<compile_context>
chip_gen: v6e
topology: v6e:2x2x1
jax: 0.10.0
libtpu: 0.0.40
codegen_flags: <defaults>
</compile_context>

<pallas_src>
import jax
import jax.numpy as jnp
from jax.experimental import pallas as pl
from jax.experimental.pallas import tpu as pltpu

EPS = 1e-5
LANES = 128
# Above v5e's 16 MiB scoped default, at/below the v6e/v7x defaults and well
# inside v7x's 64 MiB physical VMEM.
VMEM_LIMIT_BYTES = 32 * 1024 * 1024


def _round_up(v, m):
    return ((v + m - 1) // m) * m


# -----------------------------------------------------------------------------
# Kernel 1/2: conv3x3(pad=1) + bias [+ fused BN/ReLU of the previous stage]
#             + per-tile single-pass BN statistics.
# -----------------------------------------------------------------------------
def _make_conv_stats_kernel(TB, H, W, CP, apply_affine_relu, compute_dtype):
    MT = TB * H * W

    def kernel(*refs):
        if apply_affine_relu:
            x_ref, sc_ref, sh_ref, w_ref, b_ref, y_ref, st_ref, pad_ref = refs
        else:
            x_ref, w_ref, b_ref, y_ref, st_ref, pad_ref = refs

        xv = x_ref[...]                                        # (TB, H, W, CP) f32
        if apply_affine_relu:
            # Finish the previous stage's BatchNorm (global scale/shift) + ReLU,
            # fused with this stage's conv -> no extra HBM pass.
            sc = sc_ref[...].reshape(1, 1, 1, CP)
            sh = sh_ref[...].reshape(1, 1, 1, CP)
            xv = jnp.maximum(xv * sc + sh, 0.0)

        # In-kernel zero padding (spatial halo) into a VMEM scratch; replaces the
        # wrapper-side jnp.pad + HBM round trips of the previous version.
        pad_ref[...] = jnp.zeros(pad_ref.shape, pad_ref.dtype)
        pad_ref[:, 1:H + 1, 1:W + 1, :] = xv

        # conv3x3 as 9 accumulated MXU matmuls, each (MT, CP) x (CP, CP) with
        # CP a multiple of 128.  Bias folded into the accumulator init;
        # operands in compute_dtype (bf16 on v6e/v7x), accumulation in f32.
        acc = jnp.broadcast_to(b_ref[...], (MT, CP))
        for dy in range(3):
            xs = pad_ref[:, dy:dy + H, :, :].astype(compute_dtype)   # (TB,H,Wp,CP)
            for dx in range(3):
                patch = xs[:, :, dx:dx + W, :].reshape(MT, CP)
                acc = acc + jnp.dot(patch, w_ref[3 * dy + dx],
                                    preferred_element_type=jnp.float32)
        # TODO(synk): for large H*W, additionally tile rows with a +/-1-row halo
        # index_map and replace the dx value-slices with pltpu.roll to eliminate
        # the remaining in-VMEM shifted-slice copies.

        # Lane-dense (CP % 128 == 0) store of the pre-BN conv output.
        y_ref[...] = acc.reshape(TB, H, W, CP).astype(y_ref.dtype)

        # Single-pass partial BN statistics for this batch tile; combined across
        # the grid outside the kernel (Var = E[x^2] - E[x]^2, clamped there).
        st_ref[0:1, 0:1, :] = jnp.sum(acc, axis=0, keepdims=True).reshape(1, 1, CP)
        st_ref[0:1, 1:2, :] = jnp.sum(acc * acc, axis=0,
                                      keepdims=True).reshape(1, 1, CP)

    return kernel


def _conv_stats(x, w9, bias, scale, shift, *, tile_n):
    """x: (N, H, W, CP) f32 (CP-wide).  If scale/shift given, applies
    relu(x*scale+shift) before the conv.  Returns (pre-BN conv out, partial stats)."""
    N, H, W, CP = x.shape
    num_tiles = N // tile_n
    compute_dtype = w9.dtype
    apply_affine = scale is not None

    kernel = _make_conv_stats_kernel(tile_n, H, W, CP, apply_affine, compute_dtype)

    blk4 = pl.BlockSpec((tile_n, H, W, CP), lambda i: (i, 0, 0, 0))
    vec = pl.BlockSpec((1, CP), lambda i: (0, 0))
    wsp = pl.BlockSpec((9, CP, CP), lambda i: (0, 0, 0))
    stsp = pl.BlockSpec((1, 2, CP), lambda i: (i, 0, 0))

    if apply_affine:
        in_specs = [blk4, vec, vec, wsp, vec]
        args = (x, scale, shift, w9, bias)
    else:
        in_specs = [blk4, wsp, vec]
        args = (x, w9, bias)

    flops = 2 * N * H * W * CP * CP * 9
    bytes_accessed = int(x.size * x.dtype.itemsize
                         + w9.size * w9.dtype.itemsize
                         + N * H * W * CP * 4)

    return pl.pallas_call(
        kernel,
        grid=(num_tiles,),
        in_specs=in_specs,
        out_specs=(blk4, stsp),
        out_shape=(jax.ShapeDtypeStruct((N, H, W, CP), jnp.float32),
                   jax.ShapeDtypeStruct((num_tiles, 2, CP), jnp.float32)),
        scratch_shapes=[pltpu.VMEM((tile_n, H + 2, W + 2, CP), jnp.float32)],
        compiler_params=pltpu.CompilerParams(
            dimension_semantics=("parallel",),
            vmem_limit_bytes=VMEM_LIMIT_BYTES),
        cost_estimate=pl.CostEstimate(flops=flops, transcendentals=0,
                                      bytes_accessed=bytes_accessed),
    )(*args)


# -----------------------------------------------------------------------------
# Kernel 3: BN2 (global scale/shift) + residual + ReLU, lane-dense store.
# -----------------------------------------------------------------------------
def _make_finalize_kernel(CP):
    def kernel(y_ref, r_ref, sc_ref, sh_ref, o_ref):
        sc = sc_ref[...].reshape(1, 1, 1, CP)
        sh = sh_ref[...].reshape(1, 1, 1, CP)
        o_ref[...] = jnp.maximum(y_ref[...] * sc + sh + r_ref[...], 0.0)
    return kernel


def _finalize(y, resid, scale, shift, *, tile_n):
    N, H, W, CP = y.shape
    num_tiles = N // tile_n
    blk4 = pl.BlockSpec((tile_n, H, W, CP), lambda i: (i, 0, 0, 0))
    vec = pl.BlockSpec((1, CP), lambda i: (0, 0))
    return pl.pallas_call(
        _make_finalize_kernel(CP),
        grid=(num_tiles,),
        in_specs=[blk4, blk4, vec, vec],
        out_specs=blk4,
        out_shape=jax.ShapeDtypeStruct((N, H, W, CP), jnp.float32),
        compiler_params=pltpu.CompilerParams(
            dimension_semantics=("parallel",),
            vmem_limit_bytes=VMEM_LIMIT_BYTES),
        cost_estimate=pl.CostEstimate(flops=4 * N * H * W * CP, transcendentals=0,
                                      bytes_accessed=int(3 * N * H * W * CP * 4)),
    )(y, resid, scale, shift)


def _bn_scale_shift(stats, gamma, beta, count):
    """Combine per-tile (sum, sum-of-squares) partials into BN scale/shift."""
    s = jnp.sum(stats, axis=0)                       # (2, CP)
    mean = s[0] / count
    # Single-pass variance; clamp guards tiny negative values from cancellation.
    var = jnp.maximum(s[1] / count - mean * mean, 0.0)
    inv = jax.lax.rsqrt(var + EPS)
    scale = gamma * inv
    shift = beta - mean * scale
    CP = gamma.shape[0]
    return (scale.reshape(1, CP).astype(jnp.float32),
            shift.reshape(1, CP).astype(jnp.float32))


# -----------------------------------------------------------------------------
# Forward pass of ResidualBlock.
# -----------------------------------------------------------------------------
def residual_block(x_nchw, params, *, tile_n=None, matmul_dtype=jnp.bfloat16):
    """x_nchw: (N, C, H, W) float32.  Returns (N, C, H, W) float32."""
    w1, b1, g1, be1, w2, b2, g2, be2 = params
    x = jnp.transpose(x_nchw, (0, 2, 3, 1)).astype(jnp.float32)   # NCHW -> NHWC
    N, H, W, C = x.shape
    CP = _round_up(C, LANES)

    if tile_n is None:
        # Largest divisor of N whose per-step working set stays well inside VMEM.
        tile_n = 1
        per_img = (H * W * CP + (H + 2) * (W + 2) * CP) * 4 * 3
        for cand in range(N, 0, -1):
            if N % cand == 0 and cand * per_img <= VMEM_LIMIT_BYTES // 4:
                tile_n = cand
                break
    assert N % tile_n == 0, "batch must be divisible by tile_n"

    # One-time channel pad to a lane-dense multiple of 128 (no-op when
    # C % 128 == 0); reused as both the conv1 input and the residual.
    xp = jnp.pad(x, ((0, 0), (0, 0), (0, 0), (0, CP - C))) if CP != C else x

    def pack_w(w):   # HWIO (3,3,C,C) -> (9, CP, CP), zero-padded channels
        wp = jnp.zeros((3, 3, CP, CP), jnp.float32).at[:, :, :C, :C].set(w)
        return wp.reshape(9, CP, CP).astype(matmul_dtype)

    def pad_c(v):    # pad with zeros so padded channels stay exactly 0
        return jnp.pad(v, (0, CP - C)) if CP != C else v

    w1p, w2p = pack_w(w1), pack_w(w2)
    b1p = pad_c(b1).reshape(1, CP).astype(jnp.float32)
    b2p = pad_c(b2).reshape(1, CP).astype(jnp.float32)
    g1p, be1p = pad_c(g1), pad_c(be1)
    g2p, be2p = pad_c(g2), pad_c(be2)

    count = N * H * W

    # Stage 1: conv1 + bias + per-tile BN statistics.
    y1, st1 = _conv_stats(xp, w1p, b1p, None, None, tile_n=tile_n)
    sc1, sh1 = _bn_scale_shift(st1, g1p, be1p, count)

    # Stage 2: (BN1 + ReLU fused) -> conv2 + bias + per-tile BN statistics.
    y2, st2 = _conv_stats(y1, w2p, b2p, sc1, sh1, tile_n=tile_n)
    sc2, sh2 = _bn_scale_shift(st2, g2p, be2p, count)

    # Stage 3: BN2 + residual + ReLU.
    out = _finalize(y2, xp, sc2, sh2, tile_n=tile_n)

    return jnp.transpose(out[..., :C], (0, 3, 1, 2))              # NHWC -> NCHW


def init_params(key, C):
    """Deterministic synthetic init (conv weights in HWIO layout)."""
    k1, k2, k3, k4 = jax.random.split(key, 4)
    fan_in = C * 3 * 3
    bound = 1.0 / (fan_in ** 0.5)
    w1 = jax.random.uniform(k1, (3, 3, C, C), jnp.float32, -bound, bound)
    b1 = jax.random.uniform(k2, (C,), jnp.float32, -bound, bound)
    w2 = jax.random.uniform(k3, (3, 3, C, C), jnp.float32, -bound, bound)
    b2 = jax.random.uniform(k4, (C,), jnp.float32, -bound, bound)
    g1 = jnp.ones((C,), jnp.float32)
    be1 = jnp.zeros((C,), jnp.float32)
    g2 = jnp.ones((C,), jnp.float32)
    be2 = jnp.zeros((C,), jnp.float32)
    return (w1, b1, g1, be1, w2, b2, g2, be2)


def _reference(x_nchw, params):
    """Pure-JAX f32 reference (lax conv + batch-stat BN), for verification."""
    w1, b1, g1, be1, w2, b2, g2, be2 = params
    x = jnp.transpose(x_nchw, (0, 2, 3, 1))

    def conv(t, w, b):
        y = jax.lax.conv_general_dilated(
            t, w, window_strides=(1, 1), padding="SAME",
            dimension_numbers=("NHWC", "HWIO", "NHWC"))
        return y + b

    def bn(t, g, be):
        m = jnp.mean(t, axis=(0, 1, 2), keepdims=True)
        v = jnp.mean((t - m) ** 2, axis=(0, 1, 2), keepdims=True)
        return (t - m) * jax.lax.rsqrt(v + EPS) * g + be

    h = jnp.maximum(bn(conv(x, w1, b1), g1, be1), 0.0)
    o = jnp.maximum(bn(conv(h, w2, b2), g2, be2) + x, 0.0)
    return jnp.transpose(o, (0, 3, 1, 2))


if __name__ == "__main__":
    N, C, H, W = 2, 4, 16, 16
    key = jax.random.PRNGKey(0)
    kx, kp = jax.random.split(key)
    x = jax.random.normal(kx, (N, C, H, W), jnp.float32)   # NCHW, like PyTorch
    params = init_params(kp, C)

    ref = jax.block_until_ready(_reference(x, params))

    run = jax.jit(residual_block, static_argnames=("tile_n", "matmul_dtype"))

    # f32 matmul operands: tight check against the f32 reference (tile_n=1
    # exercises the multi-tile grid and the cross-tile BN-stat combine).
    out_f32 = jax.block_until_ready(
        run(x, params, tile_n=1, matmul_dtype=jnp.float32))
    assert out_f32.shape == (N, C, H, W)
    assert jnp.allclose(out_f32, ref, atol=2e-4, rtol=2e-4), "f32 path mismatch"

    # bf16 matmul operands (v6e/v7x MXU fast path), f32 accumulation.
    out_bf16 = jax.block_until_ready(
        run(x, params, tile_n=1, matmul_dtype=jnp.bfloat16))
    assert out_bf16.shape == (N, C, H, W)
    assert jnp.allclose(out_bf16, ref, atol=5e-2, rtol=5e-2), "bf16 path mismatch"

    print("KERNEL_OK")
</pallas_src>

<mosaic_0001>
module attributes {stable_mosaic.version = 11 : i64} {
  func.func @kernel(%arg0: i32, %arg1: memref<1x16x16x128xf32, #tpu.memory_space<vmem>>, %arg2: memref<1x128xf32, #tpu.memory_space<vmem>>, %arg3: memref<1x128xf32, #tpu.memory_space<vmem>>, %arg4: memref<9x128x128xf32, #tpu.memory_space<vmem>>, %arg5: memref<1x128xf32, #tpu.memory_space<vmem>>, %arg6: memref<1x16x16x128xf32, #tpu.memory_space<vmem>>, %arg7: memref<1x2x128xf32, #tpu.memory_space<vmem>>, %arg8: memref<1x18x18x128xf32, #tpu.memory_space<vmem>>) attributes {dimension_semantics = [#tpu.dimension_semantics<parallel>], iteration_bounds = array<i64: 2>, scalar_prefetch = 0 : i64, scratch_operands = 1 : i64, tpu.core_type = #tpu.core_type<tc>, window_params = [{transform_indices = @transform_0, window_bounds = array<i64: 1, 16, 16, 128>}, {pipeline_mode = #tpu.pipeline_mode<synchronous>, transform_indices = @transform_1, window_bounds = array<i64: 1, 128>}, {pipeline_mode = #tpu.pipeline_mode<synchronous>, transform_indices = @transform_2, window_bounds = array<i64: 1, 128>}, {pipeline_mode = #tpu.pipeline_mode<synchronous>, transform_indices = @transform_3, window_bounds = array<i64: 9, 128, 128>}, {pipeline_mode = #tpu.pipeline_mode<synchronous>, transform_indices = @transform_4, window_bounds = array<i64: 1, 128>}, {transform_indices = @transform_5, window_bounds = array<i64: 1, 16, 16, 128>}, {transform_indices = @transform_6, window_bounds = array<i64: 1, 2, 128>}]} {
    %c0 = arith.constant 0 : index
    %c0_0 = arith.constant 0 : index
    %c0_1 = arith.constant 0 : index
    %c0_2 = arith.constant 0 : index
    %0 = vector.load %arg1[%c0, %c0_0, %c0_1, %c0_2] : memref<1x16x16x128xf32, #tpu.memory_space<vmem>>, vector<1x16x16x128xf32>
    %c0_3 = arith.constant 0 : index
    %c0_4 = arith.constant 0 : index
    %1 = vector.load %arg2[%c0_3, %c0_4] : memref<1x128xf32, #tpu.memory_space<vmem>>, vector<1x128xf32>
    %2 = vector.shape_cast %1 : vector<1x128xf32> to vector<1x1x1x128xf32>
    %c0_5 = arith.constant 0 : index
    %c0_6 = arith.constant 0 : index
    %3 = vector.load %arg3[%c0_5, %c0_6] : memref<1x128xf32, #tpu.memory_space<vmem>>, vector<1x128xf32>
    %4 = vector.shape_cast %3 : vector<1x128xf32> to vector<1x1x1x128xf32>
    %5 = vector.broadcast %2 : vector<1x1x1x128xf32> to vector<1x16x16x128xf32>
    %6 = arith.mulf %0, %5 : vector<1x16x16x128xf32>
    %7 = vector.broadcast %4 : vector<1x1x1x128xf32> to vector<1x16x16x128xf32>
    %8 = arith.addf %6, %7 : vector<1x16x16x128xf32>
    %cst = arith.constant 0.000000e+00 : f32
    %9 = vector.broadcast %cst : f32 to vector<1x16x16x128xf32>
    %10 = arith.maximumf %8, %9 : vector<1x16x16x128xf32>
    %cst_7 = arith.constant 0.000000e+00 : f32
    %11 = vector.broadcast %cst_7 : f32 to vector<1x18x18x128xf32>
    %c0_8 = arith.constant 0 : index
    %c0_9 = arith.constant 0 : index
    %c0_10 = arith.constant 0 : index
    %c0_11 = arith.constant 0 : index
    %12 = vector.load %arg8[%c0_8, %c0_9, %c0_10, %c0_11] : memref<1x18x18x128xf32, #tpu.memory_space<vmem>>, vector<1x18x18x128xf32>
    tpu.vector_store %arg8[%c0_8, %c0_9, %c0_10, %c0_11], %11 {strides = array<i32>} : memref<1x18x18x128xf32, #tpu.memory_space<vmem>>, vector<1x18x18x128xf32>,
    %c0_12 = arith.constant 0 : index
    %c1 = arith.constant 1 : index
    %c1_13 = arith.constant 1 : index
    %c0_14 = arith.constant 0 : index
    %13 = vector.load %arg8[%c0_12, %c1, %c1_13, %c0_14] : memref<1x18x18x128xf32, #tpu.memory_space<vmem>>, vector<1x16x16x128xf32>
    tpu.vector_store %arg8[%c0_12, %c1, %c1_13, %c0_14], %10 {strides = array<i32>} : memref<1x18x18x128xf32, #tpu.memory_space<vmem>>, vector<1x16x16x128xf32>,
    %c0_15 = arith.constant 0 : index
    %c0_16 = arith.constant 0 : index
    %14 = vector.load %arg5[%c0_15, %c0_16] : memref<1x128xf32, #tpu.memory_space<vmem>>, vector<1x128xf32>
    %15 = vector.shape_cast %14 : vector<1x128xf32> to vector<1x128xf32>
    %16 = vector.broadcast %15 : vector<1x128xf32> to vector<256x128xf32>
    %c0_17 = arith.constant 0 : index
    %c0_18 = arith.constant 0 : index
    %c0_19 = arith.constant 0 : index
    %c0_20 = arith.constant 0 : index
    %17 = vector.load %arg8[%c0_17, %c0_18, %c0_19, %c0_20] : memref<1x18x18x128xf32, #tpu.memory_space<vmem>>, vector<1x16x18x128xf32>
    %18 = vector.extract_strided_slice %17 {offsets = [0, 0, 0, 0], sizes = [1, 16, 16, 128], strides = [1, 1, 1, 1]} : vector<1x16x18x128xf32> to vector<1x16x16x128xf32>
    %19 = vector.shape_cast %18 : vector<1x16x16x128xf32> to vector<256x128xf32>
    %c0_21 = arith.constant 0 : index
    %c0_22 = arith.constant 0 : index
    %c0_23 = arith.constant 0 : index
    %20 = vector.load %arg4[%c0_21, %c0_22, %c0_23] : memref<9x128x128xf32, #tpu.memory_space<vmem>>, vector<1x128x128xf32>
    %21 = vector.shape_cast %20 : vector<1x128x128xf32> to vector<128x128xf32>
    %cst_24 = arith.constant dense<0.000000e+00> : vector<256x128xf32>
    %22 = tpu.matmul %19, %21, %cst_24 {dimension_numbers = #tpu.dot_dimension_numbers<[1], [0], [0], [1], [0, 0, 1, 1], [], []>} : vector<256x128xf32>, vector<128x128xf32>, vector<256x128xf32> -> vector<256x128xf32>
    %23 = arith.addf %16, %22 : vector<256x128xf32>
    %24 = vector.extract_strided_slice %17 {offsets = [0, 0, 1, 0], sizes = [1, 16, 16, 128], strides = [1, 1, 1, 1]} : vector<1x16x18x128xf32> to vector<1x16x16x128xf32>
    %25 = vector.shape_cast %24 : vector<1x16x16x128xf32> to vector<256x128xf32>
    %c1_25 = arith.constant 1 : index
    %c0_26 = arith.constant 0 : index
    %c0_27 = arith.constant 0 : index
    %26 = vector.load %arg4[%c1_25, %c0_26, %c0_27] : memref<9x128x128xf32, #tpu.memory_space<vmem>>, vector<1x128x128xf32>
    %27 = vector.shape_cast %26 : vector<1x128x128xf32> to vector<128x128xf32>
    %cst_28 = arith.constant dense<0.000000e+00> : vector<256x128xf32>
    %28 = tpu.matmul %25, %27, %cst_28 {dimension_numbers = #tpu.dot_dimension_numbers<[1], [0], [0], [1], [0, 0, 1, 1], [], []>} : vector<256x128xf32>, vector<128x128xf32>, vector<256x128xf32> -> vector<256x128xf32>
    %29 = arith.addf %23, %28 : vector<256x128xf32>
    %30 = vector.extract_strided_slice %17 {offsets = [0, 0, 2, 0], sizes = [1, 16, 16, 128], strides = [1, 1, 1, 1]} : vector<1x16x18x128xf32> to vector<1x16x16x128xf32>
    %31 = vector.shape_cast %30 : vector<1x16x16x128xf32> to vector<256x128xf32>
    %c2 = arith.constant 2 : index
    %c0_29 = arith.constant 0 : index
    %c0_30 = arith.constant 0 : index
    %32 = vector.load %arg4[%c2, %c0_29, %c0_30] : memref<9x128x128xf32, #tpu.memory_space<vmem>>, vector<1x128x128xf32>
    %33 = vector.shape_cast %32 : vector<1x128x128xf32> to vector<128x128xf32>
    %cst_31 = arith.constant dense<0.000000e+00> : vector<256x128xf32>
    %34 = tpu.matmul %31, %33, %cst_31 {dimension_numbers = #tpu.dot_dimension_numbers<[1], [0], [0], [1], [0, 0, 1, 1], [], []>} : vector<256x128xf32>, vector<128x128xf32>, vector<256x128xf32> -> vector<256x128xf32>
    %35 = arith.addf %29, %34 : vector<256x128xf32>
    %c0_32 = arith.constant 0 : index
    %c1_33 = arith.constant 1 : index
    %c0_34 = arith.constant 0 : index
    %c0_35 = arith.constant 0 : index
    %36 = vector.load %arg8[%c0_32, %c1_33, %c0_34, %c0_35] : memref<1x18x18x128xf32, #tpu.memory_space<vmem>>, vector<1x16x18x128xf32>
    %37 = vector.extract_strided_slice %36 {offsets = [0, 0, 0, 0], sizes = [1, 16, 16, 128], strides = [1, 1, 1, 1]} : vector<1x16x18x128xf32> to vector<1x16x16x128xf32>
    %38 = vector.shape_cast %37 : vector<1x16x16x128xf32> to vector<256x128xf32>
    %c3 = arith.constant 3 : index
    %c0_36 = arith.constant 0 : index
    %c0_37 = arith.constant 0 : index
    %39 = vector.load %arg4[%c3, %c0_36, %c0_37] : memref<9x128x128xf32, #tpu.memory_space<vmem>>, vector<1x128x128xf32>
    %40 = vector.shape_cast %39 : vector<1x128x128xf32> to vector<128x128xf32>
    %cst_38 = arith.constant dense<0.000000e+00> : vector<256x128xf32>
    %41 = tpu.matmul %38, %40, %cst_38 {dimension_numbers = #tpu.dot_dimension_numbers<[1], [0], [0], [1], [0, 0, 1, 1], [], []>} : vector<256x128xf32>, vector<128x128xf32>, vector<256x128xf32> -> vector<256x128xf32>
    %42 = arith.addf %35, %41 : vector<256x128xf32>
    %43 = vector.extract_strided_slice %36 {offsets = [0, 0, 1, 0], sizes = [1, 16, 16, 128], strides = [1, 1, 1, 1]} : vector<1x16x18x128xf32> to vector<1x16x16x128xf32>
    %44 = vector.shape_cast %43 : vector<1x16x16x128xf32> to vector<256x128xf32>
    %c4 = arith.constant 4 : index
    %c0_39 = arith.constant 0 : index
    %c0_40 = arith.constant 0 : index
    %45 = vector.load %arg4[%c4, %c0_39, %c0_40] : memref<9x128x128xf32, #tpu.memory_space<vmem>>, vector<1x128x128xf32>
    %46 = vector.shape_cast %45 : vector<1x128x128xf32> to vector<128x128xf32>
    %cst_41 = arith.constant dense<0.000000e+00> : vector<256x128xf32>
    %47 = tpu.matmul %44, %46, %cst_41 {dimension_numbers = #tpu.dot_dimension_numbers<[1], [0], [0], [1], [0, 0, 1, 1], [], []>} : vector<256x128xf32>, vector<128x128xf32>, vector<256x128xf32> -> vector<256x128xf32>
    %48 = arith.addf %42, %47 : vector<256x128xf32>
    %49 = vector.extract_strided_slice %36 {offsets = [0, 0, 2, 0], sizes = [1, 16, 16, 128], strides = [1, 1, 1, 1]} : vector<1x16x18x128xf32> to vector<1x16x16x128xf32>
    %50 = vector.shape_cast %49 : vector<1x16x16x128xf32> to vector<256x128xf32>
    %c5 = arith.constant 5 : index
    %c0_42 = arith.constant 0 : index
    %c0_43 = arith.constant 0 : index
    %51 = vector.load %arg4[%c5, %c0_42, %c0_43] : memref<9x128x128xf32, #tpu.memory_space<vmem>>, vector<1x128x128xf32>
    %52 = vector.shape_cast %51 : vector<1x128x128xf32> to vector<128x128xf32>
    %cst_44 = arith.constant dense<0.000000e+00> : vector<256x128xf32>
    %53 = tpu.matmul %50, %52, %cst_44 {dimension_numbers = #tpu.dot_dimension_numbers<[1], [0], [0], [1], [0, 0, 1, 1], [], []>} : vector<256x128xf32>, vector<128x128xf32>, vector<256x128xf32> -> vector<256x128xf32>
    %54 = arith.addf %48, %53 : vector<256x128xf32>
    %c0_45 = arith.constant 0 : index
    %c2_46 = arith.constant 2 : index
    %c0_47 = arith.constant 0 : index
    %c0_48 = arith.constant 0 : index
    %55 = vector.load %arg8[%c0_45, %c2_46, %c0_47, %c0_48] : memref<1x18x18x128xf32, #tpu.memory_space<vmem>>, vector<1x16x18x128xf32>
    %56 = vector.extract_strided_slice %55 {offsets = [0, 0, 0, 0], sizes = [1, 16, 16, 128], strides = [1, 1, 1, 1]} : vector<1x16x18x128xf32> to vector<1x16x16x128xf32>
    %57 = vector.shape_cast %56 : vector<1x16x16x128xf32> to vector<256x128xf32>
    %c6 = arith.constant 6 : index
    %c0_49 = arith.constant 0 : index
    %c0_50 = arith.constant 0 : index
    %58 = vector.load %arg4[%c6, %c0_49, %c0_50] : memref<9x128x128xf32, #tpu.memory_space<vmem>>, vector<1x128x128xf32>
    %59 = vector.shape_cast %58 : vector<1x128x128xf32> to vector<128x128xf32>
    %cst_51 = arith.constant dense<0.000000e+00> : vector<256x128xf32>
    %60 = tpu.matmul %57, %59, %cst_51 {dimension_numbers = #tpu.dot_dimension_numbers<[1], [0], [0], [1], [0, 0, 1, 1], [], []>} : vector<256x128xf32>, vector<128x128xf32>, vector<256x128xf32> -> vector<256x128xf32>
    %61 = arith.addf %54, %60 : vector<256x128xf32>
    %62 = vector.extract_strided_slice %55 {offsets = [0, 0, 1, 0], sizes = [1, 16, 16, 128], strides = [1, 1, 1, 1]} : vector<1x16x18x128xf32> to vector<1x16x16x128xf32>
    %63 = vector.shape_cast %62 : vector<1x16x16x128xf32> to vector<256x128xf32>
    %c7 = arith.constant 7 : index
    %c0_52 = arith.constant 0 : index
    %c0_53 = arith.constant 0 : index
    %64 = vector.load %arg4[%c7, %c0_52, %c0_53] : memref<9x128x128xf32, #tpu.memory_space<vmem>>, vector<1x128x128xf32>
    %65 = vector.shape_cast %64 : vector<1x128x128xf32> to vector<128x128xf32>
    %cst_54 = arith.constant dense<0.000000e+00> : vector<256x128xf32>
    %66 = tpu.matmul %63, %65, %cst_54 {dimension_numbers = #tpu.dot_dimension_numbers<[1], [0], [0], [1], [0, 0, 1, 1], [], []>} : vector<256x128xf32>, vector<128x128xf32>, vector<256x128xf32> -> vector<256x128xf32>
    %67 = arith.addf %61, %66 : vector<256x128xf32>
    %68 = vector.extract_strided_slice %55 {offsets = [0, 0, 2, 0], sizes = [1, 16, 16, 128], strides = [1, 1, 1, 1]} : vector<1x16x18x128xf32> to vector<1x16x16x128xf32>
    %69 = vector.shape_cast %68 : vector<1x16x16x128xf32> to vector<256x128xf32>
    %c8 = arith.constant 8 : index
    %c0_55 = arith.constant 0 : index
    %c0_56 = arith.constant 0 : index
    %70 = vector.load %arg4[%c8, %c0_55, %c0_56] : memref<9x128x128xf32, #tpu.memory_space<vmem>>, vector<1x128x128xf32>
    %71 = vector.shape_cast %70 : vector<1x128x128xf32> to vector<128x128xf32>
    %cst_57 = arith.constant dense<0.000000e+00> : vector<256x128xf32>
    %72 = tpu.matmul %69, %71, %cst_57 {dimension_numbers = #tpu.dot_dimension_numbers<[1], [0], [0], [1], [0, 0, 1, 1], [], []>} : vector<256x128xf32>, vector<128x128xf32>, vector<256x128xf32> -> vector<256x128xf32>
    %73 = arith.addf %67, %72 : vector<256x128xf32>
    %74 = vector.shape_cast %73 : vector<256x128xf32> to vector<1x16x16x128xf32>
    %c0_58 = arith.constant 0 : index
    %c0_59 = arith.constant 0 : index
    %c0_60 = arith.constant 0 : index
    %c0_61 = arith.constant 0 : index
    %75 = vector.load %arg6[%c0_58, %c0_59, %c0_60, %c0_61] : memref<1x16x16x128xf32, #tpu.memory_space<vmem>>, vector<1x16x16x128xf32>
    tpu.vector_store %arg6[%c0_58, %c0_59, %c0_60, %c0_61], %74 {strides = array<i32>} : memref<1x16x16x128xf32, #tpu.memory_space<vmem>>, vector<1x16x16x128xf32>,
    %cst_62 = arith.constant dense<0.000000e+00> : vector<128xf32>
    %76 = vector.multi_reduction <add>, %73, %cst_62 [0] : vector<256x128xf32> to vector<128xf32>
    %77 = vector.shape_cast %76 : vector<128xf32> to vector<1x128xf32>
    %78 = vector.shape_cast %77 : vector<1x128xf32> to vector<1x1x128xf32>
    %c0_63 = arith.constant 0 : index
    %c0_64 = arith.constant 0 : index
    %c0_65 = arith.constant 0 : index
    %79 = vector.load %arg7[%c0_63, %c0_64, %c0_65] : memref<1x2x128xf32, #tpu.memory_space<vmem>>, vector<1x1x128xf32>
    tpu.vector_store %arg7[%c0_63, %c0_64, %c0_65], %78 {strides = array<i32>} : memref<1x2x128xf32, #tpu.memory_space<vmem>>, vector<1x1x128xf32>,
    %80 = arith.mulf %73, %73 : vector<256x128xf32>
    %cst_66 = arith.constant dense<0.000000e+00> : vector<128xf32>
    %81 = vector.multi_reduction <add>, %80, %cst_66 [0] : vector<256x128xf32> to vector<128xf32>
    %82 = vector.shape_cast %81 : vector<128xf32> to vector<1x128xf32>
    %83 = vector.shape_cast %82 : vector<1x128xf32> to vector<1x1x128xf32>
    %c0_67 = arith.constant 0 : index
    %c1_68 = arith.constant 1 : index
    %c0_69 = arith.constant 0 : index
    %84 = vector.load %arg7[%c0_67, %c1_68, %c0_69] : memref<1x2x128xf32, #tpu.memory_space<vmem>>, vector<1x1x128xf32>
    tpu.vector_store %arg7[%c0_67, %c1_68, %c0_69], %83 {strides = array<i32>} : memref<1x2x128xf32, #tpu.memory_space<vmem>>, vector<1x1x128xf32>,
    return
  }
  func.func @transform_0(%arg0: i32) -> (i32, i32, i32, i32) {
    %c0_i32 = arith.constant 0 : i32
    %c0_i32_0 = arith.constant 0 : i32
    %c0_i32_1 = arith.constant 0 : i32
    %c0_i32_2 = arith.constant 0 : i32
    return %arg0, %c0_i32, %c0_i32_0, %c0_i32_1 : i32, i32, i32, i32
  }
  func.func @transform_1(%arg0: i32) -> (i32, i32) {
    %c0_i32 = arith.constant 0 : i32
    %c0_i32_0 = arith.constant 0 : i32
    %c0_i32_1 = arith.constant 0 : i32
    return %c0_i32, %c0_i32_0 : i32, i32
  }
  func.func @transform_2(%arg0: i32) -> (i32, i32) {
    %c0_i32 = arith.constant 0 : i32
    %c0_i32_0 = arith.constant 0 : i32
    %c0_i32_1 = arith.constant 0 : i32
    return %c0_i32, %c0_i32_0 : i32, i32
  }
  func.func @transform_3(%arg0: i32) -> (i32, i32, i32) {
    %c0_i32 = arith.constant 0 : i32
    %c0_i32_0 = arith.constant 0 : i32
    %c0_i32_1 = arith.constant 0 : i32
    %c0_i32_2 = arith.constant 0 : i32
    return %c0_i32, %c0_i32_0, %c0_i32_1 : i32, i32, i32
  }
  func.func @transform_4(%arg0: i32) -> (i32, i32) {
    %c0_i32 = arith.constant 0 : i32
    %c0_i32_0 = arith.constant 0 : i32
    %c0_i32_1 = arith.constant 0 : i32
    return %c0_i32, %c0_i32_0 : i32, i32
  }
  func.func @transform_5(%arg0: i32) -> (i32, i32, i32, i32) {
    %c0_i32 = arith.constant 0 : i32
    %c0_i32_0 = arith.constant 0 : i32
    %c0_i32_1 = arith.constant 0 : i32
    %c0_i32_2 = arith.constant 0 : i32
    return %arg0, %c0_i32, %c0_i32_0, %c0_i32_1 : i32, i32, i32, i32
  }
  func.func @transform_6(%arg0: i32) -> (i32, i32, i32) {
    %c0_i32 = arith.constant 0 : i32
    %c0_i32_0 = arith.constant 0 : i32
    %c0_i32_1 = arith.constant 0 : i32
    return %arg0, %c0_i32, %c0_i32_0 : i32, i32, i32
  }
}

module attributes {stable_mosaic.version = 11 : i64} {
  func.func @kernel(%arg0: i32, %arg1: memref<1x16x16x128xf32, #tpu.memory_space<vmem>>, %arg2: memref<1x16x16x128xf32, #tpu.memory_space<vmem>>, %arg3: memref<1x128xf32, #tpu.memory_space<vmem>>, %arg4: memref<1x128xf32, #tpu.memory_space<vmem>>, %arg5: memref<1x16x16x128xf32, #tpu.memory_space<vmem>>) attributes {dimension_semantics = [#tpu.dimension_semantics<parallel>], iteration_bounds = array<i64: 2>, scalar_prefetch = 0 : i64, scratch_operands = 0 : i64, tpu.core_type = #tpu.core_type<tc>, window_params = [{transform_indices = @transform_0, window_bounds = array<i64: 1, 16, 16, 128>}, {transform_indices = @transform_1, window_bounds = array<i64: 1, 16, 16, 128>}, {pipeline_mode = #tpu.pipeline_mode<synchronous>, transform_indices = @transform_2, window_bounds = array<i64: 1, 128>}, {pipeline_mode = #tpu.pipeline_mode<synchronous>, transform_indices = @transform_3, window_bounds = array<i64: 1, 128>}, {transform_indices = @transform_4, window_bounds = array<i64: 1, 16, 16, 128>}]} {
    %c0 = arith.constant 0 : index
    %c0_0 = arith.constant 0 : index
    %0 = vector.load %arg3[%c0, %c0_0] : memref<1x128xf32, #tpu.memory_space<vmem>>, vector<1x128xf32>
    %1 = vector.shape_cast %0 : vector<1x128xf32> to vector<1x1x1x128xf32>
    %c0_1 = arith.constant 0 : index
    %c0_2 = arith.constant 0 : index
    %2 = vector.load %arg4[%c0_1, %c0_2] : memref<1x128xf32, #tpu.memory_space<vmem>>, vector<1x128xf32>
    %3 = vector.shape_cast %2 : vector<1x128xf32> to vector<1x1x1x128xf32>
    %c0_3 = arith.constant 0 : index
    %c0_4 = arith.constant 0 : index
    %c0_5 = arith.constant 0 : index
    %c0_6 = arith.constant 0 : index
    %4 = vector.load %arg1[%c0_3, %c0_4, %c0_5, %c0_6] : memref<1x16x16x128xf32, #tpu.memory_space<vmem>>, vector<1x16x16x128xf32>
    %5 = vector.broadcast %1 : vector<1x1x1x128xf32> to vector<1x16x16x128xf32>
    %6 = arith.mulf %4, %5 : vector<1x16x16x128xf32>
    %7 = vector.broadcast %3 : vector<1x1x1x128xf32> to vector<1x16x16x128xf32>
    %8 = arith.addf %6, %7 : vector<1x16x16x128xf32>
    %c0_7 = arith.constant 0 : index
    %c0_8 = arith.constant 0 : index
    %c0_9 = arith.constant 0 : index
    %c0_10 = arith.constant 0 : index
    %9 = vector.load %arg2[%c0_7, %c0_8, %c0_9, %c0_10] : memref<1x16x16x128xf32, #tpu.memory_space<vmem>>, vector<1x16x16x128xf32>
    %10 = arith.addf %8, %9 : vector<1x16x16x128xf32>
    %cst = arith.constant 0.000000e+00 : f32
    %11 = vector.broadcast %cst : f32 to vector<1x16x16x128xf32>
    %12 = arith.maximumf %10, %11 : vector<1x16x16x128xf32>
    %c0_11 = arith.constant 0 : index
    %c0_12 = arith.constant 0 : index
    %c0_13 = arith.constant 0 : index
    %c0_14 = arith.constant 0 : index
    %13 = vector.load %arg5[%c0_11, %c0_12, %c0_13, %c0_14] : memref<1x16x16x128xf32, #tpu.memory_space<vmem>>, vector<1x16x16x128xf32>
    tpu.vector_store %arg5[%c0_11, %c0_12, %c0_13, %c0_14], %12 {strides = array<i32>} : memref<1x16x16x128xf32, #tpu.memory_space<vmem>>, vector<1x16x16x128xf32>,
    return
  }
  func.func @transform_0(%arg0: i32) -> (i32, i32, i32, i32) {
    %c0_i32 = arith.constant 0 : i32
    %c0_i32_0 = arith.constant 0 : i32
    %c0_i32_1 = arith.constant 0 : i32
    %c0_i32_2 = arith.constant 0 : i32
    return %arg0, %c0_i32, %c0_i32_0, %c0_i32_1 : i32, i32, i32, i32
  }
  func.func @transform_1(%arg0: i32) -> (i32, i32, i32, i32) {
    %c0_i32 = arith.constant 0 : i32
    %c0_i32_0 = arith.constant 0 : i32
    %c0_i32_1 = arith.constant 0 : i32
    %c0_i32_2 = arith.constant 0 : i32
    return %arg0, %c0_i32, %c0_i32_0, %c0_i32_1 : i32, i32, i32, i32
  }
  func.func @transform_2(%arg0: i32) -> (i32, i32) {
    %c0_i32 = arith.constant 0 : i32
    %c0_i32_0 = arith.constant 0 : i32
    %c0_i32_1 = arith.constant 0 : i32
    return %c0_i32, %c0_i32_0 : i32, i32
  }
  func.func @transform_3(%arg0: i32) -> (i32, i32) {
    %c0_i32 = arith.constant 0 : i32
    %c0_i32_0 = arith.constant 0 : i32
    %c0_i32_1 = arith.constant 0 : i32
    return %c0_i32, %c0_i32_0 : i32, i32
  }
  func.func @transform_4(%arg0: i32) -> (i32, i32, i32, i32) {
    %c0_i32 = arith.constant 0 : i32
    %c0_i32_0 = arith.constant 0 : i32
    %c0_i32_1 = arith.constant 0 : i32
    %c0_i32_2 = arith.constant 0 : i32
    return %arg0, %c0_i32, %c0_i32_0, %c0_i32_1 : i32, i32, i32, i32
  }
}

module attributes {stable_mosaic.version = 11 : i64} {
  func.func @kernel(%arg0: i32, %arg1: memref<1x16x16x128xf32, #tpu.memory_space<vmem>>, %arg2: memref<9x128x128xf32, #tpu.memory_space<vmem>>, %arg3: memref<1x128xf32, #tpu.memory_space<vmem>>, %arg4: memref<1x16x16x128xf32, #tpu.memory_space<vmem>>, %arg5: memref<1x2x128xf32, #tpu.memory_space<vmem>>, %arg6: memref<1x18x18x128xf32, #tpu.memory_space<vmem>>) attributes {dimension_semantics = [#tpu.dimension_semantics<parallel>], iteration_bounds = array<i64: 2>, scalar_prefetch = 0 : i64, scratch_operands = 1 : i64, tpu.core_type = #tpu.core_type<tc>, window_params = [{transform_indices = @transform_0, window_bounds = array<i64: 1, 16, 16, 128>}, {pipeline_mode = #tpu.pipeline_mode<synchronous>, transform_indices = @transform_1, window_bounds = array<i64: 9, 128, 128>}, {pipeline_mode = #tpu.pipeline_mode<synchronous>, transform_indices = @transform_2, window_bounds = array<i64: 1, 128>}, {transform_indices = @transform_3, window_bounds = array<i64: 1, 16, 16, 128>}, {transform_indices = @transform_4, window_bounds = array<i64: 1, 2, 128>}]} {
    %c0 = arith.constant 0 : index
    %c0_0 = arith.constant 0 : index
    %c0_1 = arith.constant 0 : index
    %c0_2 = arith.constant 0 : index
    %0 = vector.load %arg1[%c0, %c0_0, %c0_1, %c0_2] : memref<1x16x16x128xf32, #tpu.memory_space<vmem>>, vector<1x16x16x128xf32>
    %cst = arith.constant 0.000000e+00 : f32
    %1 = vector.broadcast %cst : f32 to vector<1x18x18x128xf32>
    %c0_3 = arith.constant 0 : index
    %c0_4 = arith.constant 0 : index
    %c0_5 = arith.constant 0 : index
    %c0_6 = arith.constant 0 : index
    %2 = vector.load %arg6[%c0_3, %c0_4, %c0_5, %c0_6] : memref<1x18x18x128xf32, #tpu.memory_space<vmem>>, vector<1x18x18x128xf32>
    tpu.vector_store %arg6[%c0_3, %c0_4, %c0_5, %c0_6], %1 {strides = array<i32>} : memref<1x18x18x128xf32, #tpu.memory_space<vmem>>, vector<1x18x18x128xf32>,
    %c0_7 = arith.constant 0 : index
    %c1 = arith.constant 1 : index
    %c1_8 = arith.constant 1 : index
    %c0_9 = arith.constant 0 : index
    %3 = vector.load %arg6[%c0_7, %c1, %c1_8, %c0_9] : memref<1x18x18x128xf32, #tpu.memory_space<vmem>>, vector<1x16x16x128xf32>
    tpu.vector_store %arg6[%c0_7, %c1, %c1_8, %c0_9], %0 {strides = array<i32>} : memref<1x18x18x128xf32, #tpu.memory_space<vmem>>, vector<1x16x16x128xf32>,
    %c0_10 = arith.constant 0 : index
    %c0_11 = arith.constant 0 : index
    %4 = vector.load %arg3[%c0_10, %c0_11] : memref<1x128xf32, #tpu.memory_space<vmem>>, vector<1x128xf32>
    %5 = vector.shape_cast %4 : vector<1x128xf32> to vector<1x128xf32>
    %6 = vector.broadcast %5 : vector<1x128xf32> to vector<256x128xf32>
    %c0_12 = arith.constant 0 : index
    %c0_13 = arith.constant 0 : index
    %c0_14 = arith.constant 0 : index
    %c0_15 = arith.constant 0 : index
    %7 = vector.load %arg6[%c0_12, %c0_13, %c0_14, %c0_15] : memref<1x18x18x128xf32, #tpu.memory_space<vmem>>, vector<1x16x18x128xf32>
    %8 = vector.extract_strided_slice %7 {offsets = [0, 0, 0, 0], sizes = [1, 16, 16, 128], strides = [1, 1, 1, 1]} : vector<1x16x18x128xf32> to vector<1x16x16x128xf32>
    %9 = vector.shape_cast %8 : vector<1x16x16x128xf32> to vector<256x128xf32>
    %c0_16 = arith.constant 0 : index
    %c0_17 = arith.constant 0 : index
    %c0_18 = arith.constant 0 : index
    %10 = vector.load %arg2[%c0_16, %c0_17, %c0_18] : memref<9x128x128xf32, #tpu.memory_space<vmem>>, vector<1x128x128xf32>
    %11 = vector.shape_cast %10 : vector<1x128x128xf32> to vector<128x128xf32>
    %cst_19 = arith.constant dense<0.000000e+00> : vector<256x128xf32>
    %12 = tpu.matmul %9, %11, %cst_19 {dimension_numbers = #tpu.dot_dimension_numbers<[1], [0], [0], [1], [0, 0, 1, 1], [], []>} : vector<256x128xf32>, vector<128x128xf32>, vector<256x128xf32> -> vector<256x128xf32>
    %13 = arith.addf %6, %12 : vector<256x128xf32>
    %14 = vector.extract_strided_slice %7 {offsets = [0, 0, 1, 0], sizes = [1, 16, 16, 128], strides = [1, 1, 1, 1]} : vector<1x16x18x128xf32> to vector<1x16x16x128xf32>
    %15 = vector.shape_cast %14 : vector<1x16x16x128xf32> to vector<256x128xf32>
    %c1_20 = arith.constant 1 : index
    %c0_21 = arith.constant 0 : index
    %c0_22 = arith.constant 0 : index
    %16 = vector.load %arg2[%c1_20, %c0_21, %c0_22] : memref<9x128x128xf32, #tpu.memory_space<vmem>>, vector<1x128x128xf32>
    %17 = vector.shape_cast %16 : vector<1x128x128xf32> to vector<128x128xf32>
    %cst_23 = arith.constant dense<0.000000e+00> : vector<256x128xf32>
    %18 = tpu.matmul %15, %17, %cst_23 {dimension_numbers = #tpu.dot_dimension_numbers<[1], [0], [0], [1], [0, 0, 1, 1], [], []>} : vector<256x128xf32>, vector<128x128xf32>, vector<256x128xf32> -> vector<256x128xf32>
    %19 = arith.addf %13, %18 : vector<256x128xf32>
    %20 = vector.extract_strided_slice %7 {offsets = [0, 0, 2, 0], sizes = [1, 16, 16, 128], strides = [1, 1, 1, 1]} : vector<1x16x18x128xf32> to vector<1x16x16x128xf32>
    %21 = vector.shape_cast %20 : vector<1x16x16x128xf32> to vector<256x128xf32>
    %c2 = arith.constant 2 : index
    %c0_24 = arith.constant 0 : index
    %c0_25 = arith.constant 0 : index
    %22 = vector.load %arg2[%c2, %c0_24, %c0_25] : memref<9x128x128xf32, #tpu.memory_space<vmem>>, vector<1x128x128xf32>
    %23 = vector.shape_cast %22 : vector<1x128x128xf32> to vector<128x128xf32>
    %cst_26 = arith.constant dense<0.000000e+00> : vector<256x128xf32>
    %24 = tpu.matmul %21, %23, %cst_26 {dimension_numbers = #tpu.dot_dimension_numbers<[1], [0], [0], [1], [0, 0, 1, 1], [], []>} : vector<256x128xf32>, vector<128x128xf32>, vector<256x128xf32> -> vector<256x128xf32>
    %25 = arith.addf %19, %24 : vector<256x128xf32>
    %c0_27 = arith.constant 0 : index
    %c1_28 = arith.constant 1 : index
    %c0_29 = arith.constant 0 : index
    %c0_30 = arith.constant 0 : index
    %26 = vector.load %arg6[%c0_27, %c1_28, %c0_29, %c0_30] : memref<1x18x18x128xf32, #tpu.memory_space<vmem>>, vector<1x16x18x128xf32>
    %27 = vector.extract_strided_slice %26 {offsets = [0, 0, 0, 0], sizes = [1, 16, 16, 128], strides = [1, 1, 1, 1]} : vector<1x16x18x128xf32> to vector<1x16x16x128xf32>
    %28 = vector.shape_cast %27 : vector<1x16x16x128xf32> to vector<256x128xf32>
    %c3 = arith.constant 3 : index
    %c0_31 = arith.constant 0 : index
    %c0_32 = arith.constant 0 : index
    %29 = vector.load %arg2[%c3, %c0_31, %c0_32] : memref<9x128x128xf32, #tpu.memory_space<vmem>>, vector<1x128x128xf32>
    %30 = vector.shape_cast %29 : vector<1x128x128xf32> to vector<128x128xf32>
    %cst_33 = arith.constant dense<0.000000e+00> : vector<256x128xf32>
    %31 = tpu.matmul %28, %30, %cst_33 {dimension_numbers = #tpu.dot_dimension_numbers<[1], [0], [0], [1], [0, 0, 1, 1], [], []>} : vector<256x128xf32>, vector<128x128xf32>, vector<256x128xf32> -> vector<256x128xf32>
    %32 = arith.addf %25, %31 : vector<256x128xf32>
    %33 = vector.extract_strided_slice %26 {offsets = [0, 0, 1, 0], sizes = [1, 16, 16, 128], strides = [1, 1, 1, 1]} : vector<1x16x18x128xf32> to vector<1x16x16x128xf32>
    %34 = vector.shape_cast %33 : vector<1x16x16x128xf32> to vector<256x128xf32>
    %c4 = arith.constant 4 : index
    %c0_34 = arith.constant 0 : index
    %c0_35 = arith.constant 0 : index
    %35 = vector.load %arg2[%c4, %c0_34, %c0_35] : memref<9x128x128xf32, #tpu.memory_space<vmem>>, vector<1x128x128xf32>
    %36 = vector.shape_cast %35 : vector<1x128x128xf32> to vector<128x128xf32>
    %cst_36 = arith.constant dense<0.000000e+00> : vector<256x128xf32>
    %37 = tpu.matmul %34, %36, %cst_36 {dimension_numbers = #tpu.dot_dimension_numbers<[1], [0], [0], [1], [0, 0, 1, 1], [], []>} : vector<256x128xf32>, vector<128x128xf32>, vector<256x128xf32> -> vector<256x128xf32>
    %38 = arith.addf %32, %37 : vector<256x128xf32>
    %39 = vector.extract_strided_slice %26 {offsets = [0, 0, 2, 0], sizes = [1, 16, 16, 128], strides = [1, 1, 1, 1]} : vector<1x16x18x128xf32> to vector<1x16x16x128xf32>
    %40 = vector.shape_cast %39 : vector<1x16x16x128xf32> to vector<256x128xf32>
    %c5 = arith.constant 5 : index
    %c0_37 = arith.constant 0 : index
    %c0_38 = arith.constant 0 : index
    %41 = vector.load %arg2[%c5, %c0_37, %c0_38] : memref<9x128x128xf32, #tpu.memory_space<vmem>>, vector<1x128x128xf32>
    %42 = vector.shape_cast %41 : vector<1x128x128xf32> to vector<128x128xf32>
    %cst_39 = arith.constant dense<0.000000e+00> : vector<256x128xf32>
    %43 = tpu.matmul %40, %42, %cst_39 {dimension_numbers = #tpu.dot_dimension_numbers<[1], [0], [0], [1], [0, 0, 1, 1], [], []>} : vector<256x128xf32>, vector<128x128xf32>, vector<256x128xf32> -> vector<256x128xf32>
    %44 = arith.addf %38, %43 : vector<256x128xf32>
    %c0_40 = arith.constant 0 : index
    %c2_41 = arith.constant 2 : index
    %c0_42 = arith.constant 0 : index
    %c0_43 = arith.constant 0 : index
    %45 = vector.load %arg6[%c0_40, %c2_41, %c0_42, %c0_43] : memref<1x18x18x128xf32, #tpu.memory_space<vmem>>, vector<1x16x18x128xf32>
    %46 = vector.extract_strided_slice %45 {offsets = [0, 0, 0, 0], sizes = [1, 16, 16, 128], strides = [1, 1, 1, 1]} : vector<1x16x18x128xf32> to vector<1x16x16x128xf32>
    %47 = vector.shape_cast %46 : vector<1x16x16x128xf32> to vector<256x128xf32>
    %c6 = arith.constant 6 : index
    %c0_44 = arith.constant 0 : index
    %c0_45 = arith.constant 0 : index
    %48 = vector.load %arg2[%c6, %c0_44, %c0_45] : memref<9x128x128xf32, #tpu.memory_space<vmem>>, vector<1x128x128xf32>
    %49 = vector.shape_cast %48 : vector<1x128x128xf32> to vector<128x128xf32>
    %cst_46 = arith.constant dense<0.000000e+00> : vector<256x128xf32>
    %50 = tpu.matmul %47, %49, %cst_46 {dimension_numbers = #tpu.dot_dimension_numbers<[1], [0], [0], [1], [0, 0, 1, 1], [], []>} : vector<256x128xf32>, vector<128x128xf32>, vector<256x128xf32> -> vector<256x128xf32>
    %51 = arith.addf %44, %50 : vector<256x128xf32>
    %52 = vector.extract_strided_slice %45 {offsets = [0, 0, 1, 0], sizes = [1, 16, 16, 128], strides = [1, 1, 1, 1]} : vector<1x16x18x128xf32> to vector<1x16x16x128xf32>
    %53 = vector.shape_cast %52 : vector<1x16x16x128xf32> to vector<256x128xf32>
    %c7 = arith.constant 7 : index
    %c0_47 = arith.constant 0 : index
    %c0_48 = arith.constant 0 : index
    %54 = vector.load %arg2[%c7, %c0_47, %c0_48] : memref<9x128x128xf32, #tpu.memory_space<vmem>>, vector<1x128x128xf32>
    %55 = vector.shape_cast %54 : vector<1x128x128xf32> to vector<128x128xf32>
    %cst_49 = arith.constant dense<0.000000e+00> : vector<256x128xf32>
    %56 = tpu.matmul %53, %55, %cst_49 {dimension_numbers = #tpu.dot_dimension_numbers<[1], [0], [0], [1], [0, 0, 1, 1], [], []>} : vector<256x128xf32>, vector<128x128xf32>, vector<256x128xf32> -> vector<256x128xf32>
    %57 = arith.addf %51, %56 : vector<256x128xf32>
    %58 = vector.extract_strided_slice %45 {offsets = [0, 0, 2, 0], sizes = [1, 16, 16, 128], strides = [1, 1, 1, 1]} : vector<1x16x18x128xf32> to vector<1x16x16x128xf32>
    %59 = vector.shape_cast %58 : vector<1x16x16x128xf32> to vector<256x128xf32>
    %c8 = arith.constant 8 : index
    %c0_50 = arith.constant 0 : index
    %c0_51 = arith.constant 0 : index
    %60 = vector.load %arg2[%c8, %c0_50, %c0_51] : memref<9x128x128xf32, #tpu.memory_space<vmem>>, vector<1x128x128xf32>
    %61 = vector.shape_cast %60 : vector<1x128x128xf32> to vector<128x128xf32>
    %cst_52 = arith.constant dense<0.000000e+00> : vector<256x128xf32>
    %62 = tpu.matmul %59, %61, %cst_52 {dimension_numbers = #tpu.dot_dimension_numbers<[1], [0], [0], [1], [0, 0, 1, 1], [], []>} : vector<256x128xf32>, vector<128x128xf32>, vector<256x128xf32> -> vector<256x128xf32>
    %63 = arith.addf %57, %62 : vector<256x128xf32>
    %64 = vector.shape_cast %63 : vector<256x128xf32> to vector<1x16x16x128xf32>
    %c0_53 = arith.constant 0 : index
    %c0_54 = arith.constant 0 : index
    %c0_55 = arith.constant 0 : index
    %c0_56 = arith.constant 0 : index
    %65 = vector.load %arg4[%c0_53, %c0_54, %c0_55, %c0_56] : memref<1x16x16x128xf32, #tpu.memory_space<vmem>>, vector<1x16x16x128xf32>
    tpu.vector_store %arg4[%c0_53, %c0_54, %c0_55, %c0_56], %64 {strides = array<i32>} : memref<1x16x16x128xf32, #tpu.memory_space<vmem>>, vector<1x16x16x128xf32>,
    %cst_57 = arith.constant dense<0.000000e+00> : vector<128xf32>
    %66 = vector.multi_reduction <add>, %63, %cst_57 [0] : vector<256x128xf32> to vector<128xf32>
    %67 = vector.shape_cast %66 : vector<128xf32> to vector<1x128xf32>
    %68 = vector.shape_cast %67 : vector<1x128xf32> to vector<1x1x128xf32>
    %c0_58 = arith.constant 0 : index
    %c0_59 = arith.constant 0 : index
    %c0_60 = arith.constant 0 : index
    %69 = vector.load %arg5[%c0_58, %c0_59, %c0_60] : memref<1x2x128xf32, #tpu.memory_space<vmem>>, vector<1x1x128xf32>
    tpu.vector_store %arg5[%c0_58, %c0_59, %c0_60], %68 {strides = array<i32>} : memref<1x2x128xf32, #tpu.memory_space<vmem>>, vector<1x1x128xf32>,
    %70 = arith.mulf %63, %63 : vector<256x128xf32>
    %cst_61 = arith.constant dense<0.000000e+00> : vector<128xf32>
    %71 = vector.multi_reduction <add>, %70, %cst_61 [0] : vector<256x128xf32> to vector<128xf32>
    %72 = vector.shape_cast %71 : vector<128xf32> to vector<1x128xf32>
    %73 = vector.shape_cast %72 : vector<1x128xf32> to vector<1x1x128xf32>
    %c0_62 = arith.constant 0 : index
    %c1_63 = arith.constant 1 : index
    %c0_64 = arith.constant 0 : index
    %74 = vector.load %arg5[%c0_62, %c1_63, %c0_64] : memref<1x2x128xf32, #tpu.memory_space<vmem>>, vector<1x1x128xf32>
    tpu.vector_store %arg5[%c0_62, %c1_63, %c0_64], %73 {strides = array<i32>} : memref<1x2x128xf32, #tpu.memory_space<vmem>>, vector<1x1x128xf32>,
    return
  }
  func.func @transform_0(%arg0: i32) -> (i32, i32, i32, i32) {
    %c0_i32 = arith.constant 0 : i32
    %c0_i32_0 = arith.constant 0 : i32
    %c0_i32_1 = arith.constant 0 : i32
    %c0_i32_2 = arith.constant 0 : i32
    return %arg0, %c0_i32, %c0_i32_0, %c0_i32_1 : i32, i32, i32, i32
  }
  func.func @transform_1(%arg0: i32) -> (i32, i32, i32) {
    %c0_i32 = arith.constant 0 : i32
    %c0_i32_0 = arith.constant 0 : i32
    %c0_i32_1 = arith.constant 0 : i32
    %c0_i32_2 = arith.constant 0 : i32
    return %c0_i32, %c0_i32_0, %c0_i32_1 : i32, i32, i32
  }
  func.func @transform_2(%arg0: i32) -> (i32, i32) {
    %c0_i32 = arith.constant 0 : i32
    %c0_i32_0 = arith.constant 0 : i32
    %c0_i32_1 = arith.constant 0 : i32
    return %c0_i32, %c0_i32_0 : i32, i32
  }
  func.func @transform_3(%arg0: i32) -> (i32, i32, i32, i32) {
    %c0_i32 = arith.constant 0 : i32
    %c0_i32_0 = arith.constant 0 : i32
    %c0_i32_1 = arith.constant 0 : i32
    %c0_i32_2 = arith.constant 0 : i32
    return %arg0, %c0_i32, %c0_i32_0, %c0_i32_1 : i32, i32, i32, i32
  }
  func.func @transform_4(%arg0: i32) -> (i32, i32, i32) {
    %c0_i32 = arith.constant 0 : i32
    %c0_i32_0 = arith.constant 0 : i32
    %c0_i32_1 = arith.constant 0 : i32
    return %arg0, %c0_i32, %c0_i32_0 : i32, i32, i32
  }
}

</mosaic_0001>

<bundles_post_ra>
// kernel: residual_block.5
= control target key start
LH: loop header
LB: loop body
LE: loop exit
PB: predicated region body
PF: predicated region fallthrough
CT: control target
= control target key end

     0   :  { %s582_s15 = smov 0   ;;  %s783_s0 = inlined_call_operand.vmem [shape: f32[2,16,16,128], index: 0, kind: input, shape index: {}]   ;;  %s784_s1 = inlined_call_operand.vmem [shape: f32[2,16,16,128], index: 1, kind: input, shape index: {}]   ;;  %s785_s2 = inlined_call_operand.vmem [shape: f32[1,128], index: 2, kind: input, shape index: {}]   ;;  %s786_s3 = inlined_call_operand.vmem [shape: f32[1,128], index: 3, kind: input, shape index: {}]   ;;  %s787_s4 = inlined_call_operand.vmem [shape: f32[2,16,16,128], index: 4, kind: output, shape index: {}]  }
   0x1 LB: > { %s523_s16 = sadd.s32 4294967295, %s555_s15   ;;  %p527_p0 = scmp.ge.s32.totalorder %s555_s15, 1  ;;  %s555_s15 = sphi %s582_s15, %s14_s15  }
   0x2   : > { %p172_p1 = scmp.lt.s32.totalorder %s555_s15, 3 }
   0x4   : > { %p173_p2 = pnand %p527_p0, %p172_p1 }
   0x5   : > { %p203_p3 = scmp.lt.s32.totalorder (!%p173_p2), %s523_s16, 1 }
   0x6   : > { %176 = sbr.rel (%p173_p2) target bundleno = 53 (0x35), region = 36 }
   0xb   : > { %s789_s16 = smov (!%p203_p3, %s523_s16), 1  ;;  %v595_v0 = vld [vmem:[%s785_s2] ss:$0 sm:$0xff] }
   0xc   : > { %s590_s17 = sshll.u32 %s789_s16, 8  ;;  %v612_v1 = vld [vmem:[%s786_s3] ss:$0 sm:$0xff] }
   0xd   : > { %s601_s22 = scalar_lea.vmem %s783_s0, %s590_s17  ;;  %s607_s25 = scalar_lea.vmem %s784_s1, %s590_s17 }
   0xe   : > { %v220_v2 = vld [vmem:[%s601_s22] sm:$0xff]  ;;  %v221_v3 = vld [vmem:[%s601_s22 + $0x8] sm:$0xff]  ;;  %v222_v7 = vld [vmem:[%s601_s22 + $0x10] sm:$0xff]  ;;  %s643_s30 = scalar_lea.vmem %s787_s4, %s590_s17 }
   0xf   : > { %v258_v4 = vmul.f32 %v595_v0, %v220_v2  ;;  %v328_v5 = vld [vmem:[%s607_s25] sm:$0xff]  ;;  %v259_v6 = vmul.f32 %v595_v0, %v221_v3  ;;  %v329_v8 = vld [vmem:[%s607_s25 + $0x8] sm:$0xff]  ;;  %v260_v9 = vmul.f32 %v595_v0, %v222_v7  ;;  %v223_v10 = vld [vmem:[%s601_s22 + $0x18] sm:$0xff] }
  0x10   : > { %v224_v11 = vld [vmem:[%s601_s22 + $0x20] sm:$0xff]  ;;  %v330_v14 = vld [vmem:[%s607_s25 + $0x10] sm:$0xff]  ;;  %v261_v15 = vmul.f32 %v595_v0, %v223_v10  ;;  %v331_v16 = vld [vmem:[%s607_s25 + $0x18] sm:$0xff] }
  0x11   : > { %v296_v12 = vadd.f32 %v612_v1, %v258_v4  ;;  %v297_v13 = vadd.f32 %v612_v1, %v259_v6  ;;  %v262_v17 = vmul.f32 %v595_v0, %v224_v11  ;;  %v225_v18 = vld [vmem:[%s601_s22 + $0x28] sm:$0xff]  ;;  %v298_v19 = vadd.f32 %v612_v1, %v260_v9  ;;  %v332_v20 = vld [vmem:[%s607_s25 + $0x20] sm:$0xff]  ;;  %v226_v22 = vld [vmem:[%s601_s22 + $0x30] sm:$0xff] }
  0x12   : > { %v263_v21 = vmul.f32 %v595_v0, %v225_v18  ;;  %v227_v23 = vld [vmem:[%s601_s22 + $0x38] sm:$0xff]  ;;  %v299_v26 = vadd.f32 %v612_v1, %v261_v15  ;;  %v333_v28 = vld [vmem:[%s607_s25 + $0x28] sm:$0xff]  ;;  %v264_v31 = vmul.f32 %v595_v0, %v226_v22  ;;  %v228_v33 = vld [vmem:[%s601_s22 + $0x40] sm:$0xff] }
  0x13   : > { %v360_v24 = vadd.f32 %v328_v5, %v296_v12  ;;  %v361_v25 = vadd.f32 %v329_v8, %v297_v13  ;;  %v300_v27 = vadd.f32 %v612_v1, %v262_v17  ;;  %v362_v29 = vadd.f32 %v330_v14, %v298_v19  ;;  %v229_v34 = vld [vmem:[%s601_s22 + $0x48] sm:$0xff]  ;;  %v334_v39 = vld [vmem:[%s607_s25 + $0x30] sm:$0xff]  ;;  %v335_v40 = vld [vmem:[%s607_s25 + $0x38] sm:$0xff] }
  0x14   : > { %v301_v30 = vadd.f32 %v612_v1, %v263_v21  ;;  %v265_v32 = vmul.f32 %v595_v0, %v227_v23  ;;  %v363_v37 = vadd.f32 %v331_v16, %v299_v26  ;;  %v230_v41 = vld [vmem:[%s601_s22 + $0x50] sm:$0xff]  ;;  %v302_v44 = vadd.f32 %v612_v1, %v264_v31  ;;  %v231_v46 = vld [vmem:[%s601_s22 + $0x58] sm:$0xff]  ;;  %v232_v47 = vld [vmem:[%s601_s22 + $0x60] sm:$0xff] }
  0x15   : > { %v392_v35 = vmax.f32 %v360_v24, 0.0  ;;  %v393_v36 = vmax.f32 %v361_v25, 0.0  ;;  %v364_v38 = vadd.f32 %v332_v20, %v300_v27  ;;  %v394_v42 = vmax.f32 %v362_v29, 0.0  ;;  %v233_v52 = vld [vmem:[%s601_s22 + $0x68] sm:$0xff]  ;;  %v336_v56 = vld [vmem:[%s607_s25 + $0x40] sm:$0xff]  ;;  %v338_v61 = vld [vmem:[%s607_s25 + $0x50] sm:$0xff] }
  0x16   : > { %v365_v43 = vadd.f32 %v333_v28, %v301_v30  ;;  %v303_v45 = vadd.f32 %v612_v1, %v265_v32  ;;  %v395_v48 = vmax.f32 %v363_v37, 0.0  ;;  %v266_v50 = vmul.f32 %v595_v0, %v228_v33  ;;  %v337_v57 = vld [vmem:[%s607_s25 + $0x48] sm:$0xff]  ;;  %v234_v2 = vld [vmem:[%s601_s22 + $0x70] sm:$0xff]  ;;  %v235_v3 = vld [vmem:[%s601_s22 + $0x78] sm:$0xff] }
  0x17   : > { %424 = vst [vmem:[%s643_s30] sm:$0xff] %v392_v35  ;;  %425 = vst [vmem:[%s643_s30 + $0x8] sm:$0xff] %v393_v36  ;;  %v396_v49 = vmax.f32 %v364_v38, 0.0  ;;  %v267_v51 = vmul.f32 %v595_v0, %v229_v34  ;;  %v366_v54 = vadd.f32 %v334_v39, %v302_v44  ;;  %v268_v58 = vmul.f32 %v595_v0, %v230_v41  ;;  %v339_v7 = vld [vmem:[%s607_s25 + $0x58] sm:$0xff]  ;;  %v340_v8 = vld [vmem:[%s607_s25 + $0x60] sm:$0xff] }
  0x18   : > { %426 = vst [vmem:[%s643_s30 + $0x10] sm:$0xff] %v394_v42  ;;  %v397_v53 = vmax.f32 %v365_v43, 0.0  ;;  %v367_v55 = vadd.f32 %v335_v40, %v303_v45  ;;  %427 = vst [vmem:[%s643_s30 + $0x18] sm:$0xff] %v395_v48  ;;  %v304_v59 = vadd.f32 %v612_v1, %v266_v50  ;;  %v269_v62 = vmul.f32 %v595_v0, %v231_v46  ;;  %v341_v14 = vld [vmem:[%s607_s25 + $0x68] sm:$0xff]  ;;  %v236_v19 = vld [vmem:[%s601_s22 + $0x80] sm:$0xff] }
  0x19   : > { %428 = vst [vmem:[%s643_s30 + $0x20] sm:$0xff] %v396_v49  ;;  %v305_v60 = vadd.f32 %v612_v1, %v267_v51  ;;  %v270_v63 = vmul.f32 %v595_v0, %v232_v47  ;;  %v398_v4 = vmax.f32 %v366_v54, 0.0  ;;  %v306_v6 = vadd.f32 %v612_v1, %v268_v58  ;;  %v237_v20 = vld [vmem:[%s601_s22 + $0x88] sm:$0xff]  ;;  %v342_v25 = vld [vmem:[%s607_s25 + $0x70] sm:$0xff]  ;;  %v343_v26 = vld [vmem:[%s607_s25 + $0x78] sm:$0xff] }
  0x1a   : > { %429 = vst [vmem:[%s643_s30 + $0x28] sm:$0xff] %v397_v53  ;;  %v399_v5 = vmax.f32 %v367_v55, 0.0  ;;  %v271_v9 = vmul.f32 %v595_v0, %v233_v52  ;;  %v368_v10 = vadd.f32 %v336_v56, %v304_v59  ;;  %v307_v12 = vadd.f32 %v612_v1, %v269_v62  ;;  %v238_v27 = vld [vmem:[%s601_s22 + $0x90] sm:$0xff]  ;;  %v239_v32 = vld [vmem:[%s601_s22 + $0x98] sm:$0xff]  ;;  %v240_v33 = vld [vmem:[%s601_s22 + $0xa0] sm:$0xff] }
  0x1b   : > { %v369_v11 = vadd.f32 %v337_v57, %v305_v60  ;;  %v308_v13 = vadd.f32 %v612_v1, %v270_v63  ;;  %430 = vst [vmem:[%s643_s30 + $0x30] sm:$0xff] %v398_v4  ;;  %v370_v15 = vadd.f32 %v338_v61, %v306_v6  ;;  %v272_v17 = vmul.f32 %v595_v0, %v234_v2  ;;  %v241_v38 = vld [vmem:[%s601_s22 + $0xa8] sm:$0xff]  ;;  %v344_v42 = vld [vmem:[%s607_s25 + $0x80] sm:$0xff]  ;;  %v346_v47 = vld [vmem:[%s607_s25 + $0x90] sm:$0xff] }
  0x1c   : > { %431 = vst [vmem:[%s643_s30 + $0x38] sm:$0xff] %v399_v5  ;;  %v309_v16 = vadd.f32 %v612_v1, %v271_v9  ;;  %v273_v18 = vmul.f32 %v595_v0, %v235_v3  ;;  %v400_v21 = vmax.f32 %v368_v10, 0.0  ;;  %v371_v23 = vadd.f32 %v339_v7, %v307_v12  ;;  %v345_v43 = vld [vmem:[%s607_s25 + $0x88] sm:$0xff]  ;;  %v242_v50 = vld [vmem:[%s601_s22 + $0xb0] sm:$0xff]  ;;  %v243_v51 = vld [vmem:[%s601_s22 + $0xb8] sm:$0xff] }
  0x1d   : > { %v401_v22 = vmax.f32 %v369_v11, 0.0  ;;  %v372_v24 = vadd.f32 %v340_v8, %v308_v13  ;;  %v402_v28 = vmax.f32 %v370_v15, 0.0  ;;  %v310_v30 = vadd.f32 %v612_v1, %v272_v17  ;;  %v347_v55 = vld [vmem:[%s607_s25 + $0x98] sm:$0xff]  ;;  %v348_v56 = vld [vmem:[%s607_s25 + $0xa0] sm:$0xff]  ;;  %v349_v62 = vld [vmem:[%s607_s25 + $0xa8] sm:$0xff] }
  0x1e   : > { %v373_v29 = vadd.f32 %v341_v14, %v309_v16  ;;  %v311_v31 = vadd.f32 %v612_v1, %v273_v18  ;;  %432 = vst [vmem:[%s643_s30 + $0x40] sm:$0xff] %v400_v21  ;;  %v403_v34 = vmax.f32 %v371_v23, 0.0  ;;  %v274_v36 = vmul.f32 %v595_v0, %v236_v19  ;;  %v244_v5 = vld [vmem:[%s601_s22 + $0xc0] sm:$0xff]  ;;  %v245_v6 = vld [vmem:[%s601_s22 + $0xc8] sm:$0xff]  ;;  %v350_v11 = vld [vmem:[%s607_s25 + $0xb0] sm:$0xff] }
  0x1f   : > { %433 = vst [vmem:[%s643_s30 + $0x48] sm:$0xff] %v401_v22  ;;  %v404_v35 = vmax.f32 %v372_v24, 0.0  ;;  %v275_v37 = vmul.f32 %v595_v0, %v237_v20  ;;  %434 = vst [vmem:[%s643_s30 + $0x50] sm:$0xff] %v402_v28  ;;  %v374_v40 = vadd.f32 %v342_v25, %v310_v30  ;;  %v276_v44 = vmul.f32 %v595_v0, %v238_v27  ;;  %v351_v12 = vld [vmem:[%s607_s25 + $0xb8] sm:$0xff]  ;;  %v246_v13 = vld [vmem:[%s601_s22 + $0xd0] sm:$0xff] }
  0x20   : > { %v405_v39 = vmax.f32 %v373_v29, 0.0  ;;  %v375_v41 = vadd.f32 %v343_v26, %v311_v31  ;;  %435 = vst [vmem:[%s643_s30 + $0x58] sm:$0xff] %v403_v34  ;;  %v312_v45 = vadd.f32 %v612_v1, %v274_v36  ;;  %v277_v48 = vmul.f32 %v595_v0, %v239_v32  ;;  %v247_v18 = vld [vmem:[%s601_s22 + $0xd8] sm:$0xff]  ;;  %v248_v19 = vld [vmem:[%s601_s22 + $0xe0] sm:$0xff]  ;;  %v249_v24 = vld [vmem:[%s601_s22 + $0xe8] sm:$0xff] }
  0x21   : > { %436 = vst [vmem:[%s643_s30 + $0x60] sm:$0xff] %v404_v35  ;;  %v313_v46 = vadd.f32 %v612_v1, %v275_v37  ;;  %v278_v49 = vmul.f32 %v595_v0, %v240_v33  ;;  %v406_v52 = vmax.f32 %v374_v40, 0.0  ;;  %v314_v54 = vadd.f32 %v612_v1, %v276_v44  ;;  %v352_v28 = vld [vmem:[%s607_s25 + $0xc0] sm:$0xff]  ;;  %v353_v29 = vld [vmem:[%s607_s25 + $0xc8] sm:$0xff]  ;;  %v354_v33 = vld [vmem:[%s607_s25 + $0xd0] sm:$0xff] }
  0x22   : > { %437 = vst [vmem:[%s643_s30 + $0x68] sm:$0xff] %v405_v39  ;;  %v407_v53 = vmax.f32 %v375_v41, 0.0  ;;  %v279_v57 = vmul.f32 %v595_v0, %v241_v38  ;;  %v376_v58 = vadd.f32 %v344_v42, %v312_v45  ;;  %v315_v60 = vadd.f32 %v612_v1, %v277_v48  ;;  %v250_v36 = vld [vmem:[%s601_s22 + $0xf0] sm:$0xff]  ;;  %v251_v37 = vld [vmem:[%s601_s22 + $0xf8] sm:$0xff]  ;;  %v356_v42 = vld [vmem:[%s607_s25 + $0xe0] sm:$0xff] }
  0x23   : > { %v377_v59 = vadd.f32 %v345_v43, %v313_v46  ;;  %v316_v61 = vadd.f32 %v612_v1, %v278_v49  ;;  %438 = vst [vmem:[%s643_s30 + $0x70] sm:$0xff] %v406_v52  ;;  %v378_v63 = vadd.f32 %v346_v47, %v314_v54  ;;  %v280_v3 = vmul.f32 %v595_v0, %v242_v50  ;;  %v355_v41 = vld [vmem:[%s607_s25 + $0xd8] sm:$0xff]  ;;  %v357_v48 = vld [vmem:[%s607_s25 + $0xe8] sm:$0xff] }
  0x24   : > { %439 = vst [vmem:[%s643_s30 + $0x78] sm:$0xff] %v407_v53  ;;  %v317_v2 = vadd.f32 %v612_v1, %v279_v57  ;;  %v281_v4 = vmul.f32 %v595_v0, %v243_v51  ;;  %v408_v7 = vmax.f32 %v376_v58, 0.0  ;;  %v379_v9 = vadd.f32 %v347_v55, %v315_v60  ;;  %v358_v57 = vld [vmem:[%s607_s25 + $0xf0] sm:$0xff]  ;;  %v359_v58 = vld [vmem:[%s607_s25 + $0xf8] sm:$0xff] }
  0x25   : > { %v409_v8 = vmax.f32 %v377_v59, 0.0  ;;  %v380_v10 = vadd.f32 %v348_v56, %v316_v61  ;;  %v410_v14 = vmax.f32 %v378_v63, 0.0  ;;  %v318_v16 = vadd.f32 %v612_v1, %v280_v3 }
  0x26   : > { %v381_v15 = vadd.f32 %v349_v62, %v317_v2  ;;  %v319_v17 = vadd.f32 %v612_v1, %v281_v4  ;;  %440 = vst [vmem:[%s643_s30 + $0x80] sm:$0xff] %v408_v7  ;;  %v411_v20 = vmax.f32 %v379_v9, 0.0  ;;  %v282_v22 = vmul.f32 %v595_v0, %v244_v5 }
  0x27   : > { %441 = vst [vmem:[%s643_s30 + $0x88] sm:$0xff] %v409_v8  ;;  %v412_v21 = vmax.f32 %v380_v10, 0.0  ;;  %v283_v23 = vmul.f32 %v595_v0, %v245_v6  ;;  %442 = vst [vmem:[%s643_s30 + $0x90] sm:$0xff] %v410_v14  ;;  %v382_v26 = vadd.f32 %v350_v11, %v318_v16  ;;  %v284_v30 = vmul.f32 %v595_v0, %v246_v13 }
  0x28   : > { %v413_v25 = vmax.f32 %v381_v15, 0.0  ;;  %v383_v27 = vadd.f32 %v351_v12, %v319_v17  ;;  %443 = vst [vmem:[%s643_s30 + $0x98] sm:$0xff] %v411_v20  ;;  %v320_v31 = vadd.f32 %v612_v1, %v282_v22  ;;  %v285_v34 = vmul.f32 %v595_v0, %v247_v18 }
  0x29   : > { %444 = vst [vmem:[%s643_s30 + $0xa0] sm:$0xff] %v412_v21  ;;  %v321_v32 = vadd.f32 %v612_v1, %v283_v23  ;;  %v286_v35 = vmul.f32 %v595_v0, %v248_v19  ;;  %v414_v38 = vmax.f32 %v382_v26, 0.0  ;;  %v322_v40 = vadd.f32 %v612_v1, %v284_v30 }
  0x2a   : > { %445 = vst [vmem:[%s643_s30 + $0xa8] sm:$0xff] %v413_v25  ;;  %v415_v39 = vmax.f32 %v383_v27, 0.0  ;;  %v287_v43 = vmul.f32 %v595_v0, %v249_v24  ;;  %v384_v44 = vadd.f32 %v352_v28, %v320_v31  ;;  %v323_v46 = vadd.f32 %v612_v1, %v285_v34 }
  0x2b   : > { %v385_v45 = vadd.f32 %v353_v29, %v321_v32  ;;  %v324_v47 = vadd.f32 %v612_v1, %v286_v35  ;;  %446 = vst [vmem:[%s643_s30 + $0xb0] sm:$0xff] %v414_v38  ;;  %v386_v49 = vadd.f32 %v354_v33, %v322_v40  ;;  %v288_v51 = vmul.f32 %v595_v0, %v250_v36 }
  0x2c   : > { %447 = vst [vmem:[%s643_s30 + $0xb8] sm:$0xff] %v415_v39  ;;  %v325_v50 = vadd.f32 %v612_v1, %v287_v43  ;;  %v289_v52 = vmul.f32 %v595_v0, %v251_v37  ;;  %v416_v53 = vmax.f32 %v384_v44, 0.0  ;;  %v387_v55 = vadd.f32 %v355_v41, %v323_v46 }
  0x2d   : > { %v417_v54 = vmax.f32 %v385_v45, 0.0  ;;  %v388_v56 = vadd.f32 %v356_v42, %v324_v47  ;;  %v418_v59 = vmax.f32 %v386_v49, 0.0  ;;  %v326_v61 = vadd.f32 %v612_v1, %v288_v51 }
  0x2e   : > { %v389_v60 = vadd.f32 %v357_v48, %v325_v50  ;;  %v327_v62 = vadd.f32 %v612_v1, %v289_v52  ;;  %448 = vst [vmem:[%s643_s30 + $0xc0] sm:$0xff] %v416_v53  ;;  %v419_v0 = vmax.f32 %v387_v55, 0.0 }
  0x2f   : > { %449 = vst [vmem:[%s643_s30 + $0xc8] sm:$0xff] %v417_v54  ;;  %v420_v63 = vmax.f32 %v388_v56, 0.0  ;;  %450 = vst [vmem:[%s643_s30 + $0xd0] sm:$0xff] %v418_v59  ;;  %v390_v3 = vadd.f32 %v358_v57, %v326_v61 }
  0x30   : > { %v421_v2 = vmax.f32 %v389_v60, 0.0  ;;  %v391_v4 = vadd.f32 %v359_v58, %v327_v62  ;;  %451 = vst [vmem:[%s643_s30 + $0xd8] sm:$0xff] %v419_v0 }
  0x31   : > { %452 = vst [vmem:[%s643_s30 + $0xe0] sm:$0xff] %v420_v63  ;;  %v422_v5 = vmax.f32 %v390_v3, 0.0 }
  0x32   : > { %453 = vst [vmem:[%s643_s30 + $0xe8] sm:$0xff] %v421_v2  ;;  %v423_v6 = vmax.f32 %v391_v4, 0.0 }
  0x33   : > { %454 = vst [vmem:[%s643_s30 + $0xf0] sm:$0xff] %v422_v5 }
  0x34   : > { %455 = vst [vmem:[%s643_s30 + $0xf8] sm:$0xff] %v423_v6 }
  0x35 PF: > { %s14_s15 = sadd.s32 1, %s555_s15  }
  0x36   : > { %p11_p4 = scmp.ge.s32.totalorder %s14_s15, 4  }
  0x38   :  { %13 = sbr.rel (!%p11_p4) target bundleno = 1 (0x1), region = 69 }

// kernel: residual_block.4
= control target key start
LH: loop header
LB: loop body
LE: loop exit
PB: predicated region body
PF: predicated region fallthrough
CT: control target
= control target key end

     0   :  { %s5537_s21 = smov 0   ;;  %s7637_s0 = inlined_call_operand.vmem [shape: f32[2,16,16,128], index: 0, kind: input, shape index: {}]   ;;  %s7638_s1 = inlined_call_operand.vmem [shape: f32[1,128], index: 1, kind: input, shape index: {}]   ;;  %s7639_s2 = inlined_call_operand.vmem [shape: f32[1,128], index: 2, kind: input, shape index: {}]   ;;  %s7640_s3 = inlined_call_operand.vmem [shape: f32[9,128,128], index: 3, kind: input, shape index: {}]   ;;  %s7641_s4 = inlined_call_operand.vmem [shape: f32[1,128], index: 4, kind: input, shape index: {}]   ;;  %s7642_s5 = inlined_call_operand.vmem [shape: f32[2,16,16,128], index: 5, kind: output, shape index: {0}]   ;;  %s7643_s6 = inlined_call_operand.vmem [shape: f32[2,2,128], index: 6, kind: output, shape index: {1}]  }
   0x1 LB: > { %s4153_s22 = sadd.s32 4294967295, %s5499_s21   ;;  %p4157_p0 = scmp.ge.s32.totalorder %s5499_s21, 1  ;;  %s5499_s21 = sphi %s5537_s21, %s17_s21  }
   0x2   : > { %p215_p1 = scmp.lt.s32.totalorder %s5499_s21, 3 }
   0x4   : > { %p216_p2 = pnand %p4157_p0, %p215_p1 }
   0x6   : > { %219 = sbr.rel (%p216_p2) target bundleno = 565 (0x235), region = 40 }
   0xb   : > { %v562_v0 = vld [vmem:[%s7640_s3 + $0x78] sm:$0xff]  ;;  %v561_v1 = vld [vmem:[%s7640_s3 + $0x70] sm:$0xff]  ;;  %p5553_p3 = scmp.lt.s32.totalorder %s4153_s22, 1  ;;  %v5501_v2 = vmov 0.0   ;;  %v560_v3 = vld [vmem:[%s7640_s3 + $0x68] sm:$0xff]  ;;  %vm868_vm0 = vcmask 1046528  }
   0xc   : > { %5450 = vmatprep.subr.mxu1 %v562_v0  ;;  %4730 = vmatprep.subr.mxu0 %v562_v0  ;;  %429 = vst [vmem:[#allocation2 + $0xc0] sm:$0xff] %v5501_v2  ;;  %430 = vst [vmem:[#allocation2 + $0xc8] sm:$0xff] %v5501_v2  ;;  %v559_v4 = vld [vmem:[%s7640_s3 + $0x60] sm:$0xff]  ;;  %v558_v5 = vld [vmem:[%s7640_s3 + $0x58] sm:$0xff]  ;;  %vm1255_vm1 = vcmask 1045504  }
   0xd   : > { %405 = vst [vmem:[#allocation2] sm:$0xff] %v5501_v2  ;;  %407 = vst [vmem:[#allocation2 + $0x10] sm:$0x3] %v5501_v2  ;;  %5466 = vmatpush3.msra.mxu1 %v562_v0  ;;  %4731 = vmatpush3.msra.mxu0 %v562_v0  ;;  %s7856_s22 = smov (!%p5553_p3, %s4153_s22), 1  ;;  %v5634_v6 = vld [vmem:[%s7638_s1] ss:$0 sm:$0xff] }
   0xe   : > { %408 = vst [vmem:[#allocation2 + $0x18] sm:$0xff] %v5501_v2  ;;  %409 = vst [vmem:[#allocation2 + $0x20] sm:$0xff] %v5501_v2  ;;  %5451 = vmatprep.subr.mxu1 %v561_v1  ;;  %4732 = vmatprep.subr.mxu0 %v561_v1  ;;  %s4296_s8 = sshll.u32 %s7856_s22, 8  ;;  %v5640_v8 = vld [vmem:[%s7639_s2] ss:$0 sm:$0xff]  ;;  %v557_v13 = vld [vmem:[%s7640_s3 + $0x50] sm:$0xff] }
   0xf   : > { %410 = vst [vmem:[#allocation2 + $0x28] sm:$0x3] %v5501_v2  ;;  %411 = vst [vmem:[#allocation2 + $0x30] sm:$0xff] %v5501_v2  ;;  %5467 = vmatpush3.msra.mxu1 %v561_v1  ;;  %4733 = vmatpush3.msra.mxu0 %v561_v1  ;;  %s5629_s13 = scalar_lea.vmem %s7637_s0, %s4296_s8  ;;  %v556_v21 = vld [vmem:[%s7640_s3 + $0x48] sm:$0xff]  ;;  %v555_v32 = vld [vmem:[%s7640_s3 + $0x40] sm:$0xff]  ;;  %s7512_s10 = scalar_lea.vmem %s7642_s5, %s4296_s8 }
  0x10   : > { %412 = vst [vmem:[#allocation2 + $0x38] sm:$0xff] %v5501_v2  ;;  %413 = vst [vmem:[#allocation2 + $0x40] sm:$0x3] %v5501_v2  ;;  %5452 = vmatprep.subr.mxu1 %v560_v3  ;;  %4734 = vmatprep.subr.mxu0 %v560_v3  ;;  %v277_v7 = vld [vmem:[%s5629_s13 + $0x70] sm:$0xff]  ;;  %v278_v9 = vld [vmem:[%s5629_s13 + $0x78] sm:$0xff]  ;;  %s4162_s8 = sshll.u32 %s7856_s22, 1 }
  0x11   : > { %414 = vst [vmem:[#allocation2 + $0x48] sm:$0xff] %v5501_v2  ;;  %415 = vst [vmem:[#allocation2 + $0x50] sm:$0xff] %v5501_v2  ;;  %5468 = vmatpush3.msra.mxu1 %v560_v3  ;;  %4735 = vmatpush3.msra.mxu0 %v560_v3  ;;  %v317_v10 = vmul.f32 %v5634_v6, %v277_v7  ;;  %v318_v11 = vmul.f32 %v5634_v6, %v278_v9  ;;  %v279_v12 = vld [vmem:[%s5629_s13 + $0x80] sm:$0xff]  ;;  %v280_v16 = vld [vmem:[%s5629_s13 + $0x88] sm:$0xff]  ;;  %s262_s14 = scalar_lea.vmem %s7643_s6, %s4162_s8 }
  0x12   : > { %416 = vst [vmem:[#allocation2 + $0x58] sm:$0x3] %v5501_v2  ;;  %417 = vst [vmem:[#allocation2 + $0x60] sm:$0xff] %v5501_v2  ;;  %5453 = vmatprep.subr.mxu1 %v559_v4  ;;  %4736 = vmatprep.subr.mxu0 %v559_v4  ;;  %v319_v14 = vmul.f32 %v5634_v6, %v279_v12  ;;  %v263_v15 = vld [vmem:[%s5629_s13] sm:$0xff]  ;;  %v264_v20 = vld [vmem:[%s5629_s13 + $0x8] sm:$0xff]  ;;  %v320_v23 = vmul.f32 %v5634_v6, %v280_v16 }
  0x13   : > { %418 = vst [vmem:[#allocation2 + $0x68] sm:$0xff] %v5501_v2  ;;  %419 = vst [vmem:[#allocation2 + $0x70] sm:$0x3] %v5501_v2  ;;  %5469 = vmatpush3.msra.mxu1 %v559_v4  ;;  %4737 = vmatpush3.msra.mxu0 %v559_v4  ;;  %v355_v17 = vadd.f32 %v5640_v8, %v317_v10  ;;  %v356_v18 = vadd.f32 %v5640_v8, %v318_v11  ;;  %v281_v25 = vld [vmem:[%s5629_s13 + $0x90] sm:$0xff]  ;;  %v282_v31 = vld [vmem:[%s5629_s13 + $0x98] sm:$0xff] }
  0x14   : > { %420 = vst [vmem:[#allocation2 + $0x78] sm:$0xff] %v5501_v2  ;;  %421 = vst [vmem:[#allocation2 + $0x80] sm:$0xff] %v5501_v2  ;;  %5454 = vmatprep.subr.mxu1 %v558_v5  ;;  %4738 = vmatprep.subr.mxu0 %v558_v5  ;;  %v303_v19 = vmul.f32 %v5634_v6, %v263_v15  ;;  %v357_v22 = vadd.f32 %v5640_v8, %v319_v14  ;;  %v265_v30 = vld [vmem:[%s5629_s13 + $0x10] sm:$0xff]  ;;  %v266_v37 = vld [vmem:[%s5629_s13 + $0x18] sm:$0xff] }
  0x15   : > { %422 = vst [vmem:[#allocation2 + $0x88] sm:$0x3] %v5501_v2  ;;  %423 = vst [vmem:[#allocation2 + $0x90] sm:$0xff] %v5501_v2  ;;  %5470 = vmatpush3.msra.mxu1 %v558_v5  ;;  %4739 = vmatpush3.msra.mxu0 %v558_v5  ;;  %v304_v24 = vmul.f32 %v5634_v6, %v264_v20  ;;  %v387_v26 = vmax.f32 %v355_v17, 0.0  ;;  %v388_v27 = vmax.f32 %v356_v18, 0.0  ;;  %v283_v42 = vld [vmem:[%s5629_s13 + $0xa0] sm:$0xff] }
  0x16   : > { %424 = vst [vmem:[#allocation2 + $0x98] sm:$0xff] %v5501_v2  ;;  %425 = vst [vmem:[#allocation2 + $0xa0] sm:$0x3] %v5501_v2  ;;  %5455 = vmatprep.subr.mxu1 %v557_v13  ;;  %4740 = vmatprep.subr.mxu0 %v557_v13  ;;  %v341_v28 = vadd.f32 %v5640_v8, %v303_v19  ;;  %v321_v29 = vmul.f32 %v5634_v6, %v281_v25  ;;  %v389_v33 = vmax.f32 %v357_v22, 0.0  ;;  %v267_v43 = vld [vmem:[%s5629_s13 + $0x20] sm:$0xff]  ;;  %v554_v44 = vld [vmem:[%s7640_s3 + $0x38] sm:$0xff] }
  0x17   : > { %426 = vst [vmem:[#allocation2 + $0xa8] sm:$0xff] %v5501_v2  ;;  %427 = vst [vmem:[#allocation2 + $0xb0] sm:$0xff] %v5501_v2  ;;  %5471 = vmatpush3.msra.mxu1 %v557_v13  ;;  %4741 = vmatpush3.msra.mxu0 %v557_v13  ;;  %v358_v34 = vadd.f32 %v5640_v8, %v320_v23  ;;  %v342_v35 = vadd.f32 %v5640_v8, %v304_v24  ;;  %v284_v49 = vld [vmem:[%s5629_s13 + $0xa8] sm:$0xff]  ;;  %v285_v55 = vld [vmem:[%s5629_s13 + $0xb0] sm:$0xff] }
  0x18   : > { %428 = vst [vmem:[#allocation2 + $0xb8] sm:$0x3] %v5501_v2  ;;  %431 = vst [vmem:[#allocation2 + $0xd0] sm:$0x3] %v5501_v2  ;;  %v305_v36 = vmul.f32 %v5634_v6, %v265_v30  ;;  %5456 = vmatprep.subr.mxu1 %v556_v21  ;;  %4742 = vmatprep.subr.mxu0 %v556_v21  ;;  %v373_v38 = vmax.f32 %v341_v28, 0.0  ;;  %v359_v39 = vadd.f32 %v5640_v8, %v321_v29  ;;  %v268_v50 = vld [vmem:[%s5629_s13 + $0x28] sm:$0xff] }
  0x19   : > { %432 = vst [vmem:[#allocation2 + $0xd8] sm:$0xff] %v5501_v2  ;;  %433 = vst [vmem:[#allocation2 + $0xe0] sm:$0xff] %v5501_v2  ;;  %v322_v40 = vmul.f32 %v5634_v6, %v282_v31  ;;  %v306_v41 = vmul.f32 %v5634_v6, %v266_v37  ;;  %5472 = vmatpush3.msra.mxu1 %v556_v21  ;;  %4743 = vmatpush3.msra.mxu0 %v556_v21  ;;  %v390_v45 = vmax.f32 %v358_v34, 0.0  ;;  %v553_v56 = vld [vmem:[%s7640_s3 + $0x30] sm:$0xff]  ;;  %v286_v62 = vld [vmem:[%s5629_s13 + $0xb8] sm:$0xff] }
  0x1a   : > { %434 = vst [vmem:[#allocation2 + $0xe8] sm:$0x3] %v5501_v2  ;;  %435 = vst [vmem:[#allocation2 + $0xf0] sm:$0xff] %v5501_v2  ;;  %v374_v46 = vmax.f32 %v342_v35, 0.0  ;;  %v343_v47 = vadd.f32 %v5640_v8, %v305_v36  ;;  %v323_v48 = vmul.f32 %v5634_v6, %v283_v42  ;;  %5457 = vmatprep.subr.mxu1 %v555_v32  ;;  %4744 = vmatprep.subr.mxu0 %v555_v32  ;;  %v269_v61 = vld [vmem:[%s5629_s13 + $0x30] sm:$0xff]  ;;  %v270_v4 = vld [vmem:[%s5629_s13 + $0x38] sm:$0xff] }
  0x1b   : > { %436 = vst [vmem:[#allocation2 + $0xf8] sm:$0xff] %v5501_v2  ;;  %437 = vst [vmem:[#allocation2 + $0x100] sm:$0x3] %v5501_v2  ;;  %v391_v51 = vmax.f32 %v359_v39, 0.0  ;;  %v360_v52 = vadd.f32 %v5640_v8, %v322_v40  ;;  %v344_v53 = vadd.f32 %v5640_v8, %v306_v41  ;;  %v307_v54 = vmul.f32 %v5634_v6, %v267_v43  ;;  %v552_v5 = vld [vmem:[%s7640_s3 + $0x28] sm:$0xff]  ;;  %v287_v16 = vld [vmem:[%s5629_s13 + $0xc0] sm:$0xff] }
  0x1c   : > { %438 = vst [vmem:[#allocation2 + $0x108] sm:$0xff] %v5501_v2  ;;  %439 = vst [vmem:[#allocation2 + $0x110] sm:$0xff] %v5501_v2  ;;  %5473 = vmatpush3.msra.mxu1 %v555_v32  ;;  %4745 = vmatpush3.msra.mxu0 %v555_v32  ;;  %v375_v57 = vmax.f32 %v343_v47, 0.0  ;;  %v361_v58 = vadd.f32 %v5640_v8, %v323_v48  ;;  %v324_v59 = vmul.f32 %v5634_v6, %v284_v49  ;;  %v551_v17 = vld [vmem:[%s7640_s3 + $0x20] sm:$0xff]  ;;  %v550_v21 = vld [vmem:[%s7640_s3 + $0x18] sm:$0xff] }
  0x1d   : > { %440 = vst [vmem:[#allocation2 + $0x118] sm:$0x3] %v5501_v2  ;;  %441 = vst [vmem:[#allocation2 + $0x120] sm:$0xff] %v5501_v2  ;;  %v308_v60 = vmul.f32 %v5634_v6, %v268_v50  ;;  %5458 = vmatprep.subr.mxu1 %v554_v44  ;;  %4746 = vmatprep.subr.mxu0 %v554_v44  ;;  %v392_v63 = vmax.f32 %v360_v52, 0.0  ;;  %v376_v0 = vmax.f32 %v344_v53, 0.0  ;;  %v549_v28 = vld [vmem:[%s7640_s3 + $0x10] sm:$0xff] }
  0x1e   : > { %442 = vst [vmem:[#allocation2 + $0x128] sm:$0xff] %v5501_v2  ;;  %443 = vst [vmem:[#allocation2 + $0x130] sm:$0x3] %v5501_v2  ;;  %v345_v1 = vadd.f32 %v5640_v8, %v307_v54  ;;  %v325_v3 = vmul.f32 %v5634_v6, %v285_v55  ;;  %5474 = vmatpush3.msra.mxu1 %v554_v44  ;;  %4747 = vmatpush3.msra.mxu0 %v554_v44  ;;  %v393_v7 = vmax.f32 %v361_v58, 0.0  ;;  %v548_v31 = vld [vmem:[%s7640_s3 + $0x8] sm:$0xff]  ;;  %v547_v36 = vld [vmem:[%s7640_s3] sm:$0xff] }
  0x1f   : > { %444 = vst [vmem:[#allocation2 + $0x138] sm:$0xff] %v5501_v2  ;;  %445 = vst [vmem:[#allocation2 + $0x140] sm:$0xff] %v5501_v2  ;;  %v362_v9 = vadd.f32 %v5640_v8, %v324_v59  ;;  %v346_v10 = vadd.f32 %v5640_v8, %v308_v60  ;;  %v309_v11 = vmul.f32 %v5634_v6, %v269_v61  ;;  %5459 = vmatprep.subr.mxu1 %v553_v56  ;;  %v288_v34 = vld [vmem:[%s5629_s13 + $0xc8] sm:$0xff]  ;;  %v289_v39 = vld [vmem:[%s5629_s13 + $0xd0] sm:$0xff] }
  0x20   : > { %446 = vst [vmem:[#allocation2 + $0x148] sm:$0x3] %v5501_v2  ;;  %447 = vst [vmem:[#allocation2 + $0x150] sm:$0xff] %v5501_v2  ;;  %4748 = vmatprep.subr.mxu0 %v553_v56  ;;  %v377_v12 = vmax.f32 %v345_v1, 0.0  ;;  %v363_v13 = vadd.f32 %v5640_v8, %v325_v3  ;;  %v326_v14 = vmul.f32 %v5634_v6, %v286_v62  ;;  %5475 = vmatpush3.msra.mxu1 %v553_v56  ;;  %v272_v35 = vld [vmem:[%s5629_s13 + $0x48] sm:$0xff]  ;;  %v4181_v44 = vld [vmem:[%s7640_s3 + $0xf8] sm:$0xff] }
  0x21   : > { %448 = vst [vmem:[#allocation2 + $0x158] sm:$0xff] %v5501_v2  ;;  %449 = vst [vmem:[#allocation2 + $0x160] sm:$0x3] %v5501_v2  ;;  %v310_v15 = vmul.f32 %v5634_v6, %v270_v4  ;;  %4749 = vmatpush3.msra.mxu0 %v553_v56  ;;  %v394_v18 = vmax.f32 %v362_v9, 0.0  ;;  %v378_v19 = vmax.f32 %v346_v10, 0.0  ;;  %v347_v20 = vadd.f32 %v5640_v8, %v309_v11  ;;  %v290_v50 = vld [vmem:[%s5629_s13 + $0xd8] sm:$0xff] }
  0x22   : > { %450 = vst [vmem:[#allocation2 + $0x168] sm:$0xff] %v5501_v2  ;;  %451 = vst [vmem:[#allocation2 + $0x170] sm:$0xff] %v5501_v2  ;;  %5460 = vmatprep.subr.mxu1 %v552_v5  ;;  %4750 = vmatprep.subr.mxu0 %v552_v5  ;;  %v395_v22 = vmax.f32 %v363_v13, 0.0  ;;  %v327_v24 = vmul.f32 %v5634_v6, %v287_v16  ;;  %v364_v25 = vadd.f32 %v5640_v8, %v326_v14  ;;  %v291_v52 = vld [vmem:[%s5629_s13 + $0xe0] sm:$0xff]  ;;  %v4197_v53 = vld [vmem:[%s7640_s3 + $0x178] sm:$0xff] }
  0x23   : > { %452 = vst [vmem:[#allocation2 + $0x178] sm:$0x3] %v5501_v2  ;;  %453 = vst [vmem:[#allocation2 + $0x180] sm:$0xff] %v5501_v2  ;;  %5476 = vmatpush3.msra.mxu1 %v552_v5  ;;  %4751 = vmatpush3.msra.mxu0 %v552_v5  ;;  %v379_v23 = vmax.f32 %v347_v20, 0.0  ;;  %v328_v41 = vmul.f32 %v5634_v6, %v288_v34  ;;  %v312_v42 = vmul.f32 %v5634_v6, %v272_v35  ;;  %v4180_v54 = vld [vmem:[%s7640_s3 + $0xf0] sm:$0xff]  ;;  %v4179_v11 = vld [vmem:[%s7640_s3 + $0xe8] sm:$0xff] }
  0x24   : > { %454 = vst [vmem:[#allocation2 + $0x188] sm:$0xff] %v5501_v2  ;;  %455 = vst [vmem:[#allocation2 + $0x190] sm:$0x3] %v5501_v2  ;;  %5461 = vmatprep.subr.mxu1 %v551_v17  ;;  %4752 = vmatprep.subr.mxu0 %v551_v17  ;;  %v396_v29 = vmax.f32 %v364_v25, 0.0  ;;  %v365_v32 = vadd.f32 %v5640_v8, %v327_v24  ;;  %v329_v49 = vmul.f32 %v5634_v6, %v289_v39  ;;  %v4196_v1 = vld [vmem:[%s7640_s3 + $0x170] sm:$0xff]  ;;  %v4178_v20 = vld [vmem:[%s7640_s3 + $0xe0] sm:$0xff] }
  0x25   : > { %458 = vst [vmem:[#allocation2 + $0x1a8] sm:$0x3] %v5501_v2  ;;  %474 = vst [vmem:[#allocation2 + $0xc1] sm:$0xff] %v387_v26  ;;  %v348_v26 = vadd.f32 %v5640_v8, %v310_v15  ;;  %5477 = vmatpush3.msra.mxu1 %v551_v17  ;;  %4753 = vmatpush3.msra.mxu0 %v551_v17  ;;  %v366_v47 = vadd.f32 %v5640_v8, %v328_v41  ;;  %v276_v15 = vld [vmem:[%s5629_s13 + $0x68] sm:$0xff]  ;;  %v4192_v39 = vld [vmem:[%s7640_s3 + $0x150] sm:$0xff] }
  0x26   : > { %475 = vst [vmem:[#allocation2 + $0xc9] sm:$0xff] %v388_v27  ;;  %476 = vst [vmem:[#allocation2 + $0xd9] sm:$0xff] %v389_v33  ;;  %v271_v27 = vld [vmem:[%s5629_s13 + $0x40] sm:$0xff]  ;;  %5462 = vmatprep.subr.mxu1 %v550_v21  ;;  %4754 = vmatprep.subr.mxu0 %v550_v21  ;;  %v397_v37 = vmax.f32 %v365_v32, 0.0  ;;  %v350_v48 = vadd.f32 %v5640_v8, %v312_v42  ;;  %v330_v60 = vmul.f32 %v5634_v6, %v290_v50 }
  0x27   : > { %460 = vst [vmem:[#allocation2 + $0x19] sm:$0xff] %v373_v38  ;;  %477 = vst [vmem:[#allocation2 + $0xe1] sm:$0xff] %v390_v45  ;;  %v380_v30 = vmax.f32 %v348_v26, 0.0  ;;  %5478 = vmatpush3.msra.mxu1 %v550_v21  ;;  %4755 = vmatpush3.msra.mxu0 %v550_v21  ;;  %v311_v33 = vmul.f32 %v5634_v6, %v271_v27  ;;  %v273_v45 = vld [vmem:[%s5629_s13 + $0x50] sm:$0xff]  ;;  %v398_v55 = vmax.f32 %v366_v47, 0.0  ;;  %v4194_v27 = vld [vmem:[%s7640_s3 + $0x160] sm:$0xff] }
  0x28   : > { %461 = vst [vmem:[#allocation2 + $0x21] sm:$0xff] %v374_v46  ;;  %478 = vst [vmem:[#allocation2 + $0xf1] sm:$0xff] %v391_v51  ;;  %5463 = vmatprep.subr.mxu1 %v549_v28  ;;  %4756 = vmatprep.subr.mxu0 %v549_v28  ;;  %v274_v51 = vld [vmem:[%s5629_s13 + $0x58] sm:$0xff]  ;;  %v382_v56 = vmax.f32 %v350_v48, 0.0  ;;  %v313_v58 = vmul.f32 %v5634_v6, %v273_v45  ;;  %v331_v62 = vmul.f32 %v5634_v6, %v291_v52  ;;  %v4174_v47 = vld [vmem:[%s7640_s3 + $0xc0] sm:$0xff] }
  0x29   : > { %462 = vst [vmem:[#allocation2 + $0x31] sm:$0xff] %v375_v57  ;;  %479 = vst [vmem:[#allocation2 + $0xf9] sm:$0xff] %v392_v63  ;;  %5479 = vmatpush3.msra.mxu1 %v549_v28  ;;  %4757 = vmatpush3.msra.mxu0 %v549_v28  ;;  %v349_v38 = vadd.f32 %v5640_v8, %v311_v33  ;;  %v367_v57 = vadd.f32 %v5640_v8, %v329_v49  ;;  %v275_v63 = vld [vmem:[%s5629_s13 + $0x60] sm:$0xff]  ;;  %v4177_v33 = vld [vmem:[%s7640_s3 + $0xd8] sm:$0xff] }
  0x2a   : > { %463 = vst [vmem:[#allocation2 + $0x39] sm:$0xff] %v376_v0  ;;  %480 = vst [vmem:[#allocation2 + $0x109] sm:$0xff] %v393_v7  ;;  %5464 = vmatprep.subr.mxu1 %v548_v31  ;;  %4758 = vmatprep.subr.mxu0 %v548_v31  ;;  %v314_v61 = vmul.f32 %v5634_v6, %v274_v51  ;;  %v292_v0 = vld [vmem:[%s5629_s13 + $0xe8] sm:$0xff]  ;;  %v351_v7 = vadd.f32 %v5640_v8, %v313_v58  ;;  %v4190_v51 = vld [vmem:[%s7640_s3 + $0x140] sm:$0xff] }
  0x2b   : > { %464 = vst [vmem:[#allocation2 + $0x49] sm:$0xff] %v377_v12  ;;  %481 = vst [vmem:[#allocation2 + $0x111] sm:$0xff] %v394_v18  ;;  %5480 = vmatpush3.msra.mxu1 %v548_v31  ;;  %4759 = vmatpush3.msra.mxu0 %v548_v31  ;;  %v381_v46 = vmax.f32 %v349_v38, 0.0  ;;  %v399_v5 = vmax.f32 %v367_v57, 0.0  ;;  %v368_v9 = vadd.f32 %v5640_v8, %v330_v60 }
  0x2c   : > { %465 = vst [vmem:[#allocation2 + $0x51] sm:$0xff] %v378_v19  ;;  %482 = vst [vmem:[#allocation2 + $0x121] sm:$0xff] %v395_v22  ;;  %v5737_v40 = vld [vmem:[#allocation2 + $0xc0] sm:$0xff]  ;;  %5465 = vmatprep.subr.mxu1 %v547_v36  ;;  %4760 = vmatprep.subr.mxu0 %v547_v36  ;;  %v352_v10 = vadd.f32 %v5640_v8, %v314_v61  ;;  %v369_v12 = vadd.f32 %v5640_v8, %v331_v62  ;;  %v383_v17 = vmax.f32 %v351_v7, 0.0  ;;  %v4195_v19 = vld [vmem:[%s7640_s3 + $0x168] sm:$0xff] }
  0x2d   : > { %466 = vst [vmem:[#allocation2 + $0x61] sm:$0xff] %v379_v23  ;;  %483 = vst [vmem:[#allocation2 + $0x129] sm:$0xff] %v396_v29  ;;  %v5741_v43 = vld [vmem:[#allocation2 + $0xc8] sm:$0xff]  ;;  %5481 = vmatpush3.msra.mxu1 %v547_v36  ;;  %4786 = vmatprep.mubr.f32.mxu1 %v5737_v40  ;;  %v5764_v59 = vld [vmem:[#allocation2 + $0xd8] sm:$0xff]  ;;  %v315_v13 = vmul.f32 %v5634_v6, %v275_v63  ;;  %v332_v14 = vmul.f32 %v5634_v6, %v292_v0  ;;  %v400_v18 = vmax.f32 %v368_v9, 0.0 }
  0x2e   : > { %467 = vst [vmem:[#allocation2 + $0x69] sm:$0xff] %v380_v30  ;;  %484 = vst [vmem:[#allocation2 + $0x139] sm:$0xff] %v397_v37  ;;  %4761 = vmatpush3.msra.mxu0 %v547_v36  ;;  %4762 = vmatprep.mubr.f32.mxu0 %v5501_v2  ;;  %v5775_v3 = vld [vmem:[#allocation2 + $0x18] sm:$0xff]  ;;  %v5777_v4 = vld [vmem:[#allocation2 + $0xe0] sm:$0xff]  ;;  %v384_v21 = vmax.f32 %v352_v10, 0.0  ;;  %v401_v22 = vmax.f32 %v369_v12, 0.0  ;;  %v316_v26 = vmul.f32 %v5634_v6, %v276_v15 }
  0x2f   : > { %468 = vst [vmem:[#allocation2 + $0x79] sm:$0xff] %v381_v46  ;;  %4787 = vmatmul.mubr.f32.vlgmr.msra.gmra.mxu1 %v5741_v43  ;;  %4810 = vmatprep.subr.mxu1 %v4181_v44  ;;  %485 = vst [vmem:[#allocation2 + $0x141] sm:$0xff] %v398_v55  ;;  %v5790_v16 = vld [vmem:[#allocation2 + $0x20] sm:$0xff]  ;;  %v353_v23 = vadd.f32 %v5640_v8, %v315_v13  ;;  %v370_v24 = vadd.f32 %v5640_v8, %v332_v14  ;;  %v5802_v25 = vld [vmem:[#allocation2 + $0xf0] sm:$0xff]  ;;  %v909_v49 = vrot.slane %v5737_v40, 1 }
  0x30   : > { %4763 = vmatmul.mubr.f32.vlgmr.msra.gmra.mxu0 %v5501_v2  ;;  %4811 = vmatpush3.msra.mxu1 %v4181_v44  ;;  %469 = vst [vmem:[#allocation2 + $0x81] sm:$0xff] %v382_v56  ;;  %486 = vst [vmem:[#allocation2 + $0x151] sm:$0xff] %v399_v5  ;;  %v5809_v30 = vld [vmem:[#allocation2 + $0x30] sm:$0xff]  ;;  %v5811_v31 = vld [vmem:[#allocation2 + $0xf8] sm:$0xff]  ;;  %v354_v32 = vadd.f32 %v5640_v8, %v316_v26  ;;  %v910_v50 = vrot.slane %v5741_v43, 1  ;;  %v1296_v52 = vrot.slane %v5737_v40, 2 }
  0x31   : > { %4890 = vmatprep.subr.mxu0 %v4197_v53  ;;  %4812 = vmatprep.subr.mxu1 %v4180_v54  ;;  %470 = vst [vmem:[#allocation2 + $0x91] sm:$0xff] %v383_v17  ;;  %487 = vst [vmem:[#allocation2 + $0x159] sm:$0xff] %v400_v18  ;;  %v385_v28 = vmax.f32 %v353_v23, 0.0  ;;  %v402_v29 = vmax.f32 %v370_v24, 0.0  ;;  %v5818_v34 = vld [vmem:[#allocation2 + $0x38] sm:$0xff]  ;;  %v4176_v37 = vld [vmem:[%s7640_s3 + $0xd0] sm:$0xff] }
  0x32   : > { %4891 = vmatpush3.msra.mxu0 %v4197_v53  ;;  %4789 = vmatprep.mubr.f32.mxu1 %v5764_v59  ;;  %471 = vst [vmem:[#allocation2 + $0x99] sm:$0xff] %v384_v21  ;;  %488 = vst [vmem:[#allocation2 + $0x169] sm:$0xff] %v401_v22  ;;  %v386_v35 = vmax.f32 %v354_v32, 0.0  ;;  %v4193_v36 = vld [vmem:[%s7640_s3 + $0x158] sm:$0xff]  ;;  %v5828_v38 = vld [vmem:[#allocation2 + $0x108] sm:$0xff]  ;;  %v1297_v53 = vrot.slane %v5741_v43, 2  ;;  %v5893_v10 = vsel %vm868_vm0, %v909_v49, %v910_v50 }
  0x33   : > { %4813 = vmatpush3.msra.mxu1 %v4180_v54  ;;  %4892 = vmatprep.subr.mxu0 %v4196_v1  ;;  %472 = vst [vmem:[#allocation2 + $0xa9] sm:$0xff] %v385_v28  ;;  %489 = vst [vmem:[#allocation2 + $0x171] sm:$0xff] %v402_v29  ;;  %v5834_v41 = vld [vmem:[#allocation2 + $0x48] sm:$0xff]  ;;  %v5836_v42 = vld [vmem:[#allocation2 + $0x110] sm:$0xff]  ;;  %v914_v54 = vrot.slane %v5764_v59, 1  ;;  %v915_v55 = vrot.slane %v5777_v4, 1 }
  0x34   : > { %4765 = vmatprep.mubr.f32.mxu0 %v5775_v3  ;;  %4790 = vmatmul.mubr.f32.gmra.mxu1 %v5777_v4  ;;  %473 = vst [vmem:[#allocation2 + $0xb1] sm:$0xff] %v386_v35  ;;  %v4175_v44 = vld [vmem:[%s7640_s3 + $0xc8] sm:$0xff]  ;;  %v5842_v45 = vld [vmem:[#allocation2 + $0x50] sm:$0xff]  ;;  %v5852_v48 = vld [vmem:[#allocation2 + $0x120] sm:$0xff]  ;;  %v1301_v58 = vrot.slane %v5764_v59, 2  ;;  %v1302_v60 = vrot.slane %v5777_v4, 2  ;;  %v5900_v14 = vsel %vm1255_vm1, %v1296_v52, %v1297_v53 }
  0x35   : > { %4814 = vmatprep.subr.mxu1 %v4179_v11  ;;  %4893 = vmatpush3.msra.mxu0 %v4196_v1  ;;  %v4191_v46 = vld [vmem:[%s7640_s3 + $0x148] sm:$0xff]  ;;  %v5864_v56 = vld [vmem:[#allocation2 + $0x60] sm:$0xff]  ;;  %v4173_v40 = vld [vmem:[%s7640_s3 + $0xb8] sm:$0xff]  ;;  %v919_v61 = vrot.slane %v5802_v25, 1  ;;  %v1306_v62 = vrot.slane %v5802_v25, 2  ;;  %v7654_v63 = vrot.slane %v5811_v31, 1  ;;  %v5905_v15 = vsel %vm868_vm0, %v914_v54, %v915_v55 }
  0x36   : > { %4766 = vmatmul.mubr.f32.gmra.mxu0 %v5790_v16  ;;  %4815 = vmatpush3.msra.mxu1 %v4179_v11  ;;  %v5866_v57 = vld [vmem:[#allocation2 + $0x128] sm:$0xff]  ;;  %v7653_v59 = vrot.slane %v5811_v31, 2  ;;  %v924_v1 = vrot.slane %v5828_v38, 1  ;;  %v7652_v5 = vrot.slane %v5836_v42, 1  ;;  %v4189_v7 = vld [vmem:[%s7640_s3 + $0x138] sm:$0xff]  ;;  %v4172_v9 = vld [vmem:[%s7640_s3 + $0xb0] sm:$0xff]  ;;  %v5919_v22 = vsel %vm1255_vm1, %v1301_v58, %v1302_v60 }
  0x37   : > { %4894 = vmatprep.subr.mxu0 %v4195_v19  ;;  %4816 = vmatprep.subr.mxu1 %v4178_v20  ;;  %v5877_v0 = vld [vmem:[#allocation2 + $0x68] sm:$0xff]  ;;  %v1311_v11 = vrot.slane %v5828_v38, 2  ;;  %v7651_v12 = vrot.slane %v5836_v42, 2  ;;  %v538_v13 = vld [vmem:[#allocation2 + $0x138] sm:$0xff]  ;;  %v929_v17 = vrot.slane %v5852_v48, 1  ;;  %v1316_v18 = vrot.slane %v5852_v48, 2 }
  0x38   : > { %4895 = vmatpush3.msra.mxu0 %v4195_v19  ;;  %4792 = vmatprep.mubr.f32.mxu1 %v5802_v25  ;;  %v7650_v19 = vrot.slane %v5866_v57, 1  ;;  %v5914_v21 = vld [vmem:[#allocation2 + $0x140] sm:$0xff]  ;;  %v7649_v23 = vrot.slane %v5866_v57, 2  ;;  %v934_v24 = vrot.slane %v538_v13, 1  ;;  %v5922_v25 = vld [vmem:[#allocation2 + $0x78] sm:$0xff]  ;;  %v1321_v28 = vrot.slane %v538_v13, 2 }
  0x39   : > { %4817 = vmatpush3.msra.mxu1 %v4178_v20  ;;  %4896 = vmatprep.subr.mxu0 %v4194_v27  ;;  %v4188_v20 = vld [vmem:[%s7640_s3 + $0x130] sm:$0xff]  ;;  %v7648_v26 = vrot.slane %v5914_v21, 1  ;;  %v7647_v29 = vrot.slane %v5914_v21, 2  ;;  %v4171_v32 = vld [vmem:[%s7640_s3 + $0xa8] sm:$0xff]  ;;  %v5934_v35 = vld [vmem:[#allocation2 + $0x158] sm:$0xff] }
  0x3a   : > { %4768 = vmatprep.mubr.f32.mxu0 %v5809_v30  ;;  %4793 = vmatmul.mubr.f32.gmra.mxu1 %v5811_v31  ;;  %v5963_v52 = vld [vmem:[#allocation2 + $0x168] sm:$0xff]  ;;  %v5965_v54 = vld [vmem:[#allocation2 + $0x170] sm:$0xff]  ;;  %v5970_v58 = vsel %vm868_vm0, %v929_v17, %v7650_v19  ;;  %v4169_v17 = vld [vmem:[%s7640_s3 + $0x98] sm:$0xff]  ;;  %v1261_v19 = vrot.slane %v5775_v3, 2 }
  0x3b   : > { %4818 = vmatprep.subr.mxu1 %v4177_v33  ;;  %4897 = vmatpush3.msra.mxu0 %v4194_v27  ;;  %v5928_v27 = vsel %vm868_vm0, %v919_v61, %v7654_v63  ;;  %v7644_v61 = vrot.slane %v5965_v54, 2  ;;  %v4223_v63 = vld [vmem:[%s7640_s3 + $0x248] sm:$0xff]  ;;  %v4204_v43 = vld [vmem:[%s7640_s3 + $0x1b0] sm:$0xff] }
  0x3c   : > { %4769 = vmatmul.mubr.f32.gmra.mxu0 %v5818_v34  ;;  %4819 = vmatpush3.msra.mxu1 %v4177_v33  ;;  %v541_v33 = vld [vmem:[#allocation2 + $0x150] sm:$0xff]  ;;  %v4203_v4 = vld [vmem:[%s7640_s3 + $0x1a8] sm:$0xff] }
  0x3d   : > { %4898 = vmatprep.subr.mxu0 %v4193_v36  ;;  %4820 = vmatprep.subr.mxu1 %v4176_v37  ;;  %v1326_v49 = vrot.slane %v541_v33, 2 }
  0x3e   : > { %4899 = vmatpush3.msra.mxu0 %v4193_v36  ;;  %4795 = vmatprep.mubr.f32.mxu1 %v5828_v38  ;;  %v5939_v36 = vsel %vm1255_vm1, %v1306_v62, %v7653_v59  ;;  %v5946_v38 = vld [vmem:[#allocation2 + $0x80] sm:$0xff]  ;;  %v5977_v62 = vsel %vm1255_vm1, %v1316_v18, %v7649_v23  ;;  %v879_v59 = vrot.slane %v5809_v30, 1 }
  0x3f   : > { %4821 = vmatpush3.msra.mxu1 %v4176_v37  ;;  %4900 = vmatprep.subr.mxu0 %v4192_v39  ;;  %v5944_v37 = vsel %vm868_vm0, %v924_v1, %v7652_v5  ;;  %v5982_v1 = vsel %vm868_vm0, %v934_v24, %v7648_v26 }
  0x40   : > { %4771 = vmatprep.mubr.f32.mxu0 %v5834_v41  ;;  %4796 = vmatmul.mubr.f32.gmra.mxu1 %v5836_v42 }
  0x41   : > { %4822 = vmatprep.subr.mxu1 %v4175_v44  ;;  %4901 = vmatpush3.msra.mxu0 %v4192_v39  ;;  %v4187_v39 = vld [vmem:[%s7640_s3 + $0x128] sm:$0xff] }
  0x42   : > { %4772 = vmatmul.mubr.f32.gmra.mxu0 %v5842_v45  ;;  %4823 = vmatpush3.msra.mxu1 %v4175_v44  ;;  %v939_v44 = vrot.slane %v541_v33, 1 }
  0x43   : > { %4902 = vmatprep.subr.mxu0 %v4191_v46  ;;  %4824 = vmatprep.subr.mxu1 %v4174_v47 }
  0x44   : > { %4903 = vmatpush3.msra.mxu0 %v4191_v46  ;;  %4798 = vmatprep.mubr.f32.mxu1 %v5852_v48  ;;  %v7646_v46 = vrot.slane %v5934_v35, 1  ;;  %v4170_v48 = vld [vmem:[%s7640_s3 + $0xa0] sm:$0xff] }
  0x45   : > { %4825 = vmatpush3.msra.mxu1 %v4174_v47  ;;  %4904 = vmatprep.subr.mxu0 %v4190_v51  ;;  %v5955_v47 = vsel %vm1255_vm1, %v1311_v11, %v7651_v12  ;;  %v5993_v11 = vld [vmem:[#allocation2 + $0x90] sm:$0xff] }
  0x46   : > { %4774 = vmatprep.mubr.f32.mxu0 %v5864_v56  ;;  %4799 = vmatmul.mubr.f32.gmra.mxu1 %v5866_v57 }
  0x47   : > { %4826 = vmatprep.subr.mxu1 %v4173_v40  ;;  %4905 = vmatpush3.msra.mxu0 %v4190_v51  ;;  %v7645_v51 = vrot.slane %v5934_v35, 2 }
  0x48   : > { %4775 = vmatmul.mubr.f32.gmra.mxu0 %v5877_v0  ;;  %4827 = vmatpush3.msra.mxu1 %v4173_v40  ;;  %v1331_v40 = vrot.slane %v5963_v52, 2 }
  0x49   : > { %4906 = vmatprep.subr.mxu0 %v4189_v7  ;;  %4828 = vmatprep.subr.mxu1 %v4172_v9  ;;  %v6006_v18 = vsel %vm1255_vm1, %v1326_v49, %v7645_v51  ;;  %v4167_v49 = vld [vmem:[%s7640_s3 + $0x88] sm:$0xff] }
  0x4a   : > { %4907 = vmatpush3.msra.mxu0 %v4189_v7  ;;  %4801 = vmatprep.mubr.f32.mxu1 %v538_v13  ;;  %v4186_v7 = vld [vmem:[%s7640_s3 + $0x120] sm:$0xff]  ;;  %v5998_v13 = vsel %vm868_vm0, %v939_v44, %v7646_v46  ;;  %v6013_v24 = vsel %vm1255_vm1, %v1331_v40, %v7644_v61  ;;  %v6027_v44 = vld [vmem:[#allocation2 + $0xa8] sm:$0xff]  ;;  %v6034_v40 = vld [vmem:[#allocation2 + $0xb0] sm:$0xff]  ;;  %v874_v46 = vrot.slane %v5775_v3, 1 }
  0x4b   : > { %4829 = vmatpush3.msra.mxu1 %v4172_v9  ;;  %4908 = vmatprep.subr.mxu0 %v4188_v20  ;;  %v5991_v9 = vsel %vm1255_vm1, %v1321_v28, %v7647_v29  ;;  %v4185_v28 = vld [vmem:[%s7640_s3 + $0x118] sm:$0xff]  ;;  %v4166_v61 = vld [vmem:[%s7640_s3 + $0x80] sm:$0xff]  ;;  %v504_v51 = vld [vmem:[#allocation2 + $0x28] sm:$0x3] }
  0x4c   : > { %4777 = vmatprep.mubr.f32.mxu0 %v5922_v25  ;;  %4802 = vmatmul.mubr.f32.gmra.mxu1 %v5914_v21  ;;  %v4182_v29 = vld [vmem:[%s7640_s3 + $0x100] sm:$0xff]  ;;  %v877_v23 = vrot.slane %v504_v51, 1  ;;  %v1264_v5 = vrot.slane %v504_v51, 2  ;;  %v4229_v3 = vld [vmem:[%s7640_s3 + $0x278] sm:$0xff]  ;;  %v1267_v51 = vrot.slane %v5818_v34, 2 }
  0x4d   : > { %4830 = vmatprep.subr.mxu1 %v4171_v32  ;;  %4909 = vmatpush3.msra.mxu0 %v4188_v20  ;;  %v6008_v20 = vld [vmem:[#allocation2 + $0x98] sm:$0xff] }
  0x4e   : > { %4778 = vmatmul.mubr.f32.gmra.mxu0 %v5946_v38  ;;  %4831 = vmatpush3.msra.mxu1 %v4171_v32  ;;  %v4168_v32 = vld [vmem:[%s7640_s3 + $0x90] sm:$0xff] }
  0x4f   : > { %4910 = vmatprep.subr.mxu0 %v4187_v39  ;;  %4832 = vmatprep.subr.mxu1 %v4170_v48 }
  0x50   : > { %4911 = vmatpush3.msra.mxu0 %v4187_v39  ;;  %4804 = vmatprep.mubr.f32.mxu1 %v541_v33  ;;  %v4184_v33 = vld [vmem:[%s7640_s3 + $0x110] sm:$0xff] }
  0x51   : > { %4833 = vmatpush3.msra.mxu1 %v4170_v48  ;;  %4912 = vmatprep.subr.mxu0 %v4186_v7  ;;  %v501_v39 = vld [vmem:[#allocation2 + $0x10] sm:$0x3]  ;;  %v869_v48 = vrot.slane %v5501_v2, 1 }
  0x52   : > { %4780 = vmatprep.mubr.f32.mxu0 %v5993_v11  ;;  %4805 = vmatmul.mubr.f32.gmra.mxu1 %v5934_v35 }
  0x53   : > { %4834 = vmatprep.subr.mxu1 %v4169_v17  ;;  %4913 = vmatpush3.msra.mxu0 %v4186_v7  ;;  %v872_v7 = vrot.slane %v501_v39, 1 }
  0x54   : > { %4781 = vmatmul.mubr.f32.gmra.mxu0 %v6008_v20  ;;  %4835 = vmatpush3.msra.mxu1 %v4169_v17  ;;  %v1256_v17 = vrot.slane %v5501_v2, 2  ;;  %v875_v2 = vrot.slane %v5790_v16, 1 }
  0x55   : > { %4914 = vmatprep.subr.mxu0 %v4185_v28  ;;  %4836 = vmatprep.subr.mxu1 %v4168_v32  ;;  %v873_v26 = vsel %vm868_vm0, %v869_v48, %v872_v7  ;;  %v880_v7 = vrot.slane %v5818_v34, 1  ;;  %v4228_v34 = vld [vmem:[%s7640_s3 + $0x270] sm:$0xff] }
  0x56   : > { %4915 = vmatpush3.msra.mxu0 %v4185_v28  ;;  %4807 = vmatprep.mubr.f32.mxu1 %v5963_v52  ;;  %v4183_v28 = vld [vmem:[%s7640_s3 + $0x108] sm:$0xff] }
  0x57   : > { %4837 = vmatpush3.msra.mxu1 %v4168_v32  ;;  %4916 = vmatprep.subr.mxu0 %v4184_v33  ;;  %v1259_v32 = vrot.slane %v501_v39, 2  ;;  %v4213_v39 = vld [vmem:[%s7640_s3 + $0x1f8] sm:$0xff] }
  0x58   : > { %4783 = vmatprep.mubr.f32.mxu0 %v6027_v44  ;;  %4808 = vmatmul.mubr.f32.gmra.mxu1 %v5965_v54 }
  0x59   : > { %4838 = vmatprep.subr.mxu1 %v4167_v49  ;;  %4917 = vmatpush3.msra.mxu0 %v4184_v33  ;;  %v1262_v33 = vrot.slane %v5790_v16, 2  ;;  %v1260_v12 = vsel %vm1255_vm1, %v1256_v17, %v1259_v32  ;;  %v876_v16 = vsel %vm868_vm0, %v874_v46, %v875_v2  ;;  %v510_v32 = vld [vmem:[#allocation2 + $0x58] sm:$0x3] }
  0x5a   : > { %4784 = vmatmul.mubr.f32.gmra.mxu0 %v6034_v40  ;;  %4839 = vmatpush3.msra.mxu1 %v4167_v49  ;;  %v507_v49 = vld [vmem:[#allocation2 + $0x40] sm:$0x3] }
  0x5b   : > { %4918 = vmatprep.subr.mxu0 %v4183_v28  ;;  %4840 = vmatprep.subr.mxu1 %v4166_v61  ;;  %v1265_v46 = vsel %vm1255_vm1, %v1262_v33, %v1264_v5  ;;  %v4211_v5 = vld [vmem:[%s7640_s3 + $0x1e8] sm:$0xff] }
  0x5c   : > { %4919 = vmatpush3.msra.mxu0 %v4183_v28  ;;  %4841 = vmatpush3.msra.mxu1 %v4166_v61  ;;  %v878_v61 = vsel %vm868_vm0, %v875_v2, %v877_v23  ;;  %v1266_v28 = vrot.slane %v5809_v30, 2  ;;  %v884_v23 = vrot.slane %v5834_v41, 1  ;;  %v885_v30 = vrot.slane %v5842_v45, 1 }
  0x5d   : > { %4842 = vmatprep.mubr.f32.mxu1 %v869_v48  ;;  %4920 = vmatprep.subr.mxu0 %v4182_v29  ;;  %v882_v48 = vrot.slane %v507_v49, 1  ;;  %v887_v2 = vrot.slane %v510_v32, 1 }
  0x5e   : > { %4843 = vmatmul.mubr.f32.vlgmr.msra.gmra.mxu1 %v873_v26  ;;  %4921 = vmatpush3.msra.mxu0 %v4182_v29  ;;  %v1263_v26 = vsel %vm1255_vm1, %v1261_v19, %v1262_v33  ;;  %v4212_v29 = vld [vmem:[%s7640_s3 + $0x1f0] sm:$0xff]  ;;  %v1271_v33 = vrot.slane %v5834_v41, 2  ;;  %v4227_v41 = vld [vmem:[%s7640_s3 + $0x268] sm:$0xff] }
  0x5f   : > { %4922 = vmatprep.mubr.f32.mxu0 %v1256_v17  ;;  %4970 = vmatprep.subr.mxu1 %v4213_v39  ;;  %v1269_v17 = vrot.slane %v507_v49, 2  ;;  %v883_v19 = vsel %vm868_vm0, %v880_v7, %v882_v48  ;;  %v1268_v49 = vsel %vm1255_vm1, %v1266_v28, %v1267_v51  ;;  %v889_v48 = vrot.slane %v5864_v56, 1 }
  0x60   : > { %4923 = vmatmul.mubr.f32.vlgmr.msra.gmra.mxu0 %v1260_v12  ;;  %4971 = vmatpush3.msra.mxu1 %v4213_v39  ;;  %v881_v12 = vsel %vm868_vm0, %v879_v59, %v880_v7  ;;  %v1272_v39 = vrot.slane %v5842_v45, 2  ;;  %v294_v59 = vld [vmem:[%s5629_s13 + $0xf8] sm:$0xff]  ;;  %v886_v45 = vsel %vm868_vm0, %v884_v23, %v885_v30  ;;  %v888_v28 = vsel %vm868_vm0, %v885_v30, %v887_v2  ;;  %v4210_v23 = vld [vmem:[%s7640_s3 + $0x1e0] sm:$0xff] }
  0x61   : > { %5050 = vmatprep.subr.mxu0 %v4229_v3  ;;  %4845 = vmatprep.mubr.f32.mxu1 %v876_v16  ;;  %v293_v16 = vld [vmem:[%s5629_s13 + $0xf0] sm:$0xff]  ;;  %v1270_v7 = vsel %vm1255_vm1, %v1267_v51, %v1269_v17  ;;  %v6101_v17 = vrot.slane %v5877_v0, 2 }
  0x62   : > { %5051 = vmatpush3.msra.mxu0 %v4229_v3  ;;  %4846 = vmatmul.mubr.f32.gmra.mxu1 %v878_v61  ;;  %v513_v3 = vld [vmem:[#allocation2 + $0x70] sm:$0x3]  ;;  %v1274_v61 = vrot.slane %v510_v32, 2  ;;  %v333_v51 = vmul.f32 %v5634_v6, %v293_v16  ;;  %v334_v32 = vmul.f32 %v5634_v6, %v294_v59 }
  0x63   : > { %4925 = vmatprep.mubr.f32.mxu0 %v1263_v26  ;;  %4972 = vmatprep.subr.mxu1 %v4212_v29  ;;  %v6090_v26 = vrot.slane %v5877_v0, 1 }
  0x64   : > { %4926 = vmatmul.mubr.f32.gmra.mxu0 %v1265_v46  ;;  %4973 = vmatpush3.msra.mxu1 %v4212_v29  ;;  %v892_v29 = vrot.slane %v513_v3, 1  ;;  %v1276_v46 = vrot.slane %v5864_v56, 2  ;;  %v1275_v30 = vsel %vm1255_vm1, %v1272_v39, %v1274_v61  ;;  %v371_v6 = vadd.f32 %v5640_v8, %v333_v51 }
  0x65   : > { %5052 = vmatprep.subr.mxu0 %v4228_v34  ;;  %4848 = vmatprep.mubr.f32.mxu1 %v881_v12  ;;  %v516_v12 = vld [vmem:[#allocation2 + $0x88] sm:$0x3]  ;;  %v372_v2 = vadd.f32 %v5640_v8, %v334_v32  ;;  %v6119_v16 = vsel %vm868_vm0, %v889_v48, %v6090_v26  ;;  %v6125_v61 = vrot.slane %v5946_v38, 2  ;;  %v4209_v48 = vld [vmem:[%s7640_s3 + $0x1d8] sm:$0xff]  ;;  %v899_v51 = vrot.slane %v5993_v11, 1 }
  0x66   : > { %5053 = vmatpush3.msra.mxu0 %v4228_v34  ;;  %4849 = vmatmul.mubr.f32.gmra.mxu1 %v883_v19  ;;  %v1273_v34 = vsel %vm1255_vm1, %v1271_v33, %v1272_v39  ;;  %v1279_v19 = vrot.slane %v513_v3, 2  ;;  %v4226_v33 = vld [vmem:[%s7640_s3 + $0x260] sm:$0xff]  ;;  %v893_v8 = vsel %vm868_vm0, %v6090_v26, %v892_v29  ;;  %v897_v39 = vrot.slane %v516_v12, 1 }
  0x67   : > { %4928 = vmatprep.mubr.f32.mxu0 %v1268_v49  ;;  %4974 = vmatprep.subr.mxu1 %v4211_v5  ;;  %v894_v49 = vrot.slane %v5922_v25, 1  ;;  %v403_v3 = vmax.f32 %v371_v6, 0.0  ;;  %v404_v59 = vmax.f32 %v372_v2, 0.0  ;;  %v1284_v29 = vrot.slane %v516_v12, 2  ;;  %v4208_v2 = vld [vmem:[%s7640_s3 + $0x1d0] sm:$0xff] }
  0x68   : > { %4929 = vmatmul.mubr.f32.gmra.mxu0 %v1270_v7  ;;  %4975 = vmatpush3.msra.mxu1 %v4211_v5  ;;  %v6112_v5 = vrot.slane %v5946_v38, 1  ;;  %v1281_v7 = vrot.slane %v5922_v25, 2  ;;  %v6139_v32 = vrot.slane %v6008_v20, 1  ;;  %v1286_v12 = vrot.slane %v5993_v11, 2 }
  0x69   : > { %5054 = vmatprep.subr.mxu0 %v4227_v41  ;;  %4851 = vmatprep.mubr.f32.mxu1 %v886_v45  ;;  %v519_v45 = vld [vmem:[#allocation2 + $0xa0] sm:$0x3]  ;;  %490 = vst [vmem:[#allocation2 + $0x181] sm:$0xff] %v403_v3  ;;  %491 = vst [vmem:[#allocation2 + $0x189] sm:$0xff] %v404_v59  ;;  %v6171_v59 = vrot.slane %v6034_v40, 1 }
  0x6a   : > { %5055 = vmatpush3.msra.mxu0 %v4227_v41  ;;  %4852 = vmatmul.mubr.f32.gmra.mxu1 %v888_v28  ;;  %v6129_v41 = vsel %vm1255_vm1, %v1276_v46, %v6101_v17  ;;  %v1280_v28 = vsel %vm1255_vm1, %v6101_v17, %v1279_v19  ;;  %v4225_v46 = vld [vmem:[%s7640_s3 + $0x258] sm:$0xff]  ;;  %v898_v19 = vsel %vm868_vm0, %v6112_v5, %v897_v39  ;;  %v902_v6 = vrot.slane %v519_v45, 1 }
  0x6b   : > { %4931 = vmatprep.mubr.f32.mxu0 %v1273_v34  ;;  %4976 = vmatprep.subr.mxu1 %v4210_v23  ;;  %v6146_v34 = vsel %vm868_vm0, %v894_v49, %v6112_v5  ;;  %v522_v49 = vld [vmem:[#allocation2 + $0xb8] sm:$0x3]  ;;  %v904_v39 = vrot.slane %v6027_v44, 1 }
  0x6c   : > { %4932 = vmatmul.mubr.f32.gmra.mxu0 %v1275_v30  ;;  %4977 = vmatpush3.msra.mxu1 %v4210_v23  ;;  %v6150_v23 = vsel %vm1255_vm1, %v1281_v7, %v6125_v61  ;;  %v6154_v30 = vrot.slane %v6008_v20, 2  ;;  %v4224_v7 = vld [vmem:[%s7640_s3 + $0x250] sm:$0xff] }
  0x6d   : > { %5056 = vmatprep.subr.mxu0 %v4226_v33  ;;  %4854 = vmatprep.mubr.f32.mxu1 %v6119_v16 }
  0x6e   : > { %5057 = vmatpush3.msra.mxu0 %v4226_v33  ;;  %4855 = vmatmul.mubr.f32.gmra.mxu1 %v893_v8  ;;  %v1285_v33 = vsel %vm1255_vm1, %v6125_v61, %v1284_v29  ;;  %v1289_v8 = vrot.slane %v519_v45, 2  ;;  %v6167_v3 = vsel %vm1255_vm1, %v1286_v12, %v6154_v30  ;;  %v903_v45 = vsel %vm868_vm0, %v6139_v32, %v902_v6  ;;  %v4207_v12 = vld [vmem:[%s7640_s3 + $0x1c8] sm:$0xff] }
  0x6f   : > { %4934 = vmatprep.mubr.f32.mxu0 %v6129_v41  ;;  %4978 = vmatprep.subr.mxu1 %v4209_v48  ;;  %v1291_v29 = vrot.slane %v6027_v44, 2  ;;  %v1294_v6 = vrot.slane %v522_v49, 2 }
  0x70   : > { %4935 = vmatmul.mubr.f32.gmra.mxu0 %v1280_v28  ;;  %4979 = vmatpush3.msra.mxu1 %v4209_v48  ;;  %v6178_v48 = vsel %vm868_vm0, %v899_v51, %v6139_v32  ;;  %v907_v28 = vrot.slane %v522_v49, 1  ;;  %v525_v51 = vld [vmem:[#allocation2 + $0xd0] sm:$0x3] }
  0x71   : > { %5058 = vmatprep.subr.mxu0 %v4225_v46  ;;  %4857 = vmatprep.mubr.f32.mxu1 %v6146_v34 }
  0x72   : > { %5059 = vmatpush3.msra.mxu0 %v4225_v46  ;;  %4858 = vmatmul.mubr.f32.gmra.mxu1 %v898_v19  ;;  %v6185_v46 = vrot.slane %v6034_v40, 2  ;;  %v1290_v19 = vsel %vm1255_vm1, %v6154_v30, %v1289_v8  ;;  %v908_v49 = vsel %vm868_vm0, %v6171_v59, %v907_v28  ;;  %v912_v8 = vrot.slane %v525_v51, 1  ;;  %v4222_v28 = vld [vmem:[%s7640_s3 + $0x240] sm:$0xff] }
  0x73   : > { %4937 = vmatprep.mubr.f32.mxu0 %v6150_v23  ;;  %4980 = vmatprep.subr.mxu1 %v4208_v2 }
  0x74   : > { %4938 = vmatmul.mubr.f32.gmra.mxu0 %v1285_v33  ;;  %4981 = vmatpush3.msra.mxu1 %v4208_v2  ;;  %v6198_v2 = vsel %vm868_vm0, %v904_v39, %v6171_v59  ;;  %v6202_v33 = vsel %vm1255_vm1, %v1291_v29, %v6185_v46  ;;  %v1295_v39 = vsel %vm1255_vm1, %v6185_v46, %v1294_v6  ;;  %v1299_v29 = vrot.slane %v525_v51, 2  ;;  %v4205_v51 = vld [vmem:[%s7640_s3 + $0x1b8] sm:$0xff] }
  0x75   : > { %5060 = vmatprep.subr.mxu0 %v4224_v7  ;;  %4860 = vmatprep.mubr.f32.mxu1 %v6178_v48 }
  0x76   : > { %5061 = vmatpush3.msra.mxu0 %v4224_v7  ;;  %4861 = vmatmul.mubr.f32.gmra.mxu1 %v903_v45  ;;  %v4206_v7 = vld [vmem:[%s7640_s3 + $0x1c0] sm:$0xff]  ;;  %v528_v45 = vld [vmem:[#allocation2 + $0xe8] sm:$0x3]  ;;  %v1300_v6 = vsel %vm1255_vm1, %v1297_v53, %v1299_v29  ;;  %v534_v53 = vld [vmem:[#allocation2 + $0x118] sm:$0x3] }
  0x77   : > { %4940 = vmatprep.mubr.f32.mxu0 %v6167_v3  ;;  %4982 = vmatprep.subr.mxu1 %v4207_v12  ;;  %v927_v29 = vrot.slane %v534_v53, 1 }
  0x78   : > { %4941 = vmatmul.mubr.f32.gmra.mxu0 %v1290_v19  ;;  %4983 = vmatpush3.msra.mxu1 %v4207_v12  ;;  %v913_v12 = vsel %vm868_vm0, %v910_v50, %v912_v8  ;;  %v917_v19 = vrot.slane %v528_v45, 1  ;;  %v4221_v50 = vld [vmem:[%s7640_s3 + $0x238] sm:$0xff] }
  0x79   : > { %5062 = vmatprep.subr.mxu0 %v4223_v63  ;;  %4863 = vmatprep.mubr.f32.mxu1 %v6198_v2 }
  0x7a   : > { %5063 = vmatpush3.msra.mxu0 %v4223_v63  ;;  %4864 = vmatmul.mubr.f32.gmra.mxu1 %v908_v49  ;;  %v531_v63 = vld [vmem:[#allocation2 + $0x100] sm:$0x3]  ;;  %v1304_v49 = vrot.slane %v528_v45, 2  ;;  %v918_v8 = vsel %vm868_vm0, %v915_v55, %v917_v19  ;;  %v4220_v55 = vld [vmem:[%s7640_s3 + $0x230] sm:$0xff]  ;;  %v7685_v45 = vrot.slane %v5811_v31, 1  ;;  %v7687_v19 = vrot.slane %v5836_v42, 1 }
  0x7b   : > { %4943 = vmatprep.mubr.f32.mxu0 %v6202_v33  ;;  %4984 = vmatprep.subr.mxu1 %v4206_v7 }
  0x7c   : > { %4944 = vmatmul.mubr.f32.gmra.mxu0 %v1295_v39  ;;  %4985 = vmatpush3.msra.mxu1 %v4206_v7  ;;  %v922_v7 = vrot.slane %v531_v63, 1 }
  0x7d   : > { %5064 = vmatprep.subr.mxu0 %v4222_v28  ;;  %4866 = vmatprep.mubr.f32.mxu1 %v5893_v10  ;;  %v1305_v10 = vsel %vm1255_vm1, %v1302_v60, %v1304_v49  ;;  %v537_v60 = vld [vmem:[#allocation2 + $0x130] sm:$0x3] }
  0x7e   : > { %5065 = vmatpush3.msra.mxu0 %v4222_v28  ;;  %4867 = vmatmul.mubr.f32.gmra.mxu1 %v913_v12  ;;  %v923_v39 = vsel %vm868_vm0, %v7685_v45, %v922_v7  ;;  %v1314_v28 = vrot.slane %v534_v53, 2  ;;  %v4219_v12 = vld [vmem:[%s7640_s3 + $0x228] sm:$0xff]  ;;  %v1319_v49 = vrot.slane %v537_v60, 2  ;;  %v7690_v53 = vrot.slane %v5866_v57, 2 }
  0x7f   : > { %4946 = vmatprep.mubr.f32.mxu0 %v5900_v14  ;;  %4986 = vmatprep.subr.mxu1 %v4205_v51  ;;  %v1309_v14 = vrot.slane %v531_v63, 2  ;;  %v932_v63 = vrot.slane %v537_v60, 1  ;;  %v944_v60 = vrot.slane %v5963_v52, 1  ;;  %v4199_v52 = vld [vmem:[%s7640_s3 + $0x188] sm:$0xff] }
  0x80   : > { %4947 = vmatmul.mubr.f32.gmra.mxu0 %v1300_v6  ;;  %4987 = vmatpush3.msra.mxu1 %v4205_v51  ;;  %v928_v51 = vsel %vm868_vm0, %v7687_v19, %v927_v29  ;;  %v7688_v6 = vrot.slane %v5836_v42, 2  ;;  %v4201_v42 = vld [vmem:[%s7640_s3 + $0x198] sm:$0xff]  ;;  %v7692_v29 = vrot.slane %v5914_v21, 2 }
  0x81   : > { %5066 = vmatprep.subr.mxu0 %v4221_v50  ;;  %4869 = vmatprep.mubr.f32.mxu1 %v5905_v15  ;;  %v7686_v15 = vrot.slane %v5811_v31, 2  ;;  %v4202_v31 = vld [vmem:[%s7640_s3 + $0x1a0] sm:$0xff] }
  0x82   : > { %5067 = vmatpush3.msra.mxu0 %v4221_v50  ;;  %4870 = vmatmul.mubr.f32.gmra.mxu1 %v918_v8  ;;  %v4218_v50 = vld [vmem:[%s7640_s3 + $0x220] sm:$0xff]  ;;  %v7689_v8 = vrot.slane %v5866_v57, 1  ;;  %v4200_v57 = vld [vmem:[%s7640_s3 + $0x190] sm:$0xff] }
  0x83   : > { %4949 = vmatprep.mubr.f32.mxu0 %v5919_v22  ;;  %4988 = vmatprep.subr.mxu1 %v4204_v43  ;;  %v1310_v22 = vsel %vm1255_vm1, %v7686_v15, %v1309_v14  ;;  %v4217_v14 = vld [vmem:[%s7640_s3 + $0x218] sm:$0xff]  ;;  %v945_v15 = vrot.slane %v5965_v54, 1 }
  0x84   : > { %4950 = vmatmul.mubr.f32.gmra.mxu0 %v1305_v10  ;;  %4989 = vmatpush3.msra.mxu1 %v4204_v43  ;;  %v933_v7 = vsel %vm868_vm0, %v7689_v8, %v932_v63  ;;  %v6315_v63 = vld [vmem:[#allocation2 + $0x20] sm:$0xff] }
  0x85   : > { %5068 = vmatprep.subr.mxu0 %v4220_v55  ;;  %4872 = vmatprep.mubr.f32.mxu1 %v5928_v27  ;;  %v540_v27 = vld [vmem:[#allocation2 + $0x148] sm:$0x3] }
  0x86   : > { %5069 = vmatpush3.msra.mxu0 %v4220_v55  ;;  %4873 = vmatmul.mubr.f32.gmra.mxu1 %v923_v39  ;;  %v937_v43 = vrot.slane %v540_v27, 1  ;;  %v1324_v10 = vrot.slane %v540_v27, 2  ;;  %v7691_v55 = vrot.slane %v5914_v21, 1  ;;  %v946_v27 = vsel %vm868_vm0, %v944_v60, %v945_v15 }
  0x87   : > { %4952 = vmatprep.mubr.f32.mxu0 %v5939_v36  ;;  %4990 = vmatprep.subr.mxu1 %v4203_v4  ;;  %v1315_v36 = vsel %vm1255_vm1, %v7688_v6, %v1314_v28  ;;  %v6321_v6 = vld [vmem:[#allocation2 + $0x28] sm:$0x3] }
  0x88   : > { %4953 = vmatmul.mubr.f32.gmra.mxu0 %v1310_v22  ;;  %4991 = vmatpush3.msra.mxu1 %v4203_v4  ;;  %v938_v45 = vsel %vm868_vm0, %v7691_v55, %v937_v43  ;;  %v4216_v22 = vld [vmem:[%s7640_s3 + $0x210] sm:$0xff]  ;;  %v6336_v43 = vld [vmem:[#allocation2 + $0x38] sm:$0xff]  ;;  %v6353_v55 = vld [vmem:[#allocation2 + $0x48] sm:$0xff] }
  0x89   : > { %5070 = vmatprep.subr.mxu0 %v4219_v12  ;;  %4875 = vmatprep.mubr.f32.mxu1 %v5944_v37  ;;  %v543_v37 = vld [vmem:[#allocation2 + $0x160] sm:$0x3] }
  0x8a   : > { %5071 = vmatpush3.msra.mxu0 %v4219_v12  ;;  %4876 = vmatmul.mubr.f32.gmra.mxu1 %v928_v51  ;;  %v942_v39 = vrot.slane %v543_v37, 1  ;;  %v1329_v4 = vrot.slane %v543_v37, 2  ;;  %v7694_v12 = vrot.slane %v5934_v35, 2  ;;  %v6313_v51 = vld [vmem:[#allocation2 + $0x18] sm:$0xff]  ;;  %v6341_v37 = vld [vmem:[#allocation2 + $0x40] sm:$0x3] }
  0x8b   : > { %4955 = vmatprep.mubr.f32.mxu0 %v5955_v47  ;;  %4992 = vmatprep.subr.mxu1 %v4202_v31  ;;  %v1320_v47 = vsel %vm1255_vm1, %v7690_v53, %v1319_v49  ;;  %v2013_v49 = vrot.slane %v6315_v63, 1  ;;  %v4245_v53 = vld [vmem:[%s7640_s3 + $0x2f8] sm:$0xff] }
  0x8c   : > { %4956 = vmatmul.mubr.f32.gmra.mxu0 %v1315_v36  ;;  %4993 = vmatpush3.msra.mxu1 %v4202_v31  ;;  %v1330_v19 = vsel %vm1255_vm1, %v7694_v12, %v1329_v4  ;;  %v4215_v31 = vld [vmem:[%s7640_s3 + $0x208] sm:$0xff]  ;;  %v2012_v36 = vrot.slane %v6313_v51, 1 }
  0x8d   : > { %5072 = vmatprep.subr.mxu0 %v4218_v50  ;;  %4878 = vmatprep.mubr.f32.mxu1 %v5970_v58  ;;  %v546_v58 = vld [vmem:[#allocation2 + $0x178] sm:$0x3] }
  0x8e   : > { %5073 = vmatpush3.msra.mxu0 %v4218_v50  ;;  %4879 = vmatmul.mubr.f32.gmra.mxu1 %v933_v7  ;;  %v947_v28 = vrot.slane %v546_v58, 1  ;;  %v7695_v50 = vrot.slane %v5965_v54, 2  ;;  %v6334_v7 = vld [vmem:[#allocation2 + $0x30] sm:$0xff]  ;;  %v2014_v54 = vsel %vm868_vm0, %v2012_v36, %v2013_v49  ;;  %v6411_v36 = vld [vmem:[#allocation2 + $0xa0] sm:$0x3] }
  0x8f   : > { %4958 = vmatprep.mubr.f32.mxu0 %v5977_v62  ;;  %4994 = vmatprep.subr.mxu1 %v4201_v42  ;;  %v1325_v62 = vsel %vm1255_vm1, %v7692_v29, %v1324_v10  ;;  %v2018_v10 = vrot.slane %v6336_v43, 1  ;;  %v4244_v29 = vld [vmem:[%s7640_s3 + $0x2f0] sm:$0xff] }
  0x90   : > { %4959 = vmatmul.mubr.f32.gmra.mxu0 %v1320_v47  ;;  %4995 = vmatpush3.msra.mxu1 %v4201_v42  ;;  %v4214_v42 = vld [vmem:[%s7640_s3 + $0x200] sm:$0xff]  ;;  %v7655_v47 = vrot.slane %v6334_v7, 1 }
  0x91   : > { %5074 = vmatprep.subr.mxu0 %v4217_v14  ;;  %4881 = vmatprep.mubr.f32.mxu1 %v5982_v1  ;;  %v7693_v1 = vrot.slane %v5934_v35, 1  ;;  %v948_v35 = vsel %vm868_vm0, %v945_v15, %v947_v28  ;;  %v4243_v28 = vld [vmem:[%s7640_s3 + $0x2e8] sm:$0xff] }
  0x92   : > { %5075 = vmatpush3.msra.mxu0 %v4217_v14  ;;  %4882 = vmatmul.mubr.f32.gmra.mxu1 %v938_v45  ;;  %v6355_v45 = vld [vmem:[#allocation2 + $0x50] sm:$0xff] }
  0x93   : > { %4961 = vmatprep.mubr.f32.mxu0 %v5991_v9  ;;  %4996 = vmatprep.subr.mxu1 %v4200_v57  ;;  %v943_v21 = vsel %vm868_vm0, %v7693_v1, %v942_v39  ;;  %v1334_v9 = vrot.slane %v546_v58, 2  ;;  %v4261_v39 = vld [vmem:[%s7640_s3 + $0x378] sm:$0xff]  ;;  %v2019_v58 = vsel %vm868_vm0, %v7655_v47, %v2018_v10  ;;  %v6371_v4 = vrot.slane %v6355_v45, 1  ;;  %v6380_v1 = vld [vmem:[#allocation2 + $0x70] sm:$0x3] }
  0x94   : > { %4962 = vmatmul.mubr.f32.gmra.mxu0 %v1325_v62  ;;  %4997 = vmatpush3.msra.mxu1 %v4200_v57  ;;  %v6361_v57 = vld [vmem:[#allocation2 + $0x58] sm:$0x3]  ;;  %v2022_v62 = vrot.slane %v6353_v55, 1  ;;  %v2030_v12 = vrot.slane %v6380_v1, 1 }
  0x95   : > { %5076 = vmatprep.subr.mxu0 %v4216_v22  ;;  %4884 = vmatprep.mubr.f32.mxu1 %v5998_v13  ;;  %v4198_v13 = vld [vmem:[%s7640_s3 + $0x180] sm:$0xff]  ;;  %v1335_v8 = vsel %vm1255_vm1, %v7695_v50, %v1334_v9  ;;  %v2025_v15 = vrot.slane %v6361_v57, 1  ;;  %v6397_v9 = vld [vmem:[#allocation2 + $0x88] sm:$0x3] }
  0x96   : > { %5077 = vmatpush3.msra.mxu0 %v4216_v22  ;;  %4885 = vmatmul.mubr.f32.gmra.mxu1 %v943_v21  ;;  %v4260_v22 = vld [vmem:[%s7640_s3 + $0x370] sm:$0xff]  ;;  %v6384_v21 = vsel %vm868_vm0, %v2022_v62, %v6371_v4  ;;  %v6435_v50 = vld [vmem:[#allocation2 + $0xc0] sm:$0xff] }
  0x97   : > { %4964 = vmatprep.mubr.f32.mxu0 %v6006_v18  ;;  %4998 = vmatprep.subr.mxu1 %v4199_v52  ;;  %v2015_v18 = vrot.slane %v6321_v6, 1  ;;  %v4254_v62 = vld [vmem:[%s7640_s3 + $0x340] sm:$0xff] }
  0x98   : > { %4965 = vmatmul.mubr.f32.gmra.mxu0 %v1330_v19  ;;  %4999 = vmatpush3.msra.mxu1 %v4199_v52  ;;  %v2026_v52 = vsel %vm868_vm0, %v6371_v4, %v2025_v15  ;;  %v4259_v19 = vld [vmem:[%s7640_s3 + $0x368] sm:$0xff] }
  0x99   : > { %5078 = vmatprep.subr.mxu0 %v4215_v31  ;;  %4887 = vmatprep.mubr.f32.mxu1 %v946_v27  ;;  %v2016_v14 = vsel %vm868_vm0, %v2013_v49, %v2015_v18  ;;  %v2031_v27 = vsel %vm868_vm0, %v6090_v26, %v2030_v12  ;;  %v2040_v26 = vrot.slane %v6411_v36, 1  ;;  %v6425_v49 = vld [vmem:[#allocation2 + $0xb8] sm:$0x3]  ;;  %v6443_v18 = vld [vmem:[#allocation2 + $0xd0] sm:$0x3] }
  0x9a   : > { %5079 = vmatpush3.msra.mxu0 %v4215_v31  ;;  %4888 = vmatmul.mubr.f32.gmra.mxu1 %v948_v35  ;;  %v4242_v31 = vld [vmem:[%s7640_s3 + $0x2e0] sm:$0xff]  ;;  %v2035_v35 = vrot.slane %v6397_v9, 1 }
  0x9b   : > { %4967 = vmatprep.mubr.f32.mxu0 %v6013_v24  ;;  %5000 = vmatprep.subr.mxu1 %v4198_v13  ;;  %v2020_v24 = vrot.slane %v6341_v37, 1 }
  0x9c   : > { %4968 = vmatmul.mubr.f32.gmra.mxu0 %v1335_v8  ;;  %5001 = vmatpush3.msra.mxu1 %v4198_v13  ;;  %v4258_v13 = vld [vmem:[%s7640_s3 + $0x360] sm:$0xff]  ;;  %v6437_v8 = vld [vmem:[#allocation2 + $0xc8] sm:$0xff] }
  0x9d   : > { %5080 = vmatprep.subr.mxu0 %v4214_v42  ;;  %5002 = vmatprep.mubr.f32.mxu1 %v6313_v51  ;;  %v2021_v60 = vsel %vm868_vm0, %v2018_v10, %v2020_v24  ;;  %v4255_v10 = vld [vmem:[%s7640_s3 + $0x348] sm:$0xff] }
  0x9e   : > { %5081 = vmatpush3.msra.mxu0 %v4214_v42  ;;  %5003 = vmatmul.mubr.f32.vlgmr.msra.gmra.mxu1 %v6315_v63  ;;  %v6451_v42 = vrot.slane %v6437_v8, 1 }
  0x9f   : > { %5082 = vmatprep.mubr.f32.mxu0 %v2014_v54  ;;  %5130 = vmatprep.subr.mxu1 %v4245_v53  ;;  %v6457_v54 = vld [vmem:[#allocation2 + $0xd8] sm:$0xff] }
  0xa0   : > { %5083 = vmatmul.mubr.f32.vlgmr.msra.gmra.mxu0 %v2016_v14  ;;  %5131 = vmatpush3.msra.mxu1 %v4245_v53  ;;  %v6459_v53 = vld [vmem:[#allocation2 + $0xe0] sm:$0xff]  ;;  %v6465_v14 = vld [vmem:[#allocation2 + $0xe8] sm:$0x3] }
  0xa1   : > { %5210 = vmatprep.subr.mxu0 %v4261_v39  ;;  %5005 = vmatprep.mubr.f32.mxu1 %v6334_v7  ;;  %v6477_v24 = vrot.slane %v6459_v53, 1 }
  0xa2   : > { %5211 = vmatpush3.msra.mxu0 %v4261_v39  ;;  %5006 = vmatmul.mubr.f32.gmra.mxu1 %v6336_v43  ;;  %v2055_v39 = vrot.slane %v6465_v14, 1 }
  0xa3   : > { %5085 = vmatprep.mubr.f32.mxu0 %v2019_v58  ;;  %5132 = vmatprep.subr.mxu1 %v4244_v29  ;;  %7697 = vst [vmem:[#allocation4_spill] sm:$0xff] %v6477_v24  ;;  %v6483_v58 = vld [vmem:[#allocation2 + $0xf0] sm:$0xff] }
  0xa4   : > { %5086 = vmatmul.mubr.f32.gmra.mxu0 %v2021_v60  ;;  %5133 = vmatpush3.msra.mxu1 %v4244_v29  ;;  %v6485_v29 = vld [vmem:[#allocation2 + $0xf8] sm:$0xff]  ;;  %v6491_v60 = vld [vmem:[#allocation2 + $0x100] sm:$0x3]  ;;  %v2056_v12 = vsel %vm868_vm0, %v6477_v24, %v2055_v39 }
  0xa5   : > { %5212 = vmatprep.subr.mxu0 %v4260_v22  ;;  %5008 = vmatprep.mubr.f32.mxu1 %v6353_v55  ;;  %v6561_v39 = vld [vmem:[#allocation2 + $0x138] sm:$0xff] }
  0xa6   : > { %5213 = vmatpush3.msra.mxu0 %v4260_v22  ;;  %5009 = vmatmul.mubr.f32.gmra.mxu1 %v6355_v45  ;;  %v4237_v22 = vld [vmem:[%s7640_s3 + $0x2b8] sm:$0xff] }
  0xa7   : > { %5088 = vmatprep.mubr.f32.mxu0 %v6384_v21  ;;  %5134 = vmatprep.subr.mxu1 %v4243_v28 }
  0xa8   : > { %5089 = vmatmul.mubr.f32.gmra.mxu0 %v2026_v52  ;;  %5135 = vmatpush3.msra.mxu1 %v4243_v28  ;;  %v2057_v28 = vrot.slane %v6483_v58, 1  ;;  %v6503_v52 = vrot.slane %v6485_v29, 1 }
  0xa9   : > { %5214 = vmatprep.subr.mxu0 %v4259_v19  ;;  %5011 = vmatprep.mubr.f32.mxu1 %v5864_v56  ;;  %v4241_v56 = vld [vmem:[%s7640_s3 + $0x2d8] sm:$0xff] }
  0xaa   : > { %5215 = vmatpush3.msra.mxu0 %v4259_v19  ;;  %5012 = vmatmul.mubr.f32.gmra.mxu1 %v5877_v0  ;;  %v2036_v0 = vsel %vm868_vm0, %v6112_v5, %v2035_v35  ;;  %v2045_v5 = vrot.slane %v6425_v49, 1  ;;  %7699 = vst [vmem:[#allocation6_spill] sm:$0xff] %v6503_v52  ;;  %v2060_v19 = vrot.slane %v6491_v60, 1  ;;  %v4253_v35 = vld [vmem:[%s7640_s3 + $0x338] sm:$0xff] }
  0xab   : > { %5091 = vmatprep.mubr.f32.mxu0 %v6119_v16  ;;  %5136 = vmatprep.subr.mxu1 %v4242_v31  ;;  %v4257_v16 = vld [vmem:[%s7640_s3 + $0x358] sm:$0xff] }
  0xac   : > { %5092 = vmatmul.mubr.f32.gmra.mxu0 %v2031_v27  ;;  %5137 = vmatpush3.msra.mxu1 %v4242_v31  ;;  %v6509_v31 = vld [vmem:[#allocation2 + $0x108] sm:$0xff]  ;;  %v6511_v27 = vld [vmem:[#allocation2 + $0x110] sm:$0xff] }
  0xad   : > { %5216 = vmatprep.subr.mxu0 %v4258_v13  ;;  %5014 = vmatprep.mubr.f32.mxu1 %v5922_v25  ;;  %v4240_v25 = vld [vmem:[%s7640_s3 + $0x2d0] sm:$0xff] }
  0xae   : > { %5217 = vmatpush3.msra.mxu0 %v4258_v13  ;;  %5015 = vmatmul.mubr.f32.gmra.mxu1 %v5946_v38  ;;  %v2041_v38 = vsel %vm868_vm0, %v6139_v32, %v2040_v26  ;;  %v2047_v32 = vrot.slane %v6435_v50, 1  ;;  %v6517_v13 = vld [vmem:[#allocation2 + $0x118] sm:$0x3]  ;;  %v2062_v26 = vrot.slane %v6509_v31, 1 }
  0xaf   : > { %5094 = vmatprep.mubr.f32.mxu0 %v6146_v34  ;;  %5138 = vmatprep.subr.mxu1 %v4241_v56  ;;  %v4256_v34 = vld [vmem:[%s7640_s3 + $0x350] sm:$0xff] }
  0xb0   : > { %5095 = vmatmul.mubr.f32.gmra.mxu0 %v2036_v0  ;;  %5139 = vmatpush3.msra.mxu1 %v4241_v56  ;;  %v6522_v56 = vsel %vm868_vm0, %v2057_v28, %v6503_v52  ;;  %v4236_v0 = vld [vmem:[%s7640_s3 + $0x2b0] sm:$0xff]  ;;  %v6569_v28 = vld [vmem:[#allocation2 + $0x148] sm:$0x3] }
  0xb1   : > { %5218 = vmatprep.subr.mxu0 %v4257_v16  ;;  %5017 = vmatprep.mubr.f32.mxu1 %v5993_v11  ;;  %v4239_v11 = vld [vmem:[%s7640_s3 + $0x2c8] sm:$0xff]  ;;  %7700 = vst [vmem:[#allocation7_spill] sm:$0xff] %v6522_v56 }
  0xb2   : > { %5219 = vmatpush3.msra.mxu0 %v4257_v16  ;;  %5018 = vmatmul.mubr.f32.gmra.mxu1 %v6008_v20  ;;  %v2046_v20 = vsel %vm868_vm0, %v6171_v59, %v2045_v5  ;;  %v4238_v59 = vld [vmem:[%s7640_s3 + $0x2c0] sm:$0xff]  ;;  %v6529_v16 = vrot.slane %v6511_v27, 1 }
  0xb3   : > { %5097 = vmatprep.mubr.f32.mxu0 %v6178_v48  ;;  %5140 = vmatprep.subr.mxu1 %v4240_v25  ;;  %v2050_v48 = vrot.slane %v6443_v18, 1  ;;  %v6535_v5 = vld [vmem:[#allocation2 + $0x120] sm:$0xff] }
  0xb4   : > { %5098 = vmatmul.mubr.f32.gmra.mxu0 %v2041_v38  ;;  %5141 = vmatpush3.msra.mxu1 %v4240_v25  ;;  %7701 = vst [vmem:[#allocation8_spill] sm:$0xff] %v6529_v16  ;;  %v2061_v25 = vsel %vm868_vm0, %v6503_v52, %v2060_v19  ;;  %v2065_v38 = vrot.slane %v6517_v13, 1  ;;  %v4234_v19 = vld [vmem:[%s7640_s3 + $0x2a0] sm:$0xff]  ;;  %v6647_v52 = vld [vmem:[#allocation2 + $0x190] sm:$0x3] }
  0xb5   : > { %5220 = vmatprep.subr.mxu0 %v4256_v34  ;;  %5020 = vmatprep.mubr.f32.mxu1 %v6027_v44  ;;  %v6470_v44 = vsel %vm868_vm0, %v2047_v32, %v6451_v42  ;;  %v6543_v32 = vld [vmem:[#allocation2 + $0x130] sm:$0x3] }
  0xb6   : > { %5221 = vmatpush3.msra.mxu0 %v4256_v34  ;;  %5021 = vmatmul.mubr.f32.gmra.mxu1 %v6034_v40  ;;  %7696 = vst [vmem:[#allocation3_spill] sm:$0xff] %v6470_v44  ;;  %v2052_v40 = vrot.slane %v6457_v54, 1  ;;  %v6537_v34 = vld [vmem:[#allocation2 + $0x128] sm:$0xff] }
  0xb7   : > { %5100 = vmatprep.mubr.f32.mxu0 %v6198_v2  ;;  %5142 = vmatprep.subr.mxu1 %v4239_v11  ;;  %v2051_v2 = vsel %vm868_vm0, %v6451_v42, %v2050_v48  ;;  %v4235_v48 = vld [vmem:[%s7640_s3 + $0x2a8] sm:$0xff] }
  0xb8   : > { %5101 = vmatmul.mubr.f32.gmra.mxu0 %v2046_v20  ;;  %5143 = vmatpush3.msra.mxu1 %v4239_v11  ;;  %v6496_v15 = vsel %vm868_vm0, %v2052_v40, %v6477_v24  ;;  %v4252_v11 = vld [vmem:[%s7640_s3 + $0x330] sm:$0xff]  ;;  %v6548_v20 = vsel %vm868_vm0, %v2062_v26, %v6529_v16  ;;  %v2066_v40 = vsel %vm868_vm0, %v6529_v16, %v2065_v38  ;;  %v6621_v16 = vld [vmem:[#allocation2 + $0x178] sm:$0x3] }
  0xb9   : > { %5222 = vmatprep.subr.mxu0 %v4255_v10  ;;  %5023 = vmatprep.mubr.f32.mxu1 %v6435_v50  ;;  %7698 = vst [vmem:[#allocation5_spill] sm:$0xff] %v6496_v15  ;;  %7702 = vst [vmem:[#allocation9_spill] sm:$0xff] %v6548_v20  ;;  %v6587_v38 = vld [vmem:[#allocation2 + $0x150] sm:$0xff] }
  0xba   : > { %5223 = vmatpush3.msra.mxu0 %v4255_v10  ;;  %5024 = vmatmul.mubr.f32.gmra.mxu1 %v6437_v8  ;;  %v2067_v10 = vrot.slane %v6535_v5, 1 }
  0xbb   : > { %5103 = vmatprep.mubr.f32.mxu0 %v6470_v44  ;;  %5144 = vmatprep.subr.mxu1 %v4238_v59  ;;  %v2401_v44 = vrot.slane %v6321_v6, 2  ;;  %v2404_v6 = vrot.slane %v6336_v43, 2 }
  0xbc   : > { %5104 = vmatmul.mubr.f32.gmra.mxu0 %v2051_v2  ;;  %5145 = vmatpush3.msra.mxu1 %v4238_v59  ;;  %v6555_v59 = vrot.slane %v6537_v34, 1  ;;  %v2070_v2 = vrot.slane %v6543_v32, 1 }
  0xbd   : > { %5224 = vmatprep.subr.mxu0 %v4254_v62  ;;  %5026 = vmatprep.mubr.f32.mxu1 %v6457_v54 }
  0xbe   : > { %5225 = vmatpush3.msra.mxu0 %v4254_v62  ;;  %5027 = vmatmul.mubr.f32.gmra.mxu1 %v6459_v53  ;;  %7703 = vst [vmem:[#allocation10_spill] sm:$0xff] %v6555_v59  ;;  %v6563_v62 = vld [vmem:[#allocation2 + $0x140] sm:$0xff]  ;;  %v2071_v26 = vsel %vm868_vm0, %v6555_v59, %v2070_v2  ;;  %v4233_v2 = vld [vmem:[%s7640_s3 + $0x298] sm:$0xff] }
  0xbf   : > { %5106 = vmatprep.mubr.f32.mxu0 %v6496_v15  ;;  %5146 = vmatprep.subr.mxu1 %v4237_v22  ;;  %v2399_v15 = vrot.slane %v6315_v63, 2 }
  0xc0   : > { %5107 = vmatmul.mubr.f32.gmra.mxu0 %v2056_v12  ;;  %5147 = vmatpush3.msra.mxu1 %v4237_v22  ;;  %v4251_v22 = vld [vmem:[%s7640_s3 + $0x328] sm:$0xff]  ;;  %v6574_v12 = vsel %vm868_vm0, %v2067_v10, %v6555_v59  ;;  %v6595_v10 = vld [vmem:[#allocation2 + $0x160] sm:$0x3]  ;;  %v4249_v59 = vld [vmem:[%s7640_s3 + $0x318] sm:$0xff] }
  0xc1   : > { %5226 = vmatprep.subr.mxu0 %v4253_v35  ;;  %5029 = vmatprep.mubr.f32.mxu1 %v6483_v58  ;;  %7704 = vst [vmem:[#allocation11_spill] sm:$0xff] %v6574_v12 }
  0xc2   : > { %5227 = vmatpush3.msra.mxu0 %v4253_v35  ;;  %5030 = vmatmul.mubr.f32.gmra.mxu1 %v6485_v29  ;;  %v2072_v35 = vrot.slane %v6561_v39, 1 }
  0xc3   : > { %5109 = vmatprep.mubr.f32.mxu0 %v6522_v56  ;;  %5148 = vmatprep.subr.mxu1 %v4236_v0  ;;  %v4248_v56 = vld [vmem:[%s7640_s3 + $0x310] sm:$0xff] }
  0xc4   : > { %5110 = vmatmul.mubr.f32.gmra.mxu0 %v2061_v25  ;;  %5149 = vmatpush3.msra.mxu1 %v4236_v0  ;;  %v6581_v0 = vrot.slane %v6563_v62, 1  ;;  %v2075_v25 = vrot.slane %v6569_v28, 1 }
  0xc5   : > { %5228 = vmatprep.subr.mxu0 %v4252_v11  ;;  %5032 = vmatprep.mubr.f32.mxu1 %v6509_v31 }
  0xc6   : > { %5229 = vmatpush3.msra.mxu0 %v4252_v11  ;;  %5033 = vmatmul.mubr.f32.gmra.mxu1 %v6511_v27  ;;  %7705 = vst [vmem:[#allocation12_spill] sm:$0xff] %v6581_v0  ;;  %v6589_v11 = vld [vmem:[#allocation2 + $0x158] sm:$0xff] }
  0xc7   : > { %5112 = vmatprep.mubr.f32.mxu0 %v6548_v20  ;;  %5150 = vmatprep.subr.mxu1 %v4235_v48  ;;  %v6607_v47 = vrot.slane %v6589_v11, 1 }
  0xc8   : > { %5113 = vmatmul.mubr.f32.gmra.mxu0 %v2066_v40  ;;  %5151 = vmatpush3.msra.mxu1 %v4235_v48  ;;  %v4250_v48 = vld [vmem:[%s7640_s3 + $0x320] sm:$0xff]  ;;  %v6600_v40 = vsel %vm868_vm0, %v2072_v35, %v6581_v0  ;;  %v6615_v35 = vld [vmem:[#allocation2 + $0x170] sm:$0xff] }
  0xc9   : > { %5230 = vmatprep.subr.mxu0 %v4251_v22  ;;  %5035 = vmatprep.mubr.f32.mxu1 %v6535_v5  ;;  %7706 = vst [vmem:[#allocation13_spill] sm:$0xff] %v6600_v40  ;;  %7707 = vst [vmem:[#allocation14_spill] sm:$0xff] %v6607_v47  ;;  %v6633_v20 = vrot.slane %v6615_v35, 1 }
  0xca   : > { %5231 = vmatpush3.msra.mxu0 %v4251_v22  ;;  %5036 = vmatmul.mubr.f32.gmra.mxu1 %v6537_v34  ;;  %v2077_v22 = vrot.slane %v6587_v38, 1 }
  0xcb   : > { %5115 = vmatprep.mubr.f32.mxu0 %v6574_v12  ;;  %5152 = vmatprep.subr.mxu1 %v4234_v19  ;;  %v6613_v12 = vld [vmem:[#allocation2 + $0x168] sm:$0xff]  ;;  %7709 = vst [vmem:[#allocation16_spill] sm:$0xff] %v6633_v20 }
  0xcc   : > { %5116 = vmatmul.mubr.f32.gmra.mxu0 %v2071_v26  ;;  %5153 = vmatpush3.msra.mxu1 %v4234_v19  ;;  %v2076_v26 = vsel %vm868_vm0, %v6581_v0, %v2075_v25  ;;  %v2080_v19 = vrot.slane %v6595_v10, 1  ;;  %v6626_v25 = vsel %vm868_vm0, %v2077_v22, %v6607_v47  ;;  %v2082_v0 = vrot.slane %v6613_v12, 1  ;;  %v6641_v22 = vld [vmem:[#allocation2 + $0x188] sm:$0xff] }
  0xcd   : > { %5232 = vmatprep.subr.mxu0 %v4250_v48  ;;  %5038 = vmatprep.mubr.f32.mxu1 %v6561_v39  ;;  %7708 = vst [vmem:[#allocation15_spill] sm:$0xff] %v6626_v25  ;;  %v6659_v24 = vrot.slane %v6641_v22, 1 }
  0xce   : > { %5233 = vmatpush3.msra.mxu0 %v4250_v48  ;;  %5039 = vmatmul.mubr.f32.gmra.mxu1 %v6563_v62  ;;  %v4232_v48 = vld [vmem:[%s7640_s3 + $0x290] sm:$0xff] }
  0xcf   : > { %5118 = vmatprep.mubr.f32.mxu0 %v6600_v40  ;;  %5154 = vmatprep.subr.mxu1 %v4233_v2  ;;  %v6639_v40 = vld [vmem:[#allocation2 + $0x180] sm:$0xff]  ;;  %7711 = vst [vmem:[#allocation18_spill] sm:$0xff] %v6659_v24 }
  0xd0   : > { %5119 = vmatmul.mubr.f32.gmra.mxu0 %v2076_v26  ;;  %5155 = vmatpush3.msra.mxu1 %v4233_v2  ;;  %v2081_v26 = vsel %vm868_vm0, %v6607_v47, %v2080_v19  ;;  %v2085_v2 = vrot.slane %v6621_v16, 1  ;;  %v6652_v19 = vsel %vm868_vm0, %v2082_v0, %v6633_v20  ;;  %v2087_v47 = vrot.slane %v6639_v40, 1 }
  0xd1   : > { %5234 = vmatprep.subr.mxu0 %v4249_v59  ;;  %5041 = vmatprep.mubr.f32.mxu1 %v6587_v38  ;;  %7710 = vst [vmem:[#allocation17_spill] sm:$0xff] %v6652_v19  ;;  %v2398_v0 = vrot.slane %v6313_v51, 2  ;;  %v4230_v51 = vld [vmem:[%s7640_s3 + $0x280] sm:$0xff] }
  0xd2   : > { %5235 = vmatpush3.msra.mxu0 %v4249_v59  ;;  %5042 = vmatmul.mubr.f32.gmra.mxu1 %v6589_v11  ;;  %v4231_v59 = vld [vmem:[%s7640_s3 + $0x288] sm:$0xff] }
  0xd3   : > { %5121 = vmatprep.mubr.f32.mxu0 %v6626_v25  ;;  %5156 = vmatprep.subr.mxu1 %v4232_v48  ;;  %v4247_v25 = vld [vmem:[%s7640_s3 + $0x308] sm:$0xff] }
  0xd4   : > { %5122 = vmatmul.mubr.f32.gmra.mxu0 %v2081_v26  ;;  %5157 = vmatpush3.msra.mxu1 %v4232_v48  ;;  %v2086_v26 = vsel %vm868_vm0, %v6633_v20, %v2085_v2  ;;  %v2090_v48 = vrot.slane %v6647_v52, 1  ;;  %v6675_v2 = vsel %vm868_vm0, %v2087_v47, %v6659_v24  ;;  %v4246_v47 = vld [vmem:[%s7640_s3 + $0x300] sm:$0xff] }
  0xd5   : > { %5236 = vmatprep.subr.mxu0 %v4248_v56  ;;  %5044 = vmatprep.mubr.f32.mxu1 %v6613_v12  ;;  %7712 = vst [vmem:[#allocation19_spill] sm:$0xff] %v6675_v2 }
  0xd6   : > { %5237 = vmatpush3.msra.mxu0 %v4248_v56  ;;  %5045 = vmatmul.mubr.f32.gmra.mxu1 %v6615_v35  ;;  %v2091_v63 = vsel %vm868_vm0, %v6659_v24, %v2090_v48  ;;  %v2406_v48 = vrot.slane %v6341_v37, 2  ;;  %v2408_v56 = vrot.slane %v6353_v55, 2  ;;  %v6698_v24 = vrot.slane %v6355_v45, 2 }
  0xd7   : > { %5124 = vmatprep.mubr.f32.mxu0 %v6652_v19  ;;  %5158 = vmatprep.subr.mxu1 %v4231_v59  ;;  %v7713_v37 = vrot.slane %v6334_v7, 2  ;;  %v6911_v19 = vrot.slane %v6563_v62, 2 }
  0xd8   : > { %5125 = vmatmul.mubr.f32.gmra.mxu0 %v2086_v26  ;;  %5159 = vmatpush3.msra.mxu1 %v4231_v59  ;;  %v2400_v59 = vsel %vm1255_vm1, %v2398_v0, %v2399_v15  ;;  %v2402_v26 = vsel %vm1255_vm1, %v2399_v15, %v2401_v44  ;;  %v4293_v44 = vld [vmem:[%s7640_s3 + $0x478] sm:$0xff]  ;;  %v2407_v0 = vsel %vm1255_vm1, %v2404_v6, %v2406_v48 }
  0xd9   : > { %5238 = vmatprep.subr.mxu0 %v4247_v25  ;;  %5047 = vmatprep.mubr.f32.mxu1 %v6639_v40  ;;  %v2405_v15 = vsel %vm1255_vm1, %v7713_v37, %v2404_v6  ;;  %v6718_v6 = vsel %vm1255_vm1, %v2408_v56, %v6698_v24  ;;  %v6731_v56 = vld [vmem:[#allocation2 + $0x68] sm:$0xff]  ;;  %v6741_v48 = vld [vmem:[#allocation2 + $0x78] sm:$0xff]  ;;  %v2426_v37 = vrot.slane %v6411_v36, 2  ;;  %7717 = vst [vmem:[#allocation23_spill] sm:$0xff] %v6911_v19 }
  0xda   : > { %5239 = vmatpush3.msra.mxu0 %v4247_v25  ;;  %5048 = vmatmul.mubr.f32.gmra.mxu1 %v6641_v22  ;;  %v4277_v25 = vld [vmem:[%s7640_s3 + $0x3f8] sm:$0xff] }
  0xdb   : > { %5127 = vmatprep.mubr.f32.mxu0 %v6675_v2  ;;  %5160 = vmatprep.subr.mxu1 %v4230_v51  ;;  %v2427_v36 = vsel %vm1255_vm1, %v6154_v30, %v2426_v37  ;;  %v6809_v37 = vrot.slane %v6459_v53, 2  ;;  %v2451_v2 = vrot.slane %v6517_v13, 2 }
  0xdc   : > { %5128 = vmatmul.mubr.f32.gmra.mxu0 %v2091_v63  ;;  %5161 = vmatpush3.msra.mxu1 %v4230_v51  ;;  %v2411_v51 = vrot.slane %v6361_v57, 2  ;;  %v4276_v63 = vld [vmem:[%s7640_s3 + $0x3f0] sm:$0xff]  ;;  %v2416_v57 = vrot.slane %v6380_v1, 2  ;;  %v2421_v1 = vrot.slane %v6397_v9, 2 }
  0xdd   : > { %5240 = vmatprep.subr.mxu0 %v4246_v47  ;;  %5162 = vmatprep.mubr.f32.mxu1 %v2400_v59  ;;  %v6725_v59 = vld [vmem:[#allocation2 + $0x60] sm:$0xff] }
  0xde   : > { %5241 = vmatpush3.msra.mxu0 %v4246_v47  ;;  %5163 = vmatmul.mubr.f32.vlgmr.msra.gmra.mxu1 %v2402_v26  ;;  %v4292_v47 = vld [vmem:[%s7640_s3 + $0x470] sm:$0xff]  ;;  %v4275_v26 = vld [vmem:[%s7640_s3 + $0x3e8] sm:$0xff]  ;;  %v2422_v9 = vsel %vm1255_vm1, %v6125_v61, %v2421_v1  ;;  %v4289_v61 = vld [vmem:[%s7640_s3 + $0x458] sm:$0xff]  ;;  %v2436_v1 = vrot.slane %v6443_v18, 2 }
  0xdf   : > { %5242 = vmatprep.mubr.f32.mxu0 %v6334_v7  ;;  %5290 = vmatprep.subr.mxu1 %v4277_v25 }
  0xe0   : > { %5243 = vmatmul.mubr.f32.vlgmr.msra.gmra.mxu0 %v6336_v43  ;;  %5291 = vmatpush3.msra.mxu1 %v4277_v25  ;;  %v2412_v43 = vsel %vm1255_vm1, %v6698_v24, %v2411_v51  ;;  %v4274_v25 = vld [vmem:[%s7640_s3 + $0x3e0] sm:$0xff]  ;;  %v2431_v51 = vrot.slane %v6425_v49, 2  ;;  %v2433_v49 = vrot.slane %v6435_v50, 2 }
  0xe1   : > { %5370 = vmatprep.subr.mxu0 %v4293_v44  ;;  %5165 = vmatprep.mubr.f32.mxu1 %v2405_v15  ;;  %v4273_v15 = vld [vmem:[%s7640_s3 + $0x3d8] sm:$0xff] }
  0xe2   : > { %5371 = vmatpush3.msra.mxu0 %v4293_v44  ;;  %5166 = vmatmul.mubr.f32.gmra.mxu1 %v2407_v0  ;;  %v6747_v44 = vld [vmem:[#allocation2 + $0x80] sm:$0xff]  ;;  %v6763_v0 = vld [vmem:[#allocation2 + $0x98] sm:$0xff] }
  0xe3   : > { %5245 = vmatprep.mubr.f32.mxu0 %v6353_v55  ;;  %5292 = vmatprep.subr.mxu1 %v4276_v63  ;;  %v4291_v55 = vld [vmem:[%s7640_s3 + $0x468] sm:$0xff] }
  0xe4   : > { %5246 = vmatmul.mubr.f32.gmra.mxu0 %v6355_v45  ;;  %5293 = vmatpush3.msra.mxu1 %v4276_v63  ;;  %v2417_v45 = vsel %vm1255_vm1, %v6101_v17, %v2416_v57  ;;  %v4290_v17 = vld [vmem:[%s7640_s3 + $0x460] sm:$0xff]  ;;  %v6783_v57 = vld [vmem:[#allocation2 + $0xb0] sm:$0xff] }
  0xe5   : > { %5372 = vmatprep.subr.mxu0 %v4292_v47  ;;  %5168 = vmatprep.mubr.f32.mxu1 %v6718_v6 }
  0xe6   : > { %5373 = vmatpush3.msra.mxu0 %v4292_v47  ;;  %5169 = vmatmul.mubr.f32.gmra.mxu1 %v2412_v43  ;;  %v4272_v47 = vld [vmem:[%s7640_s3 + $0x3d0] sm:$0xff] }
  0xe7   : > { %5248 = vmatprep.mubr.f32.mxu0 %v6725_v59  ;;  %5294 = vmatprep.subr.mxu1 %v4275_v26 }
  0xe8   : > { %5249 = vmatmul.mubr.f32.gmra.mxu0 %v6731_v56  ;;  %5295 = vmatpush3.msra.mxu1 %v4275_v26  ;;  %v6789_v26 = vrot.slane %v6437_v8, 2 }
  0xe9   : > { %5374 = vmatprep.subr.mxu0 %v4291_v55  ;;  %5171 = vmatprep.mubr.f32.mxu1 %v6129_v41  ;;  %v6757_v41 = vld [vmem:[#allocation2 + $0x90] sm:$0xff] }
  0xea   : > { %5375 = vmatpush3.msra.mxu0 %v4291_v55  ;;  %5172 = vmatmul.mubr.f32.gmra.mxu1 %v2417_v45  ;;  %v4288_v55 = vld [vmem:[%s7640_s3 + $0x450] sm:$0xff]  ;;  %v6816_v18 = vsel %vm1255_vm1, %v2433_v49, %v6789_v26  ;;  %v6835_v49 = vrot.slane %v6485_v29, 2 }
  0xeb   : > { %5251 = vmatprep.mubr.f32.mxu0 %v6741_v48  ;;  %5296 = vmatprep.subr.mxu1 %v4274_v25 }
  0xec   : > { %5252 = vmatmul.mubr.f32.gmra.mxu0 %v6747_v44  ;;  %5297 = vmatpush3.msra.mxu1 %v4274_v25  ;;  %v4271_v25 = vld [vmem:[%s7640_s3 + $0x3c8] sm:$0xff] }
  0xed   : > { %5376 = vmatprep.subr.mxu0 %v4290_v17  ;;  %5174 = vmatprep.mubr.f32.mxu1 %v6150_v23  ;;  %v6775_v23 = vld [vmem:[#allocation2 + $0xa8] sm:$0xff] }
  0xee   : > { %5377 = vmatpush3.msra.mxu0 %v4290_v17  ;;  %5175 = vmatmul.mubr.f32.gmra.mxu1 %v2422_v9  ;;  %v2438_v9 = vrot.slane %v6457_v54, 2 }
  0xef   : > { %5254 = vmatprep.mubr.f32.mxu0 %v6757_v41  ;;  %5298 = vmatprep.subr.mxu1 %v4273_v15  ;;  %v6772_v63 = vpop.f32.mrf.mxu1 }
  0xf0   : > { %5255 = vmatmul.mubr.f32.gmra.mxu0 %v6763_v0  ;;  %5299 = vmatpush3.msra.mxu1 %v4273_v15  ;;  %v6780_v43 = vpop.f32.mrf.mxu0 }
  0xf1   : > { %5378 = vmatprep.subr.mxu0 %v4289_v61  ;;  %5177 = vmatprep.mubr.f32.mxu1 %v6167_v3  ;;  %v6785_v30 = vpop.f32.mrf.mxu1  ;;  %v2432_v3 = vsel %vm1255_vm1, %v6185_v46, %v2431_v51  ;;  %v4287_v46 = vld [vmem:[%s7640_s3 + $0x448] sm:$0xff]  ;;  %v4270_v51 = vld [vmem:[%s7640_s3 + $0x3c0] sm:$0xff] }
  0xf2   : > { %5379 = vmatpush3.msra.mxu0 %v4289_v61  ;;  %5178 = vmatmul.mubr.f32.gmra.mxu1 %v2427_v36  ;;  %v6794_v45 = vpop.f32.mrf.mxu0  ;;  %v2441_v36 = vrot.slane %v6465_v14, 2  ;;  %v6842_v14 = vsel %vm1255_vm1, %v2438_v9, %v6809_v37 }
  0xf3   : > { %5257 = vmatprep.mubr.f32.mxu0 %v6775_v23  ;;  %5300 = vmatprep.subr.mxu1 %v4272_v47 }
  0xf4   : > { %5258 = vmatmul.mubr.f32.gmra.mxu0 %v6783_v57  ;;  %5301 = vmatpush3.msra.mxu1 %v4272_v47  ;;  %v6804_v17 = vpop.f32.mrf.mxu1 }
  0xf5   : > { %5380 = vmatprep.subr.mxu0 %v4288_v55  ;;  %5180 = vmatprep.mubr.f32.mxu1 %v6202_v33  ;;  %v2437_v33 = vsel %vm1255_vm1, %v6789_v26, %v2436_v1  ;;  %v2446_v1 = vrot.slane %v6491_v60, 2 }
  0xf6   : > { %5381 = vmatpush3.msra.mxu0 %v4288_v55  ;;  %5181 = vmatmul.mubr.f32.gmra.mxu1 %v2432_v3  ;;  %v6818_v15 = vpop.f32.mrf.mxu0  ;;  %v6820_v61 = vpop.f32.mrf.mxu1  ;;  %v2442_v3 = vsel %vm1255_vm1, %v6809_v37, %v2441_v36 }
  0xf7   : > { %5260 = vmatprep.mubr.f32.mxu0 %v6435_v50  ;;  %5302 = vmatprep.subr.mxu1 %v4271_v25  ;;  %v2443_v50 = vrot.slane %v6483_v58, 2 }
  0xf8   : > { %5261 = vmatmul.mubr.f32.gmra.mxu0 %v6437_v8  ;;  %5303 = vmatpush3.msra.mxu1 %v4271_v25  ;;  %v6830_v47 = vpop.f32.mrf.mxu0  ;;  %v4286_v8 = vld [vmem:[%s7640_s3 + $0x440] sm:$0xff]  ;;  %v4269_v25 = vld [vmem:[%s7640_s3 + $0x3b8] sm:$0xff] }
  0xf9   : > { %5382 = vmatprep.subr.mxu0 %v4287_v46  ;;  %5183 = vmatprep.mubr.f32.mxu1 %v6816_v18  ;;  %v6868_v60 = vsel %vm1255_vm1, %v2443_v50, %v6835_v49  ;;  %v6885_v50 = vrot.slane %v6537_v34, 2 }
  0xfa   : > { %5383 = vmatpush3.msra.mxu0 %v4287_v46  ;;  %5184 = vmatmul.mubr.f32.gmra.mxu1 %v2437_v33  ;;  %v6844_v55 = vpop.f32.mrf.mxu1  ;;  %v6861_v33 = vrot.slane %v6511_v27, 2 }
  0xfb   : > { %5263 = vmatprep.mubr.f32.mxu0 %v6457_v54  ;;  %5304 = vmatprep.subr.mxu1 %v4270_v51  ;;  %v2448_v54 = vrot.slane %v6509_v31, 2 }
  0xfc   : > { %5264 = vmatmul.mubr.f32.gmra.mxu0 %v6459_v53  ;;  %5305 = vmatpush3.msra.mxu1 %v4270_v51  ;;  %v6854_v46 = vpop.f32.mrf.mxu0  ;;  %v6856_v9 = vpop.f32.mrf.mxu1  ;;  %v4285_v53 = vld [vmem:[%s7640_s3 + $0x438] sm:$0xff]  ;;  %v2447_v51 = vsel %vm1255_vm1, %v6835_v49, %v2446_v1  ;;  %v2452_v20 = vsel %vm1255_vm1, %v6861_v33, %v2451_v2 }
  0xfd   : > { %7714 = vst [vmem:[#allocation20_spill] sm:$0xff] %v6856_v9  ;;  %5384 = vmatprep.subr.mxu0 %v4286_v8  ;;  %5186 = vmatprep.mubr.f32.mxu1 %v6842_v14  ;;  %v6892_v13 = vsel %vm1255_vm1, %v2448_v54, %v6861_v33  ;;  %v4267_v54 = vld [vmem:[%s7640_s3 + $0x3a8] sm:$0xff]  ;;  %v3551_v9 = vrot.slane %v6725_v59, 2 }
  0xfe   : > { %5385 = vmatpush3.msra.mxu0 %v4286_v8  ;;  %5187 = vmatmul.mubr.f32.gmra.mxu1 %v2442_v3  ;;  %v6870_v36 = vpop.f32.mrf.mxu0  ;;  %v4268_v8 = vld [vmem:[%s7640_s3 + $0x3b0] sm:$0xff] }
  0xff   : > { %5266 = vmatprep.mubr.f32.mxu0 %v6483_v58  ;;  %5306 = vmatprep.subr.mxu1 %v4269_v25  ;;  %v2453_v58 = vrot.slane %v6535_v5, 2 }
 0x100   : > { %5267 = vmatmul.mubr.f32.gmra.mxu0 %v6485_v29  ;;  %5307 = vmatpush3.msra.mxu1 %v4269_v25  ;;  %v6880_v3 = vpop.f32.mrf.mxu1  ;;  %v4284_v29 = vld [vmem:[%s7640_s3 + $0x430] sm:$0xff] }
 0x101   : > { %7715 = vst [vmem:[#allocation21_spill] sm:$0xff] %v6880_v3  ;;  %5386 = vmatprep.subr.mxu0 %v4285_v53  ;;  %5189 = vmatprep.mubr.f32.mxu1 %v6868_v60 }
 0x102   : > { %5387 = vmatpush3.msra.mxu0 %v4285_v53  ;;  %5190 = vmatmul.mubr.f32.gmra.mxu1 %v2447_v51  ;;  %v6894_v1 = vpop.f32.mrf.mxu0  ;;  %v6896_v25 = vpop.f32.mrf.mxu1  ;;  %v2456_v53 = vrot.slane %v6543_v32, 2  ;;  %v6918_v32 = vsel %vm1255_vm1, %v2453_v58, %v6885_v50 }
 0x103   : > { %7716 = vst [vmem:[#allocation22_spill] sm:$0xff] %v6896_v25  ;;  %5269 = vmatprep.mubr.f32.mxu0 %v6509_v31  ;;  %5308 = vmatprep.subr.mxu1 %v4268_v8  ;;  %v2458_v31 = vrot.slane %v6561_v39, 2  ;;  %7718 = vst [vmem:[#allocation24_spill] sm:$0xff] %v6918_v32  ;;  %v2461_v25 = vrot.slane %v6569_v28, 2 }
 0x104   : > { %5270 = vmatmul.mubr.f32.gmra.mxu0 %v6511_v27  ;;  %5309 = vmatpush3.msra.mxu1 %v4268_v8  ;;  %v6906_v51 = vpop.f32.mrf.mxu0  ;;  %v4283_v27 = vld [vmem:[%s7640_s3 + $0x428] sm:$0xff]  ;;  %v2457_v8 = vsel %vm1255_vm1, %v6885_v50, %v2456_v53  ;;  %v6937_v53 = vrot.slane %v6589_v11, 2 }
 0x105   : > { %5388 = vmatprep.subr.mxu0 %v4284_v29  ;;  %5192 = vmatprep.mubr.f32.mxu1 %v6892_v13  ;;  %v6944_v28 = vsel %vm1255_vm1, %v2458_v31, %v6911_v19  ;;  %v6961_v31 = vrot.slane %v6615_v35, 2 }
 0x106   : > { %5389 = vmatpush3.msra.mxu0 %v4284_v29  ;;  %5193 = vmatmul.mubr.f32.gmra.mxu1 %v2452_v20  ;;  %v6920_v2 = vpop.f32.mrf.mxu1  ;;  %v4266_v20 = vld [vmem:[%s7640_s3 + $0x3a0] sm:$0xff]  ;;  %7721 = vst [vmem:[#allocation27_spill] sm:$0xff] %v6937_v53  ;;  %7722 = vst [vmem:[#allocation28_spill] sm:$0xff] %v6944_v28 }
 0x107   : > { %7719 = vst [vmem:[#allocation25_spill] sm:$0xff] %v6920_v2  ;;  %5272 = vmatprep.mubr.f32.mxu0 %v6535_v5  ;;  %5310 = vmatprep.subr.mxu1 %v4267_v54  ;;  %v2463_v5 = vrot.slane %v6587_v38, 2  ;;  %v2466_v2 = vrot.slane %v6595_v10, 2  ;;  %7724 = vst [vmem:[#allocation30_spill] sm:$0xff] %v6961_v31 }
 0x108   : > { %5273 = vmatmul.mubr.f32.gmra.mxu0 %v6537_v34  ;;  %5311 = vmatpush3.msra.mxu1 %v4267_v54  ;;  %v6930_v29 = vpop.f32.mrf.mxu0  ;;  %v6932_v58 = vpop.f32.mrf.mxu1  ;;  %v4282_v34 = vld [vmem:[%s7640_s3 + $0x420] sm:$0xff] }
 0x109   : > { %7720 = vst [vmem:[#allocation26_spill] sm:$0xff] %v6932_v58  ;;  %5390 = vmatprep.subr.mxu0 %v4283_v27  ;;  %5195 = vmatprep.mubr.f32.mxu1 %v6918_v32  ;;  %v2462_v58 = vsel %vm1255_vm1, %v6911_v19, %v2461_v25  ;;  %v6968_v10 = vsel %vm1255_vm1, %v2463_v5, %v6937_v53  ;;  %v4264_v5 = vld [vmem:[%s7640_s3 + $0x390] sm:$0xff]  ;;  %v7736_v19 = vrot.slane %v6334_v7, 2  ;;  %v3552_v32 = vrot.slane %v6731_v56, 2 }
 0x10a   : > { %5391 = vmatpush3.msra.mxu0 %v4283_v27  ;;  %5196 = vmatmul.mubr.f32.gmra.mxu1 %v2457_v8  ;;  %v6946_v54 = vpop.f32.mrf.mxu0  ;;  %v4265_v27 = vld [vmem:[%s7640_s3 + $0x398] sm:$0xff]  ;;  %7725 = vst [vmem:[#allocation31_spill] sm:$0xff] %v6968_v10 }
 0x10b   : > { %5275 = vmatprep.mubr.f32.mxu0 %v6561_v39  ;;  %5312 = vmatprep.subr.mxu1 %v4266_v20  ;;  %v2468_v39 = vrot.slane %v6613_v12, 2 }
 0x10c   : > { %5276 = vmatmul.mubr.f32.gmra.mxu0 %v6563_v62  ;;  %5313 = vmatpush3.msra.mxu1 %v4266_v20  ;;  %v6956_v8 = vpop.f32.mrf.mxu1  ;;  %v4281_v62 = vld [vmem:[%s7640_s3 + $0x418] sm:$0xff] }
 0x10d   : > { %7723 = vst [vmem:[#allocation29_spill] sm:$0xff] %v6956_v8  ;;  %5392 = vmatprep.subr.mxu0 %v4282_v34  ;;  %5198 = vmatprep.mubr.f32.mxu1 %v6944_v28  ;;  %v2467_v8 = vsel %vm1255_vm1, %v6937_v53, %v2466_v2 }
 0x10e   : > { %5393 = vmatpush3.msra.mxu0 %v4282_v34  ;;  %5199 = vmatmul.mubr.f32.gmra.mxu1 %v2462_v58  ;;  %v6970_v25 = vpop.f32.mrf.mxu0  ;;  %v6972_v20 = vpop.f32.mrf.mxu1  ;;  %v2471_v58 = vrot.slane %v6621_v16, 2  ;;  %v4280_v16 = vld [vmem:[%s7640_s3 + $0x410] sm:$0xff] }
 0x10f   : > { %7726 = vst [vmem:[#allocation32_spill] sm:$0xff] %v6972_v20  ;;  %5278 = vmatprep.mubr.f32.mxu0 %v6587_v38  ;;  %5314 = vmatprep.subr.mxu1 %v4265_v27  ;;  %v2473_v38 = vrot.slane %v6639_v40, 2  ;;  %v6987_v20 = vrot.slane %v6641_v22, 2 }
 0x110   : > { %5279 = vmatmul.mubr.f32.gmra.mxu0 %v6589_v11  ;;  %5315 = vmatpush3.msra.mxu1 %v4265_v27  ;;  %v6982_v34 = vpop.f32.mrf.mxu0  ;;  %v6994_v11 = vsel %vm1255_vm1, %v2468_v39, %v6961_v31  ;;  %v2472_v27 = vsel %vm1255_vm1, %v6961_v31, %v2471_v58  ;;  %v5491_v58 = vld [vmem:[#allocation2 + $0x38] sm:$0xff]  ;;  %v4262_v31 = vld [vmem:[%s7640_s3 + $0x380] sm:$0xff] }
 0x111   : > { %5394 = vmatprep.subr.mxu0 %v4281_v62  ;;  %5201 = vmatprep.mubr.f32.mxu1 %v6968_v10  ;;  %7727 = vst [vmem:[#allocation33_spill] sm:$0xff] %v6987_v20  ;;  %7728 = vst [vmem:[#allocation34_spill] sm:$0xff] %v6994_v11  ;;  %v2476_v10 = vrot.slane %v6647_v52, 2  ;;  %v4279_v52 = vld [vmem:[%s7640_s3 + $0x408] sm:$0xff] }
 0x112   : > { %5395 = vmatpush3.msra.mxu0 %v4281_v62  ;;  %5202 = vmatmul.mubr.f32.gmra.mxu1 %v2467_v8  ;;  %v6996_v2 = vpop.f32.mrf.mxu1  ;;  %v4263_v8 = vld [vmem:[%s7640_s3 + $0x388] sm:$0xff] }
 0x113   : > { %7729 = vst [vmem:[#allocation35_spill] sm:$0xff] %v6996_v2  ;;  %5281 = vmatprep.mubr.f32.mxu0 %v6613_v12  ;;  %5316 = vmatprep.subr.mxu1 %v4264_v5  ;;  %v2787_v2 = vld [vmem:[#allocation2 + $0x40] sm:$0x3] }
 0x114   : > { %5282 = vmatmul.mubr.f32.gmra.mxu0 %v6615_v35  ;;  %5317 = vmatpush3.msra.mxu1 %v4264_v5  ;;  %v7006_v62 = vpop.f32.mrf.mxu0  ;;  %v7008_v39 = vpop.f32.mrf.mxu1  ;;  %v7018_v35 = vsel %vm1255_vm1, %v2473_v38, %v6987_v20  ;;  %v3156_v5 = vrot.slane %v5491_v58, 1  ;;  %v3542_v38 = vrot.slane %v5491_v58, 2  ;;  %v7040_v58 = vld [vmem:[#allocation2] sm:$0xff] }
 0x115   : > { %7730 = vst [vmem:[#allocation36_spill] sm:$0xff] %v7008_v39  ;;  %5396 = vmatprep.subr.mxu0 %v4280_v16  ;;  %5204 = vmatprep.mubr.f32.mxu1 %v6994_v11  ;;  %7731 = vst [vmem:[#allocation37_spill] sm:$0xff] %v7018_v35  ;;  %v2477_v39 = vsel %vm1255_vm1, %v6987_v20, %v2476_v10  ;;  %v2790_v11 = vld [vmem:[#allocation2 + $0x58] sm:$0x3]  ;;  %v7049_v20 = vld [vmem:[%s7641_s4] ss:$0 sm:$0xff] }
 0x116   : > { %5397 = vmatpush3.msra.mxu0 %v4280_v16  ;;  %5205 = vmatmul.mubr.f32.gmra.mxu1 %v2472_v27  ;;  %v7014_v12 = vpop.f32.mrf.mxu0  ;;  %v3158_v16 = vrot.slane %v2787_v2, 1  ;;  %7735 = vst [vmem:[#allocation40_spill] sm:$0xff] %v7040_v58  ;;  %v3549_v3 = vrot.slane %v2790_v11, 2 }
 0x117   : > { %5284 = vmatprep.mubr.f32.mxu0 %v6639_v40  ;;  %5318 = vmatprep.subr.mxu1 %v4263_v8  ;;  %v3544_v40 = vrot.slane %v2787_v2, 2 }
 0x118   : > { %5285 = vmatmul.mubr.f32.gmra.mxu0 %v6641_v22  ;;  %5319 = vmatpush3.msra.mxu1 %v4263_v8  ;;  %v7024_v27 = vpop.f32.mrf.mxu1  ;;  %v4278_v22 = vld [vmem:[%s7640_s3 + $0x400] sm:$0xff]  ;;  %v7734_v8 = vrot.slane %v6334_v7, 1  ;;  %v3159_v2 = vsel %vm868_vm0, %v3156_v5, %v3158_v16  ;;  %v789_v16 = vadd.f32 %v6780_v43, %v7049_v20  ;;  %v788_v7 = vadd.f32 %v7049_v20, %v6794_v45 }
 0x119   : > { %7732 = vst [vmem:[#allocation38_spill] sm:$0xff] %v7024_v27  ;;  %5398 = vmatprep.subr.mxu0 %v4279_v52  ;;  %5207 = vmatprep.mubr.f32.mxu1 %v7018_v35  ;;  %v3165_v35 = vrot.slane %v6725_v59, 1  ;;  %v3545_v28 = vsel %vm1255_vm1, %v3542_v38, %v3544_v40  ;;  %v3171_v59 = vrot.slane %v6747_v44, 1  ;;  %v791_v45 = vadd.f32 %v6818_v15, %v7049_v20 }
 0x11a   : > { %5399 = vmatpush3.msra.mxu0 %v4279_v52  ;;  %5208 = vmatmul.mubr.f32.gmra.mxu1 %v2477_v39  ;;  %v7030_v53 = vpop.f32.mrf.mxu0  ;;  %v7032_v10 = vpop.f32.mrf.mxu1  ;;  %v3157_v27 = vsel %vm868_vm0, %v7734_v8, %v3156_v5  ;;  %v3163_v39 = vrot.slane %v2790_v11, 1  ;;  %v2793_v52 = vld [vmem:[#allocation2 + $0x70] sm:$0x3]  ;;  %v3543_v5 = vsel %vm1255_vm1, %v7736_v19, %v3542_v38  ;;  %v3170_v11 = vrot.slane %v6741_v48, 1 }
 0x11b   : > { %7733 = vst [vmem:[#allocation39_spill] sm:$0xff] %v7032_v10  ;;  %5287 = vmatprep.mubr.f32.mxu0 %v7040_v58  ;;  %5320 = vmatprep.subr.mxu1 %v4262_v31  ;;  %v3166_v10 = vrot.slane %v6731_v56, 1  ;;  %v3554_v40 = vrot.slane %v2793_v52, 2  ;;  %v790_v15 = vadd.f32 %v7049_v20, %v6830_v47  ;;  %v793_v47 = vadd.f32 %v6854_v46, %v7049_v20 }
 0x11c   : > { %5288 = vmatmul.mubr.f32.gmra.mxu0 %v7040_v58  ;;  %5321 = vmatpush3.msra.mxu1 %v4262_v31  ;;  %v7052_v8 = vpop.f32.mrf.mxu0  ;;  %v3168_v58 = vrot.slane %v2793_v52, 1  ;;  %v3164_v43 = vsel %vm868_vm0, %v6371_v4, %v3163_v39  ;;  %v3550_v4 = vsel %vm1255_vm1, %v6698_v24, %v3549_v3  ;;  %v3556_v39 = vrot.slane %v6741_v48, 2  ;;  %v2799_v24 = vld [vmem:[#allocation2 + $0xa0] sm:$0x3] }
 0x11d   : > { %5400 = vmatprep.subr.mxu0 %v4278_v22  ;;  %5322 = vmatprep.mubr.f32.mxu1 %v3157_v27  ;;  %v3167_v38 = vsel %vm868_vm0, %v3165_v35, %v3166_v10  ;;  %v3553_v52 = vsel %vm1255_vm1, %v3551_v9, %v3552_v32  ;;  %v3175_v48 = vrot.slane %v6757_v41, 1  ;;  %v3172_v9 = vsel %vm868_vm0, %v3170_v11, %v3171_v59 }
 0x11e   : > { %5401 = vmatpush3.msra.mxu0 %v4278_v22  ;;  %v4844_v31 = vpop.f32.mrf.mxu1  ;;  %5323 = vmatmul.mubr.f32.vlgmr.msra.gmra.mxu1 %v3159_v2  ;;  %v2796_v22 = vld [vmem:[#allocation2 + $0x88] sm:$0x3]  ;;  %v3169_v35 = vsel %vm868_vm0, %v3166_v10, %v3168_v58  ;;  %v3555_v10 = vsel %vm1255_vm1, %v3552_v32, %v3554_v40  ;;  %v3178_v32 = vrot.slane %v2799_v24, 1  ;;  %v792_v11 = vadd.f32 %v7049_v20, %v6870_v36 }
 0x11f   : > { %v1224_v19 = vadd.f32 %v4844_v31, %v789_v16  ;;  %5402 = vmatprep.mubr.f32.mxu0 %v3543_v5  ;;  %5325 = vmatprep.mubr.f32.mxu1 %v6384_v21  ;;  %v795_v36 = vadd.f32 %v6894_v1, %v7049_v20  ;;  %v794_v1 = vadd.f32 %v7049_v20, %v6906_v51 }
 0x120   : > { %v4924_v27 = vpop.f32.mrf.mxu0  ;;  %5403 = vmatmul.mubr.f32.vlgmr.msra.gmra.mxu0 %v3545_v28  ;;  %v1064_v56 = vpop.f32.mrf.mxu1  ;;  %v3557_v28 = vrot.slane %v6747_v44, 2  ;;  %v3176_v44 = vrot.slane %v6763_v0, 1 }
 0x121   : > { %v7072_v2 = vadd.f32 %v4924_v27, %v1224_v19  ;;  %v1223_v21 = vadd.f32 %v1064_v56, %v788_v7  ;;  %5405 = vmatprep.mubr.f32.mxu0 %v6718_v6  ;;  %v3173_v7 = vrot.slane %v2796_v22, 1  ;;  %v3559_v27 = vrot.slane %v2796_v22, 2 }
 0x122   : > { %v1451_v5 = vpop.f32.mrf.mxu0  ;;  %v4847_v16 = vpop.f32.mrf.mxu1  ;;  %5326 = vmatmul.mubr.f32.gmra.mxu1 %v3164_v43  ;;  %v3561_v56 = vrot.slane %v6757_v41, 2  ;;  %v3180_v22 = vrot.slane %v6775_v23, 1  ;;  %v3181_v41 = vrot.slane %v6783_v57, 1 }
 0x123   : > { %v7083_v31 = vadd.f32 %v1451_v5, %v1223_v21  ;;  %v1226_v6 = vadd.f32 %v4847_v16, %v791_v45  ;;  %5328 = vmatprep.mubr.f32.mxu1 %v3167_v38  ;;  %v3562_v38 = vrot.slane %v6763_v0, 2  ;;  %v3174_v5 = vsel %vm868_vm0, %v3171_v59, %v3173_v7 }
 0x124   : > { %v4927_v3 = vpop.f32.mrf.mxu0  ;;  %5406 = vmatmul.mubr.f32.gmra.mxu0 %v3550_v4  ;;  %v1074_v19 = vpop.f32.mrf.mxu1  ;;  %v3558_v4 = vsel %vm1255_vm1, %v3556_v39, %v3557_v28  ;;  %v3564_v39 = vrot.slane %v2799_v24, 2  ;;  %v3560_v59 = vsel %vm1255_vm1, %v3557_v28, %v3559_v27  ;;  %v3566_v7 = vrot.slane %v6775_v23, 2  ;;  %v2805_v28 = vld [vmem:[#allocation2 + $0xd0] sm:$0x3] }
 0x125   : > { %v7091_v58 = vadd.f32 %v4927_v3, %v1226_v6  ;;  %v1225_v43 = vadd.f32 %v1074_v19, %v790_v15  ;;  %5408 = vmatprep.mubr.f32.mxu0 %v3553_v52  ;;  %v2802_v52 = vld [vmem:[#allocation2 + $0xb8] sm:$0x3]  ;;  %v3567_v3 = vrot.slane %v6783_v57, 2  ;;  %v3563_v24 = vsel %vm1255_vm1, %v3561_v56, %v3562_v38 }
 0x126   : > { %v1461_v45 = vpop.f32.mrf.mxu0  ;;  %v4850_v21 = vpop.f32.mrf.mxu1  ;;  %5329 = vmatmul.mubr.f32.gmra.mxu1 %v3169_v35  ;;  %v3177_v35 = vsel %vm868_vm0, %v3175_v48, %v3176_v44  ;;  %v3179_v48 = vsel %vm868_vm0, %v3176_v44, %v3178_v32  ;;  %v3565_v57 = vsel %vm1255_vm1, %v3562_v38, %v3564_v39  ;;  %v797_v44 = vadd.f32 %v6930_v29, %v7049_v20  ;;  %v2808_v39 = vld [vmem:[#allocation2 + $0xe8] sm:$0x3] }
 0x127   : > { %v7098_v40 = vadd.f32 %v1461_v45, %v1225_v43  ;;  %v1228_v46 = vadd.f32 %v4850_v21, %v793_v47  ;;  %5331 = vmatprep.mubr.f32.mxu1 %v3172_v9  ;;  %v3183_v43 = vrot.slane %v2802_v52, 1  ;;  %v3182_v45 = vsel %vm868_vm0, %v3180_v22, %v3181_v41 }
 0x128   : > { %v4930_v0 = vpop.f32.mrf.mxu0  ;;  %5409 = vmatmul.mubr.f32.gmra.mxu0 %v3555_v10  ;;  %v1084_v16 = vpop.f32.mrf.mxu1  ;;  %v3569_v51 = vrot.slane %v2802_v52, 2  ;;  %v799_v52 = vadd.f32 %v6970_v25, %v7049_v20  ;;  %v3193_v25 = vrot.slane %v2808_v39, 1 }
 0x129   : > { %v7106_v15 = vadd.f32 %v4930_v0, %v1228_v46  ;;  %v1227_v6 = vadd.f32 %v1084_v16, %v792_v11  ;;  %5411 = vmatprep.mubr.f32.mxu0 %v3558_v4  ;;  %v3568_v11 = vsel %vm1255_vm1, %v3566_v7, %v3567_v3  ;;  %v3188_v46 = vrot.slane %v2805_v28, 1 }
 0x12a   : > { %v1471_v19 = vpop.f32.mrf.mxu0  ;;  %v4853_v10 = vpop.f32.mrf.mxu1  ;;  %5332 = vmatmul.mubr.f32.gmra.mxu1 %v3174_v5  ;;  %v796_v5 = vadd.f32 %v7049_v20, %v6946_v54  ;;  %v3184_v29 = vsel %vm868_vm0, %v3181_v41, %v3183_v43  ;;  %v3570_v54 = vsel %vm1255_vm1, %v3567_v3, %v3569_v51 }
 0x12b   : > { %v7115_v9 = vadd.f32 %v1471_v19, %v1227_v6  ;;  %v1230_v47 = vadd.f32 %v4853_v10, %v795_v36  ;;  %5334 = vmatprep.mubr.f32.mxu1 %v3177_v35  ;;  %v3574_v35 = vrot.slane %v2805_v28, 2  ;;  %v3189_v41 = vsel %vm868_vm0, %v6451_v42, %v3188_v46  ;;  %v2814_v46 = vld [vmem:[#allocation2 + $0x118] sm:$0x3] }
 0x12c   : > { %v4933_v27 = vpop.f32.mrf.mxu0  ;;  %5412 = vmatmul.mubr.f32.gmra.mxu0 %v3560_v59  ;;  %v1094_v23 = vpop.f32.mrf.mxu1  ;;  %v798_v19 = vadd.f32 %v7049_v20, %v6982_v34  ;;  %v801_v28 = vadd.f32 %v7006_v62, %v7049_v20  ;;  %v3579_v34 = vrot.slane %v2808_v39, 2 }
 0x12d   : > { %v7121_v56 = vadd.f32 %v4933_v27, %v1230_v47  ;;  %v1229_v21 = vadd.f32 %v1094_v23, %v794_v1  ;;  %5414 = vmatprep.mubr.f32.mxu0 %v3563_v24  ;;  %v7737_v24 = vld [vmem:[#allocation3_spill] sm:$0xff]  ;;  %v2811_v1 = vld [vmem:[#allocation2 + $0x100] sm:$0x3]  ;;  %v3575_v3 = vsel %vm1255_vm1, %v6789_v26, %v3574_v35  ;;  %v7740_v35 = vld [vmem:[#allocation6_spill] sm:$0xff] }
 0x12e   : > { %v1481_v4 = vpop.f32.mrf.mxu0  ;;  %v4856_v32 = vpop.f32.mrf.mxu1  ;;  %5335 = vmatmul.mubr.f32.gmra.mxu1 %v3179_v48  ;;  %v7738_v26 = vld [vmem:[#allocation5_spill] sm:$0xff] }
 0x12f   : > { %v7126_v38 = vadd.f32 %v1481_v4, %v1229_v21  ;;  %v1232_v22 = vadd.f32 %v4856_v32, %v797_v44  ;;  %5337 = vmatprep.mubr.f32.mxu1 %v3182_v45  ;;  %v3198_v45 = vrot.slane %v2811_v1, 1  ;;  %v800_v44 = vadd.f32 %v7049_v20, %v7014_v12  ;;  %v7739_v4 = vld [vmem:[#allocation4_spill] sm:$0xff] }
 0x130   : > { %v4936_v0 = vpop.f32.mrf.mxu0  ;;  %5415 = vmatmul.mubr.f32.gmra.mxu0 %v3565_v57  ;;  %v1104_v16 = vpop.f32.mrf.mxu1  ;;  %v3194_v62 = vsel %vm868_vm0, %v7739_v4, %v3193_v25  ;;  %v3580_v12 = vsel %vm1255_vm1, %v6809_v37, %v3579_v34 }
 0x131   : > { %v7131_v36 = vadd.f32 %v4936_v0, %v1232_v22  ;;  %v1231_v6 = vadd.f32 %v1104_v16, %v796_v5  ;;  %5417 = vmatprep.mubr.f32.mxu0 %v3568_v11  ;;  %v803_v5 = vadd.f32 %v7030_v53, %v7049_v20  ;;  %v3199_v39 = vsel %vm868_vm0, %v7740_v35, %v3198_v45 }
 0x132   : > { %v1491_v59 = vpop.f32.mrf.mxu0  ;;  %v4859_v7 = vpop.f32.mrf.mxu1  ;;  %5338 = vmatmul.mubr.f32.gmra.mxu1 %v3184_v29  ;;  %v807_v45 = vadd.f32 %v6804_v17, %v7049_v20 }
 0x133   : > { %v7138_v10 = vadd.f32 %v1491_v59, %v1231_v6  ;;  %v1234_v48 = vadd.f32 %v4859_v7, %v799_v52  ;;  %5340 = vmatprep.mubr.f32.mxu1 %v7737_v24  ;;  %v802_v52 = vadd.f32 %v7049_v20, %v7052_v8  ;;  %v3203_v59 = vrot.slane %v2814_v46, 1  ;;  %v2817_v7 = vld [vmem:[#allocation2 + $0x130] sm:$0x3] }
 0x134   : > { %v4939_v47 = vpop.f32.mrf.mxu0  ;;  %5418 = vmatmul.mubr.f32.gmra.mxu0 %v3570_v54  ;;  %v1114_v43 = vpop.f32.mrf.mxu1  ;;  %v7741_v54 = vld [vmem:[#allocation7_spill] sm:$0xff]  ;;  %v3589_v8 = vrot.slane %v2814_v46, 2 }
 0x135   : > { %v7145_v42 = vadd.f32 %v4939_v47, %v1234_v48  ;;  %v1233_v27 = vadd.f32 %v1114_v43, %v798_v19  ;;  %5420 = vmatprep.mubr.f32.mxu0 %v6816_v18  ;;  %v3584_v18 = vrot.slane %v2811_v1, 2  ;;  %v805_v19 = vadd.f32 %v6772_v63, %v7049_v20  ;;  %v7745_v46 = vld [vmem:[#allocation11_spill] sm:$0xff] }
 0x136   : > { %v1501_v23 = vpop.f32.mrf.mxu0  ;;  %v4862_v57 = vpop.f32.mrf.mxu1  ;;  %5341 = vmatmul.mubr.f32.gmra.mxu1 %v3189_v41  ;;  %v3208_v47 = vrot.slane %v2817_v7, 1  ;;  %v804_v43 = vadd.f32 %v7049_v20, %v6785_v30  ;;  %v3590_v30 = vsel %vm1255_vm1, %v6861_v33, %v3589_v8 }
 0x137   : > { %v7150_v21 = vadd.f32 %v1501_v23, %v1233_v27  ;;  %v1236_v51 = vadd.f32 %v4862_v57, %v801_v28  ;;  %5343 = vmatprep.mubr.f32.mxu1 %v7738_v26  ;;  %v3585_v37 = vsel %vm1255_vm1, %v6835_v49, %v3584_v18  ;;  %v7742_v49 = vld [vmem:[#allocation9_spill] sm:$0xff]  ;;  %v7743_v27 = vld [vmem:[#allocation8_spill] sm:$0xff]  ;;  %v2820_v57 = vld [vmem:[#allocation2 + $0x148] sm:$0x3] }
 0x138   : > { %v4942_v32 = vpop.f32.mrf.mxu0  ;;  %5421 = vmatmul.mubr.f32.gmra.mxu0 %v3575_v3  ;;  %v1124_v11 = vpop.f32.mrf.mxu1  ;;  %v3204_v63 = vsel %vm868_vm0, %v7743_v27, %v3203_v59  ;;  %v7747_v59 = vld [vmem:[#allocation20_spill] sm:$0xff]  ;;  %v7752_v27 = vld [vmem:[#allocation23_spill] sm:$0xff] }
 0x139   : > { %v7157_v22 = vadd.f32 %v4942_v32, %v1236_v51  ;;  %v1235_v29 = vadd.f32 %v1124_v11, %v800_v44  ;;  %5423 = vmatprep.mubr.f32.mxu0 %v6842_v14  ;;  %v806_v11 = vadd.f32 %v7049_v20, %v6820_v61  ;;  %v7746_v61 = vld [vmem:[#allocation24_spill] sm:$0xff] }
 0x13a   : > { %v1511_v0 = vpop.f32.mrf.mxu0  ;;  %v4865_v16 = vpop.f32.mrf.mxu1  ;;  %5344 = vmatmul.mubr.f32.gmra.mxu1 %v3194_v62  ;;  %v7744_v62 = vld [vmem:[#allocation10_spill] sm:$0xff] }
 0x13b   : > { %v7166_v6 = vadd.f32 %v1511_v0, %v1235_v29  ;;  %v1238_v53 = vadd.f32 %v4865_v16, %v803_v5  ;;  %5346 = vmatprep.mubr.f32.mxu1 %v7741_v54  ;;  %v3209_v32 = vsel %vm868_vm0, %v7744_v62, %v3208_v47  ;;  %v3213_v5 = vrot.slane %v2820_v57, 1  ;;  %v2823_v29 = vld [vmem:[#allocation2 + $0x160] sm:$0x3] }
 0x13c   : > { %v4945_v14 = vpop.f32.mrf.mxu0  ;;  %5424 = vmatmul.mubr.f32.gmra.mxu0 %v3580_v12  ;;  %v1134_v41 = vpop.f32.mrf.mxu1  ;;  %v809_v0 = vadd.f32 %v6844_v55, %v7049_v20  ;;  %v3218_v54 = vrot.slane %v2823_v29, 1  ;;  %v3604_v8 = vrot.slane %v2823_v29, 2  ;;  %v7757_v29 = vld [vmem:[#allocation25_spill] sm:$0xff] }
 0x13d   : > { %v7173_v48 = vadd.f32 %v4945_v14, %v1238_v53  ;;  %v1237_v24 = vadd.f32 %v1134_v41, %v802_v52  ;;  %5426 = vmatprep.mubr.f32.mxu0 %v6868_v60  ;;  %v3594_v60 = vrot.slane %v2817_v7, 2  ;;  %v808_v7 = vadd.f32 %v7049_v20, %v7747_v59 }
 0x13e   : > { %v1521_v25 = vpop.f32.mrf.mxu0  ;;  %v4868_v1 = vpop.f32.mrf.mxu1  ;;  %5347 = vmatmul.mubr.f32.gmra.mxu1 %v3199_v39  ;;  %v3599_v39 = vrot.slane %v2820_v57, 2 }
 0x13f   : > { %v7178_v3 = vadd.f32 %v1521_v25, %v1237_v24  ;;  %v1240_v28 = vadd.f32 %v4868_v1, %v805_v19  ;;  %5349 = vmatprep.mubr.f32.mxu1 %v7742_v49  ;;  %v3595_v33 = vsel %vm1255_vm1, %v6885_v50, %v3594_v60  ;;  %v7748_v50 = vld [vmem:[#allocation13_spill] sm:$0xff]  ;;  %v2826_v25 = vld [vmem:[#allocation2 + $0x178] sm:$0x3]  ;;  %v7753_v60 = vld [vmem:[#allocation14_spill] sm:$0xff] }
 0x140   : > { %v4948_v34 = vpop.f32.mrf.mxu0  ;;  %5427 = vmatmul.mubr.f32.gmra.mxu0 %v3585_v37  ;;  %v1144_v23 = vpop.f32.mrf.mxu1  ;;  %v7749_v37 = vld [vmem:[#allocation12_spill] sm:$0xff]  ;;  %v7750_v1 = vld [vmem:[#allocation21_spill] sm:$0xff]  ;;  %v3219_v57 = vsel %vm868_vm0, %v7753_v60, %v3218_v54  ;;  %v3223_v62 = vrot.slane %v2826_v25, 1 }
 0x141   : > { %v7185_v44 = vadd.f32 %v4948_v34, %v1240_v28  ;;  %v1239_v51 = vadd.f32 %v1144_v23, %v804_v43  ;;  %5429 = vmatprep.mubr.f32.mxu0 %v6892_v13  ;;  %v3214_v55 = vsel %vm868_vm0, %v7749_v37, %v3213_v5  ;;  %v811_v47 = vadd.f32 %v7750_v1, %v7049_v20  ;;  %v7751_v49 = vld [vmem:[#allocation28_spill] sm:$0xff]  ;;  %v2832_v1 = vld [vmem:[#allocation2 + $0x1a8] sm:$0x3] }
 0x142   : > { %v1531_v26 = vpop.f32.mrf.mxu0  ;;  %v4871_v4 = vpop.f32.mrf.mxu1  ;;  %5350 = vmatmul.mubr.f32.gmra.mxu1 %v3204_v63  ;;  %v3600_v63 = vsel %vm1255_vm1, %v7752_v27, %v3599_v39 }
 0x143   : > { %v7194_v18 = vadd.f32 %v1531_v26, %v1239_v51  ;;  %v1242_v17 = vadd.f32 %v4871_v4, %v807_v45  ;;  %5352 = vmatprep.mubr.f32.mxu1 %v7745_v46  ;;  %v7754_v45 = vld [vmem:[#allocation22_spill] sm:$0xff]  ;;  %v7755_v4 = vld [vmem:[#allocation15_spill] sm:$0xff] }
 0x144   : > { %v4951_v13 = vpop.f32.mrf.mxu0  ;;  %5430 = vmatmul.mubr.f32.gmra.mxu0 %v3590_v30  ;;  %v1154_v12 = vpop.f32.mrf.mxu1  ;;  %v810_v51 = vadd.f32 %v7049_v20, %v7754_v45  ;;  %v7756_v46 = vld [vmem:[#allocation27_spill] sm:$0xff] }
 0x145   : > { %v7201_v16 = vadd.f32 %v4951_v13, %v1242_v17  ;;  %v1241_v35 = vadd.f32 %v1154_v12, %v806_v11  ;;  %5432 = vmatprep.mubr.f32.mxu0 %v7746_v61  ;;  %v3605_v5 = vsel %vm1255_vm1, %v7756_v46, %v3604_v8  ;;  %v813_v13 = vadd.f32 %v7757_v29, %v7049_v20 }
 0x146   : > { %v1541_v52 = vpop.f32.mrf.mxu0  ;;  %v4874_v53 = vpop.f32.mrf.mxu1  ;;  %5353 = vmatmul.mubr.f32.gmra.mxu1 %v3209_v32  ;;  %v2829_v32 = vld [vmem:[#allocation2 + $0x190] sm:$0x3]  ;;  %v3233_v46 = vrot.slane %v2832_v1, 1 }
 0x147   : > { %v7206_v14 = vadd.f32 %v1541_v52, %v1241_v35  ;;  %v1244_v41 = vadd.f32 %v4874_v53, %v809_v0  ;;  %5355 = vmatprep.mubr.f32.mxu1 %v7748_v50  ;;  %v7758_v0 = vld [vmem:[#allocation31_spill] sm:$0xff]  ;;  %v3609_v35 = vrot.slane %v2826_v25, 2  ;;  %v3228_v52 = vrot.slane %v2829_v32, 1  ;;  %v7759_v53 = vld [vmem:[#allocation26_spill] sm:$0xff]  ;;  %v7761_v50 = vld [vmem:[#allocation16_spill] sm:$0xff] }
 0x148   : > { %v4954_v19 = vpop.f32.mrf.mxu0  ;;  %5433 = vmatmul.mubr.f32.gmra.mxu0 %v3595_v33  ;;  %v1164_v24 = vpop.f32.mrf.mxu1  ;;  %v812_v54 = vadd.f32 %v7049_v20, %v7759_v53  ;;  %v3224_v37 = vsel %vm868_vm0, %v7761_v50, %v3223_v62  ;;  %v3614_v25 = vrot.slane %v2829_v32, 2  ;;  %v3619_v53 = vrot.slane %v2832_v1, 2 }
 0x149   : > { %v7213_v43 = vadd.f32 %v4954_v19, %v1244_v41  ;;  %v1243_v28 = vadd.f32 %v1164_v24, %v808_v7  ;;  %5435 = vmatprep.mubr.f32.mxu0 %v7751_v49  ;;  %v7760_v41 = vld [vmem:[#allocation17_spill] sm:$0xff] }
 0x14a   : > { %v1551_v34 = vpop.f32.mrf.mxu0  ;;  %v4877_v23 = vpop.f32.mrf.mxu1  ;;  %5356 = vmatmul.mubr.f32.gmra.mxu1 %v3214_v55  ;;  %v7762_v55 = vld [vmem:[#allocation40_spill] sm:$0xff] }
 0x14b   : > { %v7222_v30 = vadd.f32 %v1551_v34, %v1243_v28  ;;  %v1246_v26 = vadd.f32 %v4877_v23, %v811_v47  ;;  %5358 = vmatprep.mubr.f32.mxu1 %v7755_v4  ;;  %v3230_v19 = vrot.slane %v7762_v55, 1  ;;  %v7763_v47 = vld [vmem:[#allocation29_spill] sm:$0xff]  ;;  %v7765_v34 = vld [vmem:[#allocation30_spill] sm:$0xff]  ;;  %v3616_v60 = vrot.slane %v7762_v55, 2  ;;  %v7767_v4 = vld [vmem:[#allocation32_spill] sm:$0xff] }
 0x14c   : > { %v4957_v11 = vpop.f32.mrf.mxu0  ;;  %5436 = vmatmul.mubr.f32.gmra.mxu0 %v3600_v63  ;;  %v1174_v17 = vpop.f32.mrf.mxu1  ;;  %v815_v28 = vadd.f32 %v7763_v47, %v7049_v20  ;;  %v7764_v63 = vld [vmem:[#allocation34_spill] sm:$0xff]  ;;  %v3610_v23 = vsel %vm1255_vm1, %v7765_v34, %v3609_v35  ;;  %v814_v62 = vadd.f32 %v7049_v20, %v7767_v4 }
 0x14d   : > { %v7229_v12 = vadd.f32 %v4957_v11, %v1246_v26  ;;  %v1245_v33 = vadd.f32 %v1174_v17, %v810_v51  ;;  %5438 = vmatprep.mubr.f32.mxu0 %v7758_v0  ;;  %v7766_v51 = vld [vmem:[#allocation18_spill] sm:$0xff]  ;;  %v7768_v17 = vld [vmem:[#allocation19_spill] sm:$0xff] }
 0x14e   : > { %v1561_v61 = vpop.f32.mrf.mxu0  ;;  %v4880_v39 = vpop.f32.mrf.mxu1  ;;  %5359 = vmatmul.mubr.f32.gmra.mxu1 %v3219_v57  ;;  %v3229_v26 = vsel %vm868_vm0, %v7766_v51, %v3228_v52  ;;  %v7770_v0 = vld [vmem:[#allocation35_spill] sm:$0xff]  ;;  %v7771_v52 = vld [vmem:[#allocation37_spill] sm:$0xff]  ;;  %v7773_v47 = vld [vmem:[#allocation38_spill] sm:$0xff] }
 0x14f   : > { %v7234_v59 = vadd.f32 %v1561_v61, %v1245_v33  ;;  %v1248_v7 = vadd.f32 %v4880_v39, %v813_v13  ;;  %5361 = vmatprep.mubr.f32.mxu1 %v7760_v41  ;;  %v7769_v13 = vld [vmem:[#allocation33_spill] sm:$0xff]  ;;  %v817_v35 = vadd.f32 %v7770_v0, %v7049_v20  ;;  %v7772_v41 = vld [vmem:[#allocation36_spill] sm:$0xff] }
 0x150   : > { %v4960_v24 = vpop.f32.mrf.mxu0  ;;  %5439 = vmatmul.mubr.f32.gmra.mxu0 %v3605_v5  ;;  %v1184_v8 = vpop.f32.mrf.mxu1  ;;  %v3615_v33 = vsel %vm1255_vm1, %v7769_v13, %v3614_v25  ;;  %v816_v50 = vadd.f32 %v7049_v20, %v7772_v41 }
 0x151   : > { %v7242_v49 = vadd.f32 %v4960_v24, %v1248_v7  ;;  %v1247_v27 = vadd.f32 %v1184_v8, %v812_v54  ;;  %5441 = vmatprep.mubr.f32.mxu0 %v7764_v63  ;;  %v3234_v24 = vsel %vm868_vm0, %v3230_v19, %v3233_v46  ;;  %v3620_v63 = vsel %vm1255_vm1, %v3616_v60, %v3619_v53 }
 0x152   : > { %v1571_v57 = vpop.f32.mrf.mxu0  ;;  %v4883_v45 = vpop.f32.mrf.mxu1  ;;  %5362 = vmatmul.mubr.f32.gmra.mxu1 %v3224_v37 }
 0x153   : > { %v7252_v32 = vadd.f32 %v1571_v57, %v1247_v27  ;;  %v1250_v11 = vadd.f32 %v4883_v45, %v815_v28  ;;  %5364 = vmatprep.mubr.f32.mxu1 %v7768_v17  ;;  %v819_v28 = vadd.f32 %v7773_v47, %v7049_v20  ;;  %v7774_v57 = vld [vmem:[#allocation39_spill] sm:$0xff] }
 0x154   : > { %v4963_v5 = vpop.f32.mrf.mxu0  ;;  %5442 = vmatmul.mubr.f32.gmra.mxu0 %v3610_v23  ;;  %v1194_v29 = vpop.f32.mrf.mxu1  ;;  %v818_v45 = vadd.f32 %v7049_v20, %v7774_v57 }
 0x155   : > { %v7259_v61 = vadd.f32 %v4963_v5, %v1250_v11  ;;  %v1249_v39 = vadd.f32 %v1194_v29, %v814_v62  ;;  %5444 = vmatprep.mubr.f32.mxu0 %v7771_v52 }
 0x156   : > { %v1581_v54 = vpop.f32.mrf.mxu0  ;;  %v4886_v7 = vpop.f32.mrf.mxu1  ;;  %5365 = vmatmul.mubr.f32.gmra.mxu1 %v3229_v26 }
 0x157   : > { %v7264_v37 = vadd.f32 %v1581_v54, %v1249_v39  ;;  %v1252_v55 = vadd.f32 %v4886_v7, %v817_v35  ;;  %5367 = vmatprep.mubr.f32.mxu1 %v3230_v19 }
 0x158   : > { %v4966_v8 = vpop.f32.mrf.mxu0  ;;  %5445 = vmatmul.mubr.f32.gmra.mxu0 %v3615_v33  ;;  %v1204_v25 = vpop.f32.mrf.mxu1 }
 0x159   : > { %v7269_v27 = vadd.f32 %v4966_v8, %v1252_v55  ;;  %v1251_v1 = vadd.f32 %v1204_v25, %v816_v50  ;;  %5447 = vmatprep.mubr.f32.mxu0 %v3616_v60 }
 0x15a   : > { %v1591_v34 = vpop.f32.mrf.mxu0  ;;  %v4889_v23 = vpop.f32.mrf.mxu1  ;;  %5368 = vmatmul.mubr.f32.gmra.mxu1 %v3234_v24 }
 0x15b   : > { %v7274_v51 = vadd.f32 %v1591_v34, %v1251_v1  ;;  %v1254_v19 = vadd.f32 %v4889_v23, %v819_v28 }
 0x15c   : > { %v4969_v26 = vpop.f32.mrf.mxu0  ;;  %5448 = vmatmul.mubr.f32.gmra.mxu0 %v3620_v63  ;;  %v1214_v4 = vpop.f32.mrf.mxu1 }
 0x15d   : > { %v7276_v62 = vadd.f32 %v4969_v26, %v1254_v19  ;;  %v1253_v11 = vadd.f32 %v1214_v4, %v818_v45 }
 0x15e   : > { %v1601_v17 = vpop.f32.mrf.mxu0  ;;  %v5004_v46 = vpop.f32.mrf.mxu1 }
 0x15f   : > { %v7278_v5 = vadd.f32 %v1601_v17, %v1253_v11  ;;  %v1933_v60 = vadd.f32 %v5004_v46, %v7072_v2 }
 0x160   : > { %v5084_v29 = vpop.f32.mrf.mxu0  ;;  %v1773_v13 = vpop.f32.mrf.mxu1 }
 0x161   : > { %v7281_v33 = vadd.f32 %v5084_v29, %v1933_v60  ;;  %v1932_v20 = vadd.f32 %v1773_v13, %v7083_v31 }
 0x162   : > { %v2207_v0 = vpop.f32.mrf.mxu0  ;;  %v5007_v35 = vpop.f32.mrf.mxu1 }
 0x163   : > { %v7284_v39 = vadd.f32 %v2207_v0, %v1932_v20  ;;  %v1935_v52 = vadd.f32 %v5007_v35, %v7091_v58 }
 0x164   : > { %v5087_v53 = vpop.f32.mrf.mxu0  ;;  %v1783_v54 = vpop.f32.mrf.mxu1 }
 0x165   : > { %v7287_v7 = vadd.f32 %v5087_v53, %v1935_v52  ;;  %v1934_v41 = vadd.f32 %v1783_v54, %v7098_v40 }
 0x166   : > { %v2217_v50 = vpop.f32.mrf.mxu0  ;;  %v5010_v2 = vpop.f32.mrf.mxu1 }
 0x167   : > { %v7290_v55 = vadd.f32 %v2217_v50, %v1934_v41  ;;  %v1937_v24 = vadd.f32 %v5010_v2, %v7106_v15 }
 0x168   : > { %v5090_v8 = vpop.f32.mrf.mxu0  ;;  %v1793_v31 = vpop.f32.mrf.mxu1 }
 0x169   : > { %v7293_v25 = vadd.f32 %v5090_v8, %v1937_v24  ;;  %v1936_v47 = vadd.f32 %v1793_v31, %v7115_v9 }
 0x16a   : > { %v2227_v28 = vpop.f32.mrf.mxu0  ;;  %v5013_v58 = vpop.f32.mrf.mxu1 }
 0x16b   : > { %v7296_v1 = vadd.f32 %v2227_v28, %v1936_v47  ;;  %v1939_v63 = vadd.f32 %v5013_v58, %v7121_v56 }
 0x16c   : > { %v5093_v34 = vpop.f32.mrf.mxu0  ;;  %v1803_v40 = vpop.f32.mrf.mxu1 }
 0x16d   : > { %v7299_v23 = vadd.f32 %v5093_v34, %v1939_v63  ;;  %v1938_v57 = vadd.f32 %v1803_v40, %v7126_v38 }
 0x16e   : > { %v2237_v45 = vpop.f32.mrf.mxu0  ;;  %v5016_v15 = vpop.f32.mrf.mxu1 }
 0x16f   : > { %v7302_v19 = vadd.f32 %v2237_v45, %v1938_v57  ;;  %v1941_v26 = vadd.f32 %v5016_v15, %v7131_v36 }
 0x170   : > { %v5096_v4 = vpop.f32.mrf.mxu0  ;;  %v1813_v9 = vpop.f32.mrf.mxu1 }
 0x171   : > { %v7305_v11 = vadd.f32 %v5096_v4, %v1941_v26  ;;  %v1940_v17 = vadd.f32 %v1813_v9, %v7138_v10 }
 0x172   : > { %v2247_v46 = vpop.f32.mrf.mxu0  ;;  %v5019_v56 = vpop.f32.mrf.mxu1 }
 0x173   : > { %v7308_v60 = vadd.f32 %v2247_v46, %v1940_v17  ;;  %v1943_v29 = vadd.f32 %v5019_v56, %v7145_v42 }
 0x174   : > { %v5099_v13 = vpop.f32.mrf.mxu0  ;;  %v1823_v38 = vpop.f32.mrf.mxu1 }
 0x175   : > { %v7311_v20 = vadd.f32 %v5099_v13, %v1943_v29  ;;  %v1942_v0 = vadd.f32 %v1823_v38, %v7150_v21 }
 0x176   : > { %v2257_v35 = vpop.f32.mrf.mxu0  ;;  %v5022_v36 = vpop.f32.mrf.mxu1 }
 0x177   : > { %v7314_v52 = vadd.f32 %v2257_v35, %v1942_v0  ;;  %v1945_v53 = vadd.f32 %v5022_v36, %v7157_v22 }
 0x178   : > { %v5102_v54 = vpop.f32.mrf.mxu0  ;;  %v1833_v10 = vpop.f32.mrf.mxu1 }
 0x179   : > { %v7317_v41 = vadd.f32 %v5102_v54, %v1945_v53  ;;  %v1944_v50 = vadd.f32 %v1833_v10, %v7166_v6 }
 0x17a   : > { %v2267_v2 = vpop.f32.mrf.mxu0  ;;  %v5025_v42 = vpop.f32.mrf.mxu1 }
 0x17b   : > { %v7320_v24 = vadd.f32 %v2267_v2, %v1944_v50  ;;  %v1947_v8 = vadd.f32 %v5025_v42, %v7173_v48 }
 0x17c   : > { %v5105_v31 = vpop.f32.mrf.mxu0  ;;  %v1843_v21 = vpop.f32.mrf.mxu1 }
 0x17d   : > { %v7323_v47 = vadd.f32 %v5105_v31, %v1947_v8  ;;  %v1946_v28 = vadd.f32 %v1843_v21, %v7178_v3 }
 0x17e   : > { %v2277_v58 = vpop.f32.mrf.mxu0  ;;  %v5028_v22 = vpop.f32.mrf.mxu1 }
 0x17f   : > { %v7326_v63 = vadd.f32 %v2277_v58, %v1946_v28  ;;  %v1949_v34 = vadd.f32 %v5028_v22, %v7185_v44 }
 0x180   : > { %v5108_v40 = vpop.f32.mrf.mxu0  ;;  %v1853_v6 = vpop.f32.mrf.mxu1 }
 0x181   : > { %v7329_v57 = vadd.f32 %v5108_v40, %v1949_v34  ;;  %v1948_v45 = vadd.f32 %v1853_v6, %v7194_v18 }
 0x182   : > { %v2287_v15 = vpop.f32.mrf.mxu0  ;;  %v5031_v48 = vpop.f32.mrf.mxu1 }
 0x183   : > { %v7332_v26 = vadd.f32 %v2287_v15, %v1948_v45  ;;  %v1951_v4 = vadd.f32 %v5031_v48, %v7201_v16 }
 0x184   : > { %v5111_v9 = vpop.f32.mrf.mxu0  ;;  %v1863_v3 = vpop.f32.mrf.mxu1 }
 0x185   : > { %v7335_v17 = vadd.f32 %v5111_v9, %v1951_v4  ;;  %v1950_v46 = vadd.f32 %v1863_v3, %v7206_v14 }
 0x186   : > { %v2297_v56 = vpop.f32.mrf.mxu0  ;;  %v5034_v44 = vpop.f32.mrf.mxu1 }
 0x187   : > { %7775 = vst [vmem:[#allocation3_spill] sm:$0xff] %v7335_v17  ;;  %v7338_v29 = vadd.f32 %v2297_v56, %v1950_v46  ;;  %v1953_v13 = vadd.f32 %v5034_v44, %v7213_v43 }
 0x188   : > { %v5114_v38 = vpop.f32.mrf.mxu0  ;;  %v1873_v18 = vpop.f32.mrf.mxu1 }
 0x189   : > { %7776 = vst [vmem:[#allocation5_spill] sm:$0xff] %v7338_v29  ;;  %v7341_v0 = vadd.f32 %v5114_v38, %v1953_v13  ;;  %v1952_v35 = vadd.f32 %v1873_v18, %v7222_v30 }
 0x18a   : > { %v2307_v36 = vpop.f32.mrf.mxu0  ;;  %v5037_v16 = vpop.f32.mrf.mxu1 }
 0x18b   : > { %7777 = vst [vmem:[#allocation4_spill] sm:$0xff] %v7341_v0  ;;  %v7344_v53 = vadd.f32 %v2307_v36, %v1952_v35  ;;  %v1955_v54 = vadd.f32 %v5037_v16, %v7229_v12 }
 0x18c   : > { %v5117_v10 = vpop.f32.mrf.mxu0  ;;  %v1883_v14 = vpop.f32.mrf.mxu1 }
 0x18d   : > { %7778 = vst [vmem:[#allocation6_spill] sm:$0xff] %v7344_v53  ;;  %v7347_v50 = vadd.f32 %v5117_v10, %v1955_v54  ;;  %v1954_v2 = vadd.f32 %v1883_v14, %v7234_v59 }
 0x18e   : > { %v2317_v42 = vpop.f32.mrf.mxu0  ;;  %v5040_v43 = vpop.f32.mrf.mxu1 }
 0x18f   : > { %7779 = vst [vmem:[#allocation7_spill] sm:$0xff] %v7347_v50  ;;  %v7350_v8 = vadd.f32 %v2317_v42, %v1954_v2  ;;  %v1957_v31 = vadd.f32 %v5040_v43, %v7242_v49 }
 0x190   : > { %v5120_v21 = vpop.f32.mrf.mxu0  ;;  %v1893_v30 = vpop.f32.mrf.mxu1 }
 0x191   : > { %7780 = vst [vmem:[#allocation9_spill] sm:$0xff] %v7350_v8  ;;  %v7353_v28 = vadd.f32 %v5120_v21, %v1957_v31  ;;  %v1956_v58 = vadd.f32 %v1893_v30, %v7252_v32 }
 0x192   : > { %v2327_v22 = vpop.f32.mrf.mxu0  ;;  %v5043_v12 = vpop.f32.mrf.mxu1 }
 0x193   : > { %7781 = vst [vmem:[#allocation8_spill] sm:$0xff] %v7353_v28  ;;  %v7356_v34 = vadd.f32 %v2327_v22, %v1956_v58  ;;  %v1959_v40 = vadd.f32 %v5043_v12, %v7259_v61 }
 0x194   : > { %v5123_v6 = vpop.f32.mrf.mxu0  ;;  %v1903_v59 = vpop.f32.mrf.mxu1 }
 0x195   : > { %7782 = vst [vmem:[#allocation10_spill] sm:$0xff] %v7356_v34  ;;  %v7359_v45 = vadd.f32 %v5123_v6, %v1959_v40  ;;  %v1958_v15 = vadd.f32 %v1903_v59, %v7264_v37 }
 0x196   : > { %v2337_v48 = vpop.f32.mrf.mxu0  ;;  %v5046_v49 = vpop.f32.mrf.mxu1 }
 0x197   : > { %7783 = vst [vmem:[#allocation11_spill] sm:$0xff] %v7359_v45  ;;  %v7362_v4 = vadd.f32 %v2337_v48, %v1958_v15  ;;  %v1961_v9 = vadd.f32 %v5046_v49, %v7269_v27 }
 0x198   : > { %v5126_v3 = vpop.f32.mrf.mxu0  ;;  %v1913_v32 = vpop.f32.mrf.mxu1 }
 0x199   : > { %7784 = vst [vmem:[#allocation24_spill] sm:$0xff] %v7362_v4  ;;  %v7365_v46 = vadd.f32 %v5126_v3, %v1961_v9  ;;  %v1960_v56 = vadd.f32 %v1913_v32, %v7274_v51 }
 0x19a   : > { %v2347_v44 = vpop.f32.mrf.mxu0  ;;  %v5049_v61 = vpop.f32.mrf.mxu1 }
 0x19b   : > { %7785 = vst [vmem:[#allocation20_spill] sm:$0xff] %v7365_v46  ;;  %v7368_v13 = vadd.f32 %v2347_v44, %v1960_v56  ;;  %v1963_v38 = vadd.f32 %v5049_v61, %v7276_v62 }
 0x19c   : > { %v5129_v18 = vpop.f32.mrf.mxu0  ;;  %v1923_v37 = vpop.f32.mrf.mxu1 }
 0x19d   : > { %7786 = vst [vmem:[#allocation13_spill] sm:$0xff] %v7368_v13  ;;  %v7371_v35 = vadd.f32 %v5129_v18, %v1963_v38  ;;  %v1962_v36 = vadd.f32 %v1923_v37, %v7278_v5 }
 0x19e   : > { %v2357_v16 = vpop.f32.mrf.mxu0  ;;  %v5164_v27 = vpop.f32.mrf.mxu1 }
 0x19f   : > { %7787 = vst [vmem:[#allocation12_spill] sm:$0xff] %v7371_v35  ;;  %v7374_v54 = vadd.f32 %v2357_v16, %v1962_v36 }
 0x1a0   : > { %v7376_v10 = vpop.f32.mrf.mxu0  ;;  %v2593_v14 = vpop.f32.mrf.mxu1 }
 0x1a1   : > { %7788 = vst [vmem:[#allocation21_spill] sm:$0xff] %v7374_v54 }
 0x1a2   : > { %v7378_v51 = vpop.f32.mrf.mxu0  ;;  %v5167_v2 = vpop.f32.mrf.mxu1 }
 0x1a4   : > { %v7380_v42 = vpop.f32.mrf.mxu0  ;;  %v7382_v43 = vpop.f32.mrf.mxu1 }
 0x1a6   : > { %v7384_v62 = vpop.f32.mrf.mxu0  ;;  %v7386_v31 = vpop.f32.mrf.mxu1 }
 0x1a8   : > { %v7388_v21 = vpop.f32.mrf.mxu0  ;;  %v7390_v5 = vpop.f32.mrf.mxu1 }
 0x1aa   : > { %v7392_v30 = vpop.f32.mrf.mxu0  ;;  %v7394_v58 = vpop.f32.mrf.mxu1 }
 0x1ac   : > { %v7396_v22 = vpop.f32.mrf.mxu0  ;;  %v7398_v12 = vpop.f32.mrf.mxu1 }
 0x1ae   : > { %v7400_v40 = vpop.f32.mrf.mxu0  ;;  %v7402_v6 = vpop.f32.mrf.mxu1 }
 0x1b0   : > { %v7404_v59 = vpop.f32.mrf.mxu0  ;;  %v7406_v15 = vpop.f32.mrf.mxu1 }
 0x1b2   : > { %v7408_v48 = vpop.f32.mrf.mxu0  ;;  %v7410_v49 = vpop.f32.mrf.mxu1 }
 0x1b4   : > { %v7412_v9 = vpop.f32.mrf.mxu0  ;;  %v7414_v3 = vpop.f32.mrf.mxu1 }
 0x1b6   : > { %v7416_v32 = vpop.f32.mrf.mxu0  ;;  %v7418_v56 = vpop.f32.mrf.mxu1 }
 0x1b8   : > { %v7420_v44 = vpop.f32.mrf.mxu0  ;;  %v7422_v61 = vpop.f32.mrf.mxu1 }
 0x1ba   : > { %v7424_v38 = vpop.f32.mrf.mxu0  ;;  %v7426_v18 = vpop.f32.mrf.mxu1 }
 0x1bc   : > { %v7428_v37 = vpop.f32.mrf.mxu0  ;;  %v7430_v36 = vpop.f32.mrf.mxu1 }
 0x1be   : > { %v7432_v16 = vpop.f32.mrf.mxu0  ;;  %v7434_v54 = vpop.f32.mrf.mxu1 }
 0x1c0   : > { %v7436_v35 = vpop.f32.mrf.mxu0  ;;  %v7438_v13 = vpop.f32.mrf.mxu1 }
 0x1c2   : > { %v7440_v46 = vpop.f32.mrf.mxu0  ;;  %v7442_v4 = vpop.f32.mrf.mxu1 }
 0x1c3   : > { %7789 = vst [vmem:[#allocation28_spill] sm:$0xff] %v7440_v46  ;;  %7790 = vst [vmem:[#allocation23_spill] sm:$0xff] %v7442_v4 }
 0x1c4   : > { %v7444_v45 = vpop.f32.mrf.mxu0  ;;  %v7446_v34 = vpop.f32.mrf.mxu1 }
 0x1c5   : > { %7791 = vst [vmem:[#allocation14_spill] sm:$0xff] %v7444_v45  ;;  %7792 = vst [vmem:[#allocation22_spill] sm:$0xff] %v7446_v34 }
 0x1c6   : > { %v7448_v28 = vpop.f32.mrf.mxu0  ;;  %v7450_v8 = vpop.f32.mrf.mxu1 }
 0x1c7   : > { %7793 = vst [vmem:[#allocation15_spill] sm:$0xff] %v7448_v28  ;;  %7794 = vst [vmem:[#allocation27_spill] sm:$0xff] %v7450_v8 }
 0x1c8   : > { %v7452_v50 = vpop.f32.mrf.mxu0  ;;  %v7454_v53 = vpop.f32.mrf.mxu1 }
 0x1c9   : > { %7795 = vst [vmem:[#allocation25_spill] sm:$0xff] %v7452_v50  ;;  %7796 = vst [vmem:[#allocation31_spill] sm:$0xff] %v7454_v53 }
 0x1ca   : > { %v7456_v0 = vpop.f32.mrf.mxu0  ;;  %v7458_v29 = vpop.f32.mrf.mxu1 }
 0x1cb   : > { %7797 = vst [vmem:[#allocation26_spill] sm:$0xff] %v7456_v0  ;;  %7798 = vst [vmem:[#allocation17_spill] sm:$0xff] %v7458_v29 }
 0x1cc   : > { %v7460_v17 = vpop.f32.mrf.mxu0  ;;  %v7462_v46 = vpop.f32.mrf.mxu1 }
 0x1cd   : > { %7799 = vst [vmem:[#allocation16_spill] sm:$0xff] %v7460_v17  ;;  %7800 = vst [vmem:[#allocation40_spill] sm:$0xff] %v7462_v46 }
 0x1ce   : > { %v7464_v4 = vpop.f32.mrf.mxu0  ;;  %v7466_v45 = vpop.f32.mrf.mxu1 }
 0x1cf   : > { %7801 = vst [vmem:[#allocation29_spill] sm:$0xff] %v7464_v4  ;;  %7802 = vst [vmem:[#allocation34_spill] sm:$0xff] %v7466_v45 }
 0x1d0   : > { %v7468_v34 = vpop.f32.mrf.mxu0  ;;  %v7470_v28 = vpop.f32.mrf.mxu1 }
 0x1d1   : > { %7803 = vst [vmem:[#allocation30_spill] sm:$0xff] %v7468_v34  ;;  %7804 = vst [vmem:[#allocation18_spill] sm:$0xff] %v7470_v28  ;;  %v2753_v34 = vadd.f32 %v5164_v27, %v7281_v33  ;;  %v2754_v33 = vadd.f32 %v7382_v43, %v7290_v55 }
 0x1d2   : > { %v7472_v8 = vpop.f32.mrf.mxu0  ;;  %v7474_v50 = vpop.f32.mrf.mxu1 }
 0x1d3   : > { %7805 = vst [vmem:[#allocation32_spill] sm:$0xff] %v7472_v8  ;;  %7806 = vst [vmem:[#allocation19_spill] sm:$0xff] %v7474_v50  ;;  %v2752_v50 = vadd.f32 %v2593_v14, %v7284_v39  ;;  %v2757_v39 = vadd.f32 %v7386_v31, %v7293_v25  ;;  %v2756_v25 = vadd.f32 %v7390_v5, %v7296_v1 }
 0x1d4   : > { %v7476_v53 = vpop.f32.mrf.mxu0  ;;  %v7478_v0 = vpop.f32.mrf.mxu1  ;;  %v2758_v1 = vadd.f32 %v7398_v12, %v7302_v19 }
 0x1d5   : > { %7807 = vst [vmem:[#allocation33_spill] sm:$0xff] %v7476_v53  ;;  %7808 = vst [vmem:[#allocation35_spill] sm:$0xff] %v7478_v0  ;;  %v3080_v43 = vadd.f32 %v7388_v21, %v2757_v39 }
 0x1d6   : > { %v7480_v29 = vpop.f32.mrf.mxu0  ;;  %v7482_v17 = vpop.f32.mrf.mxu1 }
 0x1d7   : > { %7809 = vst [vmem:[#allocation37_spill] sm:$0xff] %v7480_v29  ;;  %7810 = vst [vmem:[#allocation36_spill] sm:$0xff] %v7482_v17  ;;  %v3076_v29 = vadd.f32 %v7376_v10, %v2753_v34  ;;  %v2755_v17 = vadd.f32 %v5167_v2, %v7287_v7 }
 0x1d8   : > { %v7484_v46 = vpop.f32.mrf.mxu0  ;;  %v7486_v4 = vpop.f32.mrf.mxu1 }
 0x1d9   : > { %7811 = vst [vmem:[#allocation38_spill] sm:$0xff] %v7484_v46  ;;  %7812 = vst [vmem:[#allocation39_spill] sm:$0xff] %v7486_v4  ;;  %v3075_v4 = vadd.f32 %v7378_v51, %v2752_v50  ;;  %v3078_v10 = vadd.f32 %v7380_v42, %v2755_v17 }
 0x1da   : > { %v7489_v28 = vpop.f32.mrf.mxu0  ;;  %v7491_v8 = vpop.f32.mrf.mxu1 }
 0x1dc   : > { %v7494_v53 = vpop.f32.mrf.mxu0  ;;  %v7496_v0 = vpop.f32.mrf.mxu1 }
 0x1dd   : > { %7813 = vst [vmem:[#allocation41_spill] sm:$0xff] %v7494_v53 }
 0x1de   : > { %v7500_v46 = vpop.f32.mrf.mxu0  ;;  %v5324_v45 = vpop.f32.mrf.mxu1 }
 0x1df   : > { %7814 = vst [vmem:[#allocation42_spill] sm:$0xff] %v7500_v46  ;;  %v3510_v27 = vadd.f32 %v5324_v45, %v3076_v29  ;;  %v3077_v29 = vadd.f32 %v7384_v62, %v2754_v33  ;;  %v2759_v62 = vadd.f32 %v7394_v58, %v7299_v23 }
 0x1e0   : > { %v5404_v7 = vpop.f32.mrf.mxu0  ;;  %v3350_v34 = vpop.f32.mrf.mxu1 }
 0x1e1   : > { %v3896_v50 = vadd.f32 %v5404_v7, %v3510_v27  ;;  %v3509_v14 = vadd.f32 %v3350_v34, %v3075_v4  ;;  %v3079_v7 = vadd.f32 %v7392_v30, %v2756_v25  ;;  %v3082_v19 = vadd.f32 %v7396_v22, %v2759_v62 }
 0x1e2   : > { %v3736_v51 = vpop.f32.mrf.mxu0  ;;  %v5327_v55 = vpop.f32.mrf.mxu1  ;;  %v3081_v30 = vadd.f32 %v7400_v40, %v2758_v1 }
 0x1e3   : > { %3928 = vst [vmem:[%s7512_s10 + $0x8] sm:$0xff] %v3896_v50  ;;  %v3895_v45 = vadd.f32 %v3736_v51, %v3509_v14  ;;  %v3512_v2 = vadd.f32 %v5327_v55, %v3078_v10  ;;  %v3998_v31 = vmul.f32 %v3896_v50, %v3896_v50  ;;  %v2761_v10 = vadd.f32 %v7402_v6, %v7305_v11 }
 0x1e4   : > { %v5407_v46 = vpop.f32.mrf.mxu0  ;;  %v3360_v53 = vpop.f32.mrf.mxu1  ;;  %v2760_v6 = vadd.f32 %v7406_v15, %v7308_v60 }
 0x1e5   : > { %3927 = vst [vmem:[%s7512_s10] sm:$0xff] %v3895_v45  ;;  %v3959_v17 = vadd.f32 %v3896_v50, %v3895_v45  ;;  %v3997_v4 = vmul.f32 %v3895_v45, %v3895_v45  ;;  %v3898_v42 = vadd.f32 %v5407_v46, %v3512_v2  ;;  %v3511_v27 = vadd.f32 %v3360_v53, %v3077_v29 }
 0x1e6   : > { %v3746_v5 = vpop.f32.mrf.mxu0  ;;  %v5330_v33 = vpop.f32.mrf.mxu1  ;;  %v3084_v11 = vadd.f32 %v7404_v59, %v2761_v10  ;;  %v2763_v2 = vadd.f32 %v7410_v49, %v7311_v20 }
 0x1e7   : > { %v4029_v21 = vadd.f32 %v3998_v31, %v3997_v4  ;;  %3930 = vst [vmem:[%s7512_s10 + $0x18] sm:$0xff] %v3898_v42  ;;  %v3897_v39 = vadd.f32 %v3746_v5, %v3511_v27  ;;  %v3514_v34 = vadd.f32 %v5330_v33, %v3080_v43  ;;  %v4000_v55 = vmul.f32 %v3898_v42, %v3898_v42 }
 0x1e8   : > { %v5410_v46 = vpop.f32.mrf.mxu0  ;;  %v3370_v53 = vpop.f32.mrf.mxu1  ;;  %v3083_v33 = vadd.f32 %v7408_v48, %v2760_v6 }
 0x1e9   : > { %3929 = vst [vmem:[%s7512_s10 + $0x10] sm:$0xff] %v3897_v39  ;;  %v3960_v50 = vadd.f32 %v3959_v17, %v3897_v39  ;;  %v3999_v23 = vmul.f32 %v3897_v39, %v3897_v39  ;;  %v3900_v58 = vadd.f32 %v5410_v46, %v3514_v34  ;;  %v3513_v14 = vadd.f32 %v3370_v53, %v3079_v7 }
 0x1ea   : > { %v3756_v12 = vpop.f32.mrf.mxu0  ;;  %v5333_v51 = vpop.f32.mrf.mxu1  ;;  %v3086_v7 = vadd.f32 %v7412_v9, %v2763_v2 }
 0x1eb   : > { %v4030_v29 = vadd.f32 %v4029_v21, %v3999_v23  ;;  %3932 = vst [vmem:[%s7512_s10 + $0x28] sm:$0xff] %v3900_v58  ;;  %v3899_v25 = vadd.f32 %v3756_v12, %v3513_v14  ;;  %v3961_v45 = vadd.f32 %v3960_v50, %v3898_v42  ;;  %v3516_v43 = vadd.f32 %v5333_v51, %v3082_v19 }
 0x1ec   : > { %v5413_v31 = vpop.f32.mrf.mxu0  ;;  %v3380_v22 = vpop.f32.mrf.mxu1  ;;  %v2762_v42 = vadd.f32 %v7414_v3, %v7314_v52  ;;  %v4002_v59 = vmul.f32 %v3900_v58, %v3900_v58  ;;  %v2765_v21 = vadd.f32 %v7418_v56, %v7317_v41  ;;  %v2764_v50 = vadd.f32 %v7422_v61, %v7320_v24 }
 0x1ed   : > { %3931 = vst [vmem:[%s7512_s10 + $0x20] sm:$0xff] %v3899_v25  ;;  %v3962_v40 = vadd.f32 %v3961_v45, %v3899_v25  ;;  %v4001_v17 = vmul.f32 %v3899_v25, %v3899_v25  ;;  %v4031_v4 = vadd.f32 %v4030_v29, %v4000_v55  ;;  %v3515_v27 = vadd.f32 %v3380_v22, %v3081_v30 }
 0x1ee   : > { %v3902_v62 = vadd.f32 %v5413_v31, %v3516_v43  ;;  %v3766_v1 = vpop.f32.mrf.mxu0  ;;  %v5336_v60 = vpop.f32.mrf.mxu1  ;;  %v3085_v53 = vadd.f32 %v7416_v32, %v2762_v42  ;;  %v3088_v19 = vadd.f32 %v7420_v44, %v2765_v21  ;;  %v2767_v32 = vadd.f32 %v7426_v18, %v7323_v47  ;;  %v7816_v21 = vld [vmem:[#allocation23_spill] sm:$0xff] }
 0x1ef   : > { %v4032_v15 = vadd.f32 %v4031_v4, %v4001_v17  ;;  %v3901_v5 = vadd.f32 %v3766_v1, %v3515_v27  ;;  %v3963_v20 = vadd.f32 %v3962_v40, %v3900_v58  ;;  %v3518_v49 = vadd.f32 %v5336_v60, %v3084_v11 }
 0x1f0   : > { %3934 = vst [vmem:[%s7512_s10 + $0x38] sm:$0xff] %v3902_v62  ;;  %v5416_v39 = vpop.f32.mrf.mxu0  ;;  %v3390_v34 = vpop.f32.mrf.mxu1  ;;  %v4004_v58 = vmul.f32 %v3902_v62, %v3902_v62  ;;  %v3087_v6 = vadd.f32 %v7424_v38, %v2764_v50  ;;  %v2766_v44 = vadd.f32 %v7430_v36, %v7326_v63  ;;  %v2769_v47 = vadd.f32 %v7434_v54, %v7329_v57  ;;  %v7819_v50 = vld [vmem:[#allocation22_spill] sm:$0xff] }
 0x1f1   : > { %3933 = vst [vmem:[%s7512_s10 + $0x30] sm:$0xff] %v3901_v5  ;;  %v3964_v52 = vadd.f32 %v3963_v20, %v3901_v5  ;;  %v4003_v3 = vmul.f32 %v3901_v5, %v3901_v5  ;;  %v4033_v10 = vadd.f32 %v4032_v15, %v4002_v59  ;;  %v3904_v46 = vadd.f32 %v5416_v39, %v3518_v49 }
 0x1f2   : > { %v3517_v48 = vadd.f32 %v3390_v34, %v3083_v33  ;;  %v3776_v9 = vpop.f32.mrf.mxu0  ;;  %v5339_v23 = vpop.f32.mrf.mxu1  ;;  %v3090_v4 = vadd.f32 %v7428_v37, %v2767_v32  ;;  %v3089_v1 = vadd.f32 %v7432_v16, %v2766_v44  ;;  %v2768_v57 = vadd.f32 %v7438_v13, %v7332_v26  ;;  %v7822_v32 = vld [vmem:[#allocation14_spill] sm:$0xff]  ;;  %v7823_v44 = vld [vmem:[#allocation15_spill] sm:$0xff] }
 0x1f3   : > { %v4034_v41 = vadd.f32 %v4033_v10, %v4003_v3  ;;  %3936 = vst [vmem:[%s7512_s10 + $0x48] sm:$0xff] %v3904_v46  ;;  %v3965_v56 = vadd.f32 %v3964_v52, %v3902_v62  ;;  %v3520_v14 = vadd.f32 %v5339_v23, %v3086_v7  ;;  %v4006_v18 = vmul.f32 %v3904_v46, %v3904_v46  ;;  %v7815_v7 = vld [vmem:[#allocation3_spill] sm:$0xff] }
 0x1f4   : > { %v3903_v30 = vadd.f32 %v3776_v9, %v3517_v48  ;;  %v5419_v12 = vpop.f32.mrf.mxu0  ;;  %v3400_v51 = vpop.f32.mrf.mxu1  ;;  %v3092_v15 = vadd.f32 %v7436_v35, %v2769_v47  ;;  %v2771_v39 = vadd.f32 %v7816_v21, %v7815_v7  ;;  %v7825_v47 = vld [vmem:[#allocation31_spill] sm:$0xff]  ;;  %v7831_v7 = vld [vmem:[#allocation40_spill] sm:$0xff] }
 0x1f5   : > { %v4035_v55 = vadd.f32 %v4034_v41, %v4004_v58  ;;  %v3906_v24 = vadd.f32 %v5419_v12, %v3520_v14  ;;  %v3519_v61 = vadd.f32 %v3400_v51, %v3085_v53  ;;  %v7818_v53 = vld [vmem:[#allocation5_spill] sm:$0xff]  ;;  %v7820_v58 = vld [vmem:[#allocation4_spill] sm:$0xff]  ;;  %v7821_v41 = vld [vmem:[#allocation27_spill] sm:$0xff] }
 0x1f6   : > { %3935 = vst [vmem:[%s7512_s10 + $0x40] sm:$0xff] %v3903_v30  ;;  %v3966_v29 = vadd.f32 %v3965_v56, %v3903_v30  ;;  %v4005_v25 = vmul.f32 %v3903_v30, %v3903_v30  ;;  %v3786_v45 = vpop.f32.mrf.mxu0  ;;  %v5342_v11 = vpop.f32.mrf.mxu1  ;;  %v2770_v48 = vadd.f32 %v7819_v50, %v7818_v53  ;;  %v2773_v56 = vadd.f32 %v7821_v41, %v7820_v58  ;;  %v7834_v53 = vld [vmem:[#allocation16_spill] sm:$0xff] }
 0x1f7   : > { %3938 = vst [vmem:[%s7512_s10 + $0x58] sm:$0xff] %v3906_v24  ;;  %v3905_v2 = vadd.f32 %v3786_v45, %v3519_v61  ;;  %v3522_v43 = vadd.f32 %v5342_v11, %v3088_v19  ;;  %v4008_v37 = vmul.f32 %v3906_v24, %v3906_v24 }
 0x1f8   : > { %v4036_v31 = vadd.f32 %v4035_v55, %v4005_v25  ;;  %v3967_v22 = vadd.f32 %v3966_v29, %v3904_v46  ;;  %v5422_v40 = vpop.f32.mrf.mxu0  ;;  %v3410_v17 = vpop.f32.mrf.mxu1  ;;  %v7817_v46 = vld [vmem:[#allocation28_spill] sm:$0xff]  ;;  %v3094_v55 = vadd.f32 %v7822_v32, %v2771_v39 }
 0x1f9   : > { %3937 = vst [vmem:[%s7512_s10 + $0x50] sm:$0xff] %v3905_v2  ;;  %v4007_v27 = vmul.f32 %v3905_v2, %v3905_v2  ;;  %v3908_v38 = vadd.f32 %v5422_v40, %v3522_v43  ;;  %v3521_v42 = vadd.f32 %v3410_v17, %v3087_v6  ;;  %v3091_v35 = vadd.f32 %v7817_v46, %v2768_v57  ;;  %v7824_v43 = vld [vmem:[#allocation6_spill] sm:$0xff]  ;;  %v7826_v40 = vld [vmem:[#allocation25_spill] sm:$0xff] }
 0x1fa   : > { %v3968_v59 = vadd.f32 %v3967_v22, %v3905_v2  ;;  %v4037_v63 = vadd.f32 %v4036_v31, %v4006_v18  ;;  %v3796_v36 = vpop.f32.mrf.mxu0  ;;  %v5345_v62 = vpop.f32.mrf.mxu1  ;;  %v3093_v2 = vadd.f32 %v7823_v44, %v2770_v48  ;;  %v2772_v18 = vadd.f32 %v7825_v47, %v7824_v43  ;;  %v7840_v43 = vld [vmem:[#allocation19_spill] sm:$0xff] }
 0x1fb   : > { %3940 = vst [vmem:[%s7512_s10 + $0x68] sm:$0xff] %v3908_v38  ;;  %v3907_v54 = vadd.f32 %v3796_v36, %v3521_v42  ;;  %v3524_v60 = vadd.f32 %v5345_v62, %v3090_v4  ;;  %v4010_v14 = vmul.f32 %v3908_v38, %v3908_v38  ;;  %v3096_v17 = vadd.f32 %v7826_v40, %v2773_v56  ;;  %v7828_v36 = vld [vmem:[#allocation17_spill] sm:$0xff] }
 0x1fc   : > { %v4038_v5 = vadd.f32 %v4037_v63, %v4007_v27  ;;  %v3969_v20 = vadd.f32 %v3968_v59, %v3906_v24  ;;  %v5425_v49 = vpop.f32.mrf.mxu0  ;;  %v3420_v33 = vpop.f32.mrf.mxu1  ;;  %v7827_v63 = vld [vmem:[#allocation7_spill] sm:$0xff] }
 0x1fd   : > { %3939 = vst [vmem:[%s7512_s10 + $0x60] sm:$0xff] %v3907_v54  ;;  %v4009_v34 = vmul.f32 %v3907_v54, %v3907_v54  ;;  %v3910_v16 = vadd.f32 %v5425_v49, %v3524_v60  ;;  %v3523_v52 = vadd.f32 %v3420_v33, %v3089_v1  ;;  %v2775_v62 = vadd.f32 %v7828_v36, %v7827_v63  ;;  %v7830_v33 = vld [vmem:[#allocation9_spill] sm:$0xff]  ;;  %v7843_v63 = vld [vmem:[#allocation35_spill] sm:$0xff] }
 0x1fe   : > { %v3970_v3 = vadd.f32 %v3969_v20, %v3907_v54  ;;  %v4039_v26 = vadd.f32 %v4038_v5, %v4008_v37  ;;  %v3806_v13 = vpop.f32.mrf.mxu0  ;;  %v5348_v10 = vpop.f32.mrf.mxu1  ;;  %v7829_v20 = vld [vmem:[#allocation26_spill] sm:$0xff]  ;;  %v2774_v21 = vadd.f32 %v7831_v7, %v7830_v33  ;;  %v7846_v33 = vld [vmem:[#allocation33_spill] sm:$0xff] }
 0x1ff   : > { %3942 = vst [vmem:[%s7512_s10 + $0x78] sm:$0xff] %v3910_v16  ;;  %v3909_v9 = vadd.f32 %v3806_v13, %v3523_v52  ;;  %v3526_v23 = vadd.f32 %v5348_v10, %v3092_v15  ;;  %v4012_v4 = vmul.f32 %v3910_v16, %v3910_v16  ;;  %v3095_v49 = vadd.f32 %v7829_v20, %v2772_v18  ;;  %v7833_v52 = vld [vmem:[#allocation34_spill] sm:$0xff] }
 0x200   : > { %v4040_v19 = vadd.f32 %v4039_v26, %v4009_v34  ;;  %v3971_v30 = vadd.f32 %v3970_v3, %v3908_v38  ;;  %v5428_v12 = vpop.f32.mrf.mxu0  ;;  %v3430_v51 = vpop.f32.mrf.mxu1  ;;  %v3098_v50 = vadd.f32 %v7834_v53, %v2775_v62 }
 0x201   : > { %3941 = vst [vmem:[%s7512_s10 + $0x70] sm:$0xff] %v3909_v9  ;;  %v4011_v24 = vmul.f32 %v3909_v9, %v3909_v9  ;;  %v3912_v61 = vadd.f32 %v5428_v12, %v3526_v23  ;;  %v3525_v29 = vadd.f32 %v3430_v51, %v3091_v35  ;;  %v7836_v12 = vld [vmem:[#allocation10_spill] sm:$0xff] }
 0x202   : > { %v3972_v25 = vadd.f32 %v3971_v30, %v3909_v9  ;;  %v4041_v45 = vadd.f32 %v4040_v19, %v4010_v14  ;;  %v3816_v11 = vpop.f32.mrf.mxu0  ;;  %v5351_v6 = vpop.f32.mrf.mxu1  ;;  %v7835_v19 = vld [vmem:[#allocation29_spill] sm:$0xff]  ;;  %v7837_v51 = vld [vmem:[#allocation18_spill] sm:$0xff] }
 0x203   : > { %3944 = vst [vmem:[%s7512_s10 + $0x88] sm:$0xff] %v3912_v61  ;;  %v3911_v31 = vadd.f32 %v3816_v11, %v3525_v29  ;;  %v3528_v22 = vadd.f32 %v5351_v6, %v3094_v55  ;;  %v4014_v26 = vmul.f32 %v3912_v61, %v3912_v61  ;;  %v3097_v30 = vadd.f32 %v7835_v19, %v2774_v21 }
 0x204   : > { %v4042_v27 = vadd.f32 %v4041_v45, %v4011_v24  ;;  %v3973_v38 = vadd.f32 %v3972_v25, %v3910_v16  ;;  %v5431_v42 = vpop.f32.mrf.mxu0  ;;  %v3440_v59 = vpop.f32.mrf.mxu1  ;;  %v7832_v16 = vld [vmem:[#allocation8_spill] sm:$0xff]  ;;  %v2776_v32 = vadd.f32 %v7837_v51, %v7836_v12 }
 0x205   : > { %3943 = vst [vmem:[%s7512_s10 + $0x80] sm:$0xff] %v3911_v31  ;;  %v4013_v1 = vmul.f32 %v3911_v31, %v3911_v31  ;;  %v3914_v57 = vadd.f32 %v5431_v42, %v3528_v22  ;;  %v3527_v54 = vadd.f32 %v3440_v59, %v3093_v2  ;;  %v2777_v3 = vadd.f32 %v7833_v52, %v7832_v16  ;;  %v7839_v2 = vld [vmem:[#allocation11_spill] sm:$0xff]  ;;  %v7842_v59 = vld [vmem:[#allocation24_spill] sm:$0xff] }
 0x206   : > { %v3974_v60 = vadd.f32 %v3973_v38, %v3911_v31  ;;  %v4043_v15 = vadd.f32 %v4042_v27, %v4012_v4  ;;  %v3826_v37 = vpop.f32.mrf.mxu0  ;;  %v5354_v5 = vpop.f32.mrf.mxu1  ;;  %v2779_v47 = vadd.f32 %v7840_v43, %v7839_v2  ;;  %v7841_v38 = vld [vmem:[#allocation32_spill] sm:$0xff]  ;;  %v2778_v36 = vadd.f32 %v7843_v63, %v7842_v59  ;;  %v7854_v59 = vld [vmem:[#allocation42_spill] sm:$0xff] }
 0x207   : > { %3946 = vst [vmem:[%s7512_s10 + $0x98] sm:$0xff] %v3914_v57  ;;  %v3913_v39 = vadd.f32 %v3826_v37, %v3527_v54  ;;  %v3530_v34 = vadd.f32 %v5354_v5, %v3096_v17  ;;  %v4016_v25 = vmul.f32 %v3914_v57, %v3914_v57  ;;  %v3099_v42 = vadd.f32 %v7841_v38, %v2776_v32  ;;  %v7845_v54 = vld [vmem:[#allocation36_spill] sm:$0xff] }
 0x208   : > { %v4044_v13 = vadd.f32 %v4043_v15, %v4013_v1  ;;  %v3975_v10 = vadd.f32 %v3974_v60, %v3912_v61  ;;  %v5434_v46 = vpop.f32.mrf.mxu0  ;;  %v3450_v35 = vpop.f32.mrf.mxu1  ;;  %v7838_v61 = vld [vmem:[#allocation30_spill] sm:$0xff]  ;;  %v3102_v7 = vadd.f32 %v7846_v33, %v2779_v47 }
 0x209   : > { %3945 = vst [vmem:[%s7512_s10 + $0x90] sm:$0xff] %v3913_v39  ;;  %v4015_v48 = vmul.f32 %v3913_v39, %v3913_v39  ;;  %v3916_v9 = vadd.f32 %v5434_v46, %v3530_v34  ;;  %v3529_v23 = vadd.f32 %v3450_v35, %v3095_v49  ;;  %v3100_v29 = vadd.f32 %v7838_v61, %v2777_v3  ;;  %v7848_v46 = vld [vmem:[#allocation13_spill] sm:$0xff]  ;;  %v7849_v35 = vld [vmem:[#allocation39_spill] sm:$0xff] }
 0x20a   : > { %v3976_v58 = vadd.f32 %v3975_v10, %v3913_v39  ;;  %v4045_v41 = vadd.f32 %v4044_v13, %v4014_v26  ;;  %v3836_v56 = vpop.f32.mrf.mxu0  ;;  %v5357_v14 = vpop.f32.mrf.mxu1  ;;  %v7847_v13 = vld [vmem:[#allocation37_spill] sm:$0xff]  ;;  %v2780_v53 = vadd.f32 %v7849_v35, %v7848_v46 }
 0x20b   : > { %3948 = vst [vmem:[%s7512_s10 + $0xa8] sm:$0xff] %v3916_v9  ;;  %v3915_v55 = vadd.f32 %v3836_v56, %v3529_v23  ;;  %v3532_v24 = vadd.f32 %v5357_v14, %v3098_v50  ;;  %v4018_v15 = vmul.f32 %v3916_v9, %v3916_v9  ;;  %v3101_v10 = vadd.f32 %v7847_v13, %v2778_v36 }
 0x20c   : > { %v4046_v45 = vadd.f32 %v4045_v41, %v4015_v48  ;;  %v3977_v11 = vadd.f32 %v3976_v58, %v3914_v57  ;;  %v5437_v6 = vpop.f32.mrf.mxu0  ;;  %v3460_v44 = vpop.f32.mrf.mxu1  ;;  %v7844_v57 = vld [vmem:[#allocation20_spill] sm:$0xff] }
 0x20d   : > { %3947 = vst [vmem:[%s7512_s10 + $0xa0] sm:$0xff] %v3915_v55  ;;  %v4017_v18 = vmul.f32 %v3915_v55, %v3915_v55  ;;  %v3918_v31 = vadd.f32 %v5437_v6, %v3532_v24  ;;  %v3531_v22 = vadd.f32 %v3460_v44, %v3097_v30  ;;  %v2781_v60 = vadd.f32 %v7845_v54, %v7844_v57  ;;  %v7851_v30 = vld [vmem:[#allocation12_spill] sm:$0xff] }
 0x20e   : > { %v3978_v40 = vadd.f32 %v3977_v11, %v3915_v55  ;;  %v4047_v17 = vadd.f32 %v4046_v45, %v4016_v25  ;;  %v3846_v4 = vpop.f32.mrf.mxu0  ;;  %v5360_v27 = vpop.f32.mrf.mxu1  ;;  %v2783_v12 = vadd.f32 %v7491_v8, %v7851_v30  ;;  %v3103_v45 = vadd.f32 %v7489_v28, %v2780_v53  ;;  %v7852_v11 = vld [vmem:[#allocation21_spill] sm:$0xff] }
 0x20f   : > { %3950 = vst [vmem:[%s7512_s10 + $0xb8] sm:$0xff] %v3918_v31  ;;  %v3917_v62 = vadd.f32 %v3846_v4, %v3531_v22  ;;  %v3534_v1 = vadd.f32 %v5360_v27, %v3100_v29  ;;  %v4020_v58 = vmul.f32 %v3918_v31, %v3918_v31  ;;  %v2782_v6 = vadd.f32 %v7496_v0, %v7852_v11  ;;  %v7853_v22 = vld [vmem:[#allocation41_spill] sm:$0xff] }
 0x210   : > { %v4048_v37 = vadd.f32 %v4047_v17, %v4017_v18  ;;  %v3979_v5 = vadd.f32 %v3978_v40, %v3916_v9  ;;  %v5440_v20 = vpop.f32.mrf.mxu0  ;;  %v3470_v49 = vpop.f32.mrf.mxu1  ;;  %v7850_v9 = vld [vmem:[#allocation38_spill] sm:$0xff]  ;;  %v3106_v40 = vadd.f32 %v7853_v22, %v2783_v12 }
 0x211   : > { %3949 = vst [vmem:[%s7512_s10 + $0xb0] sm:$0xff] %v3917_v62  ;;  %v4019_v21 = vmul.f32 %v3917_v62, %v3917_v62  ;;  %v3920_v39 = vadd.f32 %v5440_v20, %v3534_v1  ;;  %v3533_v34 = vadd.f32 %v3470_v49, %v3099_v42  ;;  %v3104_v23 = vadd.f32 %v7850_v9, %v2781_v60 }
 0x212   : > { %v3980_v16 = vadd.f32 %v3979_v5, %v3917_v62  ;;  %v4049_v52 = vadd.f32 %v4048_v37, %v4018_v15  ;;  %v3856_v3 = vpop.f32.mrf.mxu0  ;;  %v5363_v26 = vpop.f32.mrf.mxu1  ;;  %v3105_v63 = vadd.f32 %v7854_v59, %v2782_v6 }
 0x213   : > { %3952 = vst [vmem:[%s7512_s10 + $0xc8] sm:$0xff] %v3920_v39  ;;  %v3919_v50 = vadd.f32 %v3856_v3, %v3533_v34  ;;  %v3536_v48 = vadd.f32 %v5363_v26, %v3102_v7  ;;  %v4022_v43 = vmul.f32 %v3920_v39, %v3920_v39 }
 0x214   : > { %v4050_v41 = vadd.f32 %v4049_v52, %v4019_v21  ;;  %v3981_v56 = vadd.f32 %v3980_v16, %v3918_v31  ;;  %v5443_v14 = vpop.f32.mrf.mxu0  ;;  %v3480_v19 = vpop.f32.mrf.mxu1 }
 0x215   : > { %3951 = vst [vmem:[%s7512_s10 + $0xc0] sm:$0xff] %v3919_v50  ;;  %v4021_v51 = vmul.f32 %v3919_v50, %v3919_v50  ;;  %v3922_v32 = vadd.f32 %v5443_v14, %v3536_v48  ;;  %v3535_v55 = vadd.f32 %v3480_v19, %v3101_v10 }
 0x216   : > { %v3982_v24 = vadd.f32 %v3981_v56, %v3919_v50  ;;  %v4051_v61 = vadd.f32 %v4050_v41, %v4020_v58  ;;  %v3866_v29 = vpop.f32.mrf.mxu0  ;;  %v5366_v25 = vpop.f32.mrf.mxu1 }
 0x217   : > { %3954 = vst [vmem:[%s7512_s10 + $0xd8] sm:$0xff] %v3922_v32  ;;  %v3921_v44 = vadd.f32 %v3866_v29, %v3535_v55  ;;  %v3538_v2 = vadd.f32 %v5366_v25, %v3104_v23  ;;  %v4024_v1 = vmul.f32 %v3922_v32, %v3922_v32 }
 0x218   : > { %v4052_v8 = vadd.f32 %v4051_v61, %v4021_v51  ;;  %v3983_v47 = vadd.f32 %v3982_v24, %v3920_v39  ;;  %v5446_v18 = vpop.f32.mrf.mxu0  ;;  %v3490_v31 = vpop.f32.mrf.mxu1 }
 0x219   : > { %3953 = vst [vmem:[%s7512_s10 + $0xd0] sm:$0xff] %v3921_v44  ;;  %v4023_v17 = vmul.f32 %v3921_v44, %v3921_v44  ;;  %v3924_v4 = vadd.f32 %v5446_v18, %v3538_v2  ;;  %v3537_v27 = vadd.f32 %v3490_v31, %v3103_v45 }
 0x21a   : > { %v3984_v28 = vadd.f32 %v3983_v47, %v3921_v44  ;;  %v4053_v38 = vadd.f32 %v4052_v8, %v4022_v43  ;;  %v3876_v42 = vpop.f32.mrf.mxu0  ;;  %v5369_v0 = vpop.f32.mrf.mxu1 }
 0x21b   : > { %3956 = vst [vmem:[%s7512_s10 + $0xe8] sm:$0xff] %v3924_v4  ;;  %v3923_v36 = vadd.f32 %v3876_v42, %v3537_v27  ;;  %v3540_v62 = vadd.f32 %v5369_v0, %v3106_v40  ;;  %v4026_v39 = vmul.f32 %v3924_v4, %v3924_v4 }
 0x21c   : > { %v4054_v57 = vadd.f32 %v4053_v38, %v4023_v17  ;;  %v3985_v54 = vadd.f32 %v3984_v28, %v3922_v32  ;;  %v5449_v60 = vpop.f32.mrf.mxu0  ;;  %v3500_v15 = vpop.f32.mrf.mxu1 }
 0x21d   : > { %3955 = vst [vmem:[%s7512_s10 + $0xe0] sm:$0xff] %v3923_v36  ;;  %v4025_v37 = vmul.f32 %v3923_v36, %v3923_v36  ;;  %v3926_v5 = vadd.f32 %v5449_v60, %v3540_v62  ;;  %v3539_v20 = vadd.f32 %v3500_v15, %v3105_v63 }
 0x21e   : > { %v3986_v49 = vadd.f32 %v3985_v54, %v3923_v36  ;;  %v4055_v33 = vadd.f32 %v4054_v57, %v4024_v1  ;;  %v3886_v7 = vpop.f32.mrf.mxu0 }
 0x21f   : > { %3958 = vst [vmem:[%s7512_s10 + $0xf8] sm:$0xff] %v3926_v5  ;;  %v3925_v21 = vadd.f32 %v3886_v7, %v3539_v20  ;;  %v4028_v13 = vmul.f32 %v3926_v5, %v3926_v5 }
 0x220   : > { %v4056_v34 = vadd.f32 %v4055_v33, %v4025_v37  ;;  %v3987_v16 = vadd.f32 %v3986_v49, %v3924_v4 }
 0x221   : > { %3957 = vst [vmem:[%s7512_s10 + $0xf0] sm:$0xff] %v3925_v21  ;;  %v4027_v52 = vmul.f32 %v3925_v21, %v3925_v21 }
 0x222   : > { %v3988_v3 = vadd.f32 %v3987_v16, %v3925_v21  ;;  %v4057_v26 = vadd.f32 %v4056_v34, %v4026_v39 }
 0x224   : > { %v3989_v10 = vadd.f32 %v3988_v3, %v3926_v5  ;;  %v4058_v46 = vadd.f32 %v4057_v26, %v4027_v52 }
 0x226   : > { %v3990_v35 = vrot.slane %v3989_v10, 4  ;;  %v4059_v53 = vadd.f32 %v4058_v46, %v4028_v13 }
 0x228   : > { %v3991_v50 = vadd.f32 %v3990_v35, %v3989_v10  ;;  %v4060_v48 = vrot.slane %v4059_v53, 4 }
 0x22a   : > { %v3992_v9 = vrot.slane %v3991_v50, 2  ;;  %v4061_v23 = vadd.f32 %v4060_v48, %v4059_v53 }
 0x22c   : > { %v3993_v58 = vadd.f32 %v3992_v9, %v3991_v50  ;;  %v4062_v41 = vrot.slane %v4061_v23, 2 }
 0x22e   : > { %v3994_v56 = vrot.slane %v3993_v58, 1  ;;  %v4063_v14 = vadd.f32 %v4062_v41, %v4061_v23 }
 0x230   : > { %v3995_v19 = vadd.f32 %v3994_v56, %v3993_v58  ;;  %v4064_v30 = vrot.slane %v4063_v14, 1 }
 0x232   : > { %3996 = vst [vmem:[%s262_s14] sm:$0x1] %v3995_v19  ;;  %v4065_v12 = vadd.f32 %v4064_v30, %v4063_v14 }
 0x234   : > { %4066 = vst [vmem:[%s262_s14 + $0x1] sm:$0x1] %v4065_v12 }
 0x235 PF: > { %s17_s21 = sadd.s32 1, %s5499_s21  }
 0x236   : > { %p14_p4 = scmp.ge.s32.totalorder %s17_s21, 4  }
 0x238   :  { %16 = sbr.rel (!%p14_p4) target bundleno = 1 (0x1), region = 92 }

// kernel: residual_block.3
= control target key start
LH: loop header
LB: loop body
LE: loop exit
PB: predicated region body
PF: predicated region fallthrough
CT: control target
= control target key end

     0   :  { %s5361_s15 = smov 0   ;;  %s7407_s0 = inlined_call_operand.vmem [shape: f32[2,16,16,128], index: 0, kind: input, shape index: {}]   ;;  %s7408_s1 = inlined_call_operand.vmem [shape: f32[9,128,128], index: 1, kind: input, shape index: {}]   ;;  %s7409_s2 = inlined_call_operand.vmem [shape: f32[1,128], index: 2, kind: input, shape index: {}]   ;;  %s7410_s3 = inlined_call_operand.vmem [shape: f32[2,16,16,128], index: 3, kind: output, shape index: {0}]   ;;  %s7411_s4 = inlined_call_operand.vmem [shape: f32[2,2,128], index: 4, kind: output, shape index: {1}]  }
   0x1 LB: > { %s3989_s16 = sadd.s32 4294967295, %s5333_s15   ;;  %p3993_p0 = scmp.ge.s32.totalorder %s5333_s15, 1  ;;  %s5333_s15 = sphi %s5361_s15, %s15_s15  }
   0x2   : > { %p165_p1 = scmp.lt.s32.totalorder %s5333_s15, 3 }
   0x4   : > { %p166_p2 = pnand %p3993_p0, %p165_p1 }
   0x6   : > { %169 = sbr.rel (%p166_p2) target bundleno = 565 (0x235), region = 32 }
   0xb   : > { %v398_v0 = vld [vmem:[%s7408_s1 + $0x78] sm:$0xff]  ;;  %v397_v1 = vld [vmem:[%s7408_s1 + $0x70] sm:$0xff]  ;;  %p5377_p3 = scmp.lt.s32.totalorder %s3989_s16, 1  ;;  %v5335_v2 = vmov 0.0   ;;  %v396_v3 = vld [vmem:[%s7408_s1 + $0x68] sm:$0xff]  ;;  %vm704_vm0 = vcmask 1046528  }
   0xc   : > { %5284 = vmatprep.subr.mxu1 %v398_v0  ;;  %4564 = vmatprep.subr.mxu0 %v398_v0  ;;  %265 = vst [vmem:[#allocation2 + $0xc0] sm:$0xff] %v5335_v2  ;;  %266 = vst [vmem:[#allocation2 + $0xc8] sm:$0xff] %v5335_v2  ;;  %v395_v4 = vld [vmem:[%s7408_s1 + $0x60] sm:$0xff]  ;;  %v394_v5 = vld [vmem:[%s7408_s1 + $0x58] sm:$0xff]  ;;  %vm1091_vm1 = vcmask 1045504  }
   0xd   : > { %241 = vst [vmem:[#allocation2] sm:$0xff] %v5335_v2  ;;  %243 = vst [vmem:[#allocation2 + $0x10] sm:$0x3] %v5335_v2  ;;  %5300 = vmatpush3.msra.mxu1 %v398_v0  ;;  %4565 = vmatpush3.msra.mxu0 %v398_v0  ;;  %s7664_s16 = smov (!%p5377_p3, %s3989_s16), 1  ;;  %v393_v10 = vld [vmem:[%s7408_s1 + $0x50] sm:$0xff]  ;;  %v392_v14 = vld [vmem:[%s7408_s1 + $0x48] sm:$0xff] }
   0xe   : > { %244 = vst [vmem:[#allocation2 + $0x18] sm:$0xff] %v5335_v2  ;;  %245 = vst [vmem:[#allocation2 + $0x20] sm:$0xff] %v5335_v2  ;;  %5285 = vmatprep.subr.mxu1 %v397_v1  ;;  %4566 = vmatprep.subr.mxu0 %v397_v1  ;;  %s4130_s26 = sshll.u32 %s7664_s16, 8  ;;  %v391_v18 = vld [vmem:[%s7408_s1 + $0x40] sm:$0xff]  ;;  %v390_v20 = vld [vmem:[%s7408_s1 + $0x38] sm:$0xff] }
   0xf   : > { %246 = vst [vmem:[#allocation2 + $0x28] sm:$0x3] %v5335_v2  ;;  %247 = vst [vmem:[#allocation2 + $0x30] sm:$0xff] %v5335_v2  ;;  %5301 = vmatpush3.msra.mxu1 %v397_v1  ;;  %4567 = vmatpush3.msra.mxu0 %v397_v1  ;;  %s5450_s29 = scalar_lea.vmem %s7407_s0, %s4130_s26  ;;  %v389_v30 = vld [vmem:[%s7408_s1 + $0x30] sm:$0xff]  ;;  %v388_v37 = vld [vmem:[%s7408_s1 + $0x28] sm:$0xff]  ;;  %s7282_s17 = scalar_lea.vmem %s7410_s3, %s4130_s26 }
  0x10   : > { %248 = vst [vmem:[#allocation2 + $0x38] sm:$0xff] %v5335_v2  ;;  %249 = vst [vmem:[#allocation2 + $0x40] sm:$0x3] %v5335_v2  ;;  %5286 = vmatprep.subr.mxu1 %v396_v3  ;;  %4568 = vmatprep.subr.mxu0 %v396_v3  ;;  %v223_v6 = vld [vmem:[%s5450_s29 + $0x70] sm:$0xff]  ;;  %v224_v7 = vld [vmem:[%s5450_s29 + $0x78] sm:$0xff]  ;;  %s3998_s26 = sshll.u32 %s7664_s16, 1 }
  0x11   : > { %250 = vst [vmem:[#allocation2 + $0x48] sm:$0xff] %v5335_v2  ;;  %251 = vst [vmem:[#allocation2 + $0x50] sm:$0xff] %v5335_v2  ;;  %5302 = vmatpush3.msra.mxu1 %v396_v3  ;;  %4569 = vmatpush3.msra.mxu0 %v396_v3  ;;  %v225_v8 = vld [vmem:[%s5450_s29 + $0x80] sm:$0xff]  ;;  %v226_v11 = vld [vmem:[%s5450_s29 + $0x88] sm:$0xff]  ;;  %s208_s20 = scalar_lea.vmem %s7411_s4, %s3998_s26 }
  0x12   : > { %252 = vst [vmem:[#allocation2 + $0x58] sm:$0x3] %v5335_v2  ;;  %253 = vst [vmem:[#allocation2 + $0x60] sm:$0xff] %v5335_v2  ;;  %5287 = vmatprep.subr.mxu1 %v395_v4  ;;  %4570 = vmatprep.subr.mxu0 %v395_v4  ;;  %v209_v9 = vld [vmem:[%s5450_s29] sm:$0xff]  ;;  %v210_v12 = vld [vmem:[%s5450_s29 + $0x8] sm:$0xff] }
  0x13   : > { %254 = vst [vmem:[#allocation2 + $0x68] sm:$0xff] %v5335_v2  ;;  %255 = vst [vmem:[#allocation2 + $0x70] sm:$0x3] %v5335_v2  ;;  %5303 = vmatpush3.msra.mxu1 %v395_v4  ;;  %4571 = vmatpush3.msra.mxu0 %v395_v4  ;;  %v227_v13 = vld [vmem:[%s5450_s29 + $0x90] sm:$0xff]  ;;  %v228_v16 = vld [vmem:[%s5450_s29 + $0x98] sm:$0xff] }
  0x14   : > { %256 = vst [vmem:[#allocation2 + $0x78] sm:$0xff] %v5335_v2  ;;  %257 = vst [vmem:[#allocation2 + $0x80] sm:$0xff] %v5335_v2  ;;  %5288 = vmatprep.subr.mxu1 %v394_v5  ;;  %4572 = vmatprep.subr.mxu0 %v394_v5  ;;  %v211_v15 = vld [vmem:[%s5450_s29 + $0x10] sm:$0xff]  ;;  %v212_v17 = vld [vmem:[%s5450_s29 + $0x18] sm:$0xff] }
  0x15   : > { %258 = vst [vmem:[#allocation2 + $0x88] sm:$0x3] %v5335_v2  ;;  %259 = vst [vmem:[#allocation2 + $0x90] sm:$0xff] %v5335_v2  ;;  %5304 = vmatpush3.msra.mxu1 %v394_v5  ;;  %4573 = vmatpush3.msra.mxu0 %v394_v5  ;;  %v229_v19 = vld [vmem:[%s5450_s29 + $0xa0] sm:$0xff]  ;;  %v230_v22 = vld [vmem:[%s5450_s29 + $0xa8] sm:$0xff] }
  0x16   : > { %260 = vst [vmem:[#allocation2 + $0x98] sm:$0xff] %v5335_v2  ;;  %261 = vst [vmem:[#allocation2 + $0xa0] sm:$0x3] %v5335_v2  ;;  %5289 = vmatprep.subr.mxu1 %v393_v10  ;;  %4574 = vmatprep.subr.mxu0 %v393_v10  ;;  %v213_v21 = vld [vmem:[%s5450_s29 + $0x20] sm:$0xff]  ;;  %v214_v25 = vld [vmem:[%s5450_s29 + $0x28] sm:$0xff] }
  0x17   : > { %262 = vst [vmem:[#allocation2 + $0xa8] sm:$0xff] %v5335_v2  ;;  %263 = vst [vmem:[#allocation2 + $0xb0] sm:$0xff] %v5335_v2  ;;  %5305 = vmatpush3.msra.mxu1 %v393_v10  ;;  %4575 = vmatpush3.msra.mxu0 %v393_v10  ;;  %v387_v38 = vld [vmem:[%s7408_s1 + $0x20] sm:$0xff]  ;;  %v231_v43 = vld [vmem:[%s5450_s29 + $0xb0] sm:$0xff] }
  0x18   : > { %264 = vst [vmem:[#allocation2 + $0xb8] sm:$0x3] %v5335_v2  ;;  %267 = vst [vmem:[#allocation2 + $0xd0] sm:$0x3] %v5335_v2  ;;  %5290 = vmatprep.subr.mxu1 %v392_v14  ;;  %4576 = vmatprep.subr.mxu0 %v392_v14  ;;  %v215_v49 = vld [vmem:[%s5450_s29 + $0x30] sm:$0xff]  ;;  %v232_v53 = vld [vmem:[%s5450_s29 + $0xb8] sm:$0xff] }
  0x19   : > { %268 = vst [vmem:[#allocation2 + $0xd8] sm:$0xff] %v5335_v2  ;;  %269 = vst [vmem:[#allocation2 + $0xe0] sm:$0xff] %v5335_v2  ;;  %5306 = vmatpush3.msra.mxu1 %v392_v14  ;;  %4577 = vmatpush3.msra.mxu0 %v392_v14  ;;  %v386_v56 = vld [vmem:[%s7408_s1 + $0x18] sm:$0xff]  ;;  %v385_v60 = vld [vmem:[%s7408_s1 + $0x10] sm:$0xff] }
  0x1a   : > { %270 = vst [vmem:[#allocation2 + $0xe8] sm:$0x3] %v5335_v2  ;;  %271 = vst [vmem:[#allocation2 + $0xf0] sm:$0xff] %v5335_v2  ;;  %5291 = vmatprep.subr.mxu1 %v391_v18  ;;  %4578 = vmatprep.subr.mxu0 %v391_v18  ;;  %v216_v59 = vld [vmem:[%s5450_s29 + $0x38] sm:$0xff]  ;;  %v233_v61 = vld [vmem:[%s5450_s29 + $0xc0] sm:$0xff] }
  0x1b   : > { %272 = vst [vmem:[#allocation2 + $0xf8] sm:$0xff] %v5335_v2  ;;  %273 = vst [vmem:[#allocation2 + $0x100] sm:$0x3] %v5335_v2  ;;  %5307 = vmatpush3.msra.mxu1 %v391_v18  ;;  %4579 = vmatpush3.msra.mxu0 %v391_v18  ;;  %v217_v62 = vld [vmem:[%s5450_s29 + $0x40] sm:$0xff]  ;;  %v234_v3 = vld [vmem:[%s5450_s29 + $0xc8] sm:$0xff] }
  0x1c   : > { %274 = vst [vmem:[#allocation2 + $0x108] sm:$0xff] %v5335_v2  ;;  %275 = vst [vmem:[#allocation2 + $0x110] sm:$0xff] %v5335_v2  ;;  %5292 = vmatprep.subr.mxu1 %v390_v20  ;;  %4580 = vmatprep.subr.mxu0 %v390_v20  ;;  %v218_v4 = vld [vmem:[%s5450_s29 + $0x48] sm:$0xff]  ;;  %v383_v10 = vld [vmem:[%s7408_s1] sm:$0xff] }
  0x1d   : > { %276 = vst [vmem:[#allocation2 + $0x118] sm:$0x3] %v5335_v2  ;;  %277 = vst [vmem:[#allocation2 + $0x120] sm:$0xff] %v5335_v2  ;;  %5308 = vmatpush3.msra.mxu1 %v390_v20  ;;  %4581 = vmatpush3.msra.mxu0 %v390_v20  ;;  %v237_v18 = vld [vmem:[%s5450_s29 + $0xe0] sm:$0xff] }
  0x1e   : > { %278 = vst [vmem:[#allocation2 + $0x128] sm:$0xff] %v5335_v2  ;;  %279 = vst [vmem:[#allocation2 + $0x130] sm:$0x3] %v5335_v2  ;;  %5293 = vmatprep.subr.mxu1 %v389_v30  ;;  %4582 = vmatprep.subr.mxu0 %v389_v30  ;;  %v221_v20 = vld [vmem:[%s5450_s29 + $0x60] sm:$0xff] }
  0x1f   : > { %280 = vst [vmem:[#allocation2 + $0x138] sm:$0xff] %v5335_v2  ;;  %281 = vst [vmem:[#allocation2 + $0x140] sm:$0xff] %v5335_v2  ;;  %5309 = vmatpush3.msra.mxu1 %v389_v30  ;;  %4583 = vmatpush3.msra.mxu0 %v389_v30 }
  0x20   : > { %282 = vst [vmem:[#allocation2 + $0x148] sm:$0x3] %v5335_v2  ;;  %283 = vst [vmem:[#allocation2 + $0x150] sm:$0xff] %v5335_v2  ;;  %5294 = vmatprep.subr.mxu1 %v388_v37  ;;  %4584 = vmatprep.subr.mxu0 %v388_v37 }
  0x21   : > { %284 = vst [vmem:[#allocation2 + $0x158] sm:$0xff] %v5335_v2  ;;  %285 = vst [vmem:[#allocation2 + $0x160] sm:$0x3] %v5335_v2  ;;  %5310 = vmatpush3.msra.mxu1 %v388_v37  ;;  %4585 = vmatpush3.msra.mxu0 %v388_v37 }
  0x22   : > { %286 = vst [vmem:[#allocation2 + $0x168] sm:$0xff] %v5335_v2  ;;  %287 = vst [vmem:[#allocation2 + $0x170] sm:$0xff] %v5335_v2  ;;  %5295 = vmatprep.subr.mxu1 %v387_v38  ;;  %4586 = vmatprep.subr.mxu0 %v387_v38 }
  0x23   : > { %288 = vst [vmem:[#allocation2 + $0x178] sm:$0x3] %v5335_v2  ;;  %289 = vst [vmem:[#allocation2 + $0x180] sm:$0xff] %v5335_v2  ;;  %5311 = vmatpush3.msra.mxu1 %v387_v38  ;;  %4587 = vmatpush3.msra.mxu0 %v387_v38 }
  0x24   : > { %290 = vst [vmem:[#allocation2 + $0x188] sm:$0xff] %v5335_v2  ;;  %291 = vst [vmem:[#allocation2 + $0x190] sm:$0x3] %v5335_v2  ;;  %5296 = vmatprep.subr.mxu1 %v386_v56  ;;  %4588 = vmatprep.subr.mxu0 %v386_v56 }
  0x25   : > { %294 = vst [vmem:[#allocation2 + $0x1a8] sm:$0x3] %v5335_v2  ;;  %310 = vst [vmem:[#allocation2 + $0xc1] sm:$0xff] %v223_v6  ;;  %5312 = vmatpush3.msra.mxu1 %v386_v56  ;;  %4589 = vmatpush3.msra.mxu0 %v386_v56  ;;  %v384_v6 = vld [vmem:[%s7408_s1 + $0x8] sm:$0xff] }
  0x26   : > { %311 = vst [vmem:[#allocation2 + $0xc9] sm:$0xff] %v224_v7  ;;  %312 = vst [vmem:[#allocation2 + $0xd9] sm:$0xff] %v225_v8  ;;  %v235_v7 = vld [vmem:[%s5450_s29 + $0xd0] sm:$0xff]  ;;  %5297 = vmatprep.subr.mxu1 %v385_v60  ;;  %4590 = vmatprep.subr.mxu0 %v385_v60 }
  0x27   : > { %296 = vst [vmem:[#allocation2 + $0x19] sm:$0xff] %v209_v9  ;;  %313 = vst [vmem:[#allocation2 + $0xe1] sm:$0xff] %v226_v11  ;;  %v219_v9 = vld [vmem:[%s5450_s29 + $0x50] sm:$0xff]  ;;  %5313 = vmatpush3.msra.mxu1 %v385_v60  ;;  %4591 = vmatpush3.msra.mxu0 %v385_v60 }
  0x28   : > { %297 = vst [vmem:[#allocation2 + $0x21] sm:$0xff] %v210_v12  ;;  %314 = vst [vmem:[#allocation2 + $0xf1] sm:$0xff] %v227_v13  ;;  %v236_v13 = vld [vmem:[%s5450_s29 + $0xd8] sm:$0xff]  ;;  %5298 = vmatprep.subr.mxu1 %v384_v6  ;;  %4592 = vmatprep.subr.mxu0 %v384_v6 }
  0x29   : > { %298 = vst [vmem:[#allocation2 + $0x31] sm:$0xff] %v211_v15  ;;  %315 = vst [vmem:[#allocation2 + $0xf9] sm:$0xff] %v228_v16  ;;  %v220_v15 = vld [vmem:[%s5450_s29 + $0x58] sm:$0xff]  ;;  %5314 = vmatpush3.msra.mxu1 %v384_v6  ;;  %4593 = vmatpush3.msra.mxu0 %v384_v6  ;;  %v4028_v6 = vld [vmem:[%s7408_s1 + $0x160] sm:$0xff] }
  0x2a   : > { %299 = vst [vmem:[#allocation2 + $0x39] sm:$0xff] %v212_v17  ;;  %316 = vst [vmem:[#allocation2 + $0x109] sm:$0xff] %v229_v19  ;;  %5299 = vmatprep.subr.mxu1 %v383_v10  ;;  %4594 = vmatprep.subr.mxu0 %v383_v10  ;;  %v4015_v19 = vld [vmem:[%s7408_s1 + $0xf8] sm:$0xff] }
  0x2b   : > { %300 = vst [vmem:[#allocation2 + $0x49] sm:$0xff] %v213_v21  ;;  %317 = vst [vmem:[#allocation2 + $0x111] sm:$0xff] %v230_v22  ;;  %v238_v21 = vld [vmem:[%s5450_s29 + $0xe8] sm:$0xff]  ;;  %5315 = vmatpush3.msra.mxu1 %v383_v10  ;;  %v4031_v22 = vld [vmem:[%s7408_s1 + $0x178] sm:$0xff]  ;;  %4595 = vmatpush3.msra.mxu0 %v383_v10 }
  0x2c   : > { %v5480_v23 = vld [vmem:[#allocation2 + $0xc0] sm:$0xff]  ;;  %301 = vst [vmem:[#allocation2 + $0x51] sm:$0xff] %v214_v25  ;;  %318 = vst [vmem:[#allocation2 + $0x121] sm:$0xff] %v231_v43  ;;  %4596 = vmatprep.mubr.f32.mxu0 %v5335_v2  ;;  %4644 = vmatprep.subr.mxu1 %v4015_v19  ;;  %v222_v43 = vld [vmem:[%s5450_s29 + $0x68] sm:$0xff] }
  0x2d   : > { %v5482_v24 = vld [vmem:[#allocation2 + $0xc8] sm:$0xff]  ;;  %v745_v26 = vrot.slane %v5480_v23, 1  ;;  %v1132_v27 = vrot.slane %v5480_v23, 2  ;;  %v5492_v31 = vld [vmem:[#allocation2 + $0xd8] sm:$0xff]  ;;  %302 = vst [vmem:[#allocation2 + $0x61] sm:$0xff] %v215_v49  ;;  %319 = vst [vmem:[#allocation2 + $0x129] sm:$0xff] %v232_v53  ;;  %4620 = vmatprep.mubr.f32.mxu1 %v5480_v23  ;;  %4597 = vmatmul.mubr.f32.vlgmr.msra.gmra.mxu0 %v5335_v2 }
  0x2e   : > { %v7426_v28 = vrot.slane %v5482_v24, 1  ;;  %v7425_v29 = vrot.slane %v5482_v24, 2  ;;  %v5494_v32 = vld [vmem:[#allocation2 + $0xe0] sm:$0xff]  ;;  %v750_v33 = vrot.slane %v5492_v31, 1  ;;  %v1137_v34 = vrot.slane %v5492_v31, 2  ;;  %303 = vst [vmem:[#allocation2 + $0x69] sm:$0xff] %v216_v59  ;;  %4621 = vmatmul.mubr.f32.vlgmr.msra.gmra.mxu1 %v5482_v24  ;;  %4724 = vmatprep.subr.mxu0 %v4031_v22 }
  0x2f   : > { %v7424_v35 = vrot.slane %v5494_v32, 1  ;;  %v7423_v36 = vrot.slane %v5494_v32, 2  ;;  %v5516_v41 = vld [vmem:[#allocation2 + $0xf0] sm:$0xff]  ;;  %320 = vst [vmem:[#allocation2 + $0x139] sm:$0xff] %v233_v61  ;;  %304 = vst [vmem:[#allocation2 + $0x79] sm:$0xff] %v217_v62  ;;  %4645 = vmatpush3.msra.mxu1 %v4015_v19  ;;  %4725 = vmatpush3.msra.mxu0 %v4031_v22  ;;  %v5644_v59 = vld [vmem:[#allocation2 + $0x20] sm:$0xff] }
  0x30   : > { %v5509_v39 = vsel %vm704_vm0, %v745_v26, %v7426_v28  ;;  %v5514_v40 = vsel %vm1091_vm1, %v1132_v27, %v7425_v29  ;;  %v5518_v42 = vld [vmem:[#allocation2 + $0xf8] sm:$0xff]  ;;  %v755_v44 = vrot.slane %v5516_v41, 1  ;;  %v1142_v45 = vrot.slane %v5516_v41, 2  ;;  %321 = vst [vmem:[#allocation2 + $0x141] sm:$0xff] %v234_v3  ;;  %305 = vst [vmem:[#allocation2 + $0x81] sm:$0xff] %v218_v4  ;;  %v4014_v23 = vld [vmem:[%s7408_s1 + $0xf0] sm:$0xff]  ;;  %4623 = vmatprep.mubr.f32.mxu1 %v5492_v31 }
  0x31   : > { %v7422_v46 = vrot.slane %v5518_v42, 1  ;;  %v7421_v47 = vrot.slane %v5518_v42, 2  ;;  %v5525_v48 = vld [vmem:[#allocation2 + $0x108] sm:$0xff]  ;;  %v5536_v54 = vsel %vm704_vm0, %v750_v33, %v7424_v35  ;;  %v5541_v55 = vsel %vm1091_vm1, %v1137_v34, %v7423_v36  ;;  %322 = vst [vmem:[#allocation2 + $0x151] sm:$0xff] %v235_v7  ;;  %306 = vst [vmem:[#allocation2 + $0x91] sm:$0xff] %v219_v9  ;;  %4646 = vmatprep.subr.mxu1 %v4014_v23  ;;  %v4012_v4 = vld [vmem:[%s7408_s1 + $0xe0] sm:$0xff] }
  0x32   : > { %v760_v50 = vrot.slane %v5525_v48, 1  ;;  %v1147_v51 = vrot.slane %v5525_v48, 2  ;;  %v5530_v52 = vld [vmem:[#allocation2 + $0x110] sm:$0xff]  ;;  %323 = vst [vmem:[#allocation2 + $0x159] sm:$0xff] %v236_v13  ;;  %307 = vst [vmem:[#allocation2 + $0x99] sm:$0xff] %v220_v15  ;;  %4647 = vmatpush3.msra.mxu1 %v4014_v23  ;;  %v4029_v3 = vld [vmem:[%s7408_s1 + $0x168] sm:$0xff] }
  0x33   : > { %v7420_v57 = vrot.slane %v5530_v52, 1  ;;  %v7419_v58 = vrot.slane %v5530_v52, 2  ;;  %v5557_v63 = vsel %vm704_vm0, %v755_v44, %v7422_v46  ;;  %v5562_v0 = vsel %vm1091_vm1, %v1142_v45, %v7421_v47  ;;  %v5580_v8 = vld [vmem:[#allocation2 + $0x120] sm:$0xff]  ;;  %324 = vst [vmem:[#allocation2 + $0x169] sm:$0xff] %v237_v18  ;;  %308 = vst [vmem:[#allocation2 + $0xa9] sm:$0xff] %v221_v20  ;;  %v4030_v44 = vld [vmem:[%s7408_s1 + $0x170] sm:$0xff]  ;;  %4624 = vmatmul.mubr.f32.gmra.mxu1 %v5494_v32 }
  0x34   : > { %v765_v11 = vrot.slane %v5580_v8, 1  ;;  %v1152_v12 = vrot.slane %v5580_v8, 2  ;;  %v5589_v14 = vld [vmem:[#allocation2 + $0x128] sm:$0xff]  ;;  %325 = vst [vmem:[#allocation2 + $0x171] sm:$0xff] %v238_v21  ;;  %309 = vst [vmem:[#allocation2 + $0xb1] sm:$0xff] %v222_v43  ;;  %v5632_v45 = vld [vmem:[#allocation2 + $0x18] sm:$0xff]  ;;  %4726 = vmatprep.subr.mxu0 %v4030_v44  ;;  %4626 = vmatprep.mubr.f32.mxu1 %v5516_v41 }
  0x35   : > { %v5567_v1 = vsel %vm704_vm0, %v760_v50, %v7420_v57  ;;  %v5574_v5 = vsel %vm1091_vm1, %v1147_v51, %v7419_v58  ;;  %v7418_v16 = vrot.slane %v5589_v14, 1  ;;  %v7417_v17 = vrot.slane %v5589_v14, 2  ;;  %v4013_v50 = vld [vmem:[%s7408_s1 + $0xe8] sm:$0xff]  ;;  %4599 = vmatprep.mubr.f32.mxu0 %v5632_v45  ;;  %4727 = vmatpush3.msra.mxu0 %v4030_v44  ;;  %v5670_v7 = vld [vmem:[#allocation2 + $0x30] sm:$0xff]  ;;  %v4027_v13 = vld [vmem:[%s7408_s1 + $0x158] sm:$0xff] }
  0x36   : > { %v5618_v27 = vld [vmem:[#allocation2 + $0x138] sm:$0xff]  ;;  %4648 = vmatprep.subr.mxu1 %v4013_v50  ;;  %4600 = vmatmul.mubr.f32.gmra.mxu0 %v5644_v59  ;;  %v4010_v41 = vld [vmem:[%s7408_s1 + $0xd0] sm:$0xff]  ;;  %v5700_v18 = vld [vmem:[#allocation2 + $0x48] sm:$0xff] }
  0x37   : > { %v5607_v25 = vsel %vm704_vm0, %v765_v11, %v7418_v16  ;;  %v5612_v26 = vsel %vm1091_vm1, %v1152_v12, %v7417_v17  ;;  %v5620_v30 = vld [vmem:[#allocation2 + $0x140] sm:$0xff]  ;;  %v770_v33 = vrot.slane %v5618_v27, 1  ;;  %v1157_v34 = vrot.slane %v5618_v27, 2  ;;  %4649 = vmatpush3.msra.mxu1 %v4013_v50  ;;  %4728 = vmatprep.subr.mxu0 %v4029_v3  ;;  %v4011_v11 = vld [vmem:[%s7408_s1 + $0xd8] sm:$0xff]  ;;  %v4026_v15 = vld [vmem:[%s7408_s1 + $0x150] sm:$0xff] }
  0x38   : > { %v7416_v37 = vrot.slane %v5620_v30, 1  ;;  %v7415_v38 = vrot.slane %v5620_v30, 2  ;;  %v5634_v49 = vld [vmem:[#allocation2 + $0x150] sm:$0xff]  ;;  %4650 = vmatprep.subr.mxu1 %v4012_v4  ;;  %4729 = vmatpush3.msra.mxu0 %v4029_v3  ;;  %v5686_v12 = vld [vmem:[#allocation2 + $0x38] sm:$0xff]  ;;  %v4009_v19 = vld [vmem:[%s7408_s1 + $0xc8] sm:$0xff] }
  0x39   : > { %v775_v51 = vrot.slane %v5634_v49, 1  ;;  %v1162_v53 = vrot.slane %v5634_v49, 2  ;;  %v5642_v56 = vld [vmem:[#allocation2 + $0x158] sm:$0xff]  ;;  %4651 = vmatpush3.msra.mxu1 %v4012_v4  ;;  %4730 = vmatprep.subr.mxu0 %v4028_v6  ;;  %v5706_v20 = vld [vmem:[#allocation2 + $0x50] sm:$0xff]  ;;  %v4025_v21 = vld [vmem:[%s7408_s1 + $0x148] sm:$0xff]  ;;  %v5828_v47 = vrot.slane %v5686_v12, 1 }
  0x3a   : > { %v7414_v60 = vrot.slane %v5642_v56, 1  ;;  %v7413_v61 = vrot.slane %v5642_v56, 2  ;;  %v5651_v31 = vsel %vm704_vm0, %v770_v33, %v7416_v37  ;;  %v5656_v62 = vsel %vm1091_vm1, %v1157_v34, %v7415_v38  ;;  %4602 = vmatprep.mubr.f32.mxu0 %v5670_v7  ;;  %4627 = vmatmul.mubr.f32.gmra.mxu1 %v5518_v42  ;;  %v5716_v22 = vld [vmem:[#allocation2 + $0x168] sm:$0xff]  ;;  %v4024_v33 = vld [vmem:[%s7408_s1 + $0x140] sm:$0xff]  ;;  %v4007_v50 = vld [vmem:[%s7408_s1 + $0xb8] sm:$0xff] }
  0x3b   : > { %4652 = vmatprep.subr.mxu1 %v4011_v11  ;;  %4731 = vmatpush3.msra.mxu0 %v4028_v6  ;;  %v5718_v23 = vld [vmem:[#allocation2 + $0x170] sm:$0xff]  ;;  %v1167_v34 = vrot.slane %v5716_v22, 2  ;;  %v5726_v44 = vld [vmem:[#allocation2 + $0x60] sm:$0xff]  ;;  %v5751_v6 = vld [vmem:[#allocation2 + $0x78] sm:$0xff]  ;;  %v1097_v38 = vrot.slane %v5632_v45, 2  ;;  %v1098_v37 = vrot.slane %v5644_v59, 2 }
  0x3c   : > { %v5675_v9 = vsel %vm704_vm0, %v775_v51, %v7414_v60  ;;  %v5680_v10 = vsel %vm1091_vm1, %v1162_v53, %v7413_v61  ;;  %4603 = vmatmul.mubr.f32.gmra.mxu0 %v5686_v12  ;;  %4653 = vmatpush3.msra.mxu1 %v4011_v11  ;;  %v7412_v43 = vrot.slane %v5718_v23, 2  ;;  %v5732_v51 = vld [vmem:[#allocation2 + $0x68] sm:$0xff]  ;;  %v4023_v53 = vld [vmem:[%s7408_s1 + $0x138] sm:$0xff]  ;;  %v4022_v4 = vld [vmem:[%s7408_s1 + $0x130] sm:$0xff]  ;;  %v1112_v46 = vrot.slane %v5726_v44, 2 }
  0x3d   : > { %4732 = vmatprep.subr.mxu0 %v4027_v13  ;;  %4654 = vmatprep.subr.mxu1 %v4010_v41  ;;  %v4005_v11 = vld [vmem:[%s7408_s1 + $0xa8] sm:$0xff]  ;;  %v4016_v61 = vld [vmem:[%s7408_s1 + $0x100] sm:$0xff]  ;;  %v239_v17 = vld [vmem:[%s5450_s29 + $0xf0] sm:$0xff] }
  0x3e   : > { %4733 = vmatpush3.msra.mxu0 %v4027_v13  ;;  %4629 = vmatprep.mubr.f32.mxu1 %v5525_v48  ;;  %v4008_v48 = vld [vmem:[%s7408_s1 + $0xc0] sm:$0xff]  ;;  %v5745_v3 = vsel %vm1091_vm1, %v1167_v34, %v7412_v43  ;;  %v4018_v34 = vld [vmem:[%s7408_s1 + $0x110] sm:$0xff]  ;;  %v710_v43 = vrot.slane %v5632_v45, 1  ;;  %v240_v16 = vld [vmem:[%s5450_s29 + $0xf8] sm:$0xff]  ;;  %326 = vst [vmem:[#allocation2 + $0x181] sm:$0xff] %v239_v17 }
  0x3f   : > { %4655 = vmatpush3.msra.mxu1 %v4010_v41  ;;  %4734 = vmatprep.subr.mxu0 %v4026_v15  ;;  %v5757_v13 = vld [vmem:[#allocation2 + $0x80] sm:$0xff]  ;;  %v4021_v41 = vld [vmem:[%s7408_s1 + $0x128] sm:$0xff]  ;;  %327 = vst [vmem:[#allocation2 + $0x189] sm:$0xff] %v240_v16  ;;  %v4063_v45 = vld [vmem:[%s7408_s1 + $0x278] sm:$0xff] }
  0x40   : > { %4605 = vmatprep.mubr.f32.mxu0 %v5700_v18  ;;  %4630 = vmatmul.mubr.f32.gmra.mxu1 %v5530_v52  ;;  %v352_v36 = vld [vmem:[#allocation2 + $0x88] sm:$0x3] }
  0x41   : > { %4656 = vmatprep.subr.mxu1 %v4009_v19  ;;  %4735 = vmatpush3.msra.mxu0 %v4026_v15  ;;  %v4020_v15 = vld [vmem:[%s7408_s1 + $0x120] sm:$0xff] }
  0x42   : > { %4606 = vmatmul.mubr.f32.gmra.mxu0 %v5706_v20  ;;  %4657 = vmatpush3.msra.mxu1 %v4009_v19  ;;  %v5771_v19 = vld [vmem:[#allocation2 + $0x90] sm:$0xff] }
  0x43   : > { %4736 = vmatprep.subr.mxu0 %v4025_v21  ;;  %4658 = vmatprep.subr.mxu1 %v4008_v48  ;;  %7466 = vst [vmem:[#allocation3_spill] sm:$0xff] %v5771_v19 }
  0x44   : > { %4737 = vmatpush3.msra.mxu0 %v4025_v21  ;;  %4632 = vmatprep.mubr.f32.mxu1 %v5580_v8  ;;  %v4006_v8 = vld [vmem:[%s7408_s1 + $0xb0] sm:$0xff]  ;;  %v4003_v21 = vld [vmem:[%s7408_s1 + $0x98] sm:$0xff] }
  0x45   : > { %4659 = vmatpush3.msra.mxu1 %v4008_v48  ;;  %4738 = vmatprep.subr.mxu0 %v4024_v33  ;;  %v5777_v48 = vld [vmem:[#allocation2 + $0x98] sm:$0xff] }
  0x46   : > { %4608 = vmatprep.mubr.f32.mxu0 %v5726_v44  ;;  %4633 = vmatmul.mubr.f32.gmra.mxu1 %v5589_v14  ;;  %7467 = vst [vmem:[#allocation4_spill] sm:$0xff] %v5777_v48 }
  0x47   : > { %4660 = vmatprep.subr.mxu1 %v4007_v50  ;;  %4739 = vmatpush3.msra.mxu0 %v4024_v33  ;;  %v4019_v33 = vld [vmem:[%s7408_s1 + $0x118] sm:$0xff] }
  0x48   : > { %4609 = vmatmul.mubr.f32.gmra.mxu0 %v5732_v51  ;;  %4661 = vmatpush3.msra.mxu1 %v4007_v50  ;;  %v337_v50 = vld [vmem:[#allocation2 + $0x10] sm:$0x3] }
  0x49   : > { %4740 = vmatprep.subr.mxu0 %v4023_v53  ;;  %4662 = vmatprep.subr.mxu1 %v4006_v8 }
  0x4a   : > { %4741 = vmatpush3.msra.mxu0 %v4023_v53  ;;  %4635 = vmatprep.mubr.f32.mxu1 %v5618_v27  ;;  %v4004_v27 = vld [vmem:[%s7408_s1 + $0xa0] sm:$0xff]  ;;  %v5791_v53 = vld [vmem:[#allocation2 + $0xa8] sm:$0xff] }
  0x4b   : > { %4663 = vmatpush3.msra.mxu1 %v4006_v8  ;;  %4742 = vmatprep.subr.mxu0 %v4022_v4  ;;  %v705_v8 = vrot.slane %v5335_v2, 1 }
  0x4c   : > { %4611 = vmatprep.mubr.f32.mxu0 %v5751_v6  ;;  %4636 = vmatmul.mubr.f32.gmra.mxu1 %v5620_v30 }
  0x4d   : > { %4664 = vmatprep.subr.mxu1 %v4005_v11  ;;  %4743 = vmatpush3.msra.mxu0 %v4022_v4  ;;  %v4001_v4 = vld [vmem:[%s7408_s1 + $0x88] sm:$0xff] }
  0x4e   : > { %4612 = vmatmul.mubr.f32.gmra.mxu0 %v5757_v13  ;;  %4665 = vmatpush3.msra.mxu1 %v4005_v11  ;;  %v5798_v11 = vld [vmem:[#allocation2 + $0xb0] sm:$0xff] }
  0x4f   : > { %4744 = vmatprep.subr.mxu0 %v4021_v41  ;;  %4666 = vmatprep.subr.mxu1 %v4004_v27  ;;  %7468 = vst [vmem:[#allocation5_spill] sm:$0xff] %v5798_v11 }
  0x50   : > { %4745 = vmatpush3.msra.mxu0 %v4021_v41  ;;  %4638 = vmatprep.mubr.f32.mxu1 %v5634_v49  ;;  %v4002_v49 = vld [vmem:[%s7408_s1 + $0x90] sm:$0xff]  ;;  %v708_v41 = vrot.slane %v337_v50, 1 }
  0x51   : > { %4667 = vmatpush3.msra.mxu1 %v4004_v27  ;;  %4746 = vmatprep.subr.mxu0 %v4020_v15  ;;  %v1092_v27 = vrot.slane %v5335_v2, 2  ;;  %v5811_v2 = vrot.slane %v5644_v59, 1 }
  0x52   : > { %4614 = vmatprep.mubr.f32.mxu0 %v5771_v19  ;;  %4639 = vmatmul.mubr.f32.gmra.mxu1 %v5642_v56  ;;  %v709_v60 = vsel %vm704_vm0, %v705_v8, %v708_v41  ;;  %v715_v41 = vrot.slane %v5670_v7, 1 }
  0x53   : > { %4668 = vmatprep.subr.mxu1 %v4003_v21  ;;  %4747 = vmatpush3.msra.mxu0 %v4020_v15  ;;  %v4017_v15 = vld [vmem:[%s7408_s1 + $0x108] sm:$0xff] }
  0x54   : > { %4615 = vmatmul.mubr.f32.gmra.mxu0 %v5777_v48  ;;  %4669 = vmatpush3.msra.mxu1 %v4003_v21  ;;  %v4000_v21 = vld [vmem:[%s7408_s1 + $0x80] sm:$0xff] }
  0x55   : > { %4748 = vmatprep.subr.mxu0 %v4019_v33  ;;  %4670 = vmatprep.subr.mxu1 %v4002_v49 }
  0x56   : > { %4749 = vmatpush3.msra.mxu0 %v4019_v33  ;;  %4641 = vmatprep.mubr.f32.mxu1 %v5716_v22  ;;  %v340_v33 = vld [vmem:[#allocation2 + $0x28] sm:$0x3] }
  0x57   : > { %4671 = vmatpush3.msra.mxu1 %v4002_v49  ;;  %4750 = vmatprep.subr.mxu0 %v4018_v34  ;;  %v1095_v49 = vrot.slane %v337_v50, 2  ;;  %v713_v50 = vrot.slane %v340_v33, 1  ;;  %v1100_v57 = vrot.slane %v340_v33, 2 }
  0x58   : > { %4617 = vmatprep.mubr.f32.mxu0 %v5791_v53  ;;  %4642 = vmatmul.mubr.f32.gmra.mxu1 %v5718_v23 }
  0x59   : > { %4672 = vmatprep.subr.mxu1 %v4001_v4  ;;  %4751 = vmatpush3.msra.mxu0 %v4018_v34  ;;  %v4047_v34 = vld [vmem:[%s7408_s1 + $0x1f8] sm:$0xff]  ;;  %v1096_v58 = vsel %vm1091_vm1, %v1092_v27, %v1095_v49  ;;  %v714_v16 = vsel %vm704_vm0, %v5811_v2, %v713_v50  ;;  %v1101_v33 = vsel %vm1091_vm1, %v1098_v37, %v1100_v57  ;;  %v720_v50 = vrot.slane %v5700_v18, 1 }
  0x5a   : > { %4618 = vmatmul.mubr.f32.gmra.mxu0 %v5798_v11  ;;  %4673 = vmatpush3.msra.mxu1 %v4001_v4  ;;  %v343_v4 = vld [vmem:[#allocation2 + $0x40] sm:$0x3] }
  0x5b   : > { %4752 = vmatprep.subr.mxu0 %v4017_v15  ;;  %4674 = vmatprep.subr.mxu1 %v4000_v21  ;;  %v718_v17 = vrot.slane %v343_v4, 1  ;;  %v1105_v49 = vrot.slane %v343_v4, 2  ;;  %v1107_v4 = vrot.slane %v5700_v18, 2 }
  0x5c   : > { %4753 = vmatpush3.msra.mxu0 %v4017_v15  ;;  %4675 = vmatpush3.msra.mxu1 %v4000_v21  ;;  %v1102_v15 = vrot.slane %v5670_v7, 2  ;;  %v5837_v21 = vrot.slane %v5686_v12, 2 }
  0x5d   : > { %4676 = vmatprep.mubr.f32.mxu1 %v705_v8  ;;  %4754 = vmatprep.subr.mxu0 %v4016_v61  ;;  %v712_v8 = vsel %vm704_vm0, %v710_v43, %v5811_v2  ;;  %v346_v43 = vld [vmem:[#allocation2 + $0x58] sm:$0x3]  ;;  %v719_v57 = vsel %vm704_vm0, %v5828_v47, %v718_v17  ;;  %v725_v17 = vrot.slane %v5726_v44, 1 }
  0x5e   : > { %4677 = vmatmul.mubr.f32.vlgmr.msra.gmra.mxu1 %v709_v60  ;;  %4755 = vmatpush3.msra.mxu0 %v4016_v61  ;;  %7469 = vst [vmem:[#allocation6_spill] sm:$0xff] %v5837_v21  ;;  %v1099_v60 = vsel %vm1091_vm1, %v1097_v38, %v1098_v37  ;;  %v4046_v61 = vld [vmem:[%s7408_s1 + $0x1f0] sm:$0xff]  ;;  %v723_v37 = vrot.slane %v346_v43, 1 }
  0x5f   : > { %4756 = vmatprep.mubr.f32.mxu0 %v1092_v27  ;;  %4804 = vmatprep.subr.mxu1 %v4047_v34  ;;  %v5848_v27 = vsel %vm1091_vm1, %v1102_v15, %v5837_v21  ;;  %v4062_v38 = vld [vmem:[%s7408_s1 + $0x270] sm:$0xff] }
  0x60   : > { %4757 = vmatmul.mubr.f32.vlgmr.msra.gmra.mxu0 %v1096_v58  ;;  %4805 = vmatpush3.msra.mxu1 %v4047_v34  ;;  %7470 = vst [vmem:[#allocation7_spill] sm:$0xff] %v5848_v27  ;;  %v5852_v58 = vrot.slane %v5706_v20, 1  ;;  %v5859_v34 = vsel %vm704_vm0, %v715_v41, %v5828_v47  ;;  %v349_v15 = vld [vmem:[#allocation2 + $0x70] sm:$0x3]  ;;  %v1106_v41 = vsel %vm1091_vm1, %v5837_v21, %v1105_v49  ;;  %v5886_v49 = vrot.slane %v5732_v51, 2 }
  0x61   : > { %4884 = vmatprep.subr.mxu0 %v4063_v45  ;;  %4679 = vmatprep.mubr.f32.mxu1 %v712_v8  ;;  %v5865_v8 = vrot.slane %v5706_v20, 2  ;;  %v1115_v29 = vrot.slane %v349_v15, 2 }
  0x62   : > { %4885 = vmatpush3.msra.mxu0 %v4063_v45  ;;  %4680 = vmatmul.mubr.f32.gmra.mxu1 %v714_v16  ;;  %v4045_v45 = vld [vmem:[%s7408_s1 + $0x1e8] sm:$0xff]  ;;  %v1110_v16 = vrot.slane %v346_v43, 2  ;;  %7472 = vst [vmem:[#allocation9_spill] sm:$0xff] %v5886_v49  ;;  %v724_v43 = vsel %vm704_vm0, %v5852_v58, %v723_v37  ;;  %v5903_v37 = vsel %vm1091_vm1, %v1112_v46, %v5886_v49  ;;  %v5918_v46 = vrot.slane %v5757_v13, 2 }
  0x63   : > { %4759 = vmatprep.mubr.f32.mxu0 %v1099_v60  ;;  %4806 = vmatprep.subr.mxu1 %v4046_v61  ;;  %7471 = vst [vmem:[#allocation8_spill] sm:$0xff] %v5865_v8  ;;  %v5875_v60 = vrot.slane %v5732_v51, 1  ;;  %7474 = vst [vmem:[#allocation11_spill] sm:$0xff] %v5903_v37 }
  0x64   : > { %4760 = vmatmul.mubr.f32.gmra.mxu0 %v1101_v33  ;;  %4807 = vmatpush3.msra.mxu1 %v4046_v61  ;;  %v4061_v61 = vld [vmem:[%s7408_s1 + $0x268] sm:$0xff]  ;;  %v5882_v33 = vsel %vm704_vm0, %v720_v50, %v5852_v58  ;;  %v4044_v50 = vld [vmem:[%s7408_s1 + $0x1e0] sm:$0xff]  ;;  %v1111_v35 = vsel %vm1091_vm1, %v5865_v8, %v1110_v16  ;;  %7475 = vst [vmem:[#allocation12_spill] sm:$0xff] %v5918_v46 }
  0x65   : > { %4886 = vmatprep.subr.mxu0 %v4062_v38  ;;  %4682 = vmatprep.mubr.f32.mxu1 %v5859_v34  ;;  %v5914_v28 = vsel %vm704_vm0, %v725_v17, %v5875_v60  ;;  %v355_v17 = vld [vmem:[#allocation2 + $0xa0] sm:$0x3] }
  0x66   : > { %4887 = vmatpush3.msra.mxu0 %v4062_v38  ;;  %4683 = vmatmul.mubr.f32.gmra.mxu1 %v719_v57  ;;  %v728_v38 = vrot.slane %v349_v15, 1  ;;  %v5893_v57 = vsel %vm1091_vm1, %v1107_v4, %v5865_v8  ;;  %v5907_v4 = vrot.slane %v5757_v13, 1  ;;  %v1117_v15 = vrot.slane %v5751_v6, 2 }
  0x67   : > { %4762 = vmatprep.mubr.f32.mxu0 %v5848_v27  ;;  %4808 = vmatprep.subr.mxu1 %v4045_v45  ;;  %7473 = vst [vmem:[#allocation10_spill] sm:$0xff] %v5893_v57  ;;  %v1116_v8 = vsel %vm1091_vm1, %v5886_v49, %v1115_v29  ;;  %v1120_v27 = vrot.slane %v352_v36, 2  ;;  %v1122_v29 = vrot.slane %v5771_v19, 2 }
  0x68   : > { %4763 = vmatmul.mubr.f32.gmra.mxu0 %v1106_v41  ;;  %4809 = vmatpush3.msra.mxu1 %v4045_v45  ;;  %v730_v45 = vrot.slane %v5751_v6, 1  ;;  %v4060_v41 = vld [vmem:[%s7408_s1 + $0x260] sm:$0xff]  ;;  %v729_v16 = vsel %vm704_vm0, %v5875_v60, %v728_v38  ;;  %v735_v38 = vrot.slane %v5771_v19, 1 }
  0x69   : > { %4888 = vmatprep.subr.mxu0 %v4061_v61  ;;  %4685 = vmatprep.mubr.f32.mxu1 %v5882_v33  ;;  %v1121_v49 = vsel %vm1091_vm1, %v5918_v46, %v1120_v27  ;;  %v1127_v27 = vrot.slane %v5791_v53, 2 }
  0x6a   : > { %4889 = vmatpush3.msra.mxu0 %v4061_v61  ;;  %4686 = vmatmul.mubr.f32.gmra.mxu1 %v724_v43  ;;  %v733_v61 = vrot.slane %v352_v36, 1  ;;  %v4043_v43 = vld [vmem:[%s7408_s1 + $0x1d8] sm:$0xff]  ;;  %v5942_v21 = vsel %vm704_vm0, %v730_v45, %v5907_v4  ;;  %v5946_v36 = vrot.slane %v5777_v48, 2 }
  0x6b   : > { %4765 = vmatprep.mubr.f32.mxu0 %v5893_v57  ;;  %4810 = vmatprep.subr.mxu1 %v4044_v50  ;;  %v5931_v57 = vsel %vm1091_vm1, %v1117_v15, %v5918_v46  ;;  %v738_v15 = vrot.slane %v355_v17, 1  ;;  %v358_v45 = vld [vmem:[#allocation2 + $0xb8] sm:$0x3] }
  0x6c   : > { %4766 = vmatmul.mubr.f32.gmra.mxu0 %v1111_v35  ;;  %4811 = vmatpush3.msra.mxu1 %v4044_v50  ;;  %7476 = vst [vmem:[#allocation13_spill] sm:$0xff] %v5931_v57  ;;  %v5935_v35 = vrot.slane %v5777_v48, 1  ;;  %v4059_v50 = vld [vmem:[%s7408_s1 + $0x258] sm:$0xff]  ;;  %v1125_v48 = vrot.slane %v355_v17, 2  ;;  %v5974_v17 = vrot.slane %v5798_v11, 2 }
  0x6d   : > { %4890 = vmatprep.subr.mxu0 %v4060_v41  ;;  %4688 = vmatprep.mubr.f32.mxu1 %v5914_v28 }
  0x6e   : > { %4891 = vmatpush3.msra.mxu0 %v4060_v41  ;;  %4689 = vmatmul.mubr.f32.gmra.mxu1 %v729_v16  ;;  %v734_v41 = vsel %vm704_vm0, %v5907_v4, %v733_v61  ;;  %v4042_v16 = vld [vmem:[%s7408_s1 + $0x1d0] sm:$0xff]  ;;  %v740_v61 = vrot.slane %v5791_v53, 1  ;;  %v5970_v19 = vsel %vm704_vm0, %v735_v38, %v5935_v35  ;;  %v1126_v46 = vsel %vm1091_vm1, %v5946_v36, %v1125_v48 }
  0x6f   : > { %4768 = vmatprep.mubr.f32.mxu0 %v5903_v37  ;;  %4812 = vmatprep.subr.mxu1 %v4043_v43  ;;  %v5959_v37 = vsel %vm1091_vm1, %v1122_v29, %v5946_v36  ;;  %v743_v29 = vrot.slane %v358_v45, 1  ;;  %v361_v38 = vld [vmem:[#allocation2 + $0xd0] sm:$0x3] }
  0x70   : > { %4769 = vmatmul.mubr.f32.gmra.mxu0 %v1116_v8  ;;  %4813 = vmatpush3.msra.mxu1 %v4043_v43  ;;  %v5963_v8 = vrot.slane %v5798_v11, 1  ;;  %v4058_v43 = vld [vmem:[%s7408_s1 + $0x250] sm:$0xff]  ;;  %v1130_v11 = vrot.slane %v358_v45, 2  ;;  %v4040_v45 = vld [vmem:[%s7408_s1 + $0x1c0] sm:$0xff] }
  0x71   : > { %4892 = vmatprep.subr.mxu0 %v4059_v50  ;;  %4691 = vmatprep.mubr.f32.mxu1 %v5942_v21 }
  0x72   : > { %4893 = vmatpush3.msra.mxu0 %v4059_v50  ;;  %4692 = vmatmul.mubr.f32.gmra.mxu1 %v734_v41  ;;  %v739_v50 = vsel %vm704_vm0, %v5935_v35, %v738_v15  ;;  %v4041_v41 = vld [vmem:[%s7408_s1 + $0x1c8] sm:$0xff]  ;;  %v5994_v15 = vsel %vm704_vm0, %v740_v61, %v5963_v8  ;;  %v744_v48 = vsel %vm704_vm0, %v5963_v8, %v743_v29 }
  0x73   : > { %4771 = vmatprep.mubr.f32.mxu0 %v5931_v57  ;;  %4814 = vmatprep.subr.mxu1 %v4042_v16  ;;  %v5987_v57 = vsel %vm1091_vm1, %v1127_v27, %v5974_v17  ;;  %v1131_v61 = vsel %vm1091_vm1, %v5974_v17, %v1130_v11  ;;  %v1135_v27 = vrot.slane %v361_v38, 2  ;;  %v4039_v11 = vld [vmem:[%s7408_s1 + $0x1b8] sm:$0xff] }
  0x74   : > { %4772 = vmatmul.mubr.f32.gmra.mxu0 %v1121_v49  ;;  %4815 = vmatpush3.msra.mxu1 %v4042_v16  ;;  %7477 = vst [vmem:[#allocation14_spill] sm:$0xff] %v5987_v57  ;;  %v4057_v49 = vld [vmem:[%s7408_s1 + $0x248] sm:$0xff]  ;;  %v748_v16 = vrot.slane %v361_v38, 1  ;;  %v367_v38 = vld [vmem:[#allocation2 + $0x100] sm:$0x3] }
  0x75   : > { %4894 = vmatprep.subr.mxu0 %v4058_v43  ;;  %4694 = vmatprep.mubr.f32.mxu1 %v5970_v19 }
  0x76   : > { %4895 = vmatpush3.msra.mxu0 %v4058_v43  ;;  %4695 = vmatmul.mubr.f32.gmra.mxu1 %v739_v50  ;;  %v364_v43 = vld [vmem:[#allocation2 + $0xe8] sm:$0x3]  ;;  %v4056_v50 = vld [vmem:[%s7408_s1 + $0x240] sm:$0xff] }
  0x77   : > { %4774 = vmatprep.mubr.f32.mxu0 %v5959_v37  ;;  %4816 = vmatprep.subr.mxu1 %v4041_v41 }
  0x78   : > { %4775 = vmatmul.mubr.f32.gmra.mxu0 %v1126_v46  ;;  %4817 = vmatpush3.msra.mxu1 %v4041_v41  ;;  %v7478_v46 = vrot.slane %v5482_v24, 1  ;;  %v753_v41 = vrot.slane %v364_v43, 1 }
  0x79   : > { %4896 = vmatprep.subr.mxu0 %v4057_v49  ;;  %4697 = vmatprep.mubr.f32.mxu1 %v5994_v15 }
  0x7a   : > { %4897 = vmatpush3.msra.mxu0 %v4057_v49  ;;  %4698 = vmatmul.mubr.f32.gmra.mxu1 %v744_v48  ;;  %v749_v29 = vsel %vm704_vm0, %v7478_v46, %v748_v16  ;;  %v7479_v49 = vrot.slane %v5482_v24, 2  ;;  %v4055_v16 = vld [vmem:[%s7408_s1 + $0x238] sm:$0xff]  ;;  %v758_v46 = vrot.slane %v367_v38, 1  ;;  %v4038_v24 = vld [vmem:[%s7408_s1 + $0x1b0] sm:$0xff] }
  0x7b   : > { %4777 = vmatprep.mubr.f32.mxu0 %v5987_v57  ;;  %4818 = vmatprep.subr.mxu1 %v4040_v45  ;;  %v1140_v57 = vrot.slane %v364_v43, 2  ;;  %v7481_v43 = vrot.slane %v5494_v32, 2 }
  0x7c   : > { %4778 = vmatmul.mubr.f32.gmra.mxu0 %v1131_v61  ;;  %4819 = vmatpush3.msra.mxu1 %v4040_v45  ;;  %v1136_v48 = vsel %vm1091_vm1, %v7479_v49, %v1135_v27  ;;  %v7480_v45 = vrot.slane %v5494_v32, 1  ;;  %v1145_v27 = vrot.slane %v367_v38, 2  ;;  %v4037_v32 = vld [vmem:[%s7408_s1 + $0x1a8] sm:$0xff] }
  0x7d   : > { %4898 = vmatprep.subr.mxu0 %v4056_v50  ;;  %4700 = vmatprep.mubr.f32.mxu1 %v5509_v39  ;;  %v370_v39 = vld [vmem:[#allocation2 + $0x118] sm:$0x3]  ;;  %v4053_v49 = vld [vmem:[%s7408_s1 + $0x228] sm:$0xff] }
  0x7e   : > { %4899 = vmatpush3.msra.mxu0 %v4056_v50  ;;  %4701 = vmatmul.mubr.f32.gmra.mxu1 %v749_v29  ;;  %v754_v61 = vsel %vm704_vm0, %v7480_v45, %v753_v41  ;;  %v4054_v50 = vld [vmem:[%s7408_s1 + $0x230] sm:$0xff]  ;;  %v7482_v29 = vrot.slane %v5518_v42, 1  ;;  %v1150_v38 = vrot.slane %v370_v39, 2 }
  0x7f   : > { %4780 = vmatprep.mubr.f32.mxu0 %v5514_v40  ;;  %4820 = vmatprep.subr.mxu1 %v4039_v11  ;;  %v1141_v40 = vsel %vm1091_vm1, %v7481_v43, %v1140_v57  ;;  %v7483_v57 = vrot.slane %v5518_v42, 2  ;;  %v4036_v42 = vld [vmem:[%s7408_s1 + $0x1a0] sm:$0xff] }
  0x80   : > { %4781 = vmatmul.mubr.f32.gmra.mxu0 %v1136_v48  ;;  %4821 = vmatpush3.msra.mxu1 %v4039_v11  ;;  %v759_v41 = vsel %vm704_vm0, %v7482_v29, %v758_v46  ;;  %v763_v11 = vrot.slane %v370_v39, 1  ;;  %v7484_v48 = vrot.slane %v5530_v52, 1  ;;  %v7486_v39 = vrot.slane %v5589_v14, 1  ;;  %v4051_v29 = vld [vmem:[%s7408_s1 + $0x218] sm:$0xff] }
  0x81   : > { %4900 = vmatprep.subr.mxu0 %v4055_v16  ;;  %4703 = vmatprep.mubr.f32.mxu1 %v5536_v54  ;;  %v373_v54 = vld [vmem:[#allocation2 + $0x130] sm:$0x3] }
  0x82   : > { %4901 = vmatpush3.msra.mxu0 %v4055_v16  ;;  %4704 = vmatmul.mubr.f32.gmra.mxu1 %v754_v61  ;;  %v764_v16 = vsel %vm704_vm0, %v7484_v48, %v763_v11  ;;  %v768_v45 = vrot.slane %v373_v54, 1  ;;  %v7485_v61 = vrot.slane %v5530_v52, 2  ;;  %v1155_v46 = vrot.slane %v373_v54, 2  ;;  %v4035_v52 = vld [vmem:[%s7408_s1 + $0x198] sm:$0xff] }
  0x83   : > { %4783 = vmatprep.mubr.f32.mxu0 %v5541_v55  ;;  %4822 = vmatprep.subr.mxu1 %v4038_v24  ;;  %v1146_v55 = vsel %vm1091_vm1, %v7483_v57, %v1145_v27  ;;  %v7487_v27 = vrot.slane %v5589_v14, 2  ;;  %v4034_v14 = vld [vmem:[%s7408_s1 + $0x190] sm:$0xff]  ;;  %v7489_v54 = vrot.slane %v5620_v30, 2 }
  0x84   : > { %4784 = vmatmul.mubr.f32.gmra.mxu0 %v1141_v40  ;;  %4823 = vmatpush3.msra.mxu1 %v4038_v24  ;;  %v4052_v24 = vld [vmem:[%s7408_s1 + $0x220] sm:$0xff]  ;;  %v769_v43 = vsel %vm704_vm0, %v7486_v39, %v768_v45 }
  0x85   : > { %4902 = vmatprep.subr.mxu0 %v4054_v50  ;;  %4706 = vmatprep.mubr.f32.mxu1 %v5557_v63  ;;  %v376_v63 = vld [vmem:[#allocation2 + $0x148] sm:$0x3] }
  0x86   : > { %4903 = vmatpush3.msra.mxu0 %v4054_v50  ;;  %4707 = vmatmul.mubr.f32.gmra.mxu1 %v759_v41  ;;  %v773_v40 = vrot.slane %v376_v63, 1  ;;  %v1160_v50 = vrot.slane %v376_v63, 2  ;;  %v7488_v41 = vrot.slane %v5620_v30, 1  ;;  %v4049_v63 = vld [vmem:[%s7408_s1 + $0x208] sm:$0xff] }
  0x87   : > { %4786 = vmatprep.mubr.f32.mxu0 %v5562_v0  ;;  %4824 = vmatprep.subr.mxu1 %v4037_v32  ;;  %v1151_v0 = vsel %vm1091_vm1, %v7485_v61, %v1150_v38  ;;  %v781_v38 = vrot.slane %v5718_v23, 1 }
  0x88   : > { %4787 = vmatmul.mubr.f32.gmra.mxu0 %v1146_v55  ;;  %4825 = vmatpush3.msra.mxu1 %v4037_v32  ;;  %v774_v11 = vsel %vm704_vm0, %v7488_v41, %v773_v40  ;;  %v780_v55 = vrot.slane %v5716_v22, 1  ;;  %v4033_v22 = vld [vmem:[%s7408_s1 + $0x188] sm:$0xff]  ;;  %v6126_v40 = vld [vmem:[#allocation2 + $0x40] sm:$0x3]  ;;  %v6155_v41 = vld [vmem:[#allocation2 + $0x70] sm:$0x3] }
  0x89   : > { %4904 = vmatprep.subr.mxu0 %v4053_v49  ;;  %4709 = vmatprep.mubr.f32.mxu1 %v5567_v1  ;;  %v379_v1 = vld [vmem:[#allocation2 + $0x160] sm:$0x3] }
  0x8a   : > { %4905 = vmatpush3.msra.mxu0 %v4053_v49  ;;  %4710 = vmatmul.mubr.f32.gmra.mxu1 %v764_v16  ;;  %v778_v32 = vrot.slane %v379_v1, 1  ;;  %v1165_v57 = vrot.slane %v379_v1, 2  ;;  %v4050_v49 = vld [vmem:[%s7408_s1 + $0x210] sm:$0xff]  ;;  %v7491_v16 = vrot.slane %v5642_v56, 2  ;;  %v782_v61 = vsel %vm704_vm0, %v780_v55, %v781_v38 }
  0x8b   : > { %4789 = vmatprep.mubr.f32.mxu0 %v5574_v5  ;;  %4826 = vmatprep.subr.mxu1 %v4036_v42  ;;  %v1156_v5 = vsel %vm1091_vm1, %v7487_v27, %v1155_v46  ;;  %v1856_v27 = vrot.slane %v6126_v40, 1  ;;  %v6215_v55 = vld [vmem:[#allocation2 + $0xd0] sm:$0x3] }
  0x8c   : > { %4790 = vmatmul.mubr.f32.gmra.mxu0 %v1151_v0  ;;  %4827 = vmatpush3.msra.mxu1 %v4036_v42  ;;  %v1166_v45 = vsel %vm1091_vm1, %v7491_v16, %v1165_v57  ;;  %v6105_v42 = vld [vmem:[#allocation2 + $0x18] sm:$0xff]  ;;  %v6111_v0 = vld [vmem:[#allocation2 + $0x28] sm:$0x3]  ;;  %v4090_v57 = vld [vmem:[%s7408_s1 + $0x350] sm:$0xff] }
  0x8d   : > { %4906 = vmatprep.subr.mxu0 %v4052_v24  ;;  %4712 = vmatprep.mubr.f32.mxu1 %v5607_v25  ;;  %v382_v25 = vld [vmem:[#allocation2 + $0x178] sm:$0x3]  ;;  %v1848_v46 = vrot.slane %v6105_v42, 1  ;;  %v4089_v16 = vld [vmem:[%s7408_s1 + $0x348] sm:$0xff] }
  0x8e   : > { %4907 = vmatpush3.msra.mxu0 %v4052_v24  ;;  %4713 = vmatmul.mubr.f32.gmra.mxu1 %v769_v43  ;;  %v783_v48 = vrot.slane %v382_v25, 1  ;;  %v7492_v24 = vrot.slane %v5718_v23, 2  ;;  %v1851_v43 = vrot.slane %v6111_v0, 1 }
  0x8f   : > { %4792 = vmatprep.mubr.f32.mxu0 %v5612_v26  ;;  %4828 = vmatprep.subr.mxu1 %v4035_v52  ;;  %v1161_v26 = vsel %vm1091_vm1, %v7489_v54, %v1160_v50  ;;  %v1850_v23 = vsel %vm704_vm0, %v1848_v46, %v5811_v2  ;;  %v4078_v50 = vld [vmem:[%s7408_s1 + $0x2f0] sm:$0xff]  ;;  %v6207_v54 = vld [vmem:[#allocation2 + $0xc0] sm:$0xff] }
  0x90   : > { %4793 = vmatmul.mubr.f32.gmra.mxu0 %v1156_v5  ;;  %4829 = vmatpush3.msra.mxu1 %v4035_v52  ;;  %v4079_v52 = vld [vmem:[%s7408_s1 + $0x2f8] sm:$0xff]  ;;  %v1852_v1 = vsel %vm704_vm0, %v5811_v2, %v1851_v43  ;;  %v4088_v46 = vld [vmem:[%s7408_s1 + $0x340] sm:$0xff] }
  0x91   : > { %4908 = vmatprep.subr.mxu0 %v4051_v29  ;;  %4715 = vmatprep.mubr.f32.mxu1 %v5651_v31  ;;  %v7490_v31 = vrot.slane %v5642_v56, 1  ;;  %v784_v56 = vsel %vm704_vm0, %v781_v38, %v783_v48  ;;  %v6142_v5 = vld [vmem:[#allocation2 + $0x58] sm:$0x3]  ;;  %v1883_v38 = vrot.slane %v6207_v54, 1  ;;  %v6231_v48 = vld [vmem:[#allocation2 + $0xe0] sm:$0xff] }
  0x92   : > { %4909 = vmatpush3.msra.mxu0 %v4051_v29  ;;  %4716 = vmatmul.mubr.f32.gmra.mxu1 %v774_v11  ;;  %v1861_v2 = vrot.slane %v6142_v5, 1  ;;  %v4094_v29 = vld [vmem:[%s7408_s1 + $0x370] sm:$0xff]  ;;  %v6169_v11 = vld [vmem:[#allocation2 + $0x88] sm:$0x3]  ;;  %v4071_v43 = vld [vmem:[%s7408_s1 + $0x2b8] sm:$0xff] }
  0x93   : > { %4795 = vmatprep.mubr.f32.mxu0 %v5656_v62  ;;  %4830 = vmatprep.subr.mxu1 %v4034_v14  ;;  %v779_v30 = vsel %vm704_vm0, %v7490_v31, %v778_v32  ;;  %v1170_v62 = vrot.slane %v382_v25, 2  ;;  %v6183_v32 = vld [vmem:[#allocation2 + $0xa0] sm:$0x3] }
  0x94   : > { %4796 = vmatmul.mubr.f32.gmra.mxu0 %v1161_v26  ;;  %4831 = vmatpush3.msra.mxu1 %v4034_v14  ;;  %v6197_v14 = vld [vmem:[#allocation2 + $0xb8] sm:$0x3]  ;;  %v6209_v26 = vld [vmem:[#allocation2 + $0xc8] sm:$0xff] }
  0x95   : > { %4910 = vmatprep.subr.mxu0 %v4050_v49  ;;  %4718 = vmatprep.mubr.f32.mxu1 %v5675_v9  ;;  %v4032_v9 = vld [vmem:[%s7408_s1 + $0x180] sm:$0xff]  ;;  %v1171_v39 = vsel %vm1091_vm1, %v7492_v24, %v1170_v62  ;;  %v1881_v25 = vrot.slane %v6197_v14, 1 }
  0x96   : > { %4911 = vmatpush3.msra.mxu0 %v4050_v49  ;;  %4719 = vmatmul.mubr.f32.gmra.mxu1 %v779_v30  ;;  %v6223_v49 = vrot.slane %v6209_v26, 1  ;;  %v6229_v30 = vld [vmem:[#allocation2 + $0xd8] sm:$0xff]  ;;  %v6263_v24 = vld [vmem:[#allocation2 + $0x100] sm:$0x3] }
  0x97   : > { %4798 = vmatprep.mubr.f32.mxu0 %v5680_v10  ;;  %4832 = vmatprep.subr.mxu1 %v4033_v22  ;;  %v4048_v10 = vld [vmem:[%s7408_s1 + $0x200] sm:$0xff]  ;;  %v1882_v31 = vsel %vm704_vm0, %v5963_v8, %v1881_v25  ;;  %v1888_v62 = vrot.slane %v6229_v30, 1 }
  0x98   : > { %4799 = vmatmul.mubr.f32.gmra.mxu0 %v1166_v45  ;;  %4833 = vmatpush3.msra.mxu1 %v4033_v22  ;;  %v7495_v22 = vld [vmem:[#allocation5_spill] sm:$0xff]  ;;  %v6237_v45 = vld [vmem:[#allocation2 + $0xe8] sm:$0x3] }
  0x99   : > { %4912 = vmatprep.subr.mxu0 %v4049_v63  ;;  %4721 = vmatprep.mubr.f32.mxu1 %v782_v61  ;;  %v4072_v8 = vld [vmem:[%s7408_s1 + $0x2c0] sm:$0xff]  ;;  %v1891_v61 = vrot.slane %v6237_v45, 1 }
  0x9a   : > { %4913 = vmatpush3.msra.mxu0 %v4049_v63  ;;  %4722 = vmatmul.mubr.f32.gmra.mxu1 %v784_v56  ;;  %v6249_v63 = vrot.slane %v6231_v48, 1  ;;  %v6255_v56 = vld [vmem:[#allocation2 + $0xf0] sm:$0xff]  ;;  %v6335_v25 = vld [vmem:[#allocation2 + $0x140] sm:$0xff] }
  0x9b   : > { %4801 = vmatprep.mubr.f32.mxu0 %v5745_v3  ;;  %4834 = vmatprep.subr.mxu1 %v4032_v9  ;;  %v4095_v3 = vld [vmem:[%s7408_s1 + $0x378] sm:$0xff] }
  0x9c   : > { %4802 = vmatmul.mubr.f32.gmra.mxu0 %v1171_v39  ;;  %4835 = vmatpush3.msra.mxu1 %v4032_v9  ;;  %v6257_v9 = vld [vmem:[#allocation2 + $0xf8] sm:$0xff]  ;;  %v6268_v39 = vsel %vm704_vm0, %v1888_v62, %v6249_v63 }
  0x9d   : > { %4914 = vmatprep.subr.mxu0 %v4048_v10  ;;  %4836 = vmatprep.mubr.f32.mxu1 %v6105_v42  ;;  %v6361_v62 = vld [vmem:[#allocation2 + $0x158] sm:$0xff] }
  0x9e   : > { %4915 = vmatpush3.msra.mxu0 %v4048_v10  ;;  %4837 = vmatmul.mubr.f32.vlgmr.msra.gmra.mxu1 %v5644_v59  ;;  %v1857_v59 = vsel %vm704_vm0, %v5828_v47, %v1856_v27  ;;  %v4077_v47 = vld [vmem:[%s7408_s1 + $0x2e8] sm:$0xff]  ;;  %v1893_v10 = vrot.slane %v6255_v56, 1 }
  0x9f   : > { %4916 = vmatprep.mubr.f32.mxu0 %v1850_v23  ;;  %4964 = vmatprep.subr.mxu1 %v4079_v52  ;;  %v6275_v23 = vrot.slane %v6257_v9, 1  ;;  %v6281_v27 = vld [vmem:[#allocation2 + $0x108] sm:$0xff] }
  0xa0   : > { %4917 = vmatmul.mubr.f32.vlgmr.msra.gmra.mxu0 %v1852_v1  ;;  %4965 = vmatpush3.msra.mxu1 %v4079_v52  ;;  %v1892_v52 = vsel %vm704_vm0, %v6249_v63, %v1891_v61  ;;  %v1896_v1 = vrot.slane %v6263_v24, 1  ;;  %v6367_v61 = vld [vmem:[#allocation2 + $0x160] sm:$0x3] }
  0xa1   : > { %5044 = vmatprep.subr.mxu0 %v4095_v3  ;;  %4839 = vmatprep.mubr.f32.mxu1 %v5670_v7  ;;  %v1862_v7 = vsel %vm704_vm0, %v5852_v58, %v1861_v2  ;;  %v1871_v58 = vrot.slane %v6169_v11, 1  ;;  %v6294_v2 = vsel %vm704_vm0, %v1893_v10, %v6275_v23 }
  0xa2   : > { %5045 = vmatpush3.msra.mxu0 %v4095_v3  ;;  %4840 = vmatmul.mubr.f32.gmra.mxu1 %v5686_v12  ;;  %v1866_v12 = vrot.slane %v6155_v41, 1  ;;  %v6283_v3 = vld [vmem:[#allocation2 + $0x110] sm:$0xff] }
  0xa3   : > { %4919 = vmatprep.mubr.f32.mxu0 %v5859_v34  ;;  %4966 = vmatprep.subr.mxu1 %v4078_v50  ;;  %v4093_v34 = vld [vmem:[%s7408_s1 + $0x368] sm:$0xff] }
  0xa4   : > { %4920 = vmatmul.mubr.f32.gmra.mxu0 %v1857_v59  ;;  %4967 = vmatpush3.msra.mxu1 %v4078_v50  ;;  %v4087_v50 = vld [vmem:[%s7408_s1 + $0x338] sm:$0xff] }
  0xa5   : > { %5046 = vmatprep.subr.mxu0 %v4094_v29  ;;  %4842 = vmatprep.mubr.f32.mxu1 %v5700_v18  ;;  %v4076_v18 = vld [vmem:[%s7408_s1 + $0x2e0] sm:$0xff]  ;;  %v6289_v59 = vld [vmem:[#allocation2 + $0x118] sm:$0x3] }
  0xa6   : > { %5047 = vmatpush3.msra.mxu0 %v4094_v29  ;;  %4843 = vmatmul.mubr.f32.gmra.mxu1 %v5706_v20  ;;  %v1867_v20 = vsel %vm704_vm0, %v5875_v60, %v1866_v12  ;;  %v1876_v60 = vrot.slane %v6183_v32, 1  ;;  %v4070_v29 = vld [vmem:[%s7408_s1 + $0x2b0] sm:$0xff]  ;;  %v1897_v12 = vsel %vm704_vm0, %v6275_v23, %v1896_v1 }
  0xa7   : > { %4922 = vmatprep.mubr.f32.mxu0 %v5882_v33  ;;  %4968 = vmatprep.subr.mxu1 %v4077_v47  ;;  %v4092_v33 = vld [vmem:[%s7408_s1 + $0x360] sm:$0xff] }
  0xa8   : > { %4923 = vmatmul.mubr.f32.gmra.mxu0 %v1862_v7  ;;  %4969 = vmatpush3.msra.mxu1 %v4077_v47  ;;  %v1898_v47 = vrot.slane %v6281_v27, 1  ;;  %v6301_v7 = vrot.slane %v6283_v3, 1 }
  0xa9   : > { %5048 = vmatprep.subr.mxu0 %v4093_v34  ;;  %4845 = vmatprep.mubr.f32.mxu1 %v5726_v44  ;;  %v4075_v44 = vld [vmem:[%s7408_s1 + $0x2d8] sm:$0xff] }
  0xaa   : > { %5049 = vmatpush3.msra.mxu0 %v4093_v34  ;;  %4846 = vmatmul.mubr.f32.gmra.mxu1 %v5732_v51  ;;  %v1872_v51 = vsel %vm704_vm0, %v5907_v4, %v1871_v58  ;;  %v7493_v4 = vld [vmem:[#allocation3_spill] sm:$0xff]  ;;  %v1901_v34 = vrot.slane %v6289_v59, 1 }
  0xab   : > { %4925 = vmatprep.mubr.f32.mxu0 %v5914_v28  ;;  %4970 = vmatprep.subr.mxu1 %v4076_v18  ;;  %v4091_v28 = vld [vmem:[%s7408_s1 + $0x358] sm:$0xff]  ;;  %7496 = vst [vmem:[#allocation3_spill] sm:$0xff] %v6301_v7  ;;  %v4086_v58 = vld [vmem:[%s7408_s1 + $0x330] sm:$0xff] }
  0xac   : > { %4926 = vmatmul.mubr.f32.gmra.mxu0 %v1867_v20  ;;  %4971 = vmatpush3.msra.mxu1 %v4076_v18  ;;  %v6307_v18 = vld [vmem:[#allocation2 + $0x120] sm:$0xff]  ;;  %v6309_v20 = vld [vmem:[#allocation2 + $0x128] sm:$0xff] }
  0xad   : > { %5050 = vmatprep.subr.mxu0 %v4092_v33  ;;  %4848 = vmatprep.mubr.f32.mxu1 %v5751_v6  ;;  %v4074_v6 = vld [vmem:[%s7408_s1 + $0x2d0] sm:$0xff] }
  0xae   : > { %5051 = vmatpush3.msra.mxu0 %v4092_v33  ;;  %4849 = vmatmul.mubr.f32.gmra.mxu1 %v5757_v13  ;;  %v1877_v13 = vsel %vm704_vm0, %v5935_v35, %v1876_v60  ;;  %v4073_v35 = vld [vmem:[%s7408_s1 + $0x2c8] sm:$0xff]  ;;  %v6315_v33 = vld [vmem:[#allocation2 + $0x130] sm:$0x3]  ;;  %v1903_v60 = vrot.slane %v6307_v18, 1 }
  0xaf   : > { %4928 = vmatprep.mubr.f32.mxu0 %v5942_v21  ;;  %4972 = vmatprep.subr.mxu1 %v4075_v44  ;;  %v7494_v21 = vld [vmem:[#allocation4_spill] sm:$0xff] }
  0xb0   : > { %4929 = vmatmul.mubr.f32.gmra.mxu0 %v1872_v51  ;;  %4973 = vmatpush3.msra.mxu1 %v4075_v44  ;;  %v6320_v44 = vsel %vm704_vm0, %v1898_v47, %v6301_v7  ;;  %v4069_v51 = vld [vmem:[%s7408_s1 + $0x2a8] sm:$0xff]  ;;  %v6387_v47 = vld [vmem:[#allocation2 + $0x170] sm:$0xff] }
  0xb1   : > { %5052 = vmatprep.subr.mxu0 %v4091_v28  ;;  %4851 = vmatprep.mubr.f32.mxu1 %v7493_v4  ;;  %7497 = vst [vmem:[#allocation4_spill] sm:$0xff] %v6320_v44  ;;  %v1906_v4 = vrot.slane %v6315_v33, 1 }
  0xb2   : > { %5053 = vmatpush3.msra.mxu0 %v4091_v28  ;;  %4852 = vmatmul.mubr.f32.gmra.mxu1 %v7494_v21  ;;  %v6327_v28 = vrot.slane %v6309_v20, 1  ;;  %v4085_v21 = vld [vmem:[%s7408_s1 + $0x328] sm:$0xff] }
  0xb3   : > { %4931 = vmatprep.mubr.f32.mxu0 %v5970_v19  ;;  %4974 = vmatprep.subr.mxu1 %v4074_v6  ;;  %v1886_v19 = vrot.slane %v6215_v55, 1 }
  0xb4   : > { %4932 = vmatmul.mubr.f32.gmra.mxu0 %v1877_v13  ;;  %4975 = vmatpush3.msra.mxu1 %v4074_v6  ;;  %7498 = vst [vmem:[#allocation5_spill] sm:$0xff] %v6327_v28  ;;  %v1902_v6 = vsel %vm704_vm0, %v6301_v7, %v1901_v34  ;;  %v6333_v13 = vld [vmem:[#allocation2 + $0x138] sm:$0xff] }
  0xb5   : > { %5054 = vmatprep.subr.mxu0 %v4090_v57  ;;  %4854 = vmatprep.mubr.f32.mxu1 %v5791_v53  ;;  %v6242_v53 = vsel %vm704_vm0, %v1883_v38, %v6223_v49  ;;  %v4068_v38 = vld [vmem:[%s7408_s1 + $0x2a0] sm:$0xff]  ;;  %v6393_v34 = vld [vmem:[#allocation2 + $0x178] sm:$0x3] }
  0xb6   : > { %5055 = vmatpush3.msra.mxu0 %v4090_v57  ;;  %4855 = vmatmul.mubr.f32.gmra.mxu1 %v7495_v22  ;;  %v6341_v57 = vld [vmem:[#allocation2 + $0x148] sm:$0x3]  ;;  %v1907_v22 = vsel %vm704_vm0, %v6327_v28, %v1906_v4 }
  0xb7   : > { %4934 = vmatprep.mubr.f32.mxu0 %v5994_v15  ;;  %4976 = vmatprep.subr.mxu1 %v4073_v35  ;;  %v1887_v15 = vsel %vm704_vm0, %v6223_v49, %v1886_v19  ;;  %v6353_v19 = vrot.slane %v6335_v25, 1 }
  0xb8   : > { %4935 = vmatmul.mubr.f32.gmra.mxu0 %v1882_v31  ;;  %4977 = vmatpush3.msra.mxu1 %v4073_v35  ;;  %v6346_v35 = vsel %vm704_vm0, %v1903_v60, %v6327_v28  ;;  %v1908_v31 = vrot.slane %v6333_v13, 1  ;;  %v6577_v28 = vrot.slane %v6231_v48, 2 }
  0xb9   : > { %5056 = vmatprep.subr.mxu0 %v4089_v16  ;;  %4857 = vmatprep.mubr.f32.mxu1 %v6207_v54  ;;  %7499 = vst [vmem:[#allocation15_spill] sm:$0xff] %v6346_v35  ;;  %7500 = vst [vmem:[#allocation16_spill] sm:$0xff] %v6353_v19 }
  0xba   : > { %5057 = vmatpush3.msra.mxu0 %v4089_v16  ;;  %4858 = vmatmul.mubr.f32.gmra.mxu1 %v6209_v26  ;;  %v1911_v16 = vrot.slane %v6341_v57, 1 }
  0xbb   : > { %4937 = vmatprep.mubr.f32.mxu0 %v6242_v53  ;;  %4978 = vmatprep.subr.mxu1 %v4072_v8 }
  0xbc   : > { %4938 = vmatmul.mubr.f32.gmra.mxu0 %v1887_v15  ;;  %4979 = vmatpush3.msra.mxu1 %v4072_v8  ;;  %v6359_v8 = vld [vmem:[#allocation2 + $0x150] sm:$0xff]  ;;  %v4084_v15 = vld [vmem:[%s7408_s1 + $0x320] sm:$0xff]  ;;  %v1912_v1 = vsel %vm704_vm0, %v6353_v19, %v1911_v16 }
  0xbd   : > { %5058 = vmatprep.subr.mxu0 %v4088_v46  ;;  %4860 = vmatprep.mubr.f32.mxu1 %v6229_v30  ;;  %v1913_v10 = vrot.slane %v6359_v8, 1  ;;  %v6419_v16 = vld [vmem:[#allocation2 + $0x190] sm:$0x3] }
  0xbe   : > { %5059 = vmatpush3.msra.mxu0 %v4088_v46  ;;  %4861 = vmatmul.mubr.f32.gmra.mxu1 %v6231_v48  ;;  %v6372_v46 = vsel %vm704_vm0, %v1908_v31, %v6353_v19  ;;  %v6413_v31 = vld [vmem:[#allocation2 + $0x188] sm:$0xff]  ;;  %v2272_v19 = vrot.slane %v6215_v55, 2 }
  0xbf   : > { %4940 = vmatprep.mubr.f32.mxu0 %v6268_v39  ;;  %4980 = vmatprep.subr.mxu1 %v4071_v43  ;;  %7501 = vst [vmem:[#allocation17_spill] sm:$0xff] %v6372_v46 }
  0xc0   : > { %4941 = vmatmul.mubr.f32.gmra.mxu0 %v1892_v52  ;;  %4981 = vmatpush3.msra.mxu1 %v4071_v43  ;;  %v4067_v43 = vld [vmem:[%s7408_s1 + $0x298] sm:$0xff]  ;;  %v6379_v52 = vrot.slane %v6361_v62, 1 }
  0xc1   : > { %5060 = vmatprep.subr.mxu0 %v4087_v50  ;;  %4863 = vmatprep.mubr.f32.mxu1 %v6255_v56 }
  0xc2   : > { %5061 = vmatpush3.msra.mxu0 %v4087_v50  ;;  %4864 = vmatmul.mubr.f32.gmra.mxu1 %v6257_v9  ;;  %7502 = vst [vmem:[#allocation18_spill] sm:$0xff] %v6379_v52  ;;  %v1916_v50 = vrot.slane %v6367_v61, 1 }
  0xc3   : > { %4943 = vmatprep.mubr.f32.mxu0 %v6294_v2  ;;  %4982 = vmatprep.subr.mxu1 %v4070_v29 }
  0xc4   : > { %4944 = vmatmul.mubr.f32.gmra.mxu0 %v1897_v12  ;;  %4983 = vmatpush3.msra.mxu1 %v4070_v29  ;;  %v6385_v29 = vld [vmem:[#allocation2 + $0x168] sm:$0xff]  ;;  %v4083_v12 = vld [vmem:[%s7408_s1 + $0x318] sm:$0xff]  ;;  %v1917_v4 = vsel %vm704_vm0, %v6379_v52, %v1916_v50 }
  0xc5   : > { %5062 = vmatprep.subr.mxu0 %v4086_v58  ;;  %4866 = vmatprep.mubr.f32.mxu1 %v6281_v27  ;;  %v1918_v60 = vrot.slane %v6385_v29, 1 }
  0xc6   : > { %5063 = vmatpush3.msra.mxu0 %v4086_v58  ;;  %4867 = vmatmul.mubr.f32.gmra.mxu1 %v6283_v3  ;;  %v6398_v58 = vsel %vm704_vm0, %v1913_v10, %v6379_v52  ;;  %v2237_v52 = vrot.slane %v6111_v0, 2  ;;  %v4080_v0 = vld [vmem:[%s7408_s1 + $0x300] sm:$0xff] }
  0xc7   : > { %4946 = vmatprep.mubr.f32.mxu0 %v6320_v44  ;;  %4984 = vmatprep.subr.mxu1 %v4069_v51  ;;  %7503 = vst [vmem:[#allocation19_spill] sm:$0xff] %v6398_v58 }
  0xc8   : > { %4947 = vmatmul.mubr.f32.gmra.mxu0 %v1902_v6  ;;  %4985 = vmatpush3.msra.mxu1 %v4069_v51  ;;  %v4066_v51 = vld [vmem:[%s7408_s1 + $0x290] sm:$0xff]  ;;  %v6405_v6 = vrot.slane %v6387_v47, 1 }
  0xc9   : > { %5064 = vmatprep.subr.mxu0 %v4085_v21  ;;  %4869 = vmatprep.mubr.f32.mxu1 %v6307_v18 }
  0xca   : > { %5065 = vmatpush3.msra.mxu0 %v4085_v21  ;;  %4870 = vmatmul.mubr.f32.gmra.mxu1 %v6309_v20  ;;  %7504 = vst [vmem:[#allocation20_spill] sm:$0xff] %v6405_v6  ;;  %v1921_v21 = vrot.slane %v6393_v34, 1 }
  0xcb   : > { %4949 = vmatprep.mubr.f32.mxu0 %v6346_v35  ;;  %4986 = vmatprep.subr.mxu1 %v4068_v38  ;;  %v2274_v35 = vrot.slane %v6229_v30, 2 }
  0xcc   : > { %4950 = vmatmul.mubr.f32.gmra.mxu0 %v1907_v22  ;;  %4987 = vmatpush3.msra.mxu1 %v4068_v38  ;;  %v6411_v38 = vld [vmem:[#allocation2 + $0x180] sm:$0xff]  ;;  %v4082_v22 = vld [vmem:[%s7408_s1 + $0x310] sm:$0xff]  ;;  %v1922_v50 = vsel %vm704_vm0, %v6405_v6, %v1921_v21 }
  0xcd   : > { %5066 = vmatprep.subr.mxu0 %v4084_v15  ;;  %4872 = vmatprep.mubr.f32.mxu1 %v6333_v13  ;;  %v1923_v10 = vrot.slane %v6411_v38, 1 }
  0xce   : > { %5067 = vmatpush3.msra.mxu0 %v4084_v15  ;;  %4873 = vmatmul.mubr.f32.gmra.mxu1 %v6335_v25  ;;  %v6424_v15 = vsel %vm704_vm0, %v1918_v60, %v6405_v6  ;;  %v4081_v60 = vld [vmem:[%s7408_s1 + $0x308] sm:$0xff]  ;;  %v6551_v6 = vld [vmem:[#allocation2 + $0xb0] sm:$0xff] }
  0xcf   : > { %4952 = vmatprep.mubr.f32.mxu0 %v6372_v46  ;;  %4988 = vmatprep.subr.mxu1 %v4067_v43  ;;  %7505 = vst [vmem:[#allocation21_spill] sm:$0xff] %v6424_v15  ;;  %v7517_v46 = vld [vmem:[#allocation14_spill] sm:$0xff] }
  0xd0   : > { %4953 = vmatmul.mubr.f32.gmra.mxu0 %v1912_v1  ;;  %4989 = vmatpush3.msra.mxu1 %v4067_v43  ;;  %v4065_v43 = vld [vmem:[%s7408_s1 + $0x288] sm:$0xff]  ;;  %v6431_v1 = vrot.slane %v6413_v31, 1 }
  0xd1   : > { %5068 = vmatprep.subr.mxu0 %v4083_v12  ;;  %4875 = vmatprep.mubr.f32.mxu1 %v6359_v8 }
  0xd2   : > { %5069 = vmatpush3.msra.mxu0 %v4083_v12  ;;  %4876 = vmatmul.mubr.f32.gmra.mxu1 %v6361_v62  ;;  %7506 = vst [vmem:[#allocation22_spill] sm:$0xff] %v6431_v1  ;;  %v1926_v12 = vrot.slane %v6419_v16, 1  ;;  %v6446_v21 = vsel %vm704_vm0, %v1923_v10, %v6431_v1 }
  0xd3   : > { %4955 = vmatprep.mubr.f32.mxu0 %v6398_v58  ;;  %4990 = vmatprep.subr.mxu1 %v4066_v51  ;;  %7507 = vst [vmem:[#allocation23_spill] sm:$0xff] %v6446_v21 }
  0xd4   : > { %4956 = vmatmul.mubr.f32.gmra.mxu0 %v1917_v4  ;;  %4991 = vmatpush3.msra.mxu1 %v4066_v51  ;;  %v2234_v51 = vrot.slane %v6105_v42, 2  ;;  %v5325_v4 = vld [vmem:[#allocation2 + $0x20] sm:$0xff] }
  0xd5   : > { %5070 = vmatprep.subr.mxu0 %v4082_v22  ;;  %4878 = vmatprep.mubr.f32.mxu1 %v6385_v29  ;;  %v2235_v58 = vrot.slane %v5325_v4, 2  ;;  %v4064_v42 = vld [vmem:[%s7408_s1 + $0x280] sm:$0xff]  ;;  %v6462_v4 = vld [vmem:[#allocation2 + $0x30] sm:$0xff] }
  0xd6   : > { %5071 = vmatpush3.msra.mxu0 %v4082_v22  ;;  %4879 = vmatmul.mubr.f32.gmra.mxu1 %v6387_v47  ;;  %v1927_v22 = vsel %vm704_vm0, %v6431_v1, %v1926_v12  ;;  %v4111_v12 = vld [vmem:[%s7408_s1 + $0x3f8] sm:$0xff] }
  0xd7   : > { %4958 = vmatprep.mubr.f32.mxu0 %v6424_v15  ;;  %4992 = vmatprep.subr.mxu1 %v4065_v43  ;;  %v2238_v10 = vsel %vm1091_vm1, %v2235_v58, %v2237_v52  ;;  %v4127_v52 = vld [vmem:[%s7408_s1 + $0x478] sm:$0xff] }
  0xd8   : > { %4959 = vmatmul.mubr.f32.gmra.mxu0 %v1922_v50  ;;  %4993 = vmatpush3.msra.mxu1 %v4065_v43  ;;  %v2236_v43 = vsel %vm1091_vm1, %v2234_v51, %v2235_v58  ;;  %v2242_v50 = vrot.slane %v6126_v40, 2  ;;  %v7508_v40 = vld [vmem:[#allocation6_spill] sm:$0xff]  ;;  %v2247_v51 = vrot.slane %v6142_v5, 2  ;;  %v4126_v5 = vld [vmem:[%s7408_s1 + $0x470] sm:$0xff]  ;;  %v6531_v1 = vld [vmem:[#allocation2 + $0x98] sm:$0xff] }
  0xd9   : > { %5072 = vmatprep.subr.mxu0 %v4081_v60  ;;  %4881 = vmatprep.mubr.f32.mxu1 %v6411_v38 }
  0xda   : > { %5073 = vmatpush3.msra.mxu0 %v4081_v60  ;;  %4882 = vmatmul.mubr.f32.gmra.mxu1 %v6413_v31  ;;  %v6467_v60 = vld [vmem:[#allocation2 + $0x38] sm:$0xff]  ;;  %v2243_v58 = vsel %vm1091_vm1, %v7508_v40, %v2242_v50  ;;  %v6493_v40 = vld [vmem:[#allocation2 + $0x60] sm:$0xff] }
  0xdb   : > { %4961 = vmatprep.mubr.f32.mxu0 %v6446_v21  ;;  %4994 = vmatprep.subr.mxu1 %v4064_v42  ;;  %v6515_v21 = vld [vmem:[#allocation2 + $0x80] sm:$0xff] }
  0xdc   : > { %4962 = vmatmul.mubr.f32.gmra.mxu0 %v1927_v22  ;;  %4995 = vmatpush3.msra.mxu1 %v4064_v42  ;;  %v6477_v42 = vld [vmem:[#allocation2 + $0x48] sm:$0xff]  ;;  %v4110_v22 = vld [vmem:[%s7408_s1 + $0x3f0] sm:$0xff] }
  0xdd   : > { %5074 = vmatprep.subr.mxu0 %v4080_v0  ;;  %4996 = vmatprep.mubr.f32.mxu1 %v2236_v43  ;;  %v6483_v43 = vld [vmem:[#allocation2 + $0x50] sm:$0xff] }
  0xde   : > { %5075 = vmatpush3.msra.mxu0 %v4080_v0  ;;  %4997 = vmatmul.mubr.f32.vlgmr.msra.gmra.mxu1 %v2238_v10  ;;  %v7509_v0 = vld [vmem:[#allocation7_spill] sm:$0xff]  ;;  %v7510_v10 = vld [vmem:[#allocation8_spill] sm:$0xff] }
  0xdf   : > { %5076 = vmatprep.mubr.f32.mxu0 %v6462_v4  ;;  %5124 = vmatprep.subr.mxu1 %v4111_v12  ;;  %v2248_v50 = vsel %vm1091_vm1, %v7510_v10, %v2247_v51  ;;  %v7512_v51 = vld [vmem:[#allocation9_spill] sm:$0xff]  ;;  %v2257_v10 = vrot.slane %v6169_v11, 2 }
  0xe0   : > { %5077 = vmatmul.mubr.f32.vlgmr.msra.gmra.mxu0 %v6467_v60  ;;  %5125 = vmatpush3.msra.mxu1 %v4111_v12  ;;  %v2252_v12 = vrot.slane %v6155_v41, 2  ;;  %v4125_v41 = vld [vmem:[%s7408_s1 + $0x468] sm:$0xff]  ;;  %v4124_v11 = vld [vmem:[%s7408_s1 + $0x460] sm:$0xff] }
  0xe1   : > { %5204 = vmatprep.subr.mxu0 %v4127_v52  ;;  %4999 = vmatprep.mubr.f32.mxu1 %v7509_v0  ;;  %v6499_v0 = vld [vmem:[#allocation2 + $0x68] sm:$0xff] }
  0xe2   : > { %5205 = vmatpush3.msra.mxu0 %v4127_v52  ;;  %5000 = vmatmul.mubr.f32.gmra.mxu1 %v2243_v58  ;;  %v4109_v52 = vld [vmem:[%s7408_s1 + $0x3e8] sm:$0xff]  ;;  %v3388_v7 = vrot.slane %v6499_v0, 2 }
  0xe3   : > { %5079 = vmatprep.mubr.f32.mxu0 %v6477_v42  ;;  %5126 = vmatprep.subr.mxu1 %v4110_v22  ;;  %v7511_v58 = vld [vmem:[#allocation10_spill] sm:$0xff] }
  0xe4   : > { %5080 = vmatmul.mubr.f32.gmra.mxu0 %v6483_v43  ;;  %5127 = vmatpush3.msra.mxu1 %v4110_v22  ;;  %v2253_v22 = vsel %vm1091_vm1, %v7512_v51, %v2252_v12  ;;  %v7514_v12 = vld [vmem:[#allocation12_spill] sm:$0xff]  ;;  %v2262_v51 = vrot.slane %v6183_v32, 2 }
  0xe5   : > { %5206 = vmatprep.subr.mxu0 %v4126_v5  ;;  %5002 = vmatprep.mubr.f32.mxu1 %v7511_v58  ;;  %v6509_v58 = vld [vmem:[#allocation2 + $0x78] sm:$0xff] }
  0xe6   : > { %5207 = vmatpush3.msra.mxu0 %v4126_v5  ;;  %5003 = vmatmul.mubr.f32.gmra.mxu1 %v2248_v50  ;;  %v4108_v5 = vld [vmem:[%s7408_s1 + $0x3e0] sm:$0xff]  ;;  %v7513_v50 = vld [vmem:[#allocation11_spill] sm:$0xff]  ;;  %v4123_v32 = vld [vmem:[%s7408_s1 + $0x458] sm:$0xff] }
  0xe7   : > { %5082 = vmatprep.mubr.f32.mxu0 %v6493_v40  ;;  %5128 = vmatprep.subr.mxu1 %v4109_v52 }
  0xe8   : > { %5083 = vmatmul.mubr.f32.gmra.mxu0 %v6499_v0  ;;  %5129 = vmatpush3.msra.mxu1 %v4109_v52  ;;  %v2258_v52 = vsel %vm1091_vm1, %v7514_v12, %v2257_v10  ;;  %v2263_v10 = vsel %vm1091_vm1, %v5946_v36, %v2262_v51  ;;  %v6557_v51 = vrot.slane %v6209_v26, 2 }
  0xe9   : > { %5208 = vmatprep.subr.mxu0 %v4125_v41  ;;  %5005 = vmatprep.mubr.f32.mxu1 %v7513_v50  ;;  %v6525_v50 = vld [vmem:[#allocation2 + $0x90] sm:$0xff] }
  0xea   : > { %5209 = vmatpush3.msra.mxu0 %v4125_v41  ;;  %5006 = vmatmul.mubr.f32.gmra.mxu1 %v2253_v22  ;;  %v4107_v41 = vld [vmem:[%s7408_s1 + $0x3d8] sm:$0xff]  ;;  %v7515_v22 = vld [vmem:[#allocation13_spill] sm:$0xff] }
  0xeb   : > { %5085 = vmatprep.mubr.f32.mxu0 %v6509_v58  ;;  %5130 = vmatprep.subr.mxu1 %v4108_v5 }
  0xec   : > { %5086 = vmatmul.mubr.f32.gmra.mxu0 %v6515_v21  ;;  %5131 = vmatpush3.msra.mxu1 %v4108_v5  ;;  %v2267_v5 = vrot.slane %v6197_v14, 2  ;;  %v2269_v14 = vrot.slane %v6207_v54, 2 }
  0xed   : > { %5210 = vmatprep.subr.mxu0 %v4124_v11  ;;  %5008 = vmatprep.mubr.f32.mxu1 %v7515_v22  ;;  %v6543_v22 = vld [vmem:[#allocation2 + $0xa8] sm:$0xff] }
  0xee   : > { %5211 = vmatpush3.msra.mxu0 %v4124_v11  ;;  %5009 = vmatmul.mubr.f32.gmra.mxu1 %v2258_v52  ;;  %v6540_v12 = vpop.f32.mrf.mxu1  ;;  %v4106_v11 = vld [vmem:[%s7408_s1 + $0x3d0] sm:$0xff]  ;;  %v6548_v52 = vpop.f32.mrf.mxu0  ;;  %v6584_v55 = vsel %vm1091_vm1, %v2269_v14, %v6557_v51  ;;  %v4104_v14 = vld [vmem:[%s7408_s1 + $0x3c0] sm:$0xff] }
  0xef   : > { %5088 = vmatprep.mubr.f32.mxu0 %v6525_v50  ;;  %5132 = vmatprep.subr.mxu1 %v4107_v41 }
  0xf0   : > { %5089 = vmatmul.mubr.f32.gmra.mxu0 %v6531_v1  ;;  %5133 = vmatpush3.msra.mxu1 %v4107_v41  ;;  %v6553_v36 = vpop.f32.mrf.mxu1  ;;  %v4122_v41 = vld [vmem:[%s7408_s1 + $0x450] sm:$0xff]  ;;  %v6562_v15 = vpop.f32.mrf.mxu0 }
  0xf1   : > { %5212 = vmatprep.subr.mxu0 %v4123_v32  ;;  %5011 = vmatprep.mubr.f32.mxu1 %v5959_v37  ;;  %v2268_v37 = vsel %vm1091_vm1, %v5974_v17, %v2267_v5  ;;  %v4121_v17 = vld [vmem:[%s7408_s1 + $0x448] sm:$0xff] }
  0xf2   : > { %5213 = vmatpush3.msra.mxu0 %v4123_v32  ;;  %5012 = vmatmul.mubr.f32.gmra.mxu1 %v2263_v10  ;;  %v4105_v32 = vld [vmem:[%s7408_s1 + $0x3c8] sm:$0xff] }
  0xf3   : > { %5091 = vmatprep.mubr.f32.mxu0 %v6543_v22  ;;  %5134 = vmatprep.subr.mxu1 %v4106_v11  ;;  %v6572_v10 = vpop.f32.mrf.mxu1 }
  0xf4   : > { %5092 = vmatmul.mubr.f32.gmra.mxu0 %v6551_v6  ;;  %5135 = vmatpush3.msra.mxu1 %v4106_v11  ;;  %7516 = vst [vmem:[#allocation6_spill] sm:$0xff] %v6572_v10  ;;  %v2282_v10 = vrot.slane %v6263_v24, 2 }
  0xf5   : > { %5214 = vmatprep.subr.mxu0 %v4122_v41  ;;  %5014 = vmatprep.mubr.f32.mxu1 %v7517_v46  ;;  %v6588_v11 = vpop.f32.mrf.mxu1  ;;  %v2273_v46 = vsel %vm1091_vm1, %v6557_v51, %v2272_v19 }
  0xf6   : > { %5215 = vmatpush3.msra.mxu0 %v4122_v41  ;;  %5015 = vmatmul.mubr.f32.gmra.mxu1 %v2268_v37  ;;  %v6586_v5 = vpop.f32.mrf.mxu0  ;;  %7518 = vst [vmem:[#allocation7_spill] sm:$0xff] %v6588_v11  ;;  %v2277_v41 = vrot.slane %v6237_v45, 2  ;;  %v6603_v11 = vrot.slane %v6257_v9, 2  ;;  %v6610_v45 = vsel %vm1091_vm1, %v2274_v35, %v6577_v28 }
  0xf7   : > { %5094 = vmatprep.mubr.f32.mxu0 %v6207_v54  ;;  %5136 = vmatprep.subr.mxu1 %v4105_v32  ;;  %v2279_v54 = vrot.slane %v6255_v56, 2 }
  0xf8   : > { %5095 = vmatmul.mubr.f32.gmra.mxu0 %v6209_v26  ;;  %5137 = vmatpush3.msra.mxu1 %v4105_v32  ;;  %v6598_v37 = vpop.f32.mrf.mxu0  ;;  %v4120_v26 = vld [vmem:[%s7408_s1 + $0x440] sm:$0xff]  ;;  %v2278_v32 = vsel %vm1091_vm1, %v6577_v28, %v2277_v41  ;;  %v6629_v41 = vrot.slane %v6283_v3, 2 }
  0xf9   : > { %5216 = vmatprep.subr.mxu0 %v4121_v17  ;;  %5017 = vmatprep.mubr.f32.mxu1 %v6584_v55  ;;  %v6636_v24 = vsel %vm1091_vm1, %v2279_v54, %v6603_v11  ;;  %v6653_v54 = vrot.slane %v6309_v20, 2 }
  0xfa   : > { %5217 = vmatpush3.msra.mxu0 %v4121_v17  ;;  %5018 = vmatmul.mubr.f32.gmra.mxu1 %v2273_v46  ;;  %v6612_v19 = vpop.f32.mrf.mxu1  ;;  %v4103_v17 = vld [vmem:[%s7408_s1 + $0x3b8] sm:$0xff]  ;;  %7521 = vst [vmem:[#allocation9_spill] sm:$0xff] %v6629_v41 }
  0xfb   : > { %7519 = vst [vmem:[#allocation8_spill] sm:$0xff] %v6612_v19  ;;  %5097 = vmatprep.mubr.f32.mxu0 %v6229_v30  ;;  %5138 = vmatprep.subr.mxu1 %v4104_v14  ;;  %v2284_v30 = vrot.slane %v6281_v27, 2  ;;  %v2287_v19 = vrot.slane %v6289_v59, 2  ;;  %7523 = vst [vmem:[#allocation12_spill] sm:$0xff] %v6653_v54 }
  0xfc   : > { %5098 = vmatmul.mubr.f32.gmra.mxu0 %v6231_v48  ;;  %5139 = vmatpush3.msra.mxu1 %v4104_v14  ;;  %v6622_v46 = vpop.f32.mrf.mxu0  ;;  %v6624_v35 = vpop.f32.mrf.mxu1  ;;  %v4119_v48 = vld [vmem:[%s7408_s1 + $0x438] sm:$0xff] }
  0xfd   : > { %7520 = vst [vmem:[#allocation10_spill] sm:$0xff] %v6624_v35  ;;  %5218 = vmatprep.subr.mxu0 %v4120_v26  ;;  %5020 = vmatprep.mubr.f32.mxu1 %v6610_v45  ;;  %v2283_v35 = vsel %vm1091_vm1, %v6603_v11, %v2282_v10  ;;  %v6660_v59 = vsel %vm1091_vm1, %v2284_v30, %v6629_v41  ;;  %v4101_v30 = vld [vmem:[%s7408_s1 + $0x3a8] sm:$0xff] }
  0xfe   : > { %5219 = vmatpush3.msra.mxu0 %v4120_v26  ;;  %5021 = vmatmul.mubr.f32.gmra.mxu1 %v2278_v32  ;;  %v6638_v14 = vpop.f32.mrf.mxu0  ;;  %v4102_v26 = vld [vmem:[%s7408_s1 + $0x3b0] sm:$0xff]  ;;  %7524 = vst [vmem:[#allocation13_spill] sm:$0xff] %v6660_v59 }
  0xff   : > { %5100 = vmatprep.mubr.f32.mxu0 %v6255_v56  ;;  %5140 = vmatprep.subr.mxu1 %v4103_v17  ;;  %v2289_v56 = vrot.slane %v6307_v18, 2 }
 0x100   : > { %5101 = vmatmul.mubr.f32.gmra.mxu0 %v6257_v9  ;;  %5141 = vmatpush3.msra.mxu1 %v4103_v17  ;;  %v6648_v32 = vpop.f32.mrf.mxu1  ;;  %v4118_v9 = vld [vmem:[%s7408_s1 + $0x430] sm:$0xff] }
 0x101   : > { %7522 = vst [vmem:[#allocation11_spill] sm:$0xff] %v6648_v32  ;;  %5220 = vmatprep.subr.mxu0 %v4119_v48  ;;  %5023 = vmatprep.mubr.f32.mxu1 %v6636_v24  ;;  %v2288_v32 = vsel %vm1091_vm1, %v6629_v41, %v2287_v19  ;;  %v2297_v41 = vrot.slane %v6341_v57, 2 }
 0x102   : > { %5221 = vmatpush3.msra.mxu0 %v4119_v48  ;;  %5024 = vmatmul.mubr.f32.gmra.mxu1 %v2283_v35  ;;  %v6662_v10 = vpop.f32.mrf.mxu0  ;;  %v6664_v17 = vpop.f32.mrf.mxu1  ;;  %v2292_v35 = vrot.slane %v6315_v33, 2  ;;  %v6686_v33 = vsel %vm1091_vm1, %v2289_v56, %v6653_v54 }
 0x103   : > { %7525 = vst [vmem:[#allocation14_spill] sm:$0xff] %v6664_v17  ;;  %5103 = vmatprep.mubr.f32.mxu0 %v6281_v27  ;;  %5142 = vmatprep.subr.mxu1 %v4102_v26  ;;  %v2294_v27 = vrot.slane %v6333_v13, 2  ;;  %v6679_v17 = vrot.slane %v6335_v25, 2  ;;  %7527 = vst [vmem:[#allocation25_spill] sm:$0xff] %v6686_v33 }
 0x104   : > { %5104 = vmatmul.mubr.f32.gmra.mxu0 %v6283_v3  ;;  %5143 = vmatpush3.msra.mxu1 %v4102_v26  ;;  %v6674_v48 = vpop.f32.mrf.mxu0  ;;  %v4117_v3 = vld [vmem:[%s7408_s1 + $0x428] sm:$0xff]  ;;  %v2293_v26 = vsel %vm1091_vm1, %v6653_v54, %v2292_v35  ;;  %v6705_v35 = vrot.slane %v6361_v62, 2 }
 0x105   : > { %5222 = vmatprep.subr.mxu0 %v4118_v9  ;;  %5026 = vmatprep.mubr.f32.mxu1 %v6660_v59  ;;  %7526 = vst [vmem:[#allocation24_spill] sm:$0xff] %v6679_v17  ;;  %v6712_v57 = vsel %vm1091_vm1, %v2294_v27, %v6679_v17  ;;  %v6729_v27 = vrot.slane %v6387_v47, 2  ;;  %v3387_v59 = vrot.slane %v6493_v40, 2 }
 0x106   : > { %5223 = vmatpush3.msra.mxu0 %v4118_v9  ;;  %5027 = vmatmul.mubr.f32.gmra.mxu1 %v2288_v32  ;;  %v6688_v19 = vpop.f32.mrf.mxu1  ;;  %v4100_v32 = vld [vmem:[%s7408_s1 + $0x3a0] sm:$0xff]  ;;  %7530 = vst [vmem:[#allocation28_spill] sm:$0xff] %v6705_v35  ;;  %7531 = vst [vmem:[#allocation29_spill] sm:$0xff] %v6712_v57 }
 0x107   : > { %7528 = vst [vmem:[#allocation26_spill] sm:$0xff] %v6688_v19  ;;  %5106 = vmatprep.mubr.f32.mxu0 %v6307_v18  ;;  %5144 = vmatprep.subr.mxu1 %v4101_v30  ;;  %v2299_v18 = vrot.slane %v6359_v8, 2  ;;  %v2302_v19 = vrot.slane %v6367_v61, 2  ;;  %7533 = vst [vmem:[#allocation31_spill] sm:$0xff] %v6729_v27 }
 0x108   : > { %5107 = vmatmul.mubr.f32.gmra.mxu0 %v6309_v20  ;;  %5145 = vmatpush3.msra.mxu1 %v4101_v30  ;;  %v6698_v9 = vpop.f32.mrf.mxu0  ;;  %v6700_v56 = vpop.f32.mrf.mxu1  ;;  %v4116_v20 = vld [vmem:[%s7408_s1 + $0x420] sm:$0xff] }
 0x109   : > { %7529 = vst [vmem:[#allocation27_spill] sm:$0xff] %v6700_v56  ;;  %5224 = vmatprep.subr.mxu0 %v4117_v3  ;;  %5029 = vmatprep.mubr.f32.mxu1 %v6686_v33  ;;  %v2298_v56 = vsel %vm1091_vm1, %v6679_v17, %v2297_v41  ;;  %v6736_v61 = vsel %vm1091_vm1, %v2299_v18, %v6705_v35  ;;  %v4098_v18 = vld [vmem:[%s7408_s1 + $0x390] sm:$0xff]  ;;  %v3383_v17 = vrot.slane %v6483_v43, 2 }
 0x10a   : > { %5225 = vmatpush3.msra.mxu0 %v4117_v3  ;;  %5030 = vmatmul.mubr.f32.gmra.mxu1 %v2293_v26  ;;  %v6714_v30 = vpop.f32.mrf.mxu0  ;;  %v4099_v3 = vld [vmem:[%s7408_s1 + $0x398] sm:$0xff]  ;;  %7534 = vst [vmem:[#allocation32_spill] sm:$0xff] %v6736_v61 }
 0x10b   : > { %5109 = vmatprep.mubr.f32.mxu0 %v6333_v13  ;;  %5146 = vmatprep.subr.mxu1 %v4100_v32  ;;  %v2304_v13 = vrot.slane %v6385_v29, 2 }
 0x10c   : > { %5110 = vmatmul.mubr.f32.gmra.mxu0 %v6335_v25  ;;  %5147 = vmatpush3.msra.mxu1 %v4100_v32  ;;  %v6724_v26 = vpop.f32.mrf.mxu1  ;;  %v4115_v25 = vld [vmem:[%s7408_s1 + $0x418] sm:$0xff] }
 0x10d   : > { %7532 = vst [vmem:[#allocation30_spill] sm:$0xff] %v6724_v26  ;;  %5226 = vmatprep.subr.mxu0 %v4116_v20  ;;  %5032 = vmatprep.mubr.f32.mxu1 %v6712_v57  ;;  %v2303_v26 = vsel %vm1091_vm1, %v6705_v35, %v2302_v19  ;;  %v2626_v35 = vld [vmem:[#allocation2 + $0x58] sm:$0x3]  ;;  %v6814_v57 = vld [vmem:[#allocation2] sm:$0xff] }
 0x10e   : > { %5227 = vmatpush3.msra.mxu0 %v4116_v20  ;;  %5033 = vmatmul.mubr.f32.gmra.mxu1 %v2298_v56  ;;  %v6738_v41 = vpop.f32.mrf.mxu0  ;;  %v6740_v32 = vpop.f32.mrf.mxu1  ;;  %v2307_v56 = vrot.slane %v6393_v34, 2  ;;  %v6762_v34 = vsel %vm1091_vm1, %v2304_v13, %v6729_v27  ;;  %7543 = vst [vmem:[#allocation41_spill] sm:$0xff] %v6814_v57  ;;  %v3385_v54 = vrot.slane %v2626_v35, 2 }
 0x10f   : > { %7535 = vst [vmem:[#allocation33_spill] sm:$0xff] %v6740_v32  ;;  %5112 = vmatprep.mubr.f32.mxu0 %v6359_v8  ;;  %5148 = vmatprep.subr.mxu1 %v4099_v3  ;;  %v2309_v8 = vrot.slane %v6411_v38, 2  ;;  %v6755_v32 = vrot.slane %v6413_v31, 2  ;;  %7537 = vst [vmem:[#allocation35_spill] sm:$0xff] %v6762_v34 }
 0x110   : > { %5113 = vmatmul.mubr.f32.gmra.mxu0 %v6361_v62  ;;  %5149 = vmatpush3.msra.mxu1 %v4099_v3  ;;  %v6750_v20 = vpop.f32.mrf.mxu0  ;;  %v4114_v62 = vld [vmem:[%s7408_s1 + $0x410] sm:$0xff]  ;;  %v2308_v3 = vsel %vm1091_vm1, %v6729_v27, %v2307_v56  ;;  %v2996_v27 = vrot.slane %v6477_v42, 1 }
 0x111   : > { %5228 = vmatprep.subr.mxu0 %v4115_v25  ;;  %5035 = vmatprep.mubr.f32.mxu1 %v6736_v61  ;;  %7536 = vst [vmem:[#allocation34_spill] sm:$0xff] %v6755_v32  ;;  %v2312_v61 = vrot.slane %v6419_v16, 2  ;;  %v6787_v56 = vsel %vm1091_vm1, %v2309_v8, %v6755_v32 }
 0x112   : > { %5229 = vmatpush3.msra.mxu0 %v4115_v25  ;;  %5036 = vmatmul.mubr.f32.gmra.mxu1 %v2303_v26  ;;  %v6764_v19 = vpop.f32.mrf.mxu1  ;;  %v4097_v26 = vld [vmem:[%s7408_s1 + $0x388] sm:$0xff]  ;;  %7540 = vst [vmem:[#allocation38_spill] sm:$0xff] %v6787_v56 }
 0x113   : > { %7538 = vst [vmem:[#allocation36_spill] sm:$0xff] %v6764_v19  ;;  %5115 = vmatprep.mubr.f32.mxu0 %v6385_v29  ;;  %5150 = vmatprep.subr.mxu1 %v4098_v18  ;;  %v2623_v19 = vld [vmem:[#allocation2 + $0x40] sm:$0x3]  ;;  %v2991_v29 = vrot.slane %v6462_v4, 1 }
 0x114   : > { %5116 = vmatmul.mubr.f32.gmra.mxu0 %v6387_v47  ;;  %5151 = vmatpush3.msra.mxu1 %v4098_v18  ;;  %v6774_v25 = vpop.f32.mrf.mxu0  ;;  %v6776_v13 = vpop.f32.mrf.mxu1  ;;  %v4113_v47 = vld [vmem:[%s7408_s1 + $0x408] sm:$0xff]  ;;  %v2992_v18 = vrot.slane %v6467_v60, 1 }
 0x115   : > { %7539 = vst [vmem:[#allocation37_spill] sm:$0xff] %v6776_v13  ;;  %5230 = vmatprep.subr.mxu0 %v4114_v62  ;;  %5038 = vmatprep.mubr.f32.mxu1 %v6762_v34  ;;  %v3377_v13 = vrot.slane %v6462_v4, 2  ;;  %v2997_v34 = vrot.slane %v6483_v43, 1  ;;  %v4096_v4 = vld [vmem:[%s7408_s1 + $0x380] sm:$0xff]  ;;  %v2999_v43 = vrot.slane %v2626_v35, 1  ;;  %v3006_v35 = vrot.slane %v6509_v58, 1 }
 0x116   : > { %5231 = vmatpush3.msra.mxu0 %v4114_v62  ;;  %5039 = vmatmul.mubr.f32.gmra.mxu1 %v2308_v3  ;;  %v6783_v16 = vpop.f32.mrf.mxu0  ;;  %v2313_v62 = vsel %vm1091_vm1, %v6755_v32, %v2312_v61  ;;  %v2994_v3 = vrot.slane %v2623_v19, 1  ;;  %v3380_v61 = vrot.slane %v2623_v19, 2  ;;  %v3382_v32 = vrot.slane %v6477_v42, 2  ;;  %v2629_v19 = vld [vmem:[#allocation2 + $0x70] sm:$0x3] }
 0x117   : > { %5118 = vmatprep.mubr.f32.mxu0 %v6411_v38  ;;  %5152 = vmatprep.subr.mxu1 %v4097_v26  ;;  %v3378_v38 = vrot.slane %v6467_v60, 2  ;;  %v2993_v60 = vsel %vm704_vm0, %v2991_v29, %v2992_v18 }
 0x118   : > { %5119 = vmatmul.mubr.f32.gmra.mxu0 %v6413_v31  ;;  %5153 = vmatpush3.msra.mxu1 %v4097_v26  ;;  %v6797_v8 = vpop.f32.mrf.mxu1  ;;  %v2995_v42 = vsel %vm704_vm0, %v2992_v18, %v2994_v3  ;;  %v2998_v18 = vsel %vm704_vm0, %v2996_v27, %v2997_v34 }
 0x119   : > { %7541 = vst [vmem:[#allocation39_spill] sm:$0xff] %v6797_v8  ;;  %5232 = vmatprep.subr.mxu0 %v4113_v47  ;;  %5041 = vmatprep.mubr.f32.mxu1 %v6787_v56  ;;  %v4112_v8 = vld [vmem:[%s7408_s1 + $0x400] sm:$0xff]  ;;  %v3379_v56 = vsel %vm1091_vm1, %v3377_v13, %v3378_v38  ;;  %v3381_v33 = vsel %vm1091_vm1, %v3378_v38, %v3380_v61  ;;  %v3004_v13 = vrot.slane %v2629_v19, 1  ;;  %v3390_v61 = vrot.slane %v2629_v19, 2 }
 0x11a   : > { %5233 = vmatpush3.msra.mxu0 %v4113_v47  ;;  %5042 = vmatmul.mubr.f32.gmra.mxu1 %v2313_v62  ;;  %v6806_v31 = vpop.f32.mrf.mxu0  ;;  %v6808_v26 = vpop.f32.mrf.mxu1  ;;  %v3001_v47 = vrot.slane %v6493_v40, 1  ;;  %v3002_v62 = vrot.slane %v6499_v0, 1  ;;  %v3007_v40 = vrot.slane %v6515_v21, 1  ;;  %v3389_v19 = vsel %vm1091_vm1, %v3387_v59, %v3388_v7 }
 0x11b   : > { %7542 = vst [vmem:[#allocation40_spill] sm:$0xff] %v6808_v26  ;;  %5121 = vmatprep.mubr.f32.mxu0 %v6814_v57  ;;  %5154 = vmatprep.subr.mxu1 %v4096_v4  ;;  %v6823_v26 = vld [vmem:[%s7409_s2] ss:$0 sm:$0xff] }
 0x11c   : > { %5122 = vmatmul.mubr.f32.gmra.mxu0 %v6814_v57  ;;  %5155 = vmatpush3.msra.mxu1 %v4096_v4  ;;  %v6826_v29 = vpop.f32.mrf.mxu0  ;;  %v625_v3 = vadd.f32 %v6548_v52, %v6823_v26  ;;  %v3384_v57 = vsel %vm1091_vm1, %v3382_v32, %v3383_v17  ;;  %v624_v27 = vadd.f32 %v6823_v26, %v6562_v15  ;;  %v2632_v32 = vld [vmem:[#allocation2 + $0x88] sm:$0x3] }
 0x11d   : > { %5234 = vmatprep.subr.mxu0 %v4112_v8  ;;  %5156 = vmatprep.mubr.f32.mxu1 %v2993_v60  ;;  %v3000_v52 = vsel %vm704_vm0, %v2997_v34, %v2999_v43  ;;  %v627_v60 = vadd.f32 %v6586_v5, %v6823_v26  ;;  %v3386_v34 = vsel %vm1091_vm1, %v3383_v17, %v3385_v54  ;;  %v3393_v43 = vrot.slane %v6515_v21, 2  ;;  %v2635_v54 = vld [vmem:[#allocation2 + $0xa0] sm:$0x3] }
 0x11e   : > { %5235 = vmatpush3.msra.mxu0 %v4112_v8  ;;  %v4678_v4 = vpop.f32.mrf.mxu1  ;;  %5157 = vmatmul.mubr.f32.vlgmr.msra.gmra.mxu1 %v2995_v42  ;;  %v3003_v8 = vsel %vm704_vm0, %v3001_v47, %v3002_v62  ;;  %v3392_v42 = vrot.slane %v6509_v58, 2  ;;  %v3005_v47 = vsel %vm704_vm0, %v3002_v62, %v3004_v13  ;;  %v626_v5 = vadd.f32 %v6823_v26, %v6598_v37 }
 0x11f   : > { %v1060_v44 = vadd.f32 %v4678_v4, %v625_v3  ;;  %5236 = vmatprep.mubr.f32.mxu0 %v3379_v56  ;;  %5159 = vmatprep.mubr.f32.mxu1 %v2998_v18  ;;  %v3011_v58 = vrot.slane %v6525_v50, 1  ;;  %v3012_v21 = vrot.slane %v6531_v1, 1  ;;  %v3391_v62 = vsel %vm1091_vm1, %v3388_v7, %v3390_v61 }
 0x120   : > { %v4758_v38 = vpop.f32.mrf.mxu0  ;;  %5237 = vmatmul.mubr.f32.vlgmr.msra.gmra.mxu0 %v3381_v33  ;;  %v900_v0 = vpop.f32.mrf.mxu1  ;;  %v3008_v59 = vsel %vm704_vm0, %v3006_v35, %v3007_v40  ;;  %v629_v37 = vadd.f32 %v6622_v46, %v6823_v26  ;;  %v3014_v7 = vrot.slane %v2635_v54, 1  ;;  %v628_v35 = vadd.f32 %v6823_v26, %v6638_v14 }
 0x121   : > { %v6844_v15 = vadd.f32 %v4758_v38, %v1060_v44  ;;  %v1059_v56 = vadd.f32 %v900_v0, %v624_v27  ;;  %5239 = vmatprep.mubr.f32.mxu0 %v3384_v57  ;;  %v3009_v57 = vrot.slane %v2632_v32, 1  ;;  %v3397_v38 = vrot.slane %v6525_v50, 2 }
 0x122   : > { %v1287_v18 = vpop.f32.mrf.mxu0  ;;  %v4681_v33 = vpop.f32.mrf.mxu1  ;;  %5160 = vmatmul.mubr.f32.gmra.mxu1 %v3000_v52  ;;  %v3395_v52 = vrot.slane %v2632_v32, 2  ;;  %v3398_v0 = vrot.slane %v6531_v1, 2  ;;  %v3016_v32 = vrot.slane %v6543_v22, 1  ;;  %v3017_v50 = vrot.slane %v6551_v6, 1 }
 0x123   : > { %v6853_v44 = vadd.f32 %v1287_v18, %v1059_v56  ;;  %v1062_v3 = vadd.f32 %v4681_v33, %v627_v60  ;;  %5162 = vmatprep.mubr.f32.mxu1 %v3003_v8  ;;  %v3394_v56 = vsel %vm1091_vm1, %v3392_v42, %v3393_v43  ;;  %v3013_v33 = vsel %vm704_vm0, %v3011_v58, %v3012_v21 }
 0x124   : > { %v4761_v17 = vpop.f32.mrf.mxu0  ;;  %5240 = vmatmul.mubr.f32.gmra.mxu0 %v3386_v34  ;;  %v910_v4 = vpop.f32.mrf.mxu1  ;;  %v3010_v34 = vsel %vm704_vm0, %v3007_v40, %v3009_v57  ;;  %v3400_v42 = vrot.slane %v2635_v54, 2  ;;  %v631_v14 = vadd.f32 %v6662_v10, %v6823_v26  ;;  %v3396_v40 = vsel %vm1091_vm1, %v3393_v43, %v3395_v52  ;;  %v2641_v43 = vld [vmem:[#allocation2 + $0xd0] sm:$0x3] }
 0x125   : > { %v6861_v13 = vadd.f32 %v4761_v17, %v1062_v3  ;;  %v1061_v27 = vadd.f32 %v910_v4, %v626_v5  ;;  %5242 = vmatprep.mubr.f32.mxu0 %v3389_v19  ;;  %v3402_v3 = vrot.slane %v6543_v22, 2  ;;  %v3403_v57 = vrot.slane %v6551_v6, 2 }
 0x126   : > { %v1297_v8 = vpop.f32.mrf.mxu0  ;;  %v4684_v60 = vpop.f32.mrf.mxu1  ;;  %5163 = vmatmul.mubr.f32.gmra.mxu1 %v3005_v47  ;;  %v2638_v47 = vld [vmem:[#allocation2 + $0xb8] sm:$0x3]  ;;  %v3015_v58 = vsel %vm704_vm0, %v3012_v21, %v3014_v7  ;;  %v3399_v54 = vsel %vm1091_vm1, %v3397_v38, %v3398_v0  ;;  %v630_v10 = vadd.f32 %v6823_v26, %v6674_v48  ;;  %v3401_v6 = vsel %vm1091_vm1, %v3398_v0, %v3400_v42 }
 0x127   : > { %v6868_v61 = vadd.f32 %v1297_v8, %v1061_v27  ;;  %v1064_v46 = vadd.f32 %v4684_v60, %v629_v37  ;;  %5165 = vmatprep.mubr.f32.mxu1 %v3008_v59  ;;  %v3019_v37 = vrot.slane %v2638_v47, 1  ;;  %v3018_v52 = vsel %vm704_vm0, %v3016_v32, %v3017_v50 }
 0x128   : > { %v4764_v1 = vpop.f32.mrf.mxu0  ;;  %5243 = vmatmul.mubr.f32.gmra.mxu0 %v3391_v62  ;;  %v920_v18 = vpop.f32.mrf.mxu1  ;;  %v633_v21 = vadd.f32 %v6698_v9, %v6823_v26  ;;  %v3405_v48 = vrot.slane %v2638_v47, 2  ;;  %v3404_v7 = vsel %vm1091_vm1, %v3402_v3, %v3403_v57  ;;  %v635_v42 = vadd.f32 %v6738_v41, %v6823_v26 }
 0x129   : > { %v6876_v19 = vadd.f32 %v4764_v1, %v1064_v46  ;;  %v1063_v5 = vadd.f32 %v920_v18, %v628_v35  ;;  %5245 = vmatprep.mubr.f32.mxu0 %v3394_v56  ;;  %v3024_v35 = vrot.slane %v2641_v43, 1  ;;  %v632_v46 = vadd.f32 %v6823_v26, %v6714_v30 }
 0x12a   : > { %v1307_v17 = vpop.f32.mrf.mxu0  ;;  %v4687_v4 = vpop.f32.mrf.mxu1  ;;  %5166 = vmatmul.mubr.f32.gmra.mxu1 %v3010_v34  ;;  %v3020_v9 = vsel %vm704_vm0, %v3017_v50, %v3019_v37  ;;  %v3410_v18 = vrot.slane %v2641_v43, 2  ;;  %v3406_v30 = vsel %vm1091_vm1, %v3403_v57, %v3405_v48  ;;  %v634_v3 = vadd.f32 %v6823_v26, %v6750_v20 }
 0x12b   : > { %v6885_v62 = vadd.f32 %v1307_v17, %v1063_v5  ;;  %v1066_v59 = vadd.f32 %v4687_v4, %v631_v14  ;;  %5168 = vmatprep.mubr.f32.mxu1 %v3013_v33  ;;  %v2644_v33 = vld [vmem:[#allocation2 + $0xe8] sm:$0x3]  ;;  %v3025_v50 = vsel %vm704_vm0, %v6223_v49, %v3024_v35  ;;  %v639_v48 = vadd.f32 %v6806_v31, %v6823_v26 }
 0x12c   : > { %v4767_v27 = vpop.f32.mrf.mxu0  ;;  %5246 = vmatmul.mubr.f32.gmra.mxu0 %v3396_v40  ;;  %v930_v22 = vpop.f32.mrf.mxu1  ;;  %v3029_v41 = vrot.slane %v2644_v33, 1  ;;  %v3411_v57 = vsel %vm1091_vm1, %v6557_v51, %v3410_v18  ;;  %v3415_v20 = vrot.slane %v2644_v33, 2  ;;  %v638_v35 = vadd.f32 %v6823_v26, %v6826_v29 }
 0x12d   : > { %v6891_v38 = vadd.f32 %v4767_v27, %v1066_v59  ;;  %v1065_v8 = vadd.f32 %v930_v22, %v630_v10  ;;  %5248 = vmatprep.mubr.f32.mxu0 %v3399_v54  ;;  %v637_v59 = vadd.f32 %v6774_v25, %v6823_v26  ;;  %v636_v22 = vadd.f32 %v6823_v26, %v6783_v16 }
 0x12e   : > { %v1317_v60 = vpop.f32.mrf.mxu0  ;;  %v4690_v56 = vpop.f32.mrf.mxu1  ;;  %5169 = vmatmul.mubr.f32.gmra.mxu1 %v3015_v58  ;;  %v2647_v58 = vld [vmem:[#allocation2 + $0x100] sm:$0x3]  ;;  %v3030_v51 = vsel %vm704_vm0, %v6249_v63, %v3029_v41  ;;  %v3416_v16 = vsel %vm1091_vm1, %v6577_v28, %v3415_v20  ;;  %v7546_v41 = vld [vmem:[#allocation6_spill] sm:$0xff] }
 0x12f   : > { %v6896_v0 = vadd.f32 %v1317_v60, %v1065_v8  ;;  %v1068_v34 = vadd.f32 %v4690_v56, %v633_v21  ;;  %5171 = vmatprep.mubr.f32.mxu1 %v3018_v52  ;;  %v2650_v8 = vld [vmem:[#allocation2 + $0x118] sm:$0x3] }
 0x130   : > { %v4770_v32 = vpop.f32.mrf.mxu0  ;;  %5249 = vmatmul.mubr.f32.gmra.mxu0 %v3401_v6  ;;  %v940_v1 = vpop.f32.mrf.mxu1  ;;  %v3425_v29 = vrot.slane %v2650_v8, 2 }
 0x131   : > { %v6901_v47 = vadd.f32 %v4770_v32, %v1068_v34  ;;  %v1067_v14 = vadd.f32 %v940_v1, %v632_v46  ;;  %5251 = vmatprep.mubr.f32.mxu0 %v3404_v7  ;;  %v3039_v34 = vrot.slane %v2650_v8, 1  ;;  %v641_v1 = vadd.f32 %v6540_v12, %v6823_v26 }
 0x132   : > { %v1327_v5 = vpop.f32.mrf.mxu0  ;;  %v4693_v40 = vpop.f32.mrf.mxu1  ;;  %5172 = vmatmul.mubr.f32.gmra.mxu1 %v3020_v9  ;;  %v2653_v9 = vld [vmem:[#allocation2 + $0x130] sm:$0x3] }
 0x133   : > { %v6908_v17 = vadd.f32 %v1327_v5, %v1067_v14  ;;  %v1070_v4 = vadd.f32 %v4693_v40, %v635_v42  ;;  %5174 = vmatprep.mubr.f32.mxu1 %v6242_v53  ;;  %v3034_v53 = vrot.slane %v2647_v58, 1  ;;  %v640_v14 = vadd.f32 %v6823_v26, %v6553_v36  ;;  %v7545_v40 = vld [vmem:[#allocation3_spill] sm:$0xff]  ;;  %v7547_v36 = vld [vmem:[#allocation13_spill] sm:$0xff] }
 0x134   : > { %v4773_v54 = vpop.f32.mrf.mxu0  ;;  %5252 = vmatmul.mubr.f32.gmra.mxu0 %v3406_v30  ;;  %v950_v10 = vpop.f32.mrf.mxu1  ;;  %v3040_v12 = vsel %vm704_vm0, %v7545_v40, %v3039_v34  ;;  %v2662_v40 = vld [vmem:[#allocation2 + $0x178] sm:$0x3] }
 0x135   : > { %v6915_v49 = vadd.f32 %v4773_v54, %v1070_v4  ;;  %v1069_v37 = vadd.f32 %v950_v10, %v634_v3  ;;  %5254 = vmatprep.mubr.f32.mxu0 %v6584_v55  ;;  %v3420_v55 = vrot.slane %v2647_v58, 2  ;;  %v3035_v63 = vsel %vm704_vm0, %v6275_v23, %v3034_v53  ;;  %v2656_v4 = vld [vmem:[#allocation2 + $0x148] sm:$0x3]  ;;  %v7550_v53 = vld [vmem:[#allocation7_spill] sm:$0xff] }
 0x136   : > { %v1337_v43 = vpop.f32.mrf.mxu0  ;;  %v4696_v27 = vpop.f32.mrf.mxu1  ;;  %5175 = vmatmul.mubr.f32.gmra.mxu1 %v3025_v50  ;;  %v643_v58 = vadd.f32 %v7546_v41, %v6823_v26  ;;  %v3435_v34 = vrot.slane %v2656_v4, 2  ;;  %v7560_v41 = vld [vmem:[#allocation24_spill] sm:$0xff] }
 0x137   : > { %v6920_v6 = vadd.f32 %v1337_v43, %v1069_v37  ;;  %v1072_v52 = vadd.f32 %v4696_v27, %v637_v59  ;;  %5177 = vmatprep.mubr.f32.mxu1 %v6268_v39  ;;  %v3421_v28 = vsel %vm1091_vm1, %v6603_v11, %v3420_v55  ;;  %v7544_v11 = vld [vmem:[#allocation4_spill] sm:$0xff]  ;;  %v7549_v43 = vld [vmem:[#allocation5_spill] sm:$0xff] }
 0x138   : > { %v4776_v25 = vpop.f32.mrf.mxu0  ;;  %5255 = vmatmul.mubr.f32.gmra.mxu0 %v3411_v57  ;;  %v960_v21 = vpop.f32.mrf.mxu1  ;;  %v7548_v57 = vld [vmem:[#allocation9_spill] sm:$0xff] }
 0x139   : > { %v6927_v60 = vadd.f32 %v4776_v25, %v1072_v52  ;;  %v1071_v56 = vadd.f32 %v960_v21, %v636_v22  ;;  %5257 = vmatprep.mubr.f32.mxu0 %v6610_v45  ;;  %v3426_v59 = vsel %vm1091_vm1, %v7548_v57, %v3425_v29  ;;  %v642_v22 = vadd.f32 %v6823_v26, %v7550_v53  ;;  %v7551_v25 = vld [vmem:[#allocation15_spill] sm:$0xff]  ;;  %v2659_v55 = vld [vmem:[#allocation2 + $0x160] sm:$0x3]  ;;  %v7561_v57 = vld [vmem:[#allocation18_spill] sm:$0xff] }
 0x13a   : > { %v1347_v39 = vpop.f32.mrf.mxu0  ;;  %v4699_v7 = vpop.f32.mrf.mxu1  ;;  %5178 = vmatmul.mubr.f32.gmra.mxu1 %v3030_v51  ;;  %v3049_v21 = vrot.slane %v2656_v4, 1  ;;  %v7559_v4 = vld [vmem:[#allocation29_spill] sm:$0xff]  ;;  %v7563_v53 = vld [vmem:[#allocation19_spill] sm:$0xff] }
 0x13b   : > { %v6936_v46 = vadd.f32 %v1347_v39, %v1071_v56  ;;  %v1074_v31 = vadd.f32 %v4699_v7, %v639_v48  ;;  %5180 = vmatprep.mubr.f32.mxu1 %v6294_v2  ;;  %v3044_v2 = vrot.slane %v2653_v9, 1  ;;  %v7552_v56 = vld [vmem:[#allocation12_spill] sm:$0xff] }
 0x13c   : > { %v4779_v45 = vpop.f32.mrf.mxu0  ;;  %5258 = vmatmul.mubr.f32.gmra.mxu0 %v3416_v16  ;;  %v970_v32 = vpop.f32.mrf.mxu1  ;;  %v7553_v39 = vld [vmem:[#allocation8_spill] sm:$0xff] }
 0x13d   : > { %v6943_v23 = vadd.f32 %v4779_v45, %v1074_v31  ;;  %v1073_v18 = vadd.f32 %v970_v32, %v638_v35  ;;  %5260 = vmatprep.mubr.f32.mxu0 %v6636_v24  ;;  %v3430_v24 = vrot.slane %v2653_v9, 2  ;;  %v3045_v27 = vsel %vm704_vm0, %v7549_v43, %v3044_v2  ;;  %v7554_v31 = vld [vmem:[#allocation25_spill] sm:$0xff] }
 0x13e   : > { %v1357_v33 = vpop.f32.mrf.mxu0  ;;  %v4702_v42 = vpop.f32.mrf.mxu1  ;;  %5181 = vmatmul.mubr.f32.gmra.mxu1 %v3035_v63  ;;  %v645_v7 = vadd.f32 %v7553_v39, %v6823_v26  ;;  %v3054_v32 = vrot.slane %v2659_v55, 1 }
 0x13f   : > { %v6948_v30 = vadd.f32 %v1357_v33, %v1073_v18  ;;  %v1076_v5 = vadd.f32 %v4702_v42, %v641_v1  ;;  %5183 = vmatprep.mubr.f32.mxu1 %v7544_v11  ;;  %v3431_v16 = vsel %vm1091_vm1, %v7552_v56, %v3430_v24  ;;  %v7556_v33 = vld [vmem:[#allocation17_spill] sm:$0xff]  ;;  %v7557_v42 = vld [vmem:[#allocation16_spill] sm:$0xff]  ;;  %v3440_v11 = vrot.slane %v2659_v55, 2 }
 0x140   : > { %v4782_v50 = vpop.f32.mrf.mxu0  ;;  %5261 = vmatmul.mubr.f32.gmra.mxu0 %v3421_v28  ;;  %v980_v3 = vpop.f32.mrf.mxu1  ;;  %v7555_v28 = vld [vmem:[#allocation10_spill] sm:$0xff]  ;;  %v3050_v2 = vsel %vm704_vm0, %v7557_v42, %v3049_v21  ;;  %v7564_v55 = vld [vmem:[#allocation28_spill] sm:$0xff] }
 0x141   : > { %v6955_v54 = vadd.f32 %v4782_v50, %v1076_v5  ;;  %v1075_v10 = vadd.f32 %v980_v3, %v640_v14  ;;  %5263 = vmatprep.mubr.f32.mxu0 %v7547_v36  ;;  %v644_v1 = vadd.f32 %v6823_v26, %v7555_v28 }
 0x142   : > { %v1367_v37 = vpop.f32.mrf.mxu0  ;;  %v4705_v20 = vpop.f32.mrf.mxu1  ;;  %5184 = vmatmul.mubr.f32.gmra.mxu1 %v3040_v12  ;;  %v7558_v12 = vld [vmem:[#allocation11_spill] sm:$0xff] }
 0x143   : > { %v6964_v52 = vadd.f32 %v1367_v37, %v1075_v10  ;;  %v1078_v51 = vadd.f32 %v4705_v20, %v643_v58  ;;  %5186 = vmatprep.mubr.f32.mxu1 %v7551_v25  ;;  %v647_v50 = vadd.f32 %v7558_v12, %v6823_v26  ;;  %v3436_v58 = vsel %vm1091_vm1, %v7560_v41, %v3435_v34  ;;  %v7562_v37 = vld [vmem:[#allocation14_spill] sm:$0xff] }
 0x144   : > { %v4785_v8 = vpop.f32.mrf.mxu0  ;;  %5264 = vmatmul.mubr.f32.gmra.mxu0 %v3426_v59  ;;  %v990_v48 = vpop.f32.mrf.mxu1  ;;  %v3055_v59 = vsel %vm704_vm0, %v7561_v57, %v3054_v32  ;;  %v646_v20 = vadd.f32 %v6823_v26, %v7562_v37  ;;  %v2668_v12 = vld [vmem:[#allocation2 + $0x1a8] sm:$0x3] }
 0x145   : > { %v6971_v63 = vadd.f32 %v4785_v8, %v1078_v51  ;;  %v1077_v35 = vadd.f32 %v990_v48, %v642_v22  ;;  %5266 = vmatprep.mubr.f32.mxu0 %v7554_v31  ;;  %v3059_v22 = vrot.slane %v2662_v40, 1  ;;  %v2665_v51 = vld [vmem:[#allocation2 + $0x190] sm:$0x3]  ;;  %v3441_v8 = vsel %vm1091_vm1, %v7564_v55, %v3440_v11  ;;  %v7565_v48 = vld [vmem:[#allocation26_spill] sm:$0xff] }
 0x146   : > { %v1377_v9 = vpop.f32.mrf.mxu0  ;;  %v4708_v45 = vpop.f32.mrf.mxu1  ;;  %5187 = vmatmul.mubr.f32.gmra.mxu1 %v3045_v27  ;;  %v649_v56 = vadd.f32 %v7565_v48, %v6823_v26  ;;  %v3069_v55 = vrot.slane %v2668_v12, 1 }
 0x147   : > { %v6976_v18 = vadd.f32 %v1377_v9, %v1077_v35  ;;  %v1080_v29 = vadd.f32 %v4708_v45, %v645_v7  ;;  %5189 = vmatprep.mubr.f32.mxu1 %v7556_v33  ;;  %v7566_v7 = vld [vmem:[#allocation32_spill] sm:$0xff]  ;;  %v3445_v35 = vrot.slane %v2662_v40, 2  ;;  %v3064_v9 = vrot.slane %v2665_v51, 1  ;;  %v7567_v45 = vld [vmem:[#allocation27_spill] sm:$0xff] }
 0x148   : > { %v4788_v14 = vpop.f32.mrf.mxu0  ;;  %5267 = vmatmul.mubr.f32.gmra.mxu0 %v3431_v16  ;;  %v1000_v5 = vpop.f32.mrf.mxu1  ;;  %v648_v32 = vadd.f32 %v6823_v26, %v7567_v45  ;;  %v7569_v33 = vld [vmem:[#allocation20_spill] sm:$0xff]  ;;  %v3450_v40 = vrot.slane %v2665_v51, 2  ;;  %v3455_v45 = vrot.slane %v2668_v12, 2 }
 0x149   : > { %v6983_v3 = vadd.f32 %v4788_v14, %v1080_v29  ;;  %v1079_v24 = vadd.f32 %v1000_v5, %v644_v1  ;;  %5269 = vmatprep.mubr.f32.mxu0 %v7559_v4  ;;  %v7568_v29 = vld [vmem:[#allocation21_spill] sm:$0xff]  ;;  %v3060_v42 = vsel %vm704_vm0, %v7569_v33, %v3059_v22 }
 0x14a   : > { %v1387_v10 = vpop.f32.mrf.mxu0  ;;  %v4711_v36 = vpop.f32.mrf.mxu1  ;;  %5190 = vmatmul.mubr.f32.gmra.mxu1 %v3050_v2  ;;  %v7570_v2 = vld [vmem:[#allocation41_spill] sm:$0xff] }
 0x14b   : > { %v6992_v43 = vadd.f32 %v1387_v10, %v1079_v24  ;;  %v1082_v27 = vadd.f32 %v4711_v36, %v647_v50  ;;  %5192 = vmatprep.mubr.f32.mxu1 %v7563_v53  ;;  %v3066_v14 = vrot.slane %v7570_v2, 1  ;;  %v7571_v50 = vld [vmem:[#allocation30_spill] sm:$0xff]  ;;  %v7573_v10 = vld [vmem:[#allocation31_spill] sm:$0xff]  ;;  %v3452_v57 = vrot.slane %v7570_v2, 2  ;;  %v7575_v53 = vld [vmem:[#allocation33_spill] sm:$0xff] }
 0x14c   : > { %v4791_v25 = vpop.f32.mrf.mxu0  ;;  %5270 = vmatmul.mubr.f32.gmra.mxu0 %v3436_v58  ;;  %v1010_v21 = vpop.f32.mrf.mxu1  ;;  %v651_v24 = vadd.f32 %v7571_v50, %v6823_v26  ;;  %v7572_v58 = vld [vmem:[#allocation35_spill] sm:$0xff]  ;;  %v3446_v36 = vsel %vm1091_vm1, %v7573_v10, %v3445_v35  ;;  %v650_v22 = vadd.f32 %v6823_v26, %v7575_v53 }
 0x14d   : > { %v6999_v16 = vadd.f32 %v4791_v25, %v1082_v27  ;;  %v1081_v39 = vadd.f32 %v1010_v21, %v646_v20  ;;  %5272 = vmatprep.mubr.f32.mxu0 %v7566_v7  ;;  %v7574_v20 = vld [vmem:[#allocation22_spill] sm:$0xff]  ;;  %v7576_v21 = vld [vmem:[#allocation23_spill] sm:$0xff]  ;;  %v7578_v7 = vld [vmem:[#allocation36_spill] sm:$0xff] }
 0x14e   : > { %v1397_v31 = vpop.f32.mrf.mxu0  ;;  %v4714_v34 = vpop.f32.mrf.mxu1  ;;  %5193 = vmatmul.mubr.f32.gmra.mxu1 %v3055_v59  ;;  %v3065_v27 = vsel %vm704_vm0, %v7574_v20, %v3064_v9  ;;  %v653_v35 = vadd.f32 %v7578_v7, %v6823_v26  ;;  %v7579_v9 = vld [vmem:[#allocation38_spill] sm:$0xff]  ;;  %v7581_v50 = vld [vmem:[#allocation39_spill] sm:$0xff] }
 0x14f   : > { %v7004_v28 = vadd.f32 %v1397_v31, %v1081_v39  ;;  %v1084_v1 = vadd.f32 %v4714_v34, %v649_v56  ;;  %5195 = vmatprep.mubr.f32.mxu1 %v7568_v29  ;;  %v7577_v56 = vld [vmem:[#allocation34_spill] sm:$0xff]  ;;  %v7580_v29 = vld [vmem:[#allocation37_spill] sm:$0xff] }
 0x150   : > { %v4794_v5 = vpop.f32.mrf.mxu0  ;;  %5273 = vmatmul.mubr.f32.gmra.mxu0 %v3441_v8  ;;  %v1020_v11 = vpop.f32.mrf.mxu1  ;;  %v3451_v39 = vsel %vm1091_vm1, %v7577_v56, %v3450_v40  ;;  %v652_v33 = vadd.f32 %v6823_v26, %v7580_v29 }
 0x151   : > { %v7012_v4 = vadd.f32 %v4794_v5, %v1084_v1  ;;  %v1083_v41 = vadd.f32 %v1020_v11, %v648_v32  ;;  %5275 = vmatprep.mubr.f32.mxu0 %v7572_v58  ;;  %v3070_v5 = vsel %vm704_vm0, %v3066_v14, %v3069_v55  ;;  %v3456_v58 = vsel %vm1091_vm1, %v3452_v57, %v3455_v45 }
 0x152   : > { %v1407_v59 = vpop.f32.mrf.mxu0  ;;  %v4717_v37 = vpop.f32.mrf.mxu1  ;;  %5196 = vmatmul.mubr.f32.gmra.mxu1 %v3060_v42 }
 0x153   : > { %v7022_v51 = vadd.f32 %v1407_v59, %v1083_v41  ;;  %v1086_v25 = vadd.f32 %v4717_v37, %v651_v24  ;;  %5198 = vmatprep.mubr.f32.mxu1 %v7576_v21  ;;  %v655_v24 = vadd.f32 %v7581_v50, %v6823_v26  ;;  %v7582_v59 = vld [vmem:[#allocation40_spill] sm:$0xff] }
 0x154   : > { %v4797_v8 = vpop.f32.mrf.mxu0  ;;  %5276 = vmatmul.mubr.f32.gmra.mxu0 %v3446_v36  ;;  %v1030_v48 = vpop.f32.mrf.mxu1  ;;  %v654_v37 = vadd.f32 %v6823_v26, %v7582_v59 }
 0x155   : > { %v7029_v31 = vadd.f32 %v4797_v8, %v1086_v25  ;;  %v1085_v34 = vadd.f32 %v1030_v48, %v650_v22  ;;  %5278 = vmatprep.mubr.f32.mxu0 %v7579_v9 }
 0x156   : > { %v1417_v32 = vpop.f32.mrf.mxu0  ;;  %v4720_v1 = vpop.f32.mrf.mxu1  ;;  %5199 = vmatmul.mubr.f32.gmra.mxu1 %v3065_v27 }
 0x157   : > { %v7034_v42 = vadd.f32 %v1417_v32, %v1085_v34  ;;  %v1088_v2 = vadd.f32 %v4720_v1, %v653_v35  ;;  %5201 = vmatprep.mubr.f32.mxu1 %v3066_v14 }
 0x158   : > { %v4800_v11 = vpop.f32.mrf.mxu0  ;;  %5279 = vmatmul.mubr.f32.gmra.mxu0 %v3451_v39  ;;  %v1040_v40 = vpop.f32.mrf.mxu1 }
 0x159   : > { %v7039_v41 = vadd.f32 %v4800_v11, %v1088_v2  ;;  %v1087_v12 = vadd.f32 %v1040_v40, %v652_v33  ;;  %5281 = vmatprep.mubr.f32.mxu0 %v3452_v57 }
 0x15a   : > { %v1427_v10 = vpop.f32.mrf.mxu0  ;;  %v4723_v36 = vpop.f32.mrf.mxu1  ;;  %5202 = vmatmul.mubr.f32.gmra.mxu1 %v3070_v5 }
 0x15b   : > { %v7044_v20 = vadd.f32 %v1427_v10, %v1087_v12  ;;  %v1090_v14 = vadd.f32 %v4723_v36, %v655_v24 }
 0x15c   : > { %v4803_v27 = vpop.f32.mrf.mxu0  ;;  %5282 = vmatmul.mubr.f32.gmra.mxu0 %v3456_v58  ;;  %v1050_v53 = vpop.f32.mrf.mxu1 }
 0x15d   : > { %v7046_v22 = vadd.f32 %v4803_v27, %v1090_v14  ;;  %v1089_v25 = vadd.f32 %v1050_v53, %v654_v37 }
 0x15e   : > { %v1437_v21 = vpop.f32.mrf.mxu0  ;;  %v4838_v55 = vpop.f32.mrf.mxu1 }
 0x15f   : > { %v7048_v8 = vadd.f32 %v1437_v21, %v1089_v25  ;;  %v1769_v57 = vadd.f32 %v4838_v55, %v6844_v15 }
 0x160   : > { %v4918_v48 = vpop.f32.mrf.mxu0  ;;  %v1609_v56 = vpop.f32.mrf.mxu1 }
 0x161   : > { %v7051_v39 = vadd.f32 %v4918_v48, %v1769_v57  ;;  %v1768_v26 = vadd.f32 %v1609_v56, %v6853_v44 }
 0x162   : > { %v2043_v7 = vpop.f32.mrf.mxu0  ;;  %v4841_v35 = vpop.f32.mrf.mxu1 }
 0x163   : > { %v7054_v34 = vadd.f32 %v2043_v7, %v1768_v26  ;;  %v1771_v9 = vadd.f32 %v4841_v35, %v6861_v13 }
 0x164   : > { %v4921_v45 = vpop.f32.mrf.mxu0  ;;  %v1619_v32 = vpop.f32.mrf.mxu1 }
 0x165   : > { %v7057_v1 = vadd.f32 %v4921_v45, %v1771_v9  ;;  %v1770_v29 = vadd.f32 %v1619_v32, %v6868_v61 }
 0x166   : > { %v2053_v33 = vpop.f32.mrf.mxu0  ;;  %v4844_v15 = vpop.f32.mrf.mxu1 }
 0x167   : > { %v7060_v2 = vadd.f32 %v2053_v33, %v1770_v29  ;;  %v1773_v5 = vadd.f32 %v4844_v15, %v6876_v19 }
 0x168   : > { %v4924_v11 = vpop.f32.mrf.mxu0  ;;  %v1629_v44 = vpop.f32.mrf.mxu1 }
 0x169   : > { %v7063_v40 = vadd.f32 %v4924_v11, %v1773_v5  ;;  %v1772_v50 = vadd.f32 %v1629_v44, %v6885_v62 }
 0x16a   : > { %v2063_v24 = vpop.f32.mrf.mxu0  ;;  %v4847_v13 = vpop.f32.mrf.mxu1 }
 0x16b   : > { %v7066_v12 = vadd.f32 %v2063_v24, %v1772_v50  ;;  %v1775_v58 = vadd.f32 %v4847_v13, %v6891_v38 }
 0x16c   : > { %v4927_v10 = vpop.f32.mrf.mxu0  ;;  %v1639_v61 = vpop.f32.mrf.mxu1 }
 0x16d   : > { %v7069_v36 = vadd.f32 %v4927_v10, %v1775_v58  ;;  %v1774_v59 = vadd.f32 %v1639_v61, %v6896_v0 }
 0x16e   : > { %v2073_v37 = vpop.f32.mrf.mxu0  ;;  %v4850_v19 = vpop.f32.mrf.mxu1 }
 0x16f   : > { %v7072_v14 = vadd.f32 %v2073_v37, %v1774_v59  ;;  %v1777_v27 = vadd.f32 %v4850_v19, %v6901_v47 }
 0x170   : > { %v4930_v53 = vpop.f32.mrf.mxu0  ;;  %v1649_v62 = vpop.f32.mrf.mxu1 }
 0x171   : > { %v7075_v25 = vadd.f32 %v4930_v53, %v1777_v27  ;;  %v1776_v21 = vadd.f32 %v1649_v62, %v6908_v17 }
 0x172   : > { %v2083_v55 = vpop.f32.mrf.mxu0  ;;  %v4853_v38 = vpop.f32.mrf.mxu1 }
 0x173   : > { %v7078_v57 = vadd.f32 %v2083_v55, %v1776_v21  ;;  %v1779_v48 = vadd.f32 %v4853_v38, %v6915_v49 }
 0x174   : > { %v4933_v56 = vpop.f32.mrf.mxu0  ;;  %v1659_v0 = vpop.f32.mrf.mxu1 }
 0x175   : > { %v7081_v26 = vadd.f32 %v4933_v56, %v1779_v48  ;;  %v1778_v7 = vadd.f32 %v1659_v0, %v6920_v6 }
 0x176   : > { %v2093_v35 = vpop.f32.mrf.mxu0  ;;  %v4856_v47 = vpop.f32.mrf.mxu1 }
 0x177   : > { %v7084_v9 = vadd.f32 %v2093_v35, %v1778_v7  ;;  %v1781_v45 = vadd.f32 %v4856_v47, %v6927_v60 }
 0x178   : > { %v4936_v32 = vpop.f32.mrf.mxu0  ;;  %v1669_v17 = vpop.f32.mrf.mxu1 }
 0x179   : > { %v7087_v29 = vadd.f32 %v4936_v32, %v1781_v45  ;;  %v1780_v33 = vadd.f32 %v1669_v17, %v6936_v46 }
 0x17a   : > { %v2103_v15 = vpop.f32.mrf.mxu0  ;;  %v4859_v49 = vpop.f32.mrf.mxu1 }
 0x17b   : > { %v7090_v5 = vadd.f32 %v2103_v15, %v1780_v33  ;;  %v1783_v11 = vadd.f32 %v4859_v49, %v6943_v23 }
 0x17c   : > { %v4939_v44 = vpop.f32.mrf.mxu0  ;;  %v1679_v6 = vpop.f32.mrf.mxu1 }
 0x17d   : > { %v7093_v50 = vadd.f32 %v4939_v44, %v1783_v11  ;;  %v1782_v24 = vadd.f32 %v1679_v6, %v6948_v30 }
 0x17e   : > { %v2113_v13 = vpop.f32.mrf.mxu0  ;;  %v4862_v60 = vpop.f32.mrf.mxu1 }
 0x17f   : > { %v7096_v58 = vadd.f32 %v2113_v13, %v1782_v24  ;;  %v1785_v10 = vadd.f32 %v4862_v60, %v6955_v54 }
 0x180   : > { %v4942_v61 = vpop.f32.mrf.mxu0  ;;  %v1689_v46 = vpop.f32.mrf.mxu1 }
 0x181   : > { %v7099_v59 = vadd.f32 %v4942_v61, %v1785_v10  ;;  %v1784_v37 = vadd.f32 %v1689_v46, %v6964_v52 }
 0x182   : > { %v2123_v19 = vpop.f32.mrf.mxu0  ;;  %v4865_v23 = vpop.f32.mrf.mxu1 }
 0x183   : > { %v7102_v27 = vadd.f32 %v2123_v19, %v1784_v37  ;;  %v1787_v53 = vadd.f32 %v4865_v23, %v6971_v63 }
 0x184   : > { %v4945_v62 = vpop.f32.mrf.mxu0  ;;  %v1699_v30 = vpop.f32.mrf.mxu1 }
 0x185   : > { %v7105_v21 = vadd.f32 %v4945_v62, %v1787_v53  ;;  %v1786_v55 = vadd.f32 %v1699_v30, %v6976_v18 }
 0x186   : > { %v2133_v38 = vpop.f32.mrf.mxu0  ;;  %v4868_v54 = vpop.f32.mrf.mxu1 }
 0x187   : > { %7583 = vst [vmem:[#allocation4_spill] sm:$0xff] %v7105_v21  ;;  %v7108_v48 = vadd.f32 %v2133_v38, %v1786_v55  ;;  %v1789_v56 = vadd.f32 %v4868_v54, %v6983_v3 }
 0x188   : > { %v4948_v0 = vpop.f32.mrf.mxu0  ;;  %v1709_v52 = vpop.f32.mrf.mxu1 }
 0x189   : > { %7584 = vst [vmem:[#allocation3_spill] sm:$0xff] %v7108_v48  ;;  %v7111_v7 = vadd.f32 %v4948_v0, %v1789_v56  ;;  %v1788_v35 = vadd.f32 %v1709_v52, %v6992_v43 }
 0x18a   : > { %v2143_v47 = vpop.f32.mrf.mxu0  ;;  %v4871_v63 = vpop.f32.mrf.mxu1 }
 0x18b   : > { %7585 = vst [vmem:[#allocation6_spill] sm:$0xff] %v7111_v7  ;;  %v7114_v45 = vadd.f32 %v2143_v47, %v1788_v35  ;;  %v1791_v32 = vadd.f32 %v4871_v63, %v6999_v16 }
 0x18c   : > { %v4951_v17 = vpop.f32.mrf.mxu0  ;;  %v1719_v18 = vpop.f32.mrf.mxu1 }
 0x18d   : > { %7586 = vst [vmem:[#allocation13_spill] sm:$0xff] %v7114_v45  ;;  %v7117_v33 = vadd.f32 %v4951_v17, %v1791_v32  ;;  %v1790_v15 = vadd.f32 %v1719_v18, %v7004_v28 }
 0x18e   : > { %v2153_v49 = vpop.f32.mrf.mxu0  ;;  %v4874_v3 = vpop.f32.mrf.mxu1 }
 0x18f   : > { %7587 = vst [vmem:[#allocation9_spill] sm:$0xff] %v7117_v33  ;;  %v7120_v11 = vadd.f32 %v2153_v49, %v1790_v15  ;;  %v1793_v44 = vadd.f32 %v4874_v3, %v7012_v4 }
 0x190   : > { %v4954_v6 = vpop.f32.mrf.mxu0  ;;  %v1729_v43 = vpop.f32.mrf.mxu1 }
 0x191   : > { %7588 = vst [vmem:[#allocation5_spill] sm:$0xff] %v7120_v11  ;;  %v7123_v24 = vadd.f32 %v4954_v6, %v1793_v44  ;;  %v1792_v13 = vadd.f32 %v1729_v43, %v7022_v51 }
 0x192   : > { %v2163_v60 = vpop.f32.mrf.mxu0  ;;  %v4877_v16 = vpop.f32.mrf.mxu1 }
 0x193   : > { %7589 = vst [vmem:[#allocation7_spill] sm:$0xff] %v7123_v24  ;;  %v7126_v10 = vadd.f32 %v2163_v60, %v1792_v13  ;;  %v1795_v61 = vadd.f32 %v4877_v16, %v7029_v31 }
 0x194   : > { %v4957_v46 = vpop.f32.mrf.mxu0  ;;  %v1739_v28 = vpop.f32.mrf.mxu1 }
 0x195   : > { %7590 = vst [vmem:[#allocation15_spill] sm:$0xff] %v7126_v10  ;;  %v7129_v37 = vadd.f32 %v4957_v46, %v1795_v61  ;;  %v1794_v19 = vadd.f32 %v1739_v28, %v7034_v42 }
 0x196   : > { %v2173_v23 = vpop.f32.mrf.mxu0  ;;  %v4880_v4 = vpop.f32.mrf.mxu1 }
 0x197   : > { %7591 = vst [vmem:[#allocation12_spill] sm:$0xff] %v7129_v37  ;;  %v7132_v53 = vadd.f32 %v2173_v23, %v1794_v19  ;;  %v1797_v62 = vadd.f32 %v4880_v4, %v7039_v41 }
 0x198   : > { %v4960_v30 = vpop.f32.mrf.mxu0  ;;  %v1749_v51 = vpop.f32.mrf.mxu1 }
 0x199   : > { %7592 = vst [vmem:[#allocation8_spill] sm:$0xff] %v7132_v53  ;;  %v7135_v55 = vadd.f32 %v4960_v30, %v1797_v62  ;;  %v1796_v38 = vadd.f32 %v1749_v51, %v7044_v20 }
 0x19a   : > { %v2183_v54 = vpop.f32.mrf.mxu0  ;;  %v4883_v31 = vpop.f32.mrf.mxu1 }
 0x19b   : > { %7593 = vst [vmem:[#allocation25_spill] sm:$0xff] %v7135_v55  ;;  %v7138_v56 = vadd.f32 %v2183_v54, %v1796_v38  ;;  %v1799_v0 = vadd.f32 %v4883_v31, %v7046_v22 }
 0x19c   : > { %v4963_v52 = vpop.f32.mrf.mxu0  ;;  %v1759_v42 = vpop.f32.mrf.mxu1 }
 0x19d   : > { %7594 = vst [vmem:[#allocation10_spill] sm:$0xff] %v7138_v56  ;;  %v7141_v35 = vadd.f32 %v4963_v52, %v1799_v0  ;;  %v1798_v47 = vadd.f32 %v1759_v42, %v7048_v8 }
 0x19e   : > { %v2193_v63 = vpop.f32.mrf.mxu0  ;;  %v4998_v41 = vpop.f32.mrf.mxu1 }
 0x19f   : > { %7595 = vst [vmem:[#allocation17_spill] sm:$0xff] %v7141_v35  ;;  %v7144_v32 = vadd.f32 %v2193_v63, %v1798_v47 }
 0x1a0   : > { %v7146_v17 = vpop.f32.mrf.mxu0  ;;  %v2429_v18 = vpop.f32.mrf.mxu1 }
 0x1a1   : > { %7596 = vst [vmem:[#allocation16_spill] sm:$0xff] %v7144_v32 }
 0x1a2   : > { %v7148_v20 = vpop.f32.mrf.mxu0  ;;  %v5001_v15 = vpop.f32.mrf.mxu1 }
 0x1a4   : > { %v7150_v49 = vpop.f32.mrf.mxu0  ;;  %v7152_v3 = vpop.f32.mrf.mxu1 }
 0x1a6   : > { %v7154_v22 = vpop.f32.mrf.mxu0  ;;  %v7156_v44 = vpop.f32.mrf.mxu1 }
 0x1a8   : > { %v7158_v6 = vpop.f32.mrf.mxu0  ;;  %v7160_v8 = vpop.f32.mrf.mxu1 }
 0x1aa   : > { %v7162_v43 = vpop.f32.mrf.mxu0  ;;  %v7164_v13 = vpop.f32.mrf.mxu1 }
 0x1ac   : > { %v7166_v60 = vpop.f32.mrf.mxu0  ;;  %v7168_v16 = vpop.f32.mrf.mxu1 }
 0x1ae   : > { %v7170_v61 = vpop.f32.mrf.mxu0  ;;  %v7172_v46 = vpop.f32.mrf.mxu1 }
 0x1b0   : > { %v7174_v28 = vpop.f32.mrf.mxu0  ;;  %v7176_v19 = vpop.f32.mrf.mxu1 }
 0x1b2   : > { %v7178_v23 = vpop.f32.mrf.mxu0  ;;  %v7180_v4 = vpop.f32.mrf.mxu1 }
 0x1b4   : > { %v7182_v62 = vpop.f32.mrf.mxu0  ;;  %v7184_v30 = vpop.f32.mrf.mxu1 }
 0x1b6   : > { %v7186_v51 = vpop.f32.mrf.mxu0  ;;  %v7188_v38 = vpop.f32.mrf.mxu1 }
 0x1b8   : > { %v7190_v54 = vpop.f32.mrf.mxu0  ;;  %v7192_v31 = vpop.f32.mrf.mxu1 }
 0x1ba   : > { %v7194_v0 = vpop.f32.mrf.mxu0  ;;  %v7196_v52 = vpop.f32.mrf.mxu1 }
 0x1bc   : > { %v7198_v42 = vpop.f32.mrf.mxu0  ;;  %v7200_v47 = vpop.f32.mrf.mxu1 }
 0x1be   : > { %v7202_v63 = vpop.f32.mrf.mxu0  ;;  %v7204_v32 = vpop.f32.mrf.mxu1 }
 0x1c0   : > { %v7206_v35 = vpop.f32.mrf.mxu0  ;;  %v7208_v56 = vpop.f32.mrf.mxu1 }
 0x1c2   : > { %v7210_v55 = vpop.f32.mrf.mxu0  ;;  %v7212_v53 = vpop.f32.mrf.mxu1 }
 0x1c3   : > { %7597 = vst [vmem:[#allocation11_spill] sm:$0xff] %v7210_v55  ;;  %7598 = vst [vmem:[#allocation29_spill] sm:$0xff] %v7212_v53 }
 0x1c4   : > { %v7214_v37 = vpop.f32.mrf.mxu0  ;;  %v7216_v10 = vpop.f32.mrf.mxu1 }
 0x1c5   : > { %7599 = vst [vmem:[#allocation24_spill] sm:$0xff] %v7214_v37  ;;  %7600 = vst [vmem:[#allocation18_spill] sm:$0xff] %v7216_v10 }
 0x1c6   : > { %v7218_v24 = vpop.f32.mrf.mxu0  ;;  %v7220_v11 = vpop.f32.mrf.mxu1 }
 0x1c7   : > { %7601 = vst [vmem:[#allocation14_spill] sm:$0xff] %v7218_v24  ;;  %7602 = vst [vmem:[#allocation19_spill] sm:$0xff] %v7220_v11 }
 0x1c8   : > { %v7222_v33 = vpop.f32.mrf.mxu0  ;;  %v7224_v45 = vpop.f32.mrf.mxu1 }
 0x1c9   : > { %7603 = vst [vmem:[#allocation28_spill] sm:$0xff] %v7222_v33  ;;  %7604 = vst [vmem:[#allocation26_spill] sm:$0xff] %v7224_v45 }
 0x1ca   : > { %v7226_v7 = vpop.f32.mrf.mxu0  ;;  %v7228_v48 = vpop.f32.mrf.mxu1 }
 0x1cb   : > { %7605 = vst [vmem:[#allocation32_spill] sm:$0xff] %v7226_v7  ;;  %7606 = vst [vmem:[#allocation27_spill] sm:$0xff] %v7228_v48 }
 0x1cc   : > { %v7230_v21 = vpop.f32.mrf.mxu0  ;;  %v7232_v55 = vpop.f32.mrf.mxu1 }
 0x1cd   : > { %7607 = vst [vmem:[#allocation21_spill] sm:$0xff] %v7230_v21  ;;  %7608 = vst [vmem:[#allocation20_spill] sm:$0xff] %v7232_v55 }
 0x1ce   : > { %v7234_v53 = vpop.f32.mrf.mxu0  ;;  %v7236_v37 = vpop.f32.mrf.mxu1 }
 0x1cf   : > { %7609 = vst [vmem:[#allocation41_spill] sm:$0xff] %v7234_v53  ;;  %7610 = vst [vmem:[#allocation30_spill] sm:$0xff] %v7236_v37 }
 0x1d0   : > { %v7238_v10 = vpop.f32.mrf.mxu0  ;;  %v7240_v24 = vpop.f32.mrf.mxu1 }
 0x1d1   : > { %7611 = vst [vmem:[#allocation35_spill] sm:$0xff] %v7238_v10  ;;  %7612 = vst [vmem:[#allocation31_spill] sm:$0xff] %v7240_v24  ;;  %v2589_v10 = vadd.f32 %v4998_v41, %v7051_v39  ;;  %v2590_v39 = vadd.f32 %v7152_v3, %v7060_v2 }
 0x1d2   : > { %v7242_v11 = vpop.f32.mrf.mxu0  ;;  %v7244_v33 = vpop.f32.mrf.mxu1 }
 0x1d3   : > { %7613 = vst [vmem:[#allocation22_spill] sm:$0xff] %v7242_v11  ;;  %7614 = vst [vmem:[#allocation33_spill] sm:$0xff] %v7244_v33  ;;  %v2588_v33 = vadd.f32 %v2429_v18, %v7054_v34  ;;  %v2593_v34 = vadd.f32 %v7156_v44, %v7063_v40  ;;  %v2592_v40 = vadd.f32 %v7160_v8, %v7066_v12 }
 0x1d4   : > { %v7246_v45 = vpop.f32.mrf.mxu0  ;;  %v7248_v7 = vpop.f32.mrf.mxu1  ;;  %v2594_v12 = vadd.f32 %v7168_v16, %v7072_v14 }
 0x1d5   : > { %7615 = vst [vmem:[#allocation23_spill] sm:$0xff] %v7246_v45  ;;  %7616 = vst [vmem:[#allocation34_spill] sm:$0xff] %v7248_v7  ;;  %v2916_v3 = vadd.f32 %v7158_v6, %v2593_v34 }
 0x1d6   : > { %v7250_v48 = vpop.f32.mrf.mxu0  ;;  %v7252_v21 = vpop.f32.mrf.mxu1 }
 0x1d7   : > { %7617 = vst [vmem:[#allocation36_spill] sm:$0xff] %v7250_v48  ;;  %7618 = vst [vmem:[#allocation38_spill] sm:$0xff] %v7252_v21  ;;  %v2912_v48 = vadd.f32 %v7146_v17, %v2589_v10  ;;  %v2591_v21 = vadd.f32 %v5001_v15, %v7057_v1 }
 0x1d8   : > { %v7254_v55 = vpop.f32.mrf.mxu0  ;;  %v7256_v53 = vpop.f32.mrf.mxu1 }
 0x1d9   : > { %7619 = vst [vmem:[#allocation37_spill] sm:$0xff] %v7254_v55  ;;  %7620 = vst [vmem:[#allocation39_spill] sm:$0xff] %v7256_v53  ;;  %v2911_v53 = vadd.f32 %v7148_v20, %v2588_v33  ;;  %v2914_v17 = vadd.f32 %v7150_v49, %v2591_v21 }
 0x1da   : > { %v7259_v24 = vpop.f32.mrf.mxu0  ;;  %v7261_v11 = vpop.f32.mrf.mxu1 }
 0x1dc   : > { %v7264_v45 = vpop.f32.mrf.mxu0  ;;  %v7266_v7 = vpop.f32.mrf.mxu1 }
 0x1dd   : > { %7621 = vst [vmem:[#allocation40_spill] sm:$0xff] %v7264_v45 }
 0x1de   : > { %v7270_v55 = vpop.f32.mrf.mxu0  ;;  %v5158_v37 = vpop.f32.mrf.mxu1 }
 0x1df   : > { %7622 = vst [vmem:[#allocation42_spill] sm:$0xff] %v7270_v55  ;;  %v3346_v41 = vadd.f32 %v5158_v37, %v2912_v48  ;;  %v2913_v48 = vadd.f32 %v7154_v22, %v2590_v39  ;;  %v2595_v22 = vadd.f32 %v7164_v13, %v7069_v36 }
 0x1e0   : > { %v5238_v1 = vpop.f32.mrf.mxu0  ;;  %v3186_v10 = vpop.f32.mrf.mxu1 }
 0x1e1   : > { %v3732_v33 = vadd.f32 %v5238_v1, %v3346_v41  ;;  %v3345_v18 = vadd.f32 %v3186_v10, %v2911_v53  ;;  %v2915_v1 = vadd.f32 %v7162_v43, %v2592_v40  ;;  %v2918_v14 = vadd.f32 %v7166_v60, %v2595_v22 }
 0x1e2   : > { %v3572_v20 = vpop.f32.mrf.mxu0  ;;  %v5161_v2 = vpop.f32.mrf.mxu1  ;;  %v2917_v43 = vadd.f32 %v7170_v61, %v2594_v12 }
 0x1e3   : > { %3764 = vst [vmem:[%s7282_s17 + $0x8] sm:$0xff] %v3732_v33  ;;  %v3731_v37 = vadd.f32 %v3572_v20, %v3345_v18  ;;  %v3348_v15 = vadd.f32 %v5161_v2, %v2914_v17  ;;  %v3834_v44 = vmul.f32 %v3732_v33, %v3732_v33  ;;  %v2597_v17 = vadd.f32 %v7172_v46, %v7075_v25 }
 0x1e4   : > { %v5241_v55 = vpop.f32.mrf.mxu0  ;;  %v3196_v45 = vpop.f32.mrf.mxu1  ;;  %v2596_v46 = vadd.f32 %v7176_v19, %v7078_v57 }
 0x1e5   : > { %3763 = vst [vmem:[%s7282_s17] sm:$0xff] %v3731_v37  ;;  %v3795_v21 = vadd.f32 %v3732_v33, %v3731_v37  ;;  %v3833_v53 = vmul.f32 %v3731_v37, %v3731_v37  ;;  %v3734_v49 = vadd.f32 %v5241_v55, %v3348_v15  ;;  %v3347_v41 = vadd.f32 %v3196_v45, %v2913_v48 }
 0x1e6   : > { %v3582_v8 = vpop.f32.mrf.mxu0  ;;  %v5164_v39 = vpop.f32.mrf.mxu1  ;;  %v2920_v25 = vadd.f32 %v7174_v28, %v2597_v17  ;;  %v2599_v15 = vadd.f32 %v7180_v4, %v7081_v26 }
 0x1e7   : > { %v3865_v6 = vadd.f32 %v3834_v44, %v3833_v53  ;;  %3766 = vst [vmem:[%s7282_s17 + $0x18] sm:$0xff] %v3734_v49  ;;  %v3733_v34 = vadd.f32 %v3582_v8, %v3347_v41  ;;  %v3350_v10 = vadd.f32 %v5164_v39, %v2916_v3  ;;  %v3836_v2 = vmul.f32 %v3734_v49, %v3734_v49 }
 0x1e8   : > { %v5244_v55 = vpop.f32.mrf.mxu0  ;;  %v3206_v45 = vpop.f32.mrf.mxu1  ;;  %v2919_v39 = vadd.f32 %v7178_v23, %v2596_v46 }
 0x1e9   : > { %3765 = vst [vmem:[%s7282_s17 + $0x10] sm:$0xff] %v3733_v34  ;;  %v3796_v33 = vadd.f32 %v3795_v21, %v3733_v34  ;;  %v3835_v36 = vmul.f32 %v3733_v34, %v3733_v34  ;;  %v3736_v13 = vadd.f32 %v5244_v55, %v3350_v10  ;;  %v3349_v18 = vadd.f32 %v3206_v45, %v2915_v1 }
 0x1ea   : > { %v3592_v16 = vpop.f32.mrf.mxu0  ;;  %v5167_v20 = vpop.f32.mrf.mxu1  ;;  %v2922_v1 = vadd.f32 %v7182_v62, %v2599_v15 }
 0x1eb   : > { %v3866_v48 = vadd.f32 %v3865_v6, %v3835_v36  ;;  %3768 = vst [vmem:[%s7282_s17 + $0x28] sm:$0xff] %v3736_v13  ;;  %v3735_v40 = vadd.f32 %v3592_v16, %v3349_v18  ;;  %v3797_v37 = vadd.f32 %v3796_v33, %v3734_v49  ;;  %v3352_v3 = vadd.f32 %v5167_v20, %v2918_v14 }
 0x1ec   : > { %v5247_v44 = vpop.f32.mrf.mxu0  ;;  %v3216_v60 = vpop.f32.mrf.mxu1  ;;  %v2598_v49 = vadd.f32 %v7184_v30, %v7084_v9  ;;  %v3838_v28 = vmul.f32 %v3736_v13, %v3736_v13  ;;  %v2601_v6 = vadd.f32 %v7188_v38, %v7087_v29  ;;  %v2600_v33 = vadd.f32 %v7192_v31, %v7090_v5 }
 0x1ed   : > { %3767 = vst [vmem:[%s7282_s17 + $0x20] sm:$0xff] %v3735_v40  ;;  %v3798_v61 = vadd.f32 %v3797_v37, %v3735_v40  ;;  %v3837_v21 = vmul.f32 %v3735_v40, %v3735_v40  ;;  %v3867_v53 = vadd.f32 %v3866_v48, %v3836_v2  ;;  %v3351_v41 = vadd.f32 %v3216_v60, %v2917_v43 }
 0x1ee   : > { %v3738_v22 = vadd.f32 %v5247_v44, %v3352_v3  ;;  %v3602_v12 = vpop.f32.mrf.mxu0  ;;  %v5170_v57 = vpop.f32.mrf.mxu1  ;;  %v2921_v45 = vadd.f32 %v7186_v51, %v2598_v49  ;;  %v2924_v14 = vadd.f32 %v7190_v54, %v2601_v6  ;;  %v2603_v51 = vadd.f32 %v7196_v52, %v7093_v50  ;;  %v7624_v6 = vld [vmem:[#allocation29_spill] sm:$0xff] }
 0x1ef   : > { %v3868_v19 = vadd.f32 %v3867_v53, %v3837_v21  ;;  %v3737_v8 = vadd.f32 %v3602_v12, %v3351_v41  ;;  %v3799_v26 = vadd.f32 %v3798_v61, %v3736_v13  ;;  %v3354_v4 = vadd.f32 %v5170_v57, %v2920_v25 }
 0x1f0   : > { %3770 = vst [vmem:[%s7282_s17 + $0x38] sm:$0xff] %v3738_v22  ;;  %v5250_v34 = vpop.f32.mrf.mxu0  ;;  %v3226_v10 = vpop.f32.mrf.mxu1  ;;  %v3840_v13 = vmul.f32 %v3738_v22, %v3738_v22  ;;  %v2923_v46 = vadd.f32 %v7194_v0, %v2600_v33  ;;  %v2602_v54 = vadd.f32 %v7200_v47, %v7096_v58  ;;  %v2605_v50 = vadd.f32 %v7204_v32, %v7099_v59  ;;  %v7627_v33 = vld [vmem:[#allocation18_spill] sm:$0xff] }
 0x1f1   : > { %3769 = vst [vmem:[%s7282_s17 + $0x30] sm:$0xff] %v3737_v8  ;;  %v3800_v9 = vadd.f32 %v3799_v26, %v3737_v8  ;;  %v3839_v30 = vmul.f32 %v3737_v8, %v3737_v8  ;;  %v3869_v17 = vadd.f32 %v3868_v19, %v3838_v28  ;;  %v3740_v55 = vadd.f32 %v5250_v34, %v3354_v4 }
 0x1f2   : > { %v3353_v23 = vadd.f32 %v3226_v10, %v2919_v39  ;;  %v3612_v62 = vpop.f32.mrf.mxu0  ;;  %v5173_v36 = vpop.f32.mrf.mxu1  ;;  %v2926_v53 = vadd.f32 %v7198_v42, %v2603_v51  ;;  %v2925_v12 = vadd.f32 %v7202_v63, %v2602_v54  ;;  %v2604_v59 = vadd.f32 %v7208_v56, %v7102_v27  ;;  %v7630_v51 = vld [vmem:[#allocation24_spill] sm:$0xff]  ;;  %v7631_v54 = vld [vmem:[#allocation14_spill] sm:$0xff] }
 0x1f3   : > { %v3870_v29 = vadd.f32 %v3869_v17, %v3839_v30  ;;  %3772 = vst [vmem:[%s7282_s17 + $0x48] sm:$0xff] %v3740_v55  ;;  %v3801_v38 = vadd.f32 %v3800_v9, %v3738_v22  ;;  %v3356_v18 = vadd.f32 %v5173_v36, %v2922_v1  ;;  %v3842_v52 = vmul.f32 %v3740_v55, %v3740_v55  ;;  %v7623_v1 = vld [vmem:[#allocation4_spill] sm:$0xff] }
 0x1f4   : > { %v3739_v43 = vadd.f32 %v3612_v62, %v3353_v23  ;;  %v5253_v16 = vpop.f32.mrf.mxu0  ;;  %v3236_v20 = vpop.f32.mrf.mxu1  ;;  %v2928_v19 = vadd.f32 %v7206_v35, %v2605_v50  ;;  %v2607_v34 = vadd.f32 %v7624_v6, %v7623_v1  ;;  %v7633_v50 = vld [vmem:[#allocation26_spill] sm:$0xff]  ;;  %v7639_v1 = vld [vmem:[#allocation20_spill] sm:$0xff] }
 0x1f5   : > { %v3871_v2 = vadd.f32 %v3870_v29, %v3840_v13  ;;  %v3742_v5 = vadd.f32 %v5253_v16, %v3356_v18  ;;  %v3355_v31 = vadd.f32 %v3236_v20, %v2921_v45  ;;  %v7626_v45 = vld [vmem:[#allocation3_spill] sm:$0xff]  ;;  %v7628_v13 = vld [vmem:[#allocation6_spill] sm:$0xff] }
 0x1f6   : > { %3771 = vst [vmem:[%s7282_s17 + $0x40] sm:$0xff] %v3739_v43  ;;  %v3802_v48 = vadd.f32 %v3801_v38, %v3739_v43  ;;  %v3841_v40 = vmul.f32 %v3739_v43, %v3739_v43  ;;  %v3622_v37 = vpop.f32.mrf.mxu0  ;;  %v5176_v25 = vpop.f32.mrf.mxu1  ;;  %v2606_v23 = vadd.f32 %v7627_v33, %v7626_v45  ;;  %v7629_v29 = vld [vmem:[#allocation19_spill] sm:$0xff]  ;;  %v7642_v45 = vld [vmem:[#allocation21_spill] sm:$0xff] }
 0x1f7   : > { %3774 = vst [vmem:[%s7282_s17 + $0x58] sm:$0xff] %v3742_v5  ;;  %v3741_v15 = vadd.f32 %v3622_v37, %v3355_v31  ;;  %v3358_v3 = vadd.f32 %v5176_v25, %v2924_v14  ;;  %v3844_v42 = vmul.f32 %v3742_v5, %v3742_v5  ;;  %v2609_v38 = vadd.f32 %v7629_v29, %v7628_v13 }
 0x1f8   : > { %v3872_v44 = vadd.f32 %v3871_v2, %v3841_v40  ;;  %v3803_v60 = vadd.f32 %v3802_v48, %v3740_v55  ;;  %v5256_v61 = vpop.f32.mrf.mxu0  ;;  %v3246_v21 = vpop.f32.mrf.mxu1  ;;  %v7625_v55 = vld [vmem:[#allocation11_spill] sm:$0xff]  ;;  %v2930_v2 = vadd.f32 %v7630_v51, %v2607_v34 }
 0x1f9   : > { %3773 = vst [vmem:[%s7282_s17 + $0x50] sm:$0xff] %v3741_v15  ;;  %v3843_v41 = vmul.f32 %v3741_v15, %v3741_v15  ;;  %v3744_v0 = vadd.f32 %v5256_v61, %v3358_v3  ;;  %v3357_v49 = vadd.f32 %v3246_v21, %v2923_v46  ;;  %v2927_v35 = vadd.f32 %v7625_v55, %v2604_v59  ;;  %v7632_v3 = vld [vmem:[#allocation13_spill] sm:$0xff]  ;;  %v7634_v61 = vld [vmem:[#allocation28_spill] sm:$0xff] }
 0x1fa   : > { %v3804_v28 = vadd.f32 %v3803_v60, %v3741_v15  ;;  %v3873_v58 = vadd.f32 %v3872_v44, %v3842_v52  ;;  %v3632_v47 = vpop.f32.mrf.mxu0  ;;  %v5179_v22 = vpop.f32.mrf.mxu1  ;;  %v2929_v15 = vadd.f32 %v7631_v54, %v2606_v23  ;;  %v2608_v52 = vadd.f32 %v7633_v50, %v7632_v3  ;;  %v7648_v3 = vld [vmem:[#allocation33_spill] sm:$0xff] }
 0x1fb   : > { %3776 = vst [vmem:[%s7282_s17 + $0x68] sm:$0xff] %v3744_v0  ;;  %v3743_v32 = vadd.f32 %v3632_v47, %v3357_v49  ;;  %v3360_v57 = vadd.f32 %v5179_v22, %v2926_v53  ;;  %v3846_v18 = vmul.f32 %v3744_v0, %v3744_v0  ;;  %v2932_v21 = vadd.f32 %v7634_v61, %v2609_v38  ;;  %v7636_v47 = vld [vmem:[#allocation27_spill] sm:$0xff] }
 0x1fc   : > { %v3874_v8 = vadd.f32 %v3873_v58, %v3843_v41  ;;  %v3805_v26 = vadd.f32 %v3804_v28, %v3742_v5  ;;  %v5259_v4 = vpop.f32.mrf.mxu0  ;;  %v3256_v39 = vpop.f32.mrf.mxu1  ;;  %v7635_v58 = vld [vmem:[#allocation9_spill] sm:$0xff] }
 0x1fd   : > { %3775 = vst [vmem:[%s7282_s17 + $0x60] sm:$0xff] %v3743_v32  ;;  %v3845_v10 = vmul.f32 %v3743_v32, %v3743_v32  ;;  %v3746_v63 = vadd.f32 %v5259_v4, %v3360_v57  ;;  %v3359_v9 = vadd.f32 %v3256_v39, %v2925_v12  ;;  %v2611_v22 = vadd.f32 %v7636_v47, %v7635_v58  ;;  %v7638_v39 = vld [vmem:[#allocation5_spill] sm:$0xff]  ;;  %v7651_v58 = vld [vmem:[#allocation34_spill] sm:$0xff] }
 0x1fe   : > { %v3806_v30 = vadd.f32 %v3805_v26, %v3743_v32  ;;  %v3875_v27 = vadd.f32 %v3874_v8, %v3844_v42  ;;  %v3642_v56 = vpop.f32.mrf.mxu0  ;;  %v5182_v17 = vpop.f32.mrf.mxu1  ;;  %v7637_v26 = vld [vmem:[#allocation32_spill] sm:$0xff]  ;;  %v2610_v6 = vadd.f32 %v7639_v1, %v7638_v39  ;;  %v7654_v39 = vld [vmem:[#allocation23_spill] sm:$0xff] }
 0x1ff   : > { %3778 = vst [vmem:[%s7282_s17 + $0x78] sm:$0xff] %v3746_v63  ;;  %v3745_v62 = vadd.f32 %v3642_v56, %v3359_v9  ;;  %v3362_v36 = vadd.f32 %v5182_v17, %v2928_v19  ;;  %v3848_v53 = vmul.f32 %v3746_v63, %v3746_v63  ;;  %v2931_v4 = vadd.f32 %v7637_v26, %v2608_v52  ;;  %v7641_v9 = vld [vmem:[#allocation30_spill] sm:$0xff] }
 0x200   : > { %v3876_v14 = vadd.f32 %v3875_v27, %v3845_v10  ;;  %v3807_v43 = vadd.f32 %v3806_v30, %v3744_v0  ;;  %v5262_v16 = vpop.f32.mrf.mxu0  ;;  %v3266_v20 = vpop.f32.mrf.mxu1  ;;  %v2934_v33 = vadd.f32 %v7642_v45, %v2611_v22 }
 0x201   : > { %3777 = vst [vmem:[%s7282_s17 + $0x70] sm:$0xff] %v3745_v62  ;;  %v3847_v5 = vmul.f32 %v3745_v62, %v3745_v62  ;;  %v3748_v31 = vadd.f32 %v5262_v16, %v3362_v36  ;;  %v3361_v48 = vadd.f32 %v3266_v20, %v2927_v35  ;;  %v7644_v16 = vld [vmem:[#allocation15_spill] sm:$0xff] }
 0x202   : > { %v3808_v40 = vadd.f32 %v3807_v43, %v3745_v62  ;;  %v3877_v37 = vadd.f32 %v3876_v14, %v3846_v18  ;;  %v3652_v25 = vpop.f32.mrf.mxu0  ;;  %v5185_v46 = vpop.f32.mrf.mxu1  ;;  %v7643_v14 = vld [vmem:[#allocation41_spill] sm:$0xff]  ;;  %v7645_v20 = vld [vmem:[#allocation31_spill] sm:$0xff] }
 0x203   : > { %3780 = vst [vmem:[%s7282_s17 + $0x88] sm:$0xff] %v3748_v31  ;;  %v3747_v44 = vadd.f32 %v3652_v25, %v3361_v48  ;;  %v3364_v60 = vadd.f32 %v5185_v46, %v2930_v2  ;;  %v3850_v27 = vmul.f32 %v3748_v31, %v3748_v31  ;;  %v2933_v43 = vadd.f32 %v7643_v14, %v2610_v6 }
 0x204   : > { %v3878_v41 = vadd.f32 %v3877_v37, %v3847_v5  ;;  %v3809_v0 = vadd.f32 %v3808_v40, %v3746_v63  ;;  %v5265_v49 = vpop.f32.mrf.mxu0  ;;  %v3276_v28 = vpop.f32.mrf.mxu1  ;;  %v7640_v63 = vld [vmem:[#allocation7_spill] sm:$0xff]  ;;  %v2612_v51 = vadd.f32 %v7645_v20, %v7644_v16 }
 0x205   : > { %3779 = vst [vmem:[%s7282_s17 + $0x80] sm:$0xff] %v3747_v44  ;;  %v3849_v12 = vmul.f32 %v3747_v44, %v3747_v44  ;;  %v3750_v59 = vadd.f32 %v5265_v49, %v3364_v60  ;;  %v3363_v32 = vadd.f32 %v3276_v28, %v2929_v15  ;;  %v2613_v30 = vadd.f32 %v7641_v9, %v7640_v63  ;;  %v7647_v15 = vld [vmem:[#allocation12_spill] sm:$0xff] }
 0x206   : > { %v3810_v57 = vadd.f32 %v3809_v0, %v3747_v44  ;;  %v3879_v19 = vadd.f32 %v3878_v41, %v3848_v53  ;;  %v3662_v42 = vpop.f32.mrf.mxu0  ;;  %v5188_v8 = vpop.f32.mrf.mxu1  ;;  %v2615_v50 = vadd.f32 %v7648_v3, %v7647_v15  ;;  %v7649_v0 = vld [vmem:[#allocation22_spill] sm:$0xff]  ;;  %v7650_v28 = vld [vmem:[#allocation8_spill] sm:$0xff] }
 0x207   : > { %3782 = vst [vmem:[%s7282_s17 + $0x98] sm:$0xff] %v3750_v59  ;;  %v3749_v34 = vadd.f32 %v3662_v42, %v3363_v32  ;;  %v3366_v10 = vadd.f32 %v5188_v8, %v2932_v21  ;;  %v3852_v40 = vmul.f32 %v3750_v59, %v3750_v59  ;;  %v2935_v49 = vadd.f32 %v7649_v0, %v2612_v51  ;;  %v7653_v32 = vld [vmem:[#allocation38_spill] sm:$0xff] }
 0x208   : > { %v3880_v56 = vadd.f32 %v3879_v19, %v3849_v12  ;;  %v3811_v17 = vadd.f32 %v3810_v57, %v3748_v31  ;;  %v5268_v55 = vpop.f32.mrf.mxu0  ;;  %v3286_v35 = vpop.f32.mrf.mxu1  ;;  %v7646_v31 = vld [vmem:[#allocation35_spill] sm:$0xff]  ;;  %v2614_v47 = vadd.f32 %v7651_v58, %v7650_v28  ;;  %v2938_v1 = vadd.f32 %v7654_v39, %v2615_v50  ;;  %v7662_v28 = vld [vmem:[#allocation42_spill] sm:$0xff] }
 0x209   : > { %3781 = vst [vmem:[%s7282_s17 + $0x90] sm:$0xff] %v3749_v34  ;;  %v3851_v23 = vmul.f32 %v3749_v34, %v3749_v34  ;;  %v3752_v62 = vadd.f32 %v5268_v55, %v3366_v10  ;;  %v3365_v36 = vadd.f32 %v3286_v35, %v2931_v4  ;;  %v2936_v48 = vadd.f32 %v7646_v31, %v2613_v30  ;;  %v7656_v55 = vld [vmem:[#allocation10_spill] sm:$0xff]  ;;  %v7657_v35 = vld [vmem:[#allocation39_spill] sm:$0xff] }
 0x20a   : > { %v3812_v13 = vadd.f32 %v3811_v17, %v3749_v34  ;;  %v3881_v29 = vadd.f32 %v3880_v56, %v3850_v27  ;;  %v3672_v38 = vpop.f32.mrf.mxu0  ;;  %v5191_v18 = vpop.f32.mrf.mxu1  ;;  %v7655_v56 = vld [vmem:[#allocation36_spill] sm:$0xff]  ;;  %v2616_v45 = vadd.f32 %v7657_v35, %v7656_v55 }
 0x20b   : > { %3784 = vst [vmem:[%s7282_s17 + $0xa8] sm:$0xff] %v3752_v62  ;;  %v3751_v2 = vadd.f32 %v3672_v38, %v3365_v36  ;;  %v3368_v5 = vadd.f32 %v5191_v18, %v2934_v33  ;;  %v3854_v19 = vmul.f32 %v3752_v62, %v3752_v62  ;;  %v2937_v17 = vadd.f32 %v7655_v56, %v2614_v47 }
 0x20c   : > { %v3882_v37 = vadd.f32 %v3881_v29, %v3851_v23  ;;  %v3813_v25 = vadd.f32 %v3812_v13, %v3750_v59  ;;  %v5271_v46 = vpop.f32.mrf.mxu0  ;;  %v3296_v54 = vpop.f32.mrf.mxu1  ;;  %v7652_v59 = vld [vmem:[#allocation25_spill] sm:$0xff] }
 0x20d   : > { %3783 = vst [vmem:[%s7282_s17 + $0xa0] sm:$0xff] %v3751_v2  ;;  %v3853_v52 = vmul.f32 %v3751_v2, %v3751_v2  ;;  %v3754_v44 = vadd.f32 %v5271_v46, %v3368_v5  ;;  %v3367_v60 = vadd.f32 %v3296_v54, %v2933_v43  ;;  %v2617_v57 = vadd.f32 %v7653_v32, %v7652_v59  ;;  %v7659_v43 = vld [vmem:[#allocation17_spill] sm:$0xff] }
 0x20e   : > { %v3814_v61 = vadd.f32 %v3813_v25, %v3751_v2  ;;  %v3883_v21 = vadd.f32 %v3882_v37, %v3852_v40  ;;  %v3682_v53 = vpop.f32.mrf.mxu0  ;;  %v5194_v41 = vpop.f32.mrf.mxu1  ;;  %v2619_v16 = vadd.f32 %v7261_v11, %v7659_v43  ;;  %v2939_v37 = vadd.f32 %v7259_v24, %v2616_v45  ;;  %v7660_v25 = vld [vmem:[#allocation16_spill] sm:$0xff] }
 0x20f   : > { %3786 = vst [vmem:[%s7282_s17 + $0xb8] sm:$0xff] %v3754_v44  ;;  %v3753_v22 = vadd.f32 %v3682_v53, %v3367_v60  ;;  %v3370_v12 = vadd.f32 %v5194_v41, %v2936_v48  ;;  %v3856_v13 = vmul.f32 %v3754_v44, %v3754_v44  ;;  %v2618_v46 = vadd.f32 %v7266_v7, %v7660_v25  ;;  %v7661_v60 = vld [vmem:[#allocation40_spill] sm:$0xff] }
 0x210   : > { %v3884_v42 = vadd.f32 %v3883_v21, %v3853_v52  ;;  %v3815_v8 = vadd.f32 %v3814_v61, %v3752_v62  ;;  %v5274_v26 = vpop.f32.mrf.mxu0  ;;  %v3306_v4 = vpop.f32.mrf.mxu1  ;;  %v7658_v62 = vld [vmem:[#allocation37_spill] sm:$0xff]  ;;  %v2942_v61 = vadd.f32 %v7661_v60, %v2619_v16 }
 0x211   : > { %3785 = vst [vmem:[%s7282_s17 + $0xb0] sm:$0xff] %v3753_v22  ;;  %v3855_v6 = vmul.f32 %v3753_v22, %v3753_v22  ;;  %v3756_v34 = vadd.f32 %v5274_v26, %v3370_v12  ;;  %v3369_v10 = vadd.f32 %v3306_v4, %v2935_v49  ;;  %v2940_v36 = vadd.f32 %v7658_v62, %v2617_v57 }
 0x212   : > { %v3816_v63 = vadd.f32 %v3815_v8, %v3753_v22  ;;  %v3885_v9 = vadd.f32 %v3884_v42, %v3854_v19  ;;  %v3692_v30 = vpop.f32.mrf.mxu0  ;;  %v5197_v27 = vpop.f32.mrf.mxu1  ;;  %v2941_v58 = vadd.f32 %v7662_v28, %v2618_v46 }
 0x213   : > { %3788 = vst [vmem:[%s7282_s17 + $0xc8] sm:$0xff] %v3756_v34  ;;  %v3755_v33 = vadd.f32 %v3692_v30, %v3369_v10  ;;  %v3372_v23 = vadd.f32 %v5197_v27, %v2938_v1  ;;  %v3858_v3 = vmul.f32 %v3756_v34, %v3756_v34 }
 0x214   : > { %v3886_v29 = vadd.f32 %v3885_v9, %v3855_v6  ;;  %v3817_v38 = vadd.f32 %v3816_v63, %v3754_v44  ;;  %v5277_v18 = vpop.f32.mrf.mxu0  ;;  %v3316_v14 = vpop.f32.mrf.mxu1 }
 0x215   : > { %3787 = vst [vmem:[%s7282_s17 + $0xc0] sm:$0xff] %v3755_v33  ;;  %v3857_v20 = vmul.f32 %v3755_v33, %v3755_v33  ;;  %v3758_v51 = vadd.f32 %v5277_v18, %v3372_v23  ;;  %v3371_v2 = vadd.f32 %v3316_v14, %v2937_v17 }
 0x216   : > { %v3818_v5 = vadd.f32 %v3817_v38, %v3755_v33  ;;  %v3887_v31 = vadd.f32 %v3886_v29, %v3856_v13  ;;  %v3702_v48 = vpop.f32.mrf.mxu0  ;;  %v5200_v40 = vpop.f32.mrf.mxu1 }
 0x217   : > { %3790 = vst [vmem:[%s7282_s17 + $0xd8] sm:$0xff] %v3758_v51  ;;  %v3757_v54 = vadd.f32 %v3702_v48, %v3371_v2  ;;  %v3374_v15 = vadd.f32 %v5200_v40, %v2940_v36  ;;  %v3860_v12 = vmul.f32 %v3758_v51, %v3758_v51 }
 0x218   : > { %v3888_v11 = vadd.f32 %v3887_v31, %v3857_v20  ;;  %v3819_v50 = vadd.f32 %v3818_v5, %v3756_v34  ;;  %v5280_v52 = vpop.f32.mrf.mxu0  ;;  %v3326_v44 = vpop.f32.mrf.mxu1 }
 0x219   : > { %3789 = vst [vmem:[%s7282_s17 + $0xd0] sm:$0xff] %v3757_v54  ;;  %v3859_v21 = vmul.f32 %v3757_v54, %v3757_v54  ;;  %v3760_v53 = vadd.f32 %v5280_v52, %v3374_v15  ;;  %v3373_v41 = vadd.f32 %v3326_v44, %v2939_v37 }
 0x21a   : > { %v3820_v24 = vadd.f32 %v3819_v50, %v3757_v54  ;;  %v3889_v0 = vadd.f32 %v3888_v11, %v3858_v3  ;;  %v3712_v49 = vpop.f32.mrf.mxu0  ;;  %v5203_v7 = vpop.f32.mrf.mxu1 }
 0x21b   : > { %3792 = vst [vmem:[%s7282_s17 + $0xe8] sm:$0xff] %v3760_v53  ;;  %v3759_v47 = vadd.f32 %v3712_v49, %v3373_v41  ;;  %v3376_v22 = vadd.f32 %v5203_v7, %v2942_v61  ;;  %v3862_v34 = vmul.f32 %v3760_v53, %v3760_v53 }
 0x21c   : > { %v3890_v59 = vadd.f32 %v3889_v0, %v3859_v21  ;;  %v3821_v32 = vadd.f32 %v3820_v24, %v3758_v51  ;;  %v5283_v57 = vpop.f32.mrf.mxu0  ;;  %v3336_v19 = vpop.f32.mrf.mxu1 }
 0x21d   : > { %3791 = vst [vmem:[%s7282_s17 + $0xe0] sm:$0xff] %v3759_v47  ;;  %v3861_v42 = vmul.f32 %v3759_v47, %v3759_v47  ;;  %v3762_v8 = vadd.f32 %v5283_v57, %v3376_v22  ;;  %v3375_v26 = vadd.f32 %v3336_v19, %v2941_v58 }
 0x21e   : > { %v3822_v4 = vadd.f32 %v3821_v32, %v3759_v47  ;;  %v3891_v39 = vadd.f32 %v3890_v59, %v3860_v12  ;;  %v3722_v1 = vpop.f32.mrf.mxu0 }
 0x21f   : > { %3794 = vst [vmem:[%s7282_s17 + $0xf8] sm:$0xff] %v3762_v8  ;;  %v3761_v6 = vadd.f32 %v3722_v1, %v3375_v26  ;;  %v3864_v56 = vmul.f32 %v3762_v8, %v3762_v8 }
 0x220   : > { %v3892_v10 = vadd.f32 %v3891_v39, %v3861_v42  ;;  %v3823_v63 = vadd.f32 %v3822_v4, %v3760_v53 }
 0x221   : > { %3793 = vst [vmem:[%s7282_s17 + $0xf0] sm:$0xff] %v3761_v6  ;;  %v3863_v9 = vmul.f32 %v3761_v6, %v3761_v6 }
 0x222   : > { %v3824_v30 = vadd.f32 %v3823_v63, %v3761_v6  ;;  %v3893_v27 = vadd.f32 %v3892_v10, %v3862_v34 }
 0x224   : > { %v3825_v17 = vadd.f32 %v3824_v30, %v3762_v8  ;;  %v3894_v55 = vadd.f32 %v3893_v27, %v3863_v9 }
 0x226   : > { %v3826_v35 = vrot.slane %v3825_v17, 4  ;;  %v3895_v45 = vadd.f32 %v3894_v55, %v3864_v56 }
 0x228   : > { %v3827_v33 = vadd.f32 %v3826_v35, %v3825_v17  ;;  %v3896_v23 = vrot.slane %v3895_v45, 4 }
 0x22a   : > { %v3828_v62 = vrot.slane %v3827_v33, 2  ;;  %v3897_v36 = vadd.f32 %v3896_v23, %v3895_v45 }
 0x22c   : > { %v3829_v13 = vadd.f32 %v3828_v62, %v3827_v33  ;;  %v3898_v29 = vrot.slane %v3897_v36, 2 }
 0x22e   : > { %v3830_v38 = vrot.slane %v3829_v13, 1  ;;  %v3899_v18 = vadd.f32 %v3898_v29, %v3897_v36 }
 0x230   : > { %v3831_v14 = vadd.f32 %v3830_v38, %v3829_v13  ;;  %v3900_v43 = vrot.slane %v3899_v18, 1 }
 0x232   : > { %3832 = vst [vmem:[%s208_s20] sm:$0x1] %v3831_v14  ;;  %v3901_v16 = vadd.f32 %v3900_v43, %v3899_v18 }
 0x234   : > { %3902 = vst [vmem:[%s208_s20 + $0x1] sm:$0x1] %v3901_v16 }
 0x235 PF: > { %s15_s15 = sadd.s32 1, %s5333_s15  }
 0x236   : > { %p12_p4 = scmp.ge.s32.totalorder %s15_s15, 4  }
 0x238   :  { %14 = sbr.rel (!%p12_p4) target bundleno = 1 (0x1), region = 84 }

</bundles_post_ra>
